<compile_context>
chip_gen: v5e
topology: v5e:2x2
jax: 0.10.0
libtpu: 0.0.40
codegen_flags: <defaults>
</compile_context>

<pallas_src>
import functools

import jax
import jax.numpy as jnp
from jax.experimental import pallas as pl
from jax.experimental.pallas import tpu as pltpu

# Small, deterministic stand-ins for the config constants (CFG.hidden=384, layers=3,
# forecast_steps=432, TOTAL_FEATURES) scaled down for a quick run.
B, T = 2, 8
IN_FEATURES = 12        # stand-in for TOTAL_FEATURES
HIDDEN = 32             # CFG.hidden
LAYERS = 3              # CFG.layers
FORECAST = 24           # CFG.forecast_steps
LN_EPS = 1e-5
INV_SQRT2 = 0.7071067811865476

LANE = 128
SUBLANE_BF16 = 16       # bf16 packs 2 rows/sublane -> keep batch a multiple of 16


def _round_up(v, m):
    return (v + m - 1) // m * m


HP = _round_up(HIDDEN, LANE)        # padded hidden (lane-aligned gate blocks)
D2P = 2 * HP                        # padded bidirectional hidden
DP0 = _round_up(IN_FEATURES, LANE)  # padded input features
FP = _round_up(FORECAST, LANE)      # padded forecast length
BP = _round_up(B, SUBLANE_BF16)     # padded batch (bf16-tile aligned sublanes)
D2_REAL = 2 * HIDDEN                # real LayerNorm width


def _auto_gru_chunk(t, bp, dp, hp, budget=40 * 1024 * 1024):
    """Largest divisor of t whose per-chunk working set fits the VMEM budget."""
    g3 = 3 * hp
    best = 1
    for tc in range(1, t + 1):
        if t % tc:
            continue
        per = (2 * tc * bp * dp * 2      # x chunk, double-buffered, bf16
               + 2 * tc * bp * hp * 2    # out chunk, double-buffered, bf16
               + tc * bp * g3 * 2        # gi scratch, bf16
               + tc * bp * g3 * 4)       # f32 projection temp before the bf16 store
        if per <= budget:
            best = tc
    return best


def _auto_pool_chunk(t, bp, d2p, budget=40 * 1024 * 1024):
    best = 1
    for tc in range(1, t + 1):
        if t % tc:
            continue
        per = 2 * tc * bp * d2p * 2 + tc * bp * d2p * 4   # dbl-buf bf16 chunk + f32 upcast
        if per <= budget:
            best = tc
    return best


# ----------------------------------------------------------------------------
# Kernel 1: one bidirectional GRU layer.  Grid = (2, num_chunks):
#   axis 0 = direction ("parallel" -> v7x megacore), axis 1 = time chunk ("arbitrary").
#   - per-chunk hoisted input projection (one bf16 MXU matmul) into a bf16 scratch
#   - hidden state carried across chunks in a f32 VMEM scratch
#   - backward direction gets chunk nc-1-c from the index_map and reverses time in-chunk
# ----------------------------------------------------------------------------
def gru_layer_kernel(x_ref, wih_ref, whh_ref, bih_ref, bhh_ref, out_ref, gi_ref, h_ref):
    # x_ref:   (Tc, BP, DP)   bf16  this direction's time chunk
    # wih_ref: (DP, 3*HP)     bf16  input weights (transposed)
    # whh_ref: (HP, 3*HP)     bf16  hidden weights (transposed)
    # bih_ref / bhh_ref: (1, 3*HP) f32
    # out_ref: (Tc, BP, HP)   bf16  this direction's half of the layer output (this chunk)
    # gi_ref:  (Tc, BP, 3*HP) bf16  scratch: hoisted input projection for the chunk
    # h_ref:   (BP, HP)       f32   scratch: hidden state carried across chunks
    d = pl.program_id(0)                       # 0 = forward, 1 = backward
    c = pl.program_id(1)
    tc, bp, dp = x_ref.shape
    hp = whh_ref.shape[0]

    @pl.when(c == 0)
    def _():
        h_ref[...] = jnp.zeros(h_ref.shape, jnp.float32)

    # Hoisted input projection for this chunk: one (Tc*BP, DP) x (DP, 3HP) bf16 MXU matmul.
    gi = jnp.dot(x_ref[...].reshape(tc * bp, dp), wih_ref[...],
                 preferred_element_type=jnp.float32)
    gi_ref[...] = (gi.reshape(tc, bp, 3 * hp) + bih_ref[...]).astype(jnp.bfloat16)

    whh = whh_ref[...]                         # bf16, loop-invariant
    bhh = bhh_ref[...]                         # f32

    def step(t, h):
        # forward walks t ascending within the chunk; backward walks it descending
        tt = d * (tc - 1) + (1 - 2 * d) * t
        gi_t = gi_ref[tt].astype(jnp.float32)                               # (BP, 3HP)
        gh = jnp.dot(h.astype(jnp.bfloat16), whh,
                     preferred_element_type=jnp.float32) + bhh              # (BP, 3HP)
        r = jax.nn.sigmoid(gi_t[:, 0:hp] + gh[:, 0:hp])
        z = jax.nn.sigmoid(gi_t[:, hp:2 * hp] + gh[:, hp:2 * hp])
        n = jnp.tanh(gi_t[:, 2 * hp:3 * hp] + r * gh[:, 2 * hp:3 * hp])
        h_new = (1.0 - z) * n + z * h
        out_ref[tt] = h_new.astype(out_ref.dtype)
        return h_new

    # NOTE: h stays f32 across the recurrence; only the MXU inputs / layer output are bf16.
    h_final = jax.lax.fori_loop(0, tc, step, h_ref[...], unroll=4)
    h_ref[...] = h_final


def run_gru_layer(seq, wih, whh, bih, bhh, *, tc=None):
    # seq: (T, BP, DP) bf16; wih: (2, DP, 3HP) bf16; whh: (2, HP, 3HP) bf16;
    # bih/bhh: (2, 1, 3HP) f32  ->  (T, BP, 2*HP) bf16
    t_, bp_, dp_ = seq.shape
    hp_ = whh.shape[1]
    g3 = 3 * hp_
    if tc is None:
        tc = _auto_gru_chunk(t_, bp_, dp_, hp_)
    assert t_ % tc == 0, (t_, tc)
    nc = t_ // tc

    def x_map(d, c):
        # forward direction reads chunk c, backward reads chunk nc-1-c
        return (d * (nc - 1) + (1 - 2 * d) * c, 0, 0)

    def out_map(d, c):
        return (d * (nc - 1) + (1 - 2 * d) * c, 0, d)

    # VMEM sizing from the chunk working set; 56 MiB ceiling leaves headroom on v7x
    # (64 MiB/TC).  v5e/v6e (128 MiB) can raise the chunk budget / ceiling further.
    x_blk = tc * bp_ * dp_ * 2
    out_blk = tc * bp_ * hp_ * 2
    w_blk = (dp_ * g3 + hp_ * g3) * 2 + 2 * g3 * 4
    scratch = tc * bp_ * g3 * 2 + bp_ * hp_ * 4
    tmp = tc * bp_ * g3 * 4
    need = 2 * (x_blk + out_blk + w_blk) + scratch + tmp
    vmem_limit = int(min(56 * 1024 * 1024, max(2 * need, 8 * 1024 * 1024)))

    flops = 2 * (2 * t_ * bp_ * dp_ * g3 + 2 * t_ * bp_ * hp_ * g3 + 12 * t_ * bp_ * hp_)
    trans = 2 * 3 * t_ * bp_ * hp_
    bytes_acc = (seq.size * 2 + wih.size * 2 + whh.size * 2 +
                 (bih.size + bhh.size) * 4 + t_ * bp_ * 2 * hp_ * 2)

    return pl.pallas_call(
        gru_layer_kernel,
        out_shape=jax.ShapeDtypeStruct((t_, bp_, 2 * hp_), jnp.bfloat16),
        grid_spec=pltpu.PrefetchScalarGridSpec(
            num_scalar_prefetch=0,
            grid=(2, nc),
            in_specs=[
                pl.BlockSpec((tc, bp_, dp_), x_map),                      # x chunk
                pl.BlockSpec((None, dp_, g3), lambda d, c: (d, 0, 0)),    # wih[d]
                pl.BlockSpec((None, hp_, g3), lambda d, c: (d, 0, 0)),    # whh[d]
                pl.BlockSpec((None, 1, g3), lambda d, c: (d, 0, 0)),      # bih[d]
                pl.BlockSpec((None, 1, g3), lambda d, c: (d, 0, 0)),      # bhh[d]
            ],
            out_specs=pl.BlockSpec((tc, bp_, hp_), out_map),
            scratch_shapes=[pltpu.VMEM((tc, bp_, g3), jnp.bfloat16),      # gi (proj chunk)
                            pltpu.VMEM((bp_, hp_), jnp.float32)],         # carried hidden h
        ),
        compiler_params=pltpu.CompilerParams(
            dimension_semantics=("parallel", "arbitrary"),
            vmem_limit_bytes=vmem_limit,
        ),
        cost_estimate=pl.CostEstimate(
            flops=int(flops), transcendentals=int(trans), bytes_accessed=int(bytes_acc)),
    )(seq, wih, whh, bih, bhh)


# ----------------------------------------------------------------------------
# Kernel 2: fused AttentionPool + head, T-chunked with an online softmax.
#   Grid = (num_chunks,) ("arbitrary"); running max / sum / weighted accumulator live in
#   VMEM scratch; LayerNorm -> Linear -> GELU(erf) -> Linear finalized on the last chunk.
# ----------------------------------------------------------------------------
def pool_head_kernel(seq_ref, aw_ref, ab_ref, lnw_ref, lnb_ref,
                     w1_ref, b1_ref, w2_ref, b2_ref, out_ref,
                     m_ref, l_ref, acc_ref):
    # seq_ref: (Tc, BP, D2P) bf16 ; aw/lnw/lnb: (1, D2P) f32 ; ab: (1,1) f32
    # w1: (D2P, HP) bf16 ; b1: (1, HP) f32 ; w2: (HP, FP) bf16 ; b2: (1, FP) f32
    # scratch: m/l (1, BP, 1) f32, acc (1, BP, D2P) f32
    c = pl.program_id(0)

    @pl.when(c == 0)
    def _():
        m_ref[...] = jnp.full(m_ref.shape, -jnp.inf, jnp.float32)
        l_ref[...] = jnp.zeros(l_ref.shape, jnp.float32)
        acc_ref[...] = jnp.zeros(acc_ref.shape, jnp.float32)

    seq = seq_ref[...].astype(jnp.float32)                         # (Tc, BP, D2P)
    w = aw_ref[...].reshape(1, 1, seq.shape[-1])
    # TODO(synk): at production T a fully lane-dense (BP, Tc) score layout (XLU transpose)
    # would shrink the exp/max vreg count further; kept the broadcast-friendly orientation.
    s = jnp.sum(seq * w, axis=-1, keepdims=True) + ab_ref[0, 0]    # (Tc, BP, 1)

    m_old = m_ref[...]                                             # (1, BP, 1)
    m_new = jnp.maximum(m_old, jnp.max(s, axis=0, keepdims=True))
    alpha = jnp.exp(m_old - m_new)
    p = jnp.exp(s - m_new)                                         # (Tc, BP, 1)
    l_ref[...] = alpha * l_ref[...] + jnp.sum(p, axis=0, keepdims=True)
    acc_ref[...] = alpha * acc_ref[...] + jnp.sum(p * seq, axis=0, keepdims=True)
    m_ref[...] = m_new

    @pl.when(c == pl.num_programs(0) - 1)
    def _():
        z = acc_ref[0] * pl.reciprocal(l_ref[0], approx=True)      # (BP, D2P)
        # LayerNorm over the REAL 2*HIDDEN features (padded columns of z are exactly zero);
        # masked two-pass variance avoids the E[x^2]-E[x]^2 cancellation.
        d2p = z.shape[-1]
        col = jax.lax.broadcasted_iota(jnp.int32, (1, d2p), 1)
        valid = jnp.logical_or(col < HIDDEN,
                               jnp.logical_and(col >= HP, col < HP + HIDDEN))
        inv_n = 1.0 / float(D2_REAL)
        mu = jnp.sum(z, axis=-1, keepdims=True) * inv_n
        zc = jnp.where(valid, z - mu, 0.0)
        var = jnp.sum(zc * zc, axis=-1, keepdims=True) * inv_n
        zn = zc * jax.lax.rsqrt(var + LN_EPS)
        zn = zn * lnw_ref[...] + lnb_ref[...]
        h1 = jnp.dot(zn.astype(jnp.bfloat16), w1_ref[...],
                     preferred_element_type=jnp.float32) + b1_ref[...]
        g = 0.5 * h1 * (1.0 + jax.lax.erf(h1 * INV_SQRT2))         # exact GELU
        out_ref[...] = jnp.dot(g.astype(jnp.bfloat16), w2_ref[...],
                               preferred_element_type=jnp.float32) + b2_ref[...]


def run_pool_head(seq, attn_w, attn_b, ln_w, ln_b, w1, b1, w2, b2, *, tc=None):
    t_, bp_, d2p = seq.shape
    hp_ = w1.shape[1]
    fp_ = w2.shape[1]
    if tc is None:
        tc = _auto_pool_chunk(t_, bp_, d2p)
    assert t_ % tc == 0, (t_, tc)
    nc = t_ // tc

    seq_blk = tc * bp_ * d2p * 2
    w_bytes = (d2p * hp_ + hp_ * fp_) * 2 + (4 * d2p + 1 + hp_ + fp_) * 4
    scratch = bp_ * (d2p + 2) * 4
    need = 2 * (seq_blk + w_bytes) + seq_blk * 2 + scratch + bp_ * fp_ * 4
    vmem_limit = int(min(56 * 1024 * 1024, max(2 * need, 8 * 1024 * 1024)))

    return pl.pallas_call(
        pool_head_kernel,
        out_shape=jax.ShapeDtypeStruct((bp_, fp_), jnp.float32),
        grid_spec=pltpu.PrefetchScalarGridSpec(
            num_scalar_prefetch=0,
            grid=(nc,),
            in_specs=[
                pl.BlockSpec((tc, bp_, d2p), lambda c: (c, 0, 0)),   # seq chunk
                pl.BlockSpec((1, d2p), lambda c: (0, 0)),            # attn_w
                pl.BlockSpec((1, 1), lambda c: (0, 0)),              # attn_b
                pl.BlockSpec((1, d2p), lambda c: (0, 0)),            # ln_w
                pl.BlockSpec((1, d2p), lambda c: (0, 0)),            # ln_b
                pl.BlockSpec((d2p, hp_), lambda c: (0, 0)),          # w1
                pl.BlockSpec((1, hp_), lambda c: (0, 0)),            # b1
                pl.BlockSpec((hp_, fp_), lambda c: (0, 0)),          # w2
                pl.BlockSpec((1, fp_), lambda c: (0, 0)),            # b2
            ],
            out_specs=pl.BlockSpec((bp_, fp_), lambda c: (0, 0)),    # lane-dense output
            scratch_shapes=[pltpu.VMEM((1, bp_, 1), jnp.float32),    # running max
                            pltpu.VMEM((1, bp_, 1), jnp.float32),    # running sum
                            pltpu.VMEM((1, bp_, d2p), jnp.float32)], # running weighted acc
        ),
        compiler_params=pltpu.CompilerParams(
            dimension_semantics=("arbitrary",),
            vmem_limit_bytes=vmem_limit,
        ),
    )(seq, attn_w, attn_b, ln_w, ln_b, w1, b1, w2, b2)


# ----------------------------------------------------------------------------
# Full forward (glue: pad once at entry, chain layer kernels, fused pool+head, slice).
# ----------------------------------------------------------------------------
def bigru_attn_forward(x, padded, *, gru_tc=None, pool_tc=None):
    # x: (B, T, IN_FEATURES) f32
    b_, _, f_ = x.shape
    seq = jnp.transpose(x, (1, 0, 2)).astype(jnp.float32)                 # (T, B, F)
    seq = jnp.pad(seq, ((0, 0), (0, BP - b_), (0, DP0 - f_)))             # (T, BP, DP0)
    seq = seq.astype(jnp.bfloat16)   # kernels feed bf16 to the MXU anyway
    for l in range(LAYERS):
        p = padded["gru"][l]
        seq = run_gru_layer(seq, p["wih"], p["whh"], p["bih"], p["bhh"], tc=gru_tc)
        # TODO(synk): inter-layer GRU dropout (p=0.3) omitted -- inference semantics.
    # TODO(synk): head nn.Dropout(p=0.3) omitted -- inference semantics.
    y = run_pool_head(seq, padded["attn_w"], padded["attn_b"],
                      padded["ln_w"], padded["ln_b"],
                      padded["w1"], padded["b1"], padded["w2"], padded["b2"],
                      tc=pool_tc)                                          # (BP, FP)
    return y[:b_, :FORECAST]


# ----------------------------------------------------------------------------
# Deterministic logical parameters (PyTorch layout, stored transposed) + padded packing.
# ----------------------------------------------------------------------------
def init_params(key):
    keys = iter(jax.random.split(key, 64))

    def unif(shape, bound):
        return jax.random.uniform(next(keys), shape, jnp.float32, -bound, bound)

    bound = 1.0 / float(HIDDEN) ** 0.5
    params = {"gru": []}
    for l in range(LAYERS):
        d_in = IN_FEATURES if l == 0 else 2 * HIDDEN
        layer = {}
        for tag in ("f", "b"):                    # forward / reverse directions
            layer[f"wih_{tag}"] = unif((d_in, 3 * HIDDEN), bound)    # = weight_ih_l{l}.T
            layer[f"whh_{tag}"] = unif((HIDDEN, 3 * HIDDEN), bound)  # = weight_hh_l{l}.T
            layer[f"bih_{tag}"] = unif((1, 3 * HIDDEN), bound)
            layer[f"bhh_{tag}"] = unif((1, 3 * HIDDEN), bound)
        params["gru"].append(layer)
    d2 = 2 * HIDDEN
    ab = 1.0 / float(d2) ** 0.5
    params["attn_w"] = unif((1, d2), ab)
    params["attn_b"] = unif((1, 1), ab)
    params["ln_w"] = jnp.ones((1, d2), jnp.float32)
    params["ln_b"] = jnp.zeros((1, d2), jnp.float32)
    params["w1"] = unif((d2, HIDDEN), ab)
    params["b1"] = unif((1, HIDDEN), ab)
    hb = 1.0 / float(HIDDEN) ** 0.5
    params["w2"] = unif((HIDDEN, FORECAST), hb)
    params["b2"] = unif((1, FORECAST), hb)
    return params


def _pad_gate_cols(w):
    # (rows, 3*HIDDEN) -> (rows, 3*HP): gate g occupies columns [g*HP, g*HP+HIDDEN)
    out = jnp.zeros((w.shape[0], 3 * HP), jnp.float32)
    for g in range(3):
        out = out.at[:, g * HP:g * HP + HIDDEN].set(w[:, g * HIDDEN:(g + 1) * HIDDEN])
    return out


def _pad_dir_rows(w):
    # rows laid out [forward HIDDEN | backward HIDDEN] -> D2P rows at [0,H) and [HP,HP+H)
    out = jnp.zeros((D2P, w.shape[1]), jnp.float32)
    out = out.at[0:HIDDEN, :].set(w[0:HIDDEN, :])
    out = out.at[HP:HP + HIDDEN, :].set(w[HIDDEN:2 * HIDDEN, :])
    return out


def _pad_dir_cols(w):
    out = jnp.zeros((w.shape[0], D2P), jnp.float32)
    out = out.at[:, 0:HIDDEN].set(w[:, 0:HIDDEN])
    out = out.at[:, HP:HP + HIDDEN].set(w[:, HIDDEN:2 * HIDDEN])
    return out


def _pad_rows_to(w, rows):
    return jnp.zeros((rows, w.shape[1]), jnp.float32).at[:w.shape[0], :].set(w)


def _pad_cols_to(w, cols):
    return jnp.zeros((w.shape[0], cols), jnp.float32).at[:, :w.shape[1]].set(w)


def pad_params(params):
    padded = {"gru": []}
    for l in range(LAYERS):
        p = params["gru"][l]
        wih_l, whh_l, bih_l, bhh_l = [], [], [], []
        for tag in ("f", "b"):
            wih = _pad_gate_cols(p[f"wih_{tag}"])
            wih = _pad_rows_to(wih, DP0) if l == 0 else _pad_dir_rows(wih)
            whh = _pad_rows_to(_pad_gate_cols(p[f"whh_{tag}"]), HP)
            wih_l.append(wih)
            whh_l.append(whh)
            bih_l.append(_pad_gate_cols(p[f"bih_{tag}"]))
            bhh_l.append(_pad_gate_cols(p[f"bhh_{tag}"]))
        padded["gru"].append({
            "wih": jnp.stack(wih_l).astype(jnp.bfloat16),    # (2, DP, 3*HP)
            "whh": jnp.stack(whh_l).astype(jnp.bfloat16),    # (2, HP, 3*HP)
            "bih": jnp.stack(bih_l),                         # (2, 1, 3*HP) f32
            "bhh": jnp.stack(bhh_l),                         # (2, 1, 3*HP) f32
        })
    padded["attn_w"] = _pad_dir_cols(params["attn_w"])                                 # (1, D2P)
    padded["attn_b"] = params["attn_b"]                                                # (1, 1)
    padded["ln_w"] = _pad_dir_cols(params["ln_w"])                                     # (1, D2P)
    padded["ln_b"] = _pad_dir_cols(params["ln_b"])                                     # (1, D2P)
    padded["w1"] = _pad_cols_to(_pad_dir_rows(params["w1"]), HP).astype(jnp.bfloat16)  # (D2P, HP)
    padded["b1"] = _pad_cols_to(params["b1"], HP)                                      # (1, HP)
    padded["w2"] = _pad_cols_to(_pad_rows_to(params["w2"], HP), FP).astype(jnp.bfloat16)  # (HP, FP)
    padded["b2"] = _pad_cols_to(params["b2"], FP)                                      # (1, FP)
    return padded


# ----------------------------------------------------------------------------
# Pure-JAX reference.  kernel_precision=True mirrors the kernel's precision choices
# (bf16 matmul inputs, bf16 gi, bf16 inter-layer activations) for a strict check;
# kernel_precision=False is the original full-precision PyTorch math.
# ----------------------------------------------------------------------------
def reference_forward(x, params, kernel_precision=False):
    mmdt = jnp.bfloat16 if kernel_precision else jnp.float32

    def mm(a, b):
        return jnp.dot(a.astype(mmdt), b.astype(mmdt), preferred_element_type=jnp.float32)

    def rnd(v):
        return v.astype(jnp.bfloat16).astype(jnp.float32) if kernel_precision else v

    seq = rnd(jnp.transpose(x, (1, 0, 2)).astype(jnp.float32))

    def run_dir(s, wih, whh, bih, bhh):
        def step(h, x_t):
            gi = rnd(mm(x_t, wih) + bih)
            gh = mm(h, whh) + bhh
            r = jax.nn.sigmoid(gi[:, :HIDDEN] + gh[:, :HIDDEN])
            z = jax.nn.sigmoid(gi[:, HIDDEN:2 * HIDDEN] + gh[:, HIDDEN:2 * HIDDEN])
            n = jnp.tanh(gi[:, 2 * HIDDEN:] + r * gh[:, 2 * HIDDEN:])
            h_new = (1.0 - z) * n + z * h
            return h_new, h_new
        _, out = jax.lax.scan(step, jnp.zeros((s.shape[1], HIDDEN), jnp.float32), s)
        return out

    for l in range(LAYERS):
        p = params["gru"][l]
        of = run_dir(seq, p["wih_f"], p["whh_f"], p["bih_f"], p["bhh_f"])
        ob = run_dir(seq[::-1], p["wih_b"], p["whh_b"], p["bih_b"], p["bhh_b"])[::-1]
        seq = rnd(jnp.concatenate([of, ob], axis=-1))
    h = jnp.transpose(seq, (1, 0, 2))
    s = jnp.sum(h * params["attn_w"].reshape(1, 1, -1), axis=-1, keepdims=True) + params["attn_b"][0, 0]
    w = jax.nn.softmax(s, axis=1)
    z = jnp.sum(w * h, axis=1)
    mu = jnp.mean(z, -1, keepdims=True)
    var = jnp.mean((z - mu) ** 2, -1, keepdims=True)
    zn = (z - mu) / jnp.sqrt(var + LN_EPS) * params["ln_w"] + params["ln_b"]
    h1 = mm(zn, params["w1"]) + params["b1"]
    g = 0.5 * h1 * (1.0 + jax.lax.erf(h1 * INV_SQRT2))
    return mm(g, params["w2"]) + params["b2"]


if __name__ == "__main__":
    key = jax.random.PRNGKey(0)
    kp, kx = jax.random.split(key)
    params = init_params(kp)
    padded = pad_params(params)
    x = jax.random.normal(kx, (B, T, IN_FEATURES), jnp.float32)

    fwd = jax.jit(bigru_attn_forward, static_argnames=("gru_tc", "pool_tc"))
    # Force small chunks (T=8 -> 2 chunks of 4) so the cross-chunk hidden-state carry and
    # the online-softmax carry are exercised; production would use the auto chunk choosers.
    y = jax.block_until_ready(fwd(x, padded, gru_tc=4, pool_tc=4))

    assert y.shape == (B, FORECAST), y.shape
    assert bool(jnp.all(jnp.isfinite(y)))

    # Strict check against a reference that mirrors the kernel's precision choices.
    # NOTE: re-validate tolerance at production T (~1440) before relying on bf16 gi/outputs.
    y_ref_k = reference_forward(x, params, kernel_precision=True)
    diff_k = float(jnp.max(jnp.abs(y - y_ref_k)))
    assert diff_k < 1e-2, diff_k

    # Sanity check against the original full-f32 math (only bf16 rounding differs).
    y_ref_f = reference_forward(x, params, kernel_precision=False)
    diff_f = float(jnp.max(jnp.abs(y - y_ref_f)))
    assert diff_f < 5e-2, diff_f

    print("KERNEL_OK")
</pallas_src>

<mosaic_0001>
module attributes {stable_mosaic.version = 11 : i64} {
  func.func @gru_layer_kernel(%arg0: i32, %arg1: i32, %arg2: memref<4x16x256xbf16, #tpu.memory_space<vmem>>, %arg3: memref<1x256x384xbf16, #tpu.memory_space<vmem>>, %arg4: memref<1x128x384xbf16, #tpu.memory_space<vmem>>, %arg5: memref<1x1x384xf32, #tpu.memory_space<vmem>>, %arg6: memref<1x1x384xf32, #tpu.memory_space<vmem>>, %arg7: memref<4x16x128xbf16, #tpu.memory_space<vmem>>, %arg8: memref<4x16x384xbf16, #tpu.memory_space<vmem>>, %arg9: memref<16x128xf32, #tpu.memory_space<vmem>>) attributes {dimension_semantics = [#tpu.dimension_semantics<parallel>, #tpu.dimension_semantics<arbitrary>], iteration_bounds = array<i64: 2, 2>, scalar_prefetch = 0 : i64, scratch_operands = 2 : i64, tpu.core_type = #tpu.core_type<tc>, window_params = [{transform_indices = @transform_0, window_bounds = array<i64: 4, 16, 256>}, {transform_indices = @transform_1, window_bounds = array<i64: 1, 256, 384>}, {transform_indices = @transform_2, window_bounds = array<i64: 1, 128, 384>}, {transform_indices = @transform_3, window_bounds = array<i64: 1, 1, 384>}, {transform_indices = @transform_4, window_bounds = array<i64: 1, 1, 384>}, {transform_indices = @transform_5, window_bounds = array<i64: 4, 16, 128>}]} {
    %c0_i32 = arith.constant 0 : i32
    %0 = arith.cmpi eq, %arg1, %c0_i32 : i32
    %1 = arith.extui %0 : i1 to i32
    %c0_i32_0 = arith.constant 0 : i32
    %2 = arith.cmpi ne, %1, %c0_i32_0 : i32
    scf.if %2 {
      %cst_67 = arith.constant 0.000000e+00 : f32
      %198 = vector.broadcast %cst_67 : f32 to vector<16x128xf32>
      %c0_68 = arith.constant 0 : index
      %c0_69 = arith.constant 0 : index
      %199 = vector.load %arg9[%c0_68, %c0_69] : memref<16x128xf32, #tpu.memory_space<vmem>>, vector<16x128xf32>
      tpu.vector_store %arg9[%c0_68, %c0_69], %198 {strides = array<i32>} : memref<16x128xf32, #tpu.memory_space<vmem>>, vector<16x128xf32>,
    } else {
    }
    %c0 = arith.constant 0 : index
    %c0_1 = arith.constant 0 : index
    %c0_2 = arith.constant 0 : index
    %3 = vector.load %arg2[%c0, %c0_1, %c0_2] : memref<4x16x256xbf16, #tpu.memory_space<vmem>>, vector<4x16x256xbf16>
    %4 = vector.shape_cast %3 : vector<4x16x256xbf16> to vector<64x256xbf16>
    %c0_3 = arith.constant 0 : index
    %c0_4 = arith.constant 0 : index
    %c0_5 = arith.constant 0 : index
    %5 = vector.load %arg3[%c0_3, %c0_4, %c0_5] : memref<1x256x384xbf16, #tpu.memory_space<vmem>>, vector<1x256x384xbf16>
    %6 = vector.shape_cast %5 : vector<1x256x384xbf16> to vector<256x384xbf16>
    %cst = arith.constant dense<0.000000e+00> : vector<64x384xf32>
    %7 = tpu.matmul %4, %6, %cst {dimension_numbers = #tpu.dot_dimension_numbers<[1], [0], [0], [1], [0, 0, 1, 1], [], []>} : vector<64x256xbf16>, vector<256x384xbf16>, vector<64x384xf32> -> vector<64x384xf32>
    %8 = vector.shape_cast %7 : vector<64x384xf32> to vector<4x16x384xf32>
    %c0_6 = arith.constant 0 : index
    %c0_7 = arith.constant 0 : index
    %c0_8 = arith.constant 0 : index
    %9 = vector.load %arg5[%c0_6, %c0_7, %c0_8] : memref<1x1x384xf32, #tpu.memory_space<vmem>>, vector<1x1x384xf32>
    %10 = vector.shape_cast %9 : vector<1x1x384xf32> to vector<1x384xf32>
    %11 = vector.shape_cast %10 : vector<1x384xf32> to vector<1x1x384xf32>
    %12 = vector.broadcast %11 : vector<1x1x384xf32> to vector<4x16x384xf32>
    %13 = arith.addf %8, %12 : vector<4x16x384xf32>
    %14 = arith.truncf %13 : vector<4x16x384xf32> to vector<4x16x384xbf16>
    %c0_9 = arith.constant 0 : index
    %c0_10 = arith.constant 0 : index
    %c0_11 = arith.constant 0 : index
    %15 = vector.load %arg8[%c0_9, %c0_10, %c0_11] : memref<4x16x384xbf16, #tpu.memory_space<vmem>>, vector<4x16x384xbf16>
    tpu.vector_store %arg8[%c0_9, %c0_10, %c0_11], %14 {strides = array<i32>} : memref<4x16x384xbf16, #tpu.memory_space<vmem>>, vector<4x16x384xbf16>,
    %c0_12 = arith.constant 0 : index
    %c0_13 = arith.constant 0 : index
    %c0_14 = arith.constant 0 : index
    %16 = vector.load %arg4[%c0_12, %c0_13, %c0_14] : memref<1x128x384xbf16, #tpu.memory_space<vmem>>, vector<1x128x384xbf16>
    %17 = vector.shape_cast %16 : vector<1x128x384xbf16> to vector<128x384xbf16>
    %c0_15 = arith.constant 0 : index
    %c0_16 = arith.constant 0 : index
    %c0_17 = arith.constant 0 : index
    %18 = vector.load %arg6[%c0_15, %c0_16, %c0_17] : memref<1x1x384xf32, #tpu.memory_space<vmem>>, vector<1x1x384xf32>
    %19 = vector.shape_cast %18 : vector<1x1x384xf32> to vector<1x384xf32>
    %c0_18 = arith.constant 0 : index
    %c0_19 = arith.constant 0 : index
    %20 = vector.load %arg9[%c0_18, %c0_19] : memref<16x128xf32, #tpu.memory_space<vmem>>, vector<16x128xf32>
    %c0_i32_20 = arith.constant 0 : i32
    %c3_i32 = arith.constant 3 : i32
    %21 = arith.muli %arg0, %c3_i32 : i32
    %c2_i32 = arith.constant 2 : i32
    %22 = arith.muli %c2_i32, %arg0 : i32
    %c1_i32 = arith.constant 1 : i32
    %23 = arith.subi %c1_i32, %22 : i32
    %24 = arith.muli %23, %c0_i32_20 : i32
    %25 = arith.addi %21, %24 : i32
    %26 = arith.index_cast %25 : i32 to index
    %c0_21 = arith.constant 0 : index
    %c0_22 = arith.constant 0 : index
    %27 = vector.load %arg8[%26, %c0_21, %c0_22] : memref<4x16x384xbf16, #tpu.memory_space<vmem>>, vector<1x16x384xbf16>
    %28 = vector.shape_cast %27 : vector<1x16x384xbf16> to vector<16x384xbf16>
    %29 = arith.extf %28 : vector<16x384xbf16> to vector<16x384xf32>
    %30 = arith.truncf %20 : vector<16x128xf32> to vector<16x128xbf16>
    %cst_23 = arith.constant dense<0.000000e+00> : vector<16x384xf32>
    %31 = tpu.matmul %30, %17, %cst_23 {dimension_numbers = #tpu.dot_dimension_numbers<[1], [0], [0], [1], [0, 0, 1, 1], [], []>} : vector<16x128xbf16>, vector<128x384xbf16>, vector<16x384xf32> -> vector<16x384xf32>
    %32 = vector.broadcast %19 : vector<1x384xf32> to vector<16x384xf32>
    %33 = arith.addf %31, %32 : vector<16x384xf32>
    %34 = vector.extract_strided_slice %29 {offsets = [0, 0], sizes = [16, 128], strides = [1, 1]} : vector<16x384xf32> to vector<16x128xf32>
    %35 = vector.extract_strided_slice %33 {offsets = [0, 0], sizes = [16, 128], strides = [1, 1]} : vector<16x384xf32> to vector<16x128xf32>
    %36 = arith.addf %34, %35 : vector<16x128xf32>
    %37 = arith.negf %36 : vector<16x128xf32>
    %38 = math.exp %37 : vector<16x128xf32>
    %cst_24 = arith.constant 1.000000e+00 : f32
    %39 = vector.broadcast %cst_24 : f32 to vector<16x128xf32>
    %40 = arith.addf %39, %38 : vector<16x128xf32>
    %41 = arith.divf %39, %40 : vector<16x128xf32>
    %42 = vector.extract_strided_slice %29 {offsets = [0, 128], sizes = [16, 128], strides = [1, 1]} : vector<16x384xf32> to vector<16x128xf32>
    %43 = vector.extract_strided_slice %33 {offsets = [0, 128], sizes = [16, 128], strides = [1, 1]} : vector<16x384xf32> to vector<16x128xf32>
    %44 = arith.addf %42, %43 : vector<16x128xf32>
    %45 = arith.negf %44 : vector<16x128xf32>
    %46 = math.exp %45 : vector<16x128xf32>
    %cst_25 = arith.constant 1.000000e+00 : f32
    %47 = vector.broadcast %cst_25 : f32 to vector<16x128xf32>
    %48 = arith.addf %47, %46 : vector<16x128xf32>
    %49 = arith.divf %47, %48 : vector<16x128xf32>
    %50 = vector.extract_strided_slice %29 {offsets = [0, 256], sizes = [16, 128], strides = [1, 1]} : vector<16x384xf32> to vector<16x128xf32>
    %51 = vector.extract_strided_slice %33 {offsets = [0, 256], sizes = [16, 128], strides = [1, 1]} : vector<16x384xf32> to vector<16x128xf32>
    %52 = arith.mulf %41, %51 : vector<16x128xf32>
    %53 = arith.addf %50, %52 : vector<16x128xf32>
    %54 = math.tanh %53 : vector<16x128xf32>
    %cst_26 = arith.constant 1.000000e+00 : f32
    %55 = vector.broadcast %cst_26 : f32 to vector<16x128xf32>
    %56 = arith.subf %55, %49 : vector<16x128xf32>
    %57 = arith.mulf %56, %54 : vector<16x128xf32>
    %58 = arith.mulf %49, %20 : vector<16x128xf32>
    %59 = arith.addf %57, %58 : vector<16x128xf32>
    %60 = arith.truncf %59 : vector<16x128xf32> to vector<16x128xbf16>
    %61 = arith.index_cast %25 : i32 to index
    %c0_27 = arith.constant 0 : index
    %c0_28 = arith.constant 0 : index
    %62 = vector.load %arg7[%61, %c0_27, %c0_28] : memref<4x16x128xbf16, #tpu.memory_space<vmem>>, vector<1x16x128xbf16>
    %63 = vector.shape_cast %62 : vector<1x16x128xbf16> to vector<16x128xbf16>
    %64 = vector.shape_cast %60 : vector<16x128xbf16> to vector<1x16x128xbf16>
    tpu.vector_store %arg7[%61, %c0_27, %c0_28], %64 {strides = array<i32>} : memref<4x16x128xbf16, #tpu.memory_space<vmem>>, vector<1x16x128xbf16>,
    %c1_i32_29 = arith.constant 1 : i32
    %c3_i32_30 = arith.constant 3 : i32
    %65 = arith.muli %arg0, %c3_i32_30 : i32
    %c2_i32_31 = arith.constant 2 : i32
    %66 = arith.muli %c2_i32_31, %arg0 : i32
    %c1_i32_32 = arith.constant 1 : i32
    %67 = arith.subi %c1_i32_32, %66 : i32
    %68 = arith.muli %67, %c1_i32_29 : i32
    %69 = arith.addi %65, %68 : i32
    %70 = arith.index_cast %69 : i32 to index
    %c0_33 = arith.constant 0 : index
    %c0_34 = arith.constant 0 : index
    %71 = vector.load %arg8[%70, %c0_33, %c0_34] : memref<4x16x384xbf16, #tpu.memory_space<vmem>>, vector<1x16x384xbf16>
    %72 = vector.shape_cast %71 : vector<1x16x384xbf16> to vector<16x384xbf16>
    %73 = arith.extf %72 : vector<16x384xbf16> to vector<16x384xf32>
    %74 = arith.truncf %59 : vector<16x128xf32> to vector<16x128xbf16>
    %cst_35 = arith.constant dense<0.000000e+00> : vector<16x384xf32>
    %75 = tpu.matmul %74, %17, %cst_35 {dimension_numbers = #tpu.dot_dimension_numbers<[1], [0], [0], [1], [0, 0, 1, 1], [], []>} : vector<16x128xbf16>, vector<128x384xbf16>, vector<16x384xf32> -> vector<16x384xf32>
    %76 = vector.broadcast %19 : vector<1x384xf32> to vector<16x384xf32>
    %77 = arith.addf %75, %76 : vector<16x384xf32>
    %78 = vector.extract_strided_slice %73 {offsets = [0, 0], sizes = [16, 128], strides = [1, 1]} : vector<16x384xf32> to vector<16x128xf32>
    %79 = vector.extract_strided_slice %77 {offsets = [0, 0], sizes = [16, 128], strides = [1, 1]} : vector<16x384xf32> to vector<16x128xf32>
    %80 = arith.addf %78, %79 : vector<16x128xf32>
    %81 = arith.negf %80 : vector<16x128xf32>
    %82 = math.exp %81 : vector<16x128xf32>
    %cst_36 = arith.constant 1.000000e+00 : f32
    %83 = vector.broadcast %cst_36 : f32 to vector<16x128xf32>
    %84 = arith.addf %83, %82 : vector<16x128xf32>
    %85 = arith.divf %83, %84 : vector<16x128xf32>
    %86 = vector.extract_strided_slice %73 {offsets = [0, 128], sizes = [16, 128], strides = [1, 1]} : vector<16x384xf32> to vector<16x128xf32>
    %87 = vector.extract_strided_slice %77 {offsets = [0, 128], sizes = [16, 128], strides = [1, 1]} : vector<16x384xf32> to vector<16x128xf32>
    %88 = arith.addf %86, %87 : vector<16x128xf32>
    %89 = arith.negf %88 : vector<16x128xf32>
    %90 = math.exp %89 : vector<16x128xf32>
    %cst_37 = arith.constant 1.000000e+00 : f32
    %91 = vector.broadcast %cst_37 : f32 to vector<16x128xf32>
    %92 = arith.addf %91, %90 : vector<16x128xf32>
    %93 = arith.divf %91, %92 : vector<16x128xf32>
    %94 = vector.extract_strided_slice %73 {offsets = [0, 256], sizes = [16, 128], strides = [1, 1]} : vector<16x384xf32> to vector<16x128xf32>
    %95 = vector.extract_strided_slice %77 {offsets = [0, 256], sizes = [16, 128], strides = [1, 1]} : vector<16x384xf32> to vector<16x128xf32>
    %96 = arith.mulf %85, %95 : vector<16x128xf32>
    %97 = arith.addf %94, %96 : vector<16x128xf32>
    %98 = math.tanh %97 : vector<16x128xf32>
    %cst_38 = arith.constant 1.000000e+00 : f32
    %99 = vector.broadcast %cst_38 : f32 to vector<16x128xf32>
    %100 = arith.subf %99, %93 : vector<16x128xf32>
    %101 = arith.mulf %100, %98 : vector<16x128xf32>
    %102 = arith.mulf %93, %59 : vector<16x128xf32>
    %103 = arith.addf %101, %102 : vector<16x128xf32>
    %104 = arith.truncf %103 : vector<16x128xf32> to vector<16x128xbf16>
    %105 = arith.index_cast %69 : i32 to index
    %c0_39 = arith.constant 0 : index
    %c0_40 = arith.constant 0 : index
    %106 = vector.load %arg7[%105, %c0_39, %c0_40] : memref<4x16x128xbf16, #tpu.memory_space<vmem>>, vector<1x16x128xbf16>
    %107 = vector.shape_cast %106 : vector<1x16x128xbf16> to vector<16x128xbf16>
    %108 = vector.shape_cast %104 : vector<16x128xbf16> to vector<1x16x128xbf16>
    tpu.vector_store %arg7[%105, %c0_39, %c0_40], %108 {strides = array<i32>} : memref<4x16x128xbf16, #tpu.memory_space<vmem>>, vector<1x16x128xbf16>,
    %c2_i32_41 = arith.constant 2 : i32
    %c3_i32_42 = arith.constant 3 : i32
    %109 = arith.muli %arg0, %c3_i32_42 : i32
    %c2_i32_43 = arith.constant 2 : i32
    %110 = arith.muli %c2_i32_43, %arg0 : i32
    %c1_i32_44 = arith.constant 1 : i32
    %111 = arith.subi %c1_i32_44, %110 : i32
    %112 = arith.muli %111, %c2_i32_41 : i32
    %113 = arith.addi %109, %112 : i32
    %114 = arith.index_cast %113 : i32 to index
    %c0_45 = arith.constant 0 : index
    %c0_46 = arith.constant 0 : index
    %115 = vector.load %arg8[%114, %c0_45, %c0_46] : memref<4x16x384xbf16, #tpu.memory_space<vmem>>, vector<1x16x384xbf16>
    %116 = vector.shape_cast %115 : vector<1x16x384xbf16> to vector<16x384xbf16>
    %117 = arith.extf %116 : vector<16x384xbf16> to vector<16x384xf32>
    %118 = arith.truncf %103 : vector<16x128xf32> to vector<16x128xbf16>
    %cst_47 = arith.constant dense<0.000000e+00> : vector<16x384xf32>
    %119 = tpu.matmul %118, %17, %cst_47 {dimension_numbers = #tpu.dot_dimension_numbers<[1], [0], [0], [1], [0, 0, 1, 1], [], []>} : vector<16x128xbf16>, vector<128x384xbf16>, vector<16x384xf32> -> vector<16x384xf32>
    %120 = vector.broadcast %19 : vector<1x384xf32> to vector<16x384xf32>
    %121 = arith.addf %119, %120 : vector<16x384xf32>
    %122 = vector.extract_strided_slice %117 {offsets = [0, 0], sizes = [16, 128], strides = [1, 1]} : vector<16x384xf32> to vector<16x128xf32>
    %123 = vector.extract_strided_slice %121 {offsets = [0, 0], sizes = [16, 128], strides = [1, 1]} : vector<16x384xf32> to vector<16x128xf32>
    %124 = arith.addf %122, %123 : vector<16x128xf32>
    %125 = arith.negf %124 : vector<16x128xf32>
    %126 = math.exp %125 : vector<16x128xf32>
    %cst_48 = arith.constant 1.000000e+00 : f32
    %127 = vector.broadcast %cst_48 : f32 to vector<16x128xf32>
    %128 = arith.addf %127, %126 : vector<16x128xf32>
    %129 = arith.divf %127, %128 : vector<16x128xf32>
    %130 = vector.extract_strided_slice %117 {offsets = [0, 128], sizes = [16, 128], strides = [1, 1]} : vector<16x384xf32> to vector<16x128xf32>
    %131 = vector.extract_strided_slice %121 {offsets = [0, 128], sizes = [16, 128], strides = [1, 1]} : vector<16x384xf32> to vector<16x128xf32>
    %132 = arith.addf %130, %131 : vector<16x128xf32>
    %133 = arith.negf %132 : vector<16x128xf32>
    %134 = math.exp %133 : vector<16x128xf32>
    %cst_49 = arith.constant 1.000000e+00 : f32
    %135 = vector.broadcast %cst_49 : f32 to vector<16x128xf32>
    %136 = arith.addf %135, %134 : vector<16x128xf32>
    %137 = arith.divf %135, %136 : vector<16x128xf32>
    %138 = vector.extract_strided_slice %117 {offsets = [0, 256], sizes = [16, 128], strides = [1, 1]} : vector<16x384xf32> to vector<16x128xf32>
    %139 = vector.extract_strided_slice %121 {offsets = [0, 256], sizes = [16, 128], strides = [1, 1]} : vector<16x384xf32> to vector<16x128xf32>
    %140 = arith.mulf %129, %139 : vector<16x128xf32>
    %141 = arith.addf %138, %140 : vector<16x128xf32>
    %142 = math.tanh %141 : vector<16x128xf32>
    %cst_50 = arith.constant 1.000000e+00 : f32
    %143 = vector.broadcast %cst_50 : f32 to vector<16x128xf32>
    %144 = arith.subf %143, %137 : vector<16x128xf32>
    %145 = arith.mulf %144, %142 : vector<16x128xf32>
    %146 = arith.mulf %137, %103 : vector<16x128xf32>
    %147 = arith.addf %145, %146 : vector<16x128xf32>
    %148 = arith.truncf %147 : vector<16x128xf32> to vector<16x128xbf16>
    %149 = arith.index_cast %113 : i32 to index
    %c0_51 = arith.constant 0 : index
    %c0_52 = arith.constant 0 : index
    %150 = vector.load %arg7[%149, %c0_51, %c0_52] : memref<4x16x128xbf16, #tpu.memory_space<vmem>>, vector<1x16x128xbf16>
    %151 = vector.shape_cast %150 : vector<1x16x128xbf16> to vector<16x128xbf16>
    %152 = vector.shape_cast %148 : vector<16x128xbf16> to vector<1x16x128xbf16>
    tpu.vector_store %arg7[%149, %c0_51, %c0_52], %152 {strides = array<i32>} : memref<4x16x128xbf16, #tpu.memory_space<vmem>>, vector<1x16x128xbf16>,
    %c3_i32_53 = arith.constant 3 : i32
    %c3_i32_54 = arith.constant 3 : i32
    %153 = arith.muli %arg0, %c3_i32_54 : i32
    %c2_i32_55 = arith.constant 2 : i32
    %154 = arith.muli %c2_i32_55, %arg0 : i32
    %c1_i32_56 = arith.constant 1 : i32
    %155 = arith.subi %c1_i32_56, %154 : i32
    %156 = arith.muli %155, %c3_i32_53 : i32
    %157 = arith.addi %153, %156 : i32
    %158 = arith.index_cast %157 : i32 to index
    %c0_57 = arith.constant 0 : index
    %c0_58 = arith.constant 0 : index
    %159 = vector.load %arg8[%158, %c0_57, %c0_58] : memref<4x16x384xbf16, #tpu.memory_space<vmem>>, vector<1x16x384xbf16>
    %160 = vector.shape_cast %159 : vector<1x16x384xbf16> to vector<16x384xbf16>
    %161 = arith.extf %160 : vector<16x384xbf16> to vector<16x384xf32>
    %162 = arith.truncf %147 : vector<16x128xf32> to vector<16x128xbf16>
    %cst_59 = arith.constant dense<0.000000e+00> : vector<16x384xf32>
    %163 = tpu.matmul %162, %17, %cst_59 {dimension_numbers = #tpu.dot_dimension_numbers<[1], [0], [0], [1], [0, 0, 1, 1], [], []>} : vector<16x128xbf16>, vector<128x384xbf16>, vector<16x384xf32> -> vector<16x384xf32>
    %164 = vector.broadcast %19 : vector<1x384xf32> to vector<16x384xf32>
    %165 = arith.addf %163, %164 : vector<16x384xf32>
    %166 = vector.extract_strided_slice %161 {offsets = [0, 0], sizes = [16, 128], strides = [1, 1]} : vector<16x384xf32> to vector<16x128xf32>
    %167 = vector.extract_strided_slice %165 {offsets = [0, 0], sizes = [16, 128], strides = [1, 1]} : vector<16x384xf32> to vector<16x128xf32>
    %168 = arith.addf %166, %167 : vector<16x128xf32>
    %169 = arith.negf %168 : vector<16x128xf32>
    %170 = math.exp %169 : vector<16x128xf32>
    %cst_60 = arith.constant 1.000000e+00 : f32
    %171 = vector.broadcast %cst_60 : f32 to vector<16x128xf32>
    %172 = arith.addf %171, %170 : vector<16x128xf32>
    %173 = arith.divf %171, %172 : vector<16x128xf32>
    %174 = vector.extract_strided_slice %161 {offsets = [0, 128], sizes = [16, 128], strides = [1, 1]} : vector<16x384xf32> to vector<16x128xf32>
    %175 = vector.extract_strided_slice %165 {offsets = [0, 128], sizes = [16, 128], strides = [1, 1]} : vector<16x384xf32> to vector<16x128xf32>
    %176 = arith.addf %174, %175 : vector<16x128xf32>
    %177 = arith.negf %176 : vector<16x128xf32>
    %178 = math.exp %177 : vector<16x128xf32>
    %cst_61 = arith.constant 1.000000e+00 : f32
    %179 = vector.broadcast %cst_61 : f32 to vector<16x128xf32>
    %180 = arith.addf %179, %178 : vector<16x128xf32>
    %181 = arith.divf %179, %180 : vector<16x128xf32>
    %182 = vector.extract_strided_slice %161 {offsets = [0, 256], sizes = [16, 128], strides = [1, 1]} : vector<16x384xf32> to vector<16x128xf32>
    %183 = vector.extract_strided_slice %165 {offsets = [0, 256], sizes = [16, 128], strides = [1, 1]} : vector<16x384xf32> to vector<16x128xf32>
    %184 = arith.mulf %173, %183 : vector<16x128xf32>
    %185 = arith.addf %182, %184 : vector<16x128xf32>
    %186 = math.tanh %185 : vector<16x128xf32>
    %cst_62 = arith.constant 1.000000e+00 : f32
    %187 = vector.broadcast %cst_62 : f32 to vector<16x128xf32>
    %188 = arith.subf %187, %181 : vector<16x128xf32>
    %189 = arith.mulf %188, %186 : vector<16x128xf32>
    %190 = arith.mulf %181, %147 : vector<16x128xf32>
    %191 = arith.addf %189, %190 : vector<16x128xf32>
    %192 = arith.truncf %191 : vector<16x128xf32> to vector<16x128xbf16>
    %193 = arith.index_cast %157 : i32 to index
    %c0_63 = arith.constant 0 : index
    %c0_64 = arith.constant 0 : index
    %194 = vector.load %arg7[%193, %c0_63, %c0_64] : memref<4x16x128xbf16, #tpu.memory_space<vmem>>, vector<1x16x128xbf16>
    %195 = vector.shape_cast %194 : vector<1x16x128xbf16> to vector<16x128xbf16>
    %196 = vector.shape_cast %192 : vector<16x128xbf16> to vector<1x16x128xbf16>
    tpu.vector_store %arg7[%193, %c0_63, %c0_64], %196 {strides = array<i32>} : memref<4x16x128xbf16, #tpu.memory_space<vmem>>, vector<1x16x128xbf16>,
    %c4_i32 = arith.constant 4 : i32
    %c0_65 = arith.constant 0 : index
    %c0_66 = arith.constant 0 : index
    %197 = vector.load %arg9[%c0_65, %c0_66] : memref<16x128xf32, #tpu.memory_space<vmem>>, vector<16x128xf32>
    tpu.vector_store %arg9[%c0_65, %c0_66], %191 {strides = array<i32>} : memref<16x128xf32, #tpu.memory_space<vmem>>, vector<16x128xf32>,
    return
  }
  func.func @transform_0(%arg0: i32, %arg1: i32) -> (i32, i32, i32) {
    %c1_i32 = arith.constant 1 : i32
    %0 = arith.muli %arg0, %c1_i32 : i32
    %c2_i32 = arith.constant 2 : i32
    %1 = arith.muli %c2_i32, %arg0 : i32
    %c1_i32_0 = arith.constant 1 : i32
    %2 = arith.subi %c1_i32_0, %1 : i32
    %3 = arith.muli %2, %arg1 : i32
    %4 = arith.addi %0, %3 : i32
    %c0_i32 = arith.constant 0 : i32
    %c0_i32_1 = arith.constant 0 : i32
    %c0_i32_2 = arith.constant 0 : i32
    return %4, %c0_i32, %c0_i32_1 : i32, i32, i32
  }
  func.func @transform_1(%arg0: i32, %arg1: i32) -> (i32, i32, i32) {
    %c0_i32 = arith.constant 0 : i32
    %c0_i32_0 = arith.constant 0 : i32
    %c0_i32_1 = arith.constant 0 : i32
    return %arg0, %c0_i32, %c0_i32_0 : i32, i32, i32
  }
  func.func @transform_2(%arg0: i32, %arg1: i32) -> (i32, i32, i32) {
    %c0_i32 = arith.constant 0 : i32
    %c0_i32_0 = arith.constant 0 : i32
    %c0_i32_1 = arith.constant 0 : i32
    return %arg0, %c0_i32, %c0_i32_0 : i32, i32, i32
  }
  func.func @transform_3(%arg0: i32, %arg1: i32) -> (i32, i32, i32) {
    %c0_i32 = arith.constant 0 : i32
    %c0_i32_0 = arith.constant 0 : i32
    %c0_i32_1 = arith.constant 0 : i32
    return %arg0, %c0_i32, %c0_i32_0 : i32, i32, i32
  }
  func.func @transform_4(%arg0: i32, %arg1: i32) -> (i32, i32, i32) {
    %c0_i32 = arith.constant 0 : i32
    %c0_i32_0 = arith.constant 0 : i32
    %c0_i32_1 = arith.constant 0 : i32
    return %arg0, %c0_i32, %c0_i32_0 : i32, i32, i32
  }
  func.func @transform_5(%arg0: i32, %arg1: i32) -> (i32, i32, i32) {
    %c1_i32 = arith.constant 1 : i32
    %0 = arith.muli %arg0, %c1_i32 : i32
    %c2_i32 = arith.constant 2 : i32
    %1 = arith.muli %c2_i32, %arg0 : i32
    %c1_i32_0 = arith.constant 1 : i32
    %2 = arith.subi %c1_i32_0, %1 : i32
    %3 = arith.muli %2, %arg1 : i32
    %4 = arith.addi %0, %3 : i32
    %c0_i32 = arith.constant 0 : i32
    %c0_i32_1 = arith.constant 0 : i32
    return %4, %c0_i32, %arg0 : i32, i32, i32
  }
}

module attributes {stable_mosaic.version = 11 : i64} {
  func.func @gru_layer_kernel(%arg0: i32, %arg1: i32, %arg2: memref<4x16x256xbf16, #tpu.memory_space<vmem>>, %arg3: memref<1x256x384xbf16, #tpu.memory_space<vmem>>, %arg4: memref<1x128x384xbf16, #tpu.memory_space<vmem>>, %arg5: memref<1x1x384xf32, #tpu.memory_space<vmem>>, %arg6: memref<1x1x384xf32, #tpu.memory_space<vmem>>, %arg7: memref<4x16x128xbf16, #tpu.memory_space<vmem>>, %arg8: memref<4x16x384xbf16, #tpu.memory_space<vmem>>, %arg9: memref<16x128xf32, #tpu.memory_space<vmem>>) attributes {dimension_semantics = [#tpu.dimension_semantics<parallel>, #tpu.dimension_semantics<arbitrary>], iteration_bounds = array<i64: 2, 2>, scalar_prefetch = 0 : i64, scratch_operands = 2 : i64, tpu.core_type = #tpu.core_type<tc>, window_params = [{transform_indices = @transform_0, window_bounds = array<i64: 4, 16, 256>}, {transform_indices = @transform_1, window_bounds = array<i64: 1, 256, 384>}, {transform_indices = @transform_2, window_bounds = array<i64: 1, 128, 384>}, {transform_indices = @transform_3, window_bounds = array<i64: 1, 1, 384>}, {transform_indices = @transform_4, window_bounds = array<i64: 1, 1, 384>}, {transform_indices = @transform_5, window_bounds = array<i64: 4, 16, 128>}]} {
    %c0_i32 = arith.constant 0 : i32
    %0 = arith.cmpi eq, %arg1, %c0_i32 : i32
    %1 = arith.extui %0 : i1 to i32
    %c0_i32_0 = arith.constant 0 : i32
    %2 = arith.cmpi ne, %1, %c0_i32_0 : i32
    scf.if %2 {
      %cst_67 = arith.constant 0.000000e+00 : f32
      %198 = vector.broadcast %cst_67 : f32 to vector<16x128xf32>
      %c0_68 = arith.constant 0 : index
      %c0_69 = arith.constant 0 : index
      %199 = vector.load %arg9[%c0_68, %c0_69] : memref<16x128xf32, #tpu.memory_space<vmem>>, vector<16x128xf32>
      tpu.vector_store %arg9[%c0_68, %c0_69], %198 {strides = array<i32>} : memref<16x128xf32, #tpu.memory_space<vmem>>, vector<16x128xf32>,
    } else {
    }
    %c0 = arith.constant 0 : index
    %c0_1 = arith.constant 0 : index
    %c0_2 = arith.constant 0 : index
    %3 = vector.load %arg2[%c0, %c0_1, %c0_2] : memref<4x16x256xbf16, #tpu.memory_space<vmem>>, vector<4x16x256xbf16>
    %4 = vector.shape_cast %3 : vector<4x16x256xbf16> to vector<64x256xbf16>
    %c0_3 = arith.constant 0 : index
    %c0_4 = arith.constant 0 : index
    %c0_5 = arith.constant 0 : index
    %5 = vector.load %arg3[%c0_3, %c0_4, %c0_5] : memref<1x256x384xbf16, #tpu.memory_space<vmem>>, vector<1x256x384xbf16>
    %6 = vector.shape_cast %5 : vector<1x256x384xbf16> to vector<256x384xbf16>
    %cst = arith.constant dense<0.000000e+00> : vector<64x384xf32>
    %7 = tpu.matmul %4, %6, %cst {dimension_numbers = #tpu.dot_dimension_numbers<[1], [0], [0], [1], [0, 0, 1, 1], [], []>} : vector<64x256xbf16>, vector<256x384xbf16>, vector<64x384xf32> -> vector<64x384xf32>
    %8 = vector.shape_cast %7 : vector<64x384xf32> to vector<4x16x384xf32>
    %c0_6 = arith.constant 0 : index
    %c0_7 = arith.constant 0 : index
    %c0_8 = arith.constant 0 : index
    %9 = vector.load %arg5[%c0_6, %c0_7, %c0_8] : memref<1x1x384xf32, #tpu.memory_space<vmem>>, vector<1x1x384xf32>
    %10 = vector.shape_cast %9 : vector<1x1x384xf32> to vector<1x384xf32>
    %11 = vector.shape_cast %10 : vector<1x384xf32> to vector<1x1x384xf32>
    %12 = vector.broadcast %11 : vector<1x1x384xf32> to vector<4x16x384xf32>
    %13 = arith.addf %8, %12 : vector<4x16x384xf32>
    %14 = arith.truncf %13 : vector<4x16x384xf32> to vector<4x16x384xbf16>
    %c0_9 = arith.constant 0 : index
    %c0_10 = arith.constant 0 : index
    %c0_11 = arith.constant 0 : index
    %15 = vector.load %arg8[%c0_9, %c0_10, %c0_11] : memref<4x16x384xbf16, #tpu.memory_space<vmem>>, vector<4x16x384xbf16>
    tpu.vector_store %arg8[%c0_9, %c0_10, %c0_11], %14 {strides = array<i32>} : memref<4x16x384xbf16, #tpu.memory_space<vmem>>, vector<4x16x384xbf16>,
    %c0_12 = arith.constant 0 : index
    %c0_13 = arith.constant 0 : index
    %c0_14 = arith.constant 0 : index
    %16 = vector.load %arg4[%c0_12, %c0_13, %c0_14] : memref<1x128x384xbf16, #tpu.memory_space<vmem>>, vector<1x128x384xbf16>
    %17 = vector.shape_cast %16 : vector<1x128x384xbf16> to vector<128x384xbf16>
    %c0_15 = arith.constant 0 : index
    %c0_16 = arith.constant 0 : index
    %c0_17 = arith.constant 0 : index
    %18 = vector.load %arg6[%c0_15, %c0_16, %c0_17] : memref<1x1x384xf32, #tpu.memory_space<vmem>>, vector<1x1x384xf32>
    %19 = vector.shape_cast %18 : vector<1x1x384xf32> to vector<1x384xf32>
    %c0_18 = arith.constant 0 : index
    %c0_19 = arith.constant 0 : index
    %20 = vector.load %arg9[%c0_18, %c0_19] : memref<16x128xf32, #tpu.memory_space<vmem>>, vector<16x128xf32>
    %c0_i32_20 = arith.constant 0 : i32
    %c3_i32 = arith.constant 3 : i32
    %21 = arith.muli %arg0, %c3_i32 : i32
    %c2_i32 = arith.constant 2 : i32
    %22 = arith.muli %c2_i32, %arg0 : i32
    %c1_i32 = arith.constant 1 : i32
    %23 = arith.subi %c1_i32, %22 : i32
    %24 = arith.muli %23, %c0_i32_20 : i32
    %25 = arith.addi %21, %24 : i32
    %26 = arith.index_cast %25 : i32 to index
    %c0_21 = arith.constant 0 : index
    %c0_22 = arith.constant 0 : index
    %27 = vector.load %arg8[%26, %c0_21, %c0_22] : memref<4x16x384xbf16, #tpu.memory_space<vmem>>, vector<1x16x384xbf16>
    %28 = vector.shape_cast %27 : vector<1x16x384xbf16> to vector<16x384xbf16>
    %29 = arith.extf %28 : vector<16x384xbf16> to vector<16x384xf32>
    %30 = arith.truncf %20 : vector<16x128xf32> to vector<16x128xbf16>
    %cst_23 = arith.constant dense<0.000000e+00> : vector<16x384xf32>
    %31 = tpu.matmul %30, %17, %cst_23 {dimension_numbers = #tpu.dot_dimension_numbers<[1], [0], [0], [1], [0, 0, 1, 1], [], []>} : vector<16x128xbf16>, vector<128x384xbf16>, vector<16x384xf32> -> vector<16x384xf32>
    %32 = vector.broadcast %19 : vector<1x384xf32> to vector<16x384xf32>
    %33 = arith.addf %31, %32 : vector<16x384xf32>
    %34 = vector.extract_strided_slice %29 {offsets = [0, 0], sizes = [16, 128], strides = [1, 1]} : vector<16x384xf32> to vector<16x128xf32>
    %35 = vector.extract_strided_slice %33 {offsets = [0, 0], sizes = [16, 128], strides = [1, 1]} : vector<16x384xf32> to vector<16x128xf32>
    %36 = arith.addf %34, %35 : vector<16x128xf32>
    %37 = arith.negf %36 : vector<16x128xf32>
    %38 = math.exp %37 : vector<16x128xf32>
    %cst_24 = arith.constant 1.000000e+00 : f32
    %39 = vector.broadcast %cst_24 : f32 to vector<16x128xf32>
    %40 = arith.addf %39, %38 : vector<16x128xf32>
    %41 = arith.divf %39, %40 : vector<16x128xf32>
    %42 = vector.extract_strided_slice %29 {offsets = [0, 128], sizes = [16, 128], strides = [1, 1]} : vector<16x384xf32> to vector<16x128xf32>
    %43 = vector.extract_strided_slice %33 {offsets = [0, 128], sizes = [16, 128], strides = [1, 1]} : vector<16x384xf32> to vector<16x128xf32>
    %44 = arith.addf %42, %43 : vector<16x128xf32>
    %45 = arith.negf %44 : vector<16x128xf32>
    %46 = math.exp %45 : vector<16x128xf32>
    %cst_25 = arith.constant 1.000000e+00 : f32
    %47 = vector.broadcast %cst_25 : f32 to vector<16x128xf32>
    %48 = arith.addf %47, %46 : vector<16x128xf32>
    %49 = arith.divf %47, %48 : vector<16x128xf32>
    %50 = vector.extract_strided_slice %29 {offsets = [0, 256], sizes = [16, 128], strides = [1, 1]} : vector<16x384xf32> to vector<16x128xf32>
    %51 = vector.extract_strided_slice %33 {offsets = [0, 256], sizes = [16, 128], strides = [1, 1]} : vector<16x384xf32> to vector<16x128xf32>
    %52 = arith.mulf %41, %51 : vector<16x128xf32>
    %53 = arith.addf %50, %52 : vector<16x128xf32>
    %54 = math.tanh %53 : vector<16x128xf32>
    %cst_26 = arith.constant 1.000000e+00 : f32
    %55 = vector.broadcast %cst_26 : f32 to vector<16x128xf32>
    %56 = arith.subf %55, %49 : vector<16x128xf32>
    %57 = arith.mulf %56, %54 : vector<16x128xf32>
    %58 = arith.mulf %49, %20 : vector<16x128xf32>
    %59 = arith.addf %57, %58 : vector<16x128xf32>
    %60 = arith.truncf %59 : vector<16x128xf32> to vector<16x128xbf16>
    %61 = arith.index_cast %25 : i32 to index
    %c0_27 = arith.constant 0 : index
    %c0_28 = arith.constant 0 : index
    %62 = vector.load %arg7[%61, %c0_27, %c0_28] : memref<4x16x128xbf16, #tpu.memory_space<vmem>>, vector<1x16x128xbf16>
    %63 = vector.shape_cast %62 : vector<1x16x128xbf16> to vector<16x128xbf16>
    %64 = vector.shape_cast %60 : vector<16x128xbf16> to vector<1x16x128xbf16>
    tpu.vector_store %arg7[%61, %c0_27, %c0_28], %64 {strides = array<i32>} : memref<4x16x128xbf16, #tpu.memory_space<vmem>>, vector<1x16x128xbf16>,
    %c1_i32_29 = arith.constant 1 : i32
    %c3_i32_30 = arith.constant 3 : i32
    %65 = arith.muli %arg0, %c3_i32_30 : i32
    %c2_i32_31 = arith.constant 2 : i32
    %66 = arith.muli %c2_i32_31, %arg0 : i32
    %c1_i32_32 = arith.constant 1 : i32
    %67 = arith.subi %c1_i32_32, %66 : i32
    %68 = arith.muli %67, %c1_i32_29 : i32
    %69 = arith.addi %65, %68 : i32
    %70 = arith.index_cast %69 : i32 to index
    %c0_33 = arith.constant 0 : index
    %c0_34 = arith.constant 0 : index
    %71 = vector.load %arg8[%70, %c0_33, %c0_34] : memref<4x16x384xbf16, #tpu.memory_space<vmem>>, vector<1x16x384xbf16>
    %72 = vector.shape_cast %71 : vector<1x16x384xbf16> to vector<16x384xbf16>
    %73 = arith.extf %72 : vector<16x384xbf16> to vector<16x384xf32>
    %74 = arith.truncf %59 : vector<16x128xf32> to vector<16x128xbf16>
    %cst_35 = arith.constant dense<0.000000e+00> : vector<16x384xf32>
    %75 = tpu.matmul %74, %17, %cst_35 {dimension_numbers = #tpu.dot_dimension_numbers<[1], [0], [0], [1], [0, 0, 1, 1], [], []>} : vector<16x128xbf16>, vector<128x384xbf16>, vector<16x384xf32> -> vector<16x384xf32>
    %76 = vector.broadcast %19 : vector<1x384xf32> to vector<16x384xf32>
    %77 = arith.addf %75, %76 : vector<16x384xf32>
    %78 = vector.extract_strided_slice %73 {offsets = [0, 0], sizes = [16, 128], strides = [1, 1]} : vector<16x384xf32> to vector<16x128xf32>
    %79 = vector.extract_strided_slice %77 {offsets = [0, 0], sizes = [16, 128], strides = [1, 1]} : vector<16x384xf32> to vector<16x128xf32>
    %80 = arith.addf %78, %79 : vector<16x128xf32>
    %81 = arith.negf %80 : vector<16x128xf32>
    %82 = math.exp %81 : vector<16x128xf32>
    %cst_36 = arith.constant 1.000000e+00 : f32
    %83 = vector.broadcast %cst_36 : f32 to vector<16x128xf32>
    %84 = arith.addf %83, %82 : vector<16x128xf32>
    %85 = arith.divf %83, %84 : vector<16x128xf32>
    %86 = vector.extract_strided_slice %73 {offsets = [0, 128], sizes = [16, 128], strides = [1, 1]} : vector<16x384xf32> to vector<16x128xf32>
    %87 = vector.extract_strided_slice %77 {offsets = [0, 128], sizes = [16, 128], strides = [1, 1]} : vector<16x384xf32> to vector<16x128xf32>
    %88 = arith.addf %86, %87 : vector<16x128xf32>
    %89 = arith.negf %88 : vector<16x128xf32>
    %90 = math.exp %89 : vector<16x128xf32>
    %cst_37 = arith.constant 1.000000e+00 : f32
    %91 = vector.broadcast %cst_37 : f32 to vector<16x128xf32>
    %92 = arith.addf %91, %90 : vector<16x128xf32>
    %93 = arith.divf %91, %92 : vector<16x128xf32>
    %94 = vector.extract_strided_slice %73 {offsets = [0, 256], sizes = [16, 128], strides = [1, 1]} : vector<16x384xf32> to vector<16x128xf32>
    %95 = vector.extract_strided_slice %77 {offsets = [0, 256], sizes = [16, 128], strides = [1, 1]} : vector<16x384xf32> to vector<16x128xf32>
    %96 = arith.mulf %85, %95 : vector<16x128xf32>
    %97 = arith.addf %94, %96 : vector<16x128xf32>
    %98 = math.tanh %97 : vector<16x128xf32>
    %cst_38 = arith.constant 1.000000e+00 : f32
    %99 = vector.broadcast %cst_38 : f32 to vector<16x128xf32>
    %100 = arith.subf %99, %93 : vector<16x128xf32>
    %101 = arith.mulf %100, %98 : vector<16x128xf32>
    %102 = arith.mulf %93, %59 : vector<16x128xf32>
    %103 = arith.addf %101, %102 : vector<16x128xf32>
    %104 = arith.truncf %103 : vector<16x128xf32> to vector<16x128xbf16>
    %105 = arith.index_cast %69 : i32 to index
    %c0_39 = arith.constant 0 : index
    %c0_40 = arith.constant 0 : index
    %106 = vector.load %arg7[%105, %c0_39, %c0_40] : memref<4x16x128xbf16, #tpu.memory_space<vmem>>, vector<1x16x128xbf16>
    %107 = vector.shape_cast %106 : vector<1x16x128xbf16> to vector<16x128xbf16>
    %108 = vector.shape_cast %104 : vector<16x128xbf16> to vector<1x16x128xbf16>
    tpu.vector_store %arg7[%105, %c0_39, %c0_40], %108 {strides = array<i32>} : memref<4x16x128xbf16, #tpu.memory_space<vmem>>, vector<1x16x128xbf16>,
    %c2_i32_41 = arith.constant 2 : i32
    %c3_i32_42 = arith.constant 3 : i32
    %109 = arith.muli %arg0, %c3_i32_42 : i32
    %c2_i32_43 = arith.constant 2 : i32
    %110 = arith.muli %c2_i32_43, %arg0 : i32
    %c1_i32_44 = arith.constant 1 : i32
    %111 = arith.subi %c1_i32_44, %110 : i32
    %112 = arith.muli %111, %c2_i32_41 : i32
    %113 = arith.addi %109, %112 : i32
    %114 = arith.index_cast %113 : i32 to index
    %c0_45 = arith.constant 0 : index
    %c0_46 = arith.constant 0 : index
    %115 = vector.load %arg8[%114, %c0_45, %c0_46] : memref<4x16x384xbf16, #tpu.memory_space<vmem>>, vector<1x16x384xbf16>
    %116 = vector.shape_cast %115 : vector<1x16x384xbf16> to vector<16x384xbf16>
    %117 = arith.extf %116 : vector<16x384xbf16> to vector<16x384xf32>
    %118 = arith.truncf %103 : vector<16x128xf32> to vector<16x128xbf16>
    %cst_47 = arith.constant dense<0.000000e+00> : vector<16x384xf32>
    %119 = tpu.matmul %118, %17, %cst_47 {dimension_numbers = #tpu.dot_dimension_numbers<[1], [0], [0], [1], [0, 0, 1, 1], [], []>} : vector<16x128xbf16>, vector<128x384xbf16>, vector<16x384xf32> -> vector<16x384xf32>
    %120 = vector.broadcast %19 : vector<1x384xf32> to vector<16x384xf32>
    %121 = arith.addf %119, %120 : vector<16x384xf32>
    %122 = vector.extract_strided_slice %117 {offsets = [0, 0], sizes = [16, 128], strides = [1, 1]} : vector<16x384xf32> to vector<16x128xf32>
    %123 = vector.extract_strided_slice %121 {offsets = [0, 0], sizes = [16, 128], strides = [1, 1]} : vector<16x384xf32> to vector<16x128xf32>
    %124 = arith.addf %122, %123 : vector<16x128xf32>
    %125 = arith.negf %124 : vector<16x128xf32>
    %126 = math.exp %125 : vector<16x128xf32>
    %cst_48 = arith.constant 1.000000e+00 : f32
    %127 = vector.broadcast %cst_48 : f32 to vector<16x128xf32>
    %128 = arith.addf %127, %126 : vector<16x128xf32>
    %129 = arith.divf %127, %128 : vector<16x128xf32>
    %130 = vector.extract_strided_slice %117 {offsets = [0, 128], sizes = [16, 128], strides = [1, 1]} : vector<16x384xf32> to vector<16x128xf32>
    %131 = vector.extract_strided_slice %121 {offsets = [0, 128], sizes = [16, 128], strides = [1, 1]} : vector<16x384xf32> to vector<16x128xf32>
    %132 = arith.addf %130, %131 : vector<16x128xf32>
    %133 = arith.negf %132 : vector<16x128xf32>
    %134 = math.exp %133 : vector<16x128xf32>
    %cst_49 = arith.constant 1.000000e+00 : f32
    %135 = vector.broadcast %cst_49 : f32 to vector<16x128xf32>
    %136 = arith.addf %135, %134 : vector<16x128xf32>
    %137 = arith.divf %135, %136 : vector<16x128xf32>
    %138 = vector.extract_strided_slice %117 {offsets = [0, 256], sizes = [16, 128], strides = [1, 1]} : vector<16x384xf32> to vector<16x128xf32>
    %139 = vector.extract_strided_slice %121 {offsets = [0, 256], sizes = [16, 128], strides = [1, 1]} : vector<16x384xf32> to vector<16x128xf32>
    %140 = arith.mulf %129, %139 : vector<16x128xf32>
    %141 = arith.addf %138, %140 : vector<16x128xf32>
    %142 = math.tanh %141 : vector<16x128xf32>
    %cst_50 = arith.constant 1.000000e+00 : f32
    %143 = vector.broadcast %cst_50 : f32 to vector<16x128xf32>
    %144 = arith.subf %143, %137 : vector<16x128xf32>
    %145 = arith.mulf %144, %142 : vector<16x128xf32>
    %146 = arith.mulf %137, %103 : vector<16x128xf32>
    %147 = arith.addf %145, %146 : vector<16x128xf32>
    %148 = arith.truncf %147 : vector<16x128xf32> to vector<16x128xbf16>
    %149 = arith.index_cast %113 : i32 to index
    %c0_51 = arith.constant 0 : index
    %c0_52 = arith.constant 0 : index
    %150 = vector.load %arg7[%149, %c0_51, %c0_52] : memref<4x16x128xbf16, #tpu.memory_space<vmem>>, vector<1x16x128xbf16>
    %151 = vector.shape_cast %150 : vector<1x16x128xbf16> to vector<16x128xbf16>
    %152 = vector.shape_cast %148 : vector<16x128xbf16> to vector<1x16x128xbf16>
    tpu.vector_store %arg7[%149, %c0_51, %c0_52], %152 {strides = array<i32>} : memref<4x16x128xbf16, #tpu.memory_space<vmem>>, vector<1x16x128xbf16>,
    %c3_i32_53 = arith.constant 3 : i32
    %c3_i32_54 = arith.constant 3 : i32
    %153 = arith.muli %arg0, %c3_i32_54 : i32
    %c2_i32_55 = arith.constant 2 : i32
    %154 = arith.muli %c2_i32_55, %arg0 : i32
    %c1_i32_56 = arith.constant 1 : i32
    %155 = arith.subi %c1_i32_56, %154 : i32
    %156 = arith.muli %155, %c3_i32_53 : i32
    %157 = arith.addi %153, %156 : i32
    %158 = arith.index_cast %157 : i32 to index
    %c0_57 = arith.constant 0 : index
    %c0_58 = arith.constant 0 : index
    %159 = vector.load %arg8[%158, %c0_57, %c0_58] : memref<4x16x384xbf16, #tpu.memory_space<vmem>>, vector<1x16x384xbf16>
    %160 = vector.shape_cast %159 : vector<1x16x384xbf16> to vector<16x384xbf16>
    %161 = arith.extf %160 : vector<16x384xbf16> to vector<16x384xf32>
    %162 = arith.truncf %147 : vector<16x128xf32> to vector<16x128xbf16>
    %cst_59 = arith.constant dense<0.000000e+00> : vector<16x384xf32>
    %163 = tpu.matmul %162, %17, %cst_59 {dimension_numbers = #tpu.dot_dimension_numbers<[1], [0], [0], [1], [0, 0, 1, 1], [], []>} : vector<16x128xbf16>, vector<128x384xbf16>, vector<16x384xf32> -> vector<16x384xf32>
    %164 = vector.broadcast %19 : vector<1x384xf32> to vector<16x384xf32>
    %165 = arith.addf %163, %164 : vector<16x384xf32>
    %166 = vector.extract_strided_slice %161 {offsets = [0, 0], sizes = [16, 128], strides = [1, 1]} : vector<16x384xf32> to vector<16x128xf32>
    %167 = vector.extract_strided_slice %165 {offsets = [0, 0], sizes = [16, 128], strides = [1, 1]} : vector<16x384xf32> to vector<16x128xf32>
    %168 = arith.addf %166, %167 : vector<16x128xf32>
    %169 = arith.negf %168 : vector<16x128xf32>
    %170 = math.exp %169 : vector<16x128xf32>
    %cst_60 = arith.constant 1.000000e+00 : f32
    %171 = vector.broadcast %cst_60 : f32 to vector<16x128xf32>
    %172 = arith.addf %171, %170 : vector<16x128xf32>
    %173 = arith.divf %171, %172 : vector<16x128xf32>
    %174 = vector.extract_strided_slice %161 {offsets = [0, 128], sizes = [16, 128], strides = [1, 1]} : vector<16x384xf32> to vector<16x128xf32>
    %175 = vector.extract_strided_slice %165 {offsets = [0, 128], sizes = [16, 128], strides = [1, 1]} : vector<16x384xf32> to vector<16x128xf32>
    %176 = arith.addf %174, %175 : vector<16x128xf32>
    %177 = arith.negf %176 : vector<16x128xf32>
    %178 = math.exp %177 : vector<16x128xf32>
    %cst_61 = arith.constant 1.000000e+00 : f32
    %179 = vector.broadcast %cst_61 : f32 to vector<16x128xf32>
    %180 = arith.addf %179, %178 : vector<16x128xf32>
    %181 = arith.divf %179, %180 : vector<16x128xf32>
    %182 = vector.extract_strided_slice %161 {offsets = [0, 256], sizes = [16, 128], strides = [1, 1]} : vector<16x384xf32> to vector<16x128xf32>
    %183 = vector.extract_strided_slice %165 {offsets = [0, 256], sizes = [16, 128], strides = [1, 1]} : vector<16x384xf32> to vector<16x128xf32>
    %184 = arith.mulf %173, %183 : vector<16x128xf32>
    %185 = arith.addf %182, %184 : vector<16x128xf32>
    %186 = math.tanh %185 : vector<16x128xf32>
    %cst_62 = arith.constant 1.000000e+00 : f32
    %187 = vector.broadcast %cst_62 : f32 to vector<16x128xf32>
    %188 = arith.subf %187, %181 : vector<16x128xf32>
    %189 = arith.mulf %188, %186 : vector<16x128xf32>
    %190 = arith.mulf %181, %147 : vector<16x128xf32>
    %191 = arith.addf %189, %190 : vector<16x128xf32>
    %192 = arith.truncf %191 : vector<16x128xf32> to vector<16x128xbf16>
    %193 = arith.index_cast %157 : i32 to index
    %c0_63 = arith.constant 0 : index
    %c0_64 = arith.constant 0 : index
    %194 = vector.load %arg7[%193, %c0_63, %c0_64] : memref<4x16x128xbf16, #tpu.memory_space<vmem>>, vector<1x16x128xbf16>
    %195 = vector.shape_cast %194 : vector<1x16x128xbf16> to vector<16x128xbf16>
    %196 = vector.shape_cast %192 : vector<16x128xbf16> to vector<1x16x128xbf16>
    tpu.vector_store %arg7[%193, %c0_63, %c0_64], %196 {strides = array<i32>} : memref<4x16x128xbf16, #tpu.memory_space<vmem>>, vector<1x16x128xbf16>,
    %c4_i32 = arith.constant 4 : i32
    %c0_65 = arith.constant 0 : index
    %c0_66 = arith.constant 0 : index
    %197 = vector.load %arg9[%c0_65, %c0_66] : memref<16x128xf32, #tpu.memory_space<vmem>>, vector<16x128xf32>
    tpu.vector_store %arg9[%c0_65, %c0_66], %191 {strides = array<i32>} : memref<16x128xf32, #tpu.memory_space<vmem>>, vector<16x128xf32>,
    return
  }
  func.func @transform_0(%arg0: i32, %arg1: i32) -> (i32, i32, i32) {
    %c1_i32 = arith.constant 1 : i32
    %0 = arith.muli %arg0, %c1_i32 : i32
    %c2_i32 = arith.constant 2 : i32
    %1 = arith.muli %c2_i32, %arg0 : i32
    %c1_i32_0 = arith.constant 1 : i32
    %2 = arith.subi %c1_i32_0, %1 : i32
    %3 = arith.muli %2, %arg1 : i32
    %4 = arith.addi %0, %3 : i32
    %c0_i32 = arith.constant 0 : i32
    %c0_i32_1 = arith.constant 0 : i32
    %c0_i32_2 = arith.constant 0 : i32
    return %4, %c0_i32, %c0_i32_1 : i32, i32, i32
  }
  func.func @transform_1(%arg0: i32, %arg1: i32) -> (i32, i32, i32) {
    %c0_i32 = arith.constant 0 : i32
    %c0_i32_0 = arith.constant 0 : i32
    %c0_i32_1 = arith.constant 0 : i32
    return %arg0, %c0_i32, %c0_i32_0 : i32, i32, i32
  }
  func.func @transform_2(%arg0: i32, %arg1: i32) -> (i32, i32, i32) {
    %c0_i32 = arith.constant 0 : i32
    %c0_i32_0 = arith.constant 0 : i32
    %c0_i32_1 = arith.constant 0 : i32
    return %arg0, %c0_i32, %c0_i32_0 : i32, i32, i32
  }
  func.func @transform_3(%arg0: i32, %arg1: i32) -> (i32, i32, i32) {
    %c0_i32 = arith.constant 0 : i32
    %c0_i32_0 = arith.constant 0 : i32
    %c0_i32_1 = arith.constant 0 : i32
    return %arg0, %c0_i32, %c0_i32_0 : i32, i32, i32
  }
  func.func @transform_4(%arg0: i32, %arg1: i32) -> (i32, i32, i32) {
    %c0_i32 = arith.constant 0 : i32
    %c0_i32_0 = arith.constant 0 : i32
    %c0_i32_1 = arith.constant 0 : i32
    return %arg0, %c0_i32, %c0_i32_0 : i32, i32, i32
  }
  func.func @transform_5(%arg0: i32, %arg1: i32) -> (i32, i32, i32) {
    %c1_i32 = arith.constant 1 : i32
    %0 = arith.muli %arg0, %c1_i32 : i32
    %c2_i32 = arith.constant 2 : i32
    %1 = arith.muli %c2_i32, %arg0 : i32
    %c1_i32_0 = arith.constant 1 : i32
    %2 = arith.subi %c1_i32_0, %1 : i32
    %3 = arith.muli %2, %arg1 : i32
    %4 = arith.addi %0, %3 : i32
    %c0_i32 = arith.constant 0 : i32
    %c0_i32_1 = arith.constant 0 : i32
    return %4, %c0_i32, %arg0 : i32, i32, i32
  }
}

module attributes {stable_mosaic.version = 11 : i64} {
  func.func @gru_layer_kernel(%arg0: i32, %arg1: i32, %arg2: memref<4x16x128xbf16, #tpu.memory_space<vmem>>, %arg3: memref<1x128x384xbf16, #tpu.memory_space<vmem>>, %arg4: memref<1x128x384xbf16, #tpu.memory_space<vmem>>, %arg5: memref<1x1x384xf32, #tpu.memory_space<vmem>>, %arg6: memref<1x1x384xf32, #tpu.memory_space<vmem>>, %arg7: memref<4x16x128xbf16, #tpu.memory_space<vmem>>, %arg8: memref<4x16x384xbf16, #tpu.memory_space<vmem>>, %arg9: memref<16x128xf32, #tpu.memory_space<vmem>>) attributes {dimension_semantics = [#tpu.dimension_semantics<parallel>, #tpu.dimension_semantics<arbitrary>], iteration_bounds = array<i64: 2, 2>, scalar_prefetch = 0 : i64, scratch_operands = 2 : i64, tpu.core_type = #tpu.core_type<tc>, window_params = [{transform_indices = @transform_0, window_bounds = array<i64: 4, 16, 128>}, {transform_indices = @transform_1, window_bounds = array<i64: 1, 128, 384>}, {transform_indices = @transform_2, window_bounds = array<i64: 1, 128, 384>}, {transform_indices = @transform_3, window_bounds = array<i64: 1, 1, 384>}, {transform_indices = @transform_4, window_bounds = array<i64: 1, 1, 384>}, {transform_indices = @transform_5, window_bounds = array<i64: 4, 16, 128>}]} {
    %c0_i32 = arith.constant 0 : i32
    %0 = arith.cmpi eq, %arg1, %c0_i32 : i32
    %1 = arith.extui %0 : i1 to i32
    %c0_i32_0 = arith.constant 0 : i32
    %2 = arith.cmpi ne, %1, %c0_i32_0 : i32
    scf.if %2 {
      %cst_67 = arith.constant 0.000000e+00 : f32
      %198 = vector.broadcast %cst_67 : f32 to vector<16x128xf32>
      %c0_68 = arith.constant 0 : index
      %c0_69 = arith.constant 0 : index
      %199 = vector.load %arg9[%c0_68, %c0_69] : memref<16x128xf32, #tpu.memory_space<vmem>>, vector<16x128xf32>
      tpu.vector_store %arg9[%c0_68, %c0_69], %198 {strides = array<i32>} : memref<16x128xf32, #tpu.memory_space<vmem>>, vector<16x128xf32>,
    } else {
    }
    %c0 = arith.constant 0 : index
    %c0_1 = arith.constant 0 : index
    %c0_2 = arith.constant 0 : index
    %3 = vector.load %arg2[%c0, %c0_1, %c0_2] : memref<4x16x128xbf16, #tpu.memory_space<vmem>>, vector<4x16x128xbf16>
    %4 = vector.shape_cast %3 : vector<4x16x128xbf16> to vector<64x128xbf16>
    %c0_3 = arith.constant 0 : index
    %c0_4 = arith.constant 0 : index
    %c0_5 = arith.constant 0 : index
    %5 = vector.load %arg3[%c0_3, %c0_4, %c0_5] : memref<1x128x384xbf16, #tpu.memory_space<vmem>>, vector<1x128x384xbf16>
    %6 = vector.shape_cast %5 : vector<1x128x384xbf16> to vector<128x384xbf16>
    %cst = arith.constant dense<0.000000e+00> : vector<64x384xf32>
    %7 = tpu.matmul %4, %6, %cst {dimension_numbers = #tpu.dot_dimension_numbers<[1], [0], [0], [1], [0, 0, 1, 1], [], []>} : vector<64x128xbf16>, vector<128x384xbf16>, vector<64x384xf32> -> vector<64x384xf32>
    %8 = vector.shape_cast %7 : vector<64x384xf32> to vector<4x16x384xf32>
    %c0_6 = arith.constant 0 : index
    %c0_7 = arith.constant 0 : index
    %c0_8 = arith.constant 0 : index
    %9 = vector.load %arg5[%c0_6, %c0_7, %c0_8] : memref<1x1x384xf32, #tpu.memory_space<vmem>>, vector<1x1x384xf32>
    %10 = vector.shape_cast %9 : vector<1x1x384xf32> to vector<1x384xf32>
    %11 = vector.shape_cast %10 : vector<1x384xf32> to vector<1x1x384xf32>
    %12 = vector.broadcast %11 : vector<1x1x384xf32> to vector<4x16x384xf32>
    %13 = arith.addf %8, %12 : vector<4x16x384xf32>
    %14 = arith.truncf %13 : vector<4x16x384xf32> to vector<4x16x384xbf16>
    %c0_9 = arith.constant 0 : index
    %c0_10 = arith.constant 0 : index
    %c0_11 = arith.constant 0 : index
    %15 = vector.load %arg8[%c0_9, %c0_10, %c0_11] : memref<4x16x384xbf16, #tpu.memory_space<vmem>>, vector<4x16x384xbf16>
    tpu.vector_store %arg8[%c0_9, %c0_10, %c0_11], %14 {strides = array<i32>} : memref<4x16x384xbf16, #tpu.memory_space<vmem>>, vector<4x16x384xbf16>,
    %c0_12 = arith.constant 0 : index
    %c0_13 = arith.constant 0 : index
    %c0_14 = arith.constant 0 : index
    %16 = vector.load %arg4[%c0_12, %c0_13, %c0_14] : memref<1x128x384xbf16, #tpu.memory_space<vmem>>, vector<1x128x384xbf16>
    %17 = vector.shape_cast %16 : vector<1x128x384xbf16> to vector<128x384xbf16>
    %c0_15 = arith.constant 0 : index
    %c0_16 = arith.constant 0 : index
    %c0_17 = arith.constant 0 : index
    %18 = vector.load %arg6[%c0_15, %c0_16, %c0_17] : memref<1x1x384xf32, #tpu.memory_space<vmem>>, vector<1x1x384xf32>
    %19 = vector.shape_cast %18 : vector<1x1x384xf32> to vector<1x384xf32>
    %c0_18 = arith.constant 0 : index
    %c0_19 = arith.constant 0 : index
    %20 = vector.load %arg9[%c0_18, %c0_19] : memref<16x128xf32, #tpu.memory_space<vmem>>, vector<16x128xf32>
    %c0_i32_20 = arith.constant 0 : i32
    %c3_i32 = arith.constant 3 : i32
    %21 = arith.muli %arg0, %c3_i32 : i32
    %c2_i32 = arith.constant 2 : i32
    %22 = arith.muli %c2_i32, %arg0 : i32
    %c1_i32 = arith.constant 1 : i32
    %23 = arith.subi %c1_i32, %22 : i32
    %24 = arith.muli %23, %c0_i32_20 : i32
    %25 = arith.addi %21, %24 : i32
    %26 = arith.index_cast %25 : i32 to index
    %c0_21 = arith.constant 0 : index
    %c0_22 = arith.constant 0 : index
    %27 = vector.load %arg8[%26, %c0_21, %c0_22] : memref<4x16x384xbf16, #tpu.memory_space<vmem>>, vector<1x16x384xbf16>
    %28 = vector.shape_cast %27 : vector<1x16x384xbf16> to vector<16x384xbf16>
    %29 = arith.extf %28 : vector<16x384xbf16> to vector<16x384xf32>
    %30 = arith.truncf %20 : vector<16x128xf32> to vector<16x128xbf16>
    %cst_23 = arith.constant dense<0.000000e+00> : vector<16x384xf32>
    %31 = tpu.matmul %30, %17, %cst_23 {dimension_numbers = #tpu.dot_dimension_numbers<[1], [0], [0], [1], [0, 0, 1, 1], [], []>} : vector<16x128xbf16>, vector<128x384xbf16>, vector<16x384xf32> -> vector<16x384xf32>
    %32 = vector.broadcast %19 : vector<1x384xf32> to vector<16x384xf32>
    %33 = arith.addf %31, %32 : vector<16x384xf32>
    %34 = vector.extract_strided_slice %29 {offsets = [0, 0], sizes = [16, 128], strides = [1, 1]} : vector<16x384xf32> to vector<16x128xf32>
    %35 = vector.extract_strided_slice %33 {offsets = [0, 0], sizes = [16, 128], strides = [1, 1]} : vector<16x384xf32> to vector<16x128xf32>
    %36 = arith.addf %34, %35 : vector<16x128xf32>
    %37 = arith.negf %36 : vector<16x128xf32>
    %38 = math.exp %37 : vector<16x128xf32>
    %cst_24 = arith.constant 1.000000e+00 : f32
    %39 = vector.broadcast %cst_24 : f32 to vector<16x128xf32>
    %40 = arith.addf %39, %38 : vector<16x128xf32>
    %41 = arith.divf %39, %40 : vector<16x128xf32>
    %42 = vector.extract_strided_slice %29 {offsets = [0, 128], sizes = [16, 128], strides = [1, 1]} : vector<16x384xf32> to vector<16x128xf32>
    %43 = vector.extract_strided_slice %33 {offsets = [0, 128], sizes = [16, 128], strides = [1, 1]} : vector<16x384xf32> to vector<16x128xf32>
    %44 = arith.addf %42, %43 : vector<16x128xf32>
    %45 = arith.negf %44 : vector<16x128xf32>
    %46 = math.exp %45 : vector<16x128xf32>
    %cst_25 = arith.constant 1.000000e+00 : f32
    %47 = vector.broadcast %cst_25 : f32 to vector<16x128xf32>
    %48 = arith.addf %47, %46 : vector<16x128xf32>
    %49 = arith.divf %47, %48 : vector<16x128xf32>
    %50 = vector.extract_strided_slice %29 {offsets = [0, 256], sizes = [16, 128], strides = [1, 1]} : vector<16x384xf32> to vector<16x128xf32>
    %51 = vector.extract_strided_slice %33 {offsets = [0, 256], sizes = [16, 128], strides = [1, 1]} : vector<16x384xf32> to vector<16x128xf32>
    %52 = arith.mulf %41, %51 : vector<16x128xf32>
    %53 = arith.addf %50, %52 : vector<16x128xf32>
    %54 = math.tanh %53 : vector<16x128xf32>
    %cst_26 = arith.constant 1.000000e+00 : f32
    %55 = vector.broadcast %cst_26 : f32 to vector<16x128xf32>
    %56 = arith.subf %55, %49 : vector<16x128xf32>
    %57 = arith.mulf %56, %54 : vector<16x128xf32>
    %58 = arith.mulf %49, %20 : vector<16x128xf32>
    %59 = arith.addf %57, %58 : vector<16x128xf32>
    %60 = arith.truncf %59 : vector<16x128xf32> to vector<16x128xbf16>
    %61 = arith.index_cast %25 : i32 to index
    %c0_27 = arith.constant 0 : index
    %c0_28 = arith.constant 0 : index
    %62 = vector.load %arg7[%61, %c0_27, %c0_28] : memref<4x16x128xbf16, #tpu.memory_space<vmem>>, vector<1x16x128xbf16>
    %63 = vector.shape_cast %62 : vector<1x16x128xbf16> to vector<16x128xbf16>
    %64 = vector.shape_cast %60 : vector<16x128xbf16> to vector<1x16x128xbf16>
    tpu.vector_store %arg7[%61, %c0_27, %c0_28], %64 {strides = array<i32>} : memref<4x16x128xbf16, #tpu.memory_space<vmem>>, vector<1x16x128xbf16>,
    %c1_i32_29 = arith.constant 1 : i32
    %c3_i32_30 = arith.constant 3 : i32
    %65 = arith.muli %arg0, %c3_i32_30 : i32
    %c2_i32_31 = arith.constant 2 : i32
    %66 = arith.muli %c2_i32_31, %arg0 : i32
    %c1_i32_32 = arith.constant 1 : i32
    %67 = arith.subi %c1_i32_32, %66 : i32
    %68 = arith.muli %67, %c1_i32_29 : i32
    %69 = arith.addi %65, %68 : i32
    %70 = arith.index_cast %69 : i32 to index
    %c0_33 = arith.constant 0 : index
    %c0_34 = arith.constant 0 : index
    %71 = vector.load %arg8[%70, %c0_33, %c0_34] : memref<4x16x384xbf16, #tpu.memory_space<vmem>>, vector<1x16x384xbf16>
    %72 = vector.shape_cast %71 : vector<1x16x384xbf16> to vector<16x384xbf16>
    %73 = arith.extf %72 : vector<16x384xbf16> to vector<16x384xf32>
    %74 = arith.truncf %59 : vector<16x128xf32> to vector<16x128xbf16>
    %cst_35 = arith.constant dense<0.000000e+00> : vector<16x384xf32>
    %75 = tpu.matmul %74, %17, %cst_35 {dimension_numbers = #tpu.dot_dimension_numbers<[1], [0], [0], [1], [0, 0, 1, 1], [], []>} : vector<16x128xbf16>, vector<128x384xbf16>, vector<16x384xf32> -> vector<16x384xf32>
    %76 = vector.broadcast %19 : vector<1x384xf32> to vector<16x384xf32>
    %77 = arith.addf %75, %76 : vector<16x384xf32>
    %78 = vector.extract_strided_slice %73 {offsets = [0, 0], sizes = [16, 128], strides = [1, 1]} : vector<16x384xf32> to vector<16x128xf32>
    %79 = vector.extract_strided_slice %77 {offsets = [0, 0], sizes = [16, 128], strides = [1, 1]} : vector<16x384xf32> to vector<16x128xf32>
    %80 = arith.addf %78, %79 : vector<16x128xf32>
    %81 = arith.negf %80 : vector<16x128xf32>
    %82 = math.exp %81 : vector<16x128xf32>
    %cst_36 = arith.constant 1.000000e+00 : f32
    %83 = vector.broadcast %cst_36 : f32 to vector<16x128xf32>
    %84 = arith.addf %83, %82 : vector<16x128xf32>
    %85 = arith.divf %83, %84 : vector<16x128xf32>
    %86 = vector.extract_strided_slice %73 {offsets = [0, 128], sizes = [16, 128], strides = [1, 1]} : vector<16x384xf32> to vector<16x128xf32>
    %87 = vector.extract_strided_slice %77 {offsets = [0, 128], sizes = [16, 128], strides = [1, 1]} : vector<16x384xf32> to vector<16x128xf32>
    %88 = arith.addf %86, %87 : vector<16x128xf32>
    %89 = arith.negf %88 : vector<16x128xf32>
    %90 = math.exp %89 : vector<16x128xf32>
    %cst_37 = arith.constant 1.000000e+00 : f32
    %91 = vector.broadcast %cst_37 : f32 to vector<16x128xf32>
    %92 = arith.addf %91, %90 : vector<16x128xf32>
    %93 = arith.divf %91, %92 : vector<16x128xf32>
    %94 = vector.extract_strided_slice %73 {offsets = [0, 256], sizes = [16, 128], strides = [1, 1]} : vector<16x384xf32> to vector<16x128xf32>
    %95 = vector.extract_strided_slice %77 {offsets = [0, 256], sizes = [16, 128], strides = [1, 1]} : vector<16x384xf32> to vector<16x128xf32>
    %96 = arith.mulf %85, %95 : vector<16x128xf32>
    %97 = arith.addf %94, %96 : vector<16x128xf32>
    %98 = math.tanh %97 : vector<16x128xf32>
    %cst_38 = arith.constant 1.000000e+00 : f32
    %99 = vector.broadcast %cst_38 : f32 to vector<16x128xf32>
    %100 = arith.subf %99, %93 : vector<16x128xf32>
    %101 = arith.mulf %100, %98 : vector<16x128xf32>
    %102 = arith.mulf %93, %59 : vector<16x128xf32>
    %103 = arith.addf %101, %102 : vector<16x128xf32>
    %104 = arith.truncf %103 : vector<16x128xf32> to vector<16x128xbf16>
    %105 = arith.index_cast %69 : i32 to index
    %c0_39 = arith.constant 0 : index
    %c0_40 = arith.constant 0 : index
    %106 = vector.load %arg7[%105, %c0_39, %c0_40] : memref<4x16x128xbf16, #tpu.memory_space<vmem>>, vector<1x16x128xbf16>
    %107 = vector.shape_cast %106 : vector<1x16x128xbf16> to vector<16x128xbf16>
    %108 = vector.shape_cast %104 : vector<16x128xbf16> to vector<1x16x128xbf16>
    tpu.vector_store %arg7[%105, %c0_39, %c0_40], %108 {strides = array<i32>} : memref<4x16x128xbf16, #tpu.memory_space<vmem>>, vector<1x16x128xbf16>,
    %c2_i32_41 = arith.constant 2 : i32
    %c3_i32_42 = arith.constant 3 : i32
    %109 = arith.muli %arg0, %c3_i32_42 : i32
    %c2_i32_43 = arith.constant 2 : i32
    %110 = arith.muli %c2_i32_43, %arg0 : i32
    %c1_i32_44 = arith.constant 1 : i32
    %111 = arith.subi %c1_i32_44, %110 : i32
    %112 = arith.muli %111, %c2_i32_41 : i32
    %113 = arith.addi %109, %112 : i32
    %114 = arith.index_cast %113 : i32 to index
    %c0_45 = arith.constant 0 : index
    %c0_46 = arith.constant 0 : index
    %115 = vector.load %arg8[%114, %c0_45, %c0_46] : memref<4x16x384xbf16, #tpu.memory_space<vmem>>, vector<1x16x384xbf16>
    %116 = vector.shape_cast %115 : vector<1x16x384xbf16> to vector<16x384xbf16>
    %117 = arith.extf %116 : vector<16x384xbf16> to vector<16x384xf32>
    %118 = arith.truncf %103 : vector<16x128xf32> to vector<16x128xbf16>
    %cst_47 = arith.constant dense<0.000000e+00> : vector<16x384xf32>
    %119 = tpu.matmul %118, %17, %cst_47 {dimension_numbers = #tpu.dot_dimension_numbers<[1], [0], [0], [1], [0, 0, 1, 1], [], []>} : vector<16x128xbf16>, vector<128x384xbf16>, vector<16x384xf32> -> vector<16x384xf32>
    %120 = vector.broadcast %19 : vector<1x384xf32> to vector<16x384xf32>
    %121 = arith.addf %119, %120 : vector<16x384xf32>
    %122 = vector.extract_strided_slice %117 {offsets = [0, 0], sizes = [16, 128], strides = [1, 1]} : vector<16x384xf32> to vector<16x128xf32>
    %123 = vector.extract_strided_slice %121 {offsets = [0, 0], sizes = [16, 128], strides = [1, 1]} : vector<16x384xf32> to vector<16x128xf32>
    %124 = arith.addf %122, %123 : vector<16x128xf32>
    %125 = arith.negf %124 : vector<16x128xf32>
    %126 = math.exp %125 : vector<16x128xf32>
    %cst_48 = arith.constant 1.000000e+00 : f32
    %127 = vector.broadcast %cst_48 : f32 to vector<16x128xf32>
    %128 = arith.addf %127, %126 : vector<16x128xf32>
    %129 = arith.divf %127, %128 : vector<16x128xf32>
    %130 = vector.extract_strided_slice %117 {offsets = [0, 128], sizes = [16, 128], strides = [1, 1]} : vector<16x384xf32> to vector<16x128xf32>
    %131 = vector.extract_strided_slice %121 {offsets = [0, 128], sizes = [16, 128], strides = [1, 1]} : vector<16x384xf32> to vector<16x128xf32>
    %132 = arith.addf %130, %131 : vector<16x128xf32>
    %133 = arith.negf %132 : vector<16x128xf32>
    %134 = math.exp %133 : vector<16x128xf32>
    %cst_49 = arith.constant 1.000000e+00 : f32
    %135 = vector.broadcast %cst_49 : f32 to vector<16x128xf32>
    %136 = arith.addf %135, %134 : vector<16x128xf32>
    %137 = arith.divf %135, %136 : vector<16x128xf32>
    %138 = vector.extract_strided_slice %117 {offsets = [0, 256], sizes = [16, 128], strides = [1, 1]} : vector<16x384xf32> to vector<16x128xf32>
    %139 = vector.extract_strided_slice %121 {offsets = [0, 256], sizes = [16, 128], strides = [1, 1]} : vector<16x384xf32> to vector<16x128xf32>
    %140 = arith.mulf %129, %139 : vector<16x128xf32>
    %141 = arith.addf %138, %140 : vector<16x128xf32>
    %142 = math.tanh %141 : vector<16x128xf32>
    %cst_50 = arith.constant 1.000000e+00 : f32
    %143 = vector.broadcast %cst_50 : f32 to vector<16x128xf32>
    %144 = arith.subf %143, %137 : vector<16x128xf32>
    %145 = arith.mulf %144, %142 : vector<16x128xf32>
    %146 = arith.mulf %137, %103 : vector<16x128xf32>
    %147 = arith.addf %145, %146 : vector<16x128xf32>
    %148 = arith.truncf %147 : vector<16x128xf32> to vector<16x128xbf16>
    %149 = arith.index_cast %113 : i32 to index
    %c0_51 = arith.constant 0 : index
    %c0_52 = arith.constant 0 : index
    %150 = vector.load %arg7[%149, %c0_51, %c0_52] : memref<4x16x128xbf16, #tpu.memory_space<vmem>>, vector<1x16x128xbf16>
    %151 = vector.shape_cast %150 : vector<1x16x128xbf16> to vector<16x128xbf16>
    %152 = vector.shape_cast %148 : vector<16x128xbf16> to vector<1x16x128xbf16>
    tpu.vector_store %arg7[%149, %c0_51, %c0_52], %152 {strides = array<i32>} : memref<4x16x128xbf16, #tpu.memory_space<vmem>>, vector<1x16x128xbf16>,
    %c3_i32_53 = arith.constant 3 : i32
    %c3_i32_54 = arith.constant 3 : i32
    %153 = arith.muli %arg0, %c3_i32_54 : i32
    %c2_i32_55 = arith.constant 2 : i32
    %154 = arith.muli %c2_i32_55, %arg0 : i32
    %c1_i32_56 = arith.constant 1 : i32
    %155 = arith.subi %c1_i32_56, %154 : i32
    %156 = arith.muli %155, %c3_i32_53 : i32
    %157 = arith.addi %153, %156 : i32
    %158 = arith.index_cast %157 : i32 to index
    %c0_57 = arith.constant 0 : index
    %c0_58 = arith.constant 0 : index
    %159 = vector.load %arg8[%158, %c0_57, %c0_58] : memref<4x16x384xbf16, #tpu.memory_space<vmem>>, vector<1x16x384xbf16>
    %160 = vector.shape_cast %159 : vector<1x16x384xbf16> to vector<16x384xbf16>
    %161 = arith.extf %160 : vector<16x384xbf16> to vector<16x384xf32>
    %162 = arith.truncf %147 : vector<16x128xf32> to vector<16x128xbf16>
    %cst_59 = arith.constant dense<0.000000e+00> : vector<16x384xf32>
    %163 = tpu.matmul %162, %17, %cst_59 {dimension_numbers = #tpu.dot_dimension_numbers<[1], [0], [0], [1], [0, 0, 1, 1], [], []>} : vector<16x128xbf16>, vector<128x384xbf16>, vector<16x384xf32> -> vector<16x384xf32>
    %164 = vector.broadcast %19 : vector<1x384xf32> to vector<16x384xf32>
    %165 = arith.addf %163, %164 : vector<16x384xf32>
    %166 = vector.extract_strided_slice %161 {offsets = [0, 0], sizes = [16, 128], strides = [1, 1]} : vector<16x384xf32> to vector<16x128xf32>
    %167 = vector.extract_strided_slice %165 {offsets = [0, 0], sizes = [16, 128], strides = [1, 1]} : vector<16x384xf32> to vector<16x128xf32>
    %168 = arith.addf %166, %167 : vector<16x128xf32>
    %169 = arith.negf %168 : vector<16x128xf32>
    %170 = math.exp %169 : vector<16x128xf32>
    %cst_60 = arith.constant 1.000000e+00 : f32
    %171 = vector.broadcast %cst_60 : f32 to vector<16x128xf32>
    %172 = arith.addf %171, %170 : vector<16x128xf32>
    %173 = arith.divf %171, %172 : vector<16x128xf32>
    %174 = vector.extract_strided_slice %161 {offsets = [0, 128], sizes = [16, 128], strides = [1, 1]} : vector<16x384xf32> to vector<16x128xf32>
    %175 = vector.extract_strided_slice %165 {offsets = [0, 128], sizes = [16, 128], strides = [1, 1]} : vector<16x384xf32> to vector<16x128xf32>
    %176 = arith.addf %174, %175 : vector<16x128xf32>
    %177 = arith.negf %176 : vector<16x128xf32>
    %178 = math.exp %177 : vector<16x128xf32>
    %cst_61 = arith.constant 1.000000e+00 : f32
    %179 = vector.broadcast %cst_61 : f32 to vector<16x128xf32>
    %180 = arith.addf %179, %178 : vector<16x128xf32>
    %181 = arith.divf %179, %180 : vector<16x128xf32>
    %182 = vector.extract_strided_slice %161 {offsets = [0, 256], sizes = [16, 128], strides = [1, 1]} : vector<16x384xf32> to vector<16x128xf32>
    %183 = vector.extract_strided_slice %165 {offsets = [0, 256], sizes = [16, 128], strides = [1, 1]} : vector<16x384xf32> to vector<16x128xf32>
    %184 = arith.mulf %173, %183 : vector<16x128xf32>
    %185 = arith.addf %182, %184 : vector<16x128xf32>
    %186 = math.tanh %185 : vector<16x128xf32>
    %cst_62 = arith.constant 1.000000e+00 : f32
    %187 = vector.broadcast %cst_62 : f32 to vector<16x128xf32>
    %188 = arith.subf %187, %181 : vector<16x128xf32>
    %189 = arith.mulf %188, %186 : vector<16x128xf32>
    %190 = arith.mulf %181, %147 : vector<16x128xf32>
    %191 = arith.addf %189, %190 : vector<16x128xf32>
    %192 = arith.truncf %191 : vector<16x128xf32> to vector<16x128xbf16>
    %193 = arith.index_cast %157 : i32 to index
    %c0_63 = arith.constant 0 : index
    %c0_64 = arith.constant 0 : index
    %194 = vector.load %arg7[%193, %c0_63, %c0_64] : memref<4x16x128xbf16, #tpu.memory_space<vmem>>, vector<1x16x128xbf16>
    %195 = vector.shape_cast %194 : vector<1x16x128xbf16> to vector<16x128xbf16>
    %196 = vector.shape_cast %192 : vector<16x128xbf16> to vector<1x16x128xbf16>
    tpu.vector_store %arg7[%193, %c0_63, %c0_64], %196 {strides = array<i32>} : memref<4x16x128xbf16, #tpu.memory_space<vmem>>, vector<1x16x128xbf16>,
    %c4_i32 = arith.constant 4 : i32
    %c0_65 = arith.constant 0 : index
    %c0_66 = arith.constant 0 : index
    %197 = vector.load %arg9[%c0_65, %c0_66] : memref<16x128xf32, #tpu.memory_space<vmem>>, vector<16x128xf32>
    tpu.vector_store %arg9[%c0_65, %c0_66], %191 {strides = array<i32>} : memref<16x128xf32, #tpu.memory_space<vmem>>, vector<16x128xf32>,
    return
  }
  func.func @transform_0(%arg0: i32, %arg1: i32) -> (i32, i32, i32) {
    %c1_i32 = arith.constant 1 : i32
    %0 = arith.muli %arg0, %c1_i32 : i32
    %c2_i32 = arith.constant 2 : i32
    %1 = arith.muli %c2_i32, %arg0 : i32
    %c1_i32_0 = arith.constant 1 : i32
    %2 = arith.subi %c1_i32_0, %1 : i32
    %3 = arith.muli %2, %arg1 : i32
    %4 = arith.addi %0, %3 : i32
    %c0_i32 = arith.constant 0 : i32
    %c0_i32_1 = arith.constant 0 : i32
    %c0_i32_2 = arith.constant 0 : i32
    return %4, %c0_i32, %c0_i32_1 : i32, i32, i32
  }
  func.func @transform_1(%arg0: i32, %arg1: i32) -> (i32, i32, i32) {
    %c0_i32 = arith.constant 0 : i32
    %c0_i32_0 = arith.constant 0 : i32
    %c0_i32_1 = arith.constant 0 : i32
    return %arg0, %c0_i32, %c0_i32_0 : i32, i32, i32
  }
  func.func @transform_2(%arg0: i32, %arg1: i32) -> (i32, i32, i32) {
    %c0_i32 = arith.constant 0 : i32
    %c0_i32_0 = arith.constant 0 : i32
    %c0_i32_1 = arith.constant 0 : i32
    return %arg0, %c0_i32, %c0_i32_0 : i32, i32, i32
  }
  func.func @transform_3(%arg0: i32, %arg1: i32) -> (i32, i32, i32) {
    %c0_i32 = arith.constant 0 : i32
    %c0_i32_0 = arith.constant 0 : i32
    %c0_i32_1 = arith.constant 0 : i32
    return %arg0, %c0_i32, %c0_i32_0 : i32, i32, i32
  }
  func.func @transform_4(%arg0: i32, %arg1: i32) -> (i32, i32, i32) {
    %c0_i32 = arith.constant 0 : i32
    %c0_i32_0 = arith.constant 0 : i32
    %c0_i32_1 = arith.constant 0 : i32
    return %arg0, %c0_i32, %c0_i32_0 : i32, i32, i32
  }
  func.func @transform_5(%arg0: i32, %arg1: i32) -> (i32, i32, i32) {
    %c1_i32 = arith.constant 1 : i32
    %0 = arith.muli %arg0, %c1_i32 : i32
    %c2_i32 = arith.constant 2 : i32
    %1 = arith.muli %c2_i32, %arg0 : i32
    %c1_i32_0 = arith.constant 1 : i32
    %2 = arith.subi %c1_i32_0, %1 : i32
    %3 = arith.muli %2, %arg1 : i32
    %4 = arith.addi %0, %3 : i32
    %c0_i32 = arith.constant 0 : i32
    %c0_i32_1 = arith.constant 0 : i32
    return %4, %c0_i32, %arg0 : i32, i32, i32
  }
}

module attributes {stable_mosaic.version = 11 : i64} {
  func.func @pool_head_kernel(%arg0: i32, %arg1: memref<4x16x256xbf16, #tpu.memory_space<vmem>>, %arg2: memref<1x256xf32, #tpu.memory_space<vmem>>, %arg3: memref<1x1xf32, #tpu.memory_space<vmem>>, %arg4: memref<1x256xf32, #tpu.memory_space<vmem>>, %arg5: memref<1x256xf32, #tpu.memory_space<vmem>>, %arg6: memref<256x128xbf16, #tpu.memory_space<vmem>>, %arg7: memref<1x128xf32, #tpu.memory_space<vmem>>, %arg8: memref<128x128xbf16, #tpu.memory_space<vmem>>, %arg9: memref<1x128xf32, #tpu.memory_space<vmem>>, %arg10: memref<16x128xf32, #tpu.memory_space<vmem>>, %arg11: memref<1x16x1xf32, #tpu.memory_space<vmem>>, %arg12: memref<1x16x1xf32, #tpu.memory_space<vmem>>, %arg13: memref<1x16x256xf32, #tpu.memory_space<vmem>>) attributes {dimension_semantics = [#tpu.dimension_semantics<arbitrary>], iteration_bounds = array<i64: 2>, scalar_prefetch = 0 : i64, scratch_operands = 3 : i64, tpu.core_type = #tpu.core_type<tc>, window_params = [{transform_indices = @transform_0, window_bounds = array<i64: 4, 16, 256>}, {pipeline_mode = #tpu.pipeline_mode<synchronous>, transform_indices = @transform_1, window_bounds = array<i64: 1, 256>}, {pipeline_mode = #tpu.pipeline_mode<synchronous>, transform_indices = @transform_2, window_bounds = array<i64: 1, 1>}, {pipeline_mode = #tpu.pipeline_mode<synchronous>, transform_indices = @transform_3, window_bounds = array<i64: 1, 256>}, {pipeline_mode = #tpu.pipeline_mode<synchronous>, transform_indices = @transform_4, window_bounds = array<i64: 1, 256>}, {pipeline_mode = #tpu.pipeline_mode<synchronous>, transform_indices = @transform_5, window_bounds = array<i64: 256, 128>}, {pipeline_mode = #tpu.pipeline_mode<synchronous>, transform_indices = @transform_6, window_bounds = array<i64: 1, 128>}, {pipeline_mode = #tpu.pipeline_mode<synchronous>, transform_indices = @transform_7, window_bounds = array<i64: 128, 128>}, {pipeline_mode = #tpu.pipeline_mode<synchronous>, transform_indices = @transform_8, window_bounds = array<i64: 1, 128>}, {pipeline_mode = #tpu.pipeline_mode<synchronous>, transform_indices = @transform_9, window_bounds = array<i64: 16, 128>}]} {
    %c0_i32 = arith.constant 0 : i32
    %0 = arith.cmpi eq, %arg0, %c0_i32 : i32
    %1 = arith.extui %0 : i1 to i32
    %c0_i32_0 = arith.constant 0 : i32
    %2 = arith.cmpi ne, %1, %c0_i32_0 : i32
    scf.if %2 {
      %cst_29 = arith.constant 0xFF800000 : f32
      %43 = vector.broadcast %cst_29 : f32 to vector<1x16x1xf32>
      %c0_30 = arith.constant 0 : index
      %c0_31 = arith.constant 0 : index
      %c0_32 = arith.constant 0 : index
      %44 = vector.load %arg11[%c0_30, %c0_31, %c0_32] : memref<1x16x1xf32, #tpu.memory_space<vmem>>, vector<1x16x1xf32>
      tpu.vector_store %arg11[%c0_30, %c0_31, %c0_32], %43 {strides = array<i32>} : memref<1x16x1xf32, #tpu.memory_space<vmem>>, vector<1x16x1xf32>,
      %cst_33 = arith.constant 0.000000e+00 : f32
      %45 = vector.broadcast %cst_33 : f32 to vector<1x16x1xf32>
      %c0_34 = arith.constant 0 : index
      %c0_35 = arith.constant 0 : index
      %c0_36 = arith.constant 0 : index
      %46 = vector.load %arg12[%c0_34, %c0_35, %c0_36] : memref<1x16x1xf32, #tpu.memory_space<vmem>>, vector<1x16x1xf32>
      tpu.vector_store %arg12[%c0_34, %c0_35, %c0_36], %45 {strides = array<i32>} : memref<1x16x1xf32, #tpu.memory_space<vmem>>, vector<1x16x1xf32>,
      %cst_37 = arith.constant 0.000000e+00 : f32
      %47 = vector.broadcast %cst_37 : f32 to vector<1x16x256xf32>
      %c0_38 = arith.constant 0 : index
      %c0_39 = arith.constant 0 : index
      %c0_40 = arith.constant 0 : index
      %48 = vector.load %arg13[%c0_38, %c0_39, %c0_40] : memref<1x16x256xf32, #tpu.memory_space<vmem>>, vector<1x16x256xf32>
      tpu.vector_store %arg13[%c0_38, %c0_39, %c0_40], %47 {strides = array<i32>} : memref<1x16x256xf32, #tpu.memory_space<vmem>>, vector<1x16x256xf32>,
    } else {
    }
    %c0 = arith.constant 0 : index
    %c0_1 = arith.constant 0 : index
    %c0_2 = arith.constant 0 : index
    %3 = vector.load %arg1[%c0, %c0_1, %c0_2] : memref<4x16x256xbf16, #tpu.memory_space<vmem>>, vector<4x16x256xbf16>
    %4 = arith.extf %3 : vector<4x16x256xbf16> to vector<4x16x256xf32>
    %c0_3 = arith.constant 0 : index
    %c0_4 = arith.constant 0 : index
    %5 = vector.load %arg2[%c0_3, %c0_4] : memref<1x256xf32, #tpu.memory_space<vmem>>, vector<1x256xf32>
    %6 = vector.shape_cast %5 : vector<1x256xf32> to vector<1x1x256xf32>
    %7 = vector.broadcast %6 : vector<1x1x256xf32> to vector<4x16x256xf32>
    %8 = arith.mulf %4, %7 : vector<4x16x256xf32>
    %cst = arith.constant dense<0.000000e+00> : vector<4x16xf32>
    %9 = vector.multi_reduction <add>, %8, %cst [2] : vector<4x16x256xf32> to vector<4x16xf32>
    %10 = vector.shape_cast %9 : vector<4x16xf32> to vector<4x16x1xf32>
    %c0_5 = arith.constant 0 : index
    %c0_6 = arith.constant 0 : index
    %11 = vector.load %arg3[%c0_5, %c0_6] : memref<1x1xf32, #tpu.memory_space<vmem>>, vector<1x1xf32>
    %12 = vector.extract %11[0, 0] : f32 from vector<1x1xf32>
    %13 = vector.broadcast %12 : f32 to vector<4x16x1xf32>
    %14 = arith.addf %10, %13 : vector<4x16x1xf32>
    %c0_7 = arith.constant 0 : index
    %c0_8 = arith.constant 0 : index
    %c0_9 = arith.constant 0 : index
    %15 = vector.load %arg11[%c0_7, %c0_8, %c0_9] : memref<1x16x1xf32, #tpu.memory_space<vmem>>, vector<1x16x1xf32>
    %cst_10 = arith.constant dense<0xFF800000> : vector<16x1xf32>
    %16 = vector.multi_reduction <maximumf>, %14, %cst_10 [0] : vector<4x16x1xf32> to vector<16x1xf32>
    %17 = vector.shape_cast %16 : vector<16x1xf32> to vector<1x16x1xf32>
    %18 = arith.maximumf %15, %17 : vector<1x16x1xf32>
    %19 = arith.subf %15, %18 : vector<1x16x1xf32>
    %20 = math.exp %19 : vector<1x16x1xf32>
    %21 = vector.broadcast %18 : vector<1x16x1xf32> to vector<4x16x1xf32>
    %22 = arith.subf %14, %21 : vector<4x16x1xf32>
    %23 = math.exp %22 : vector<4x16x1xf32>
    %c0_11 = arith.constant 0 : index
    %c0_12 = arith.constant 0 : index
    %c0_13 = arith.constant 0 : index
    %24 = vector.load %arg12[%c0_11, %c0_12, %c0_13] : memref<1x16x1xf32, #tpu.memory_space<vmem>>, vector<1x16x1xf32>
    %25 = arith.mulf %20, %24 : vector<1x16x1xf32>
    %cst_14 = arith.constant dense<0.000000e+00> : vector<16x1xf32>
    %26 = vector.multi_reduction <add>, %23, %cst_14 [0] : vector<4x16x1xf32> to vector<16x1xf32>
    %27 = vector.shape_cast %26 : vector<16x1xf32> to vector<1x16x1xf32>
    %28 = arith.addf %25, %27 : vector<1x16x1xf32>
    %c0_15 = arith.constant 0 : index
    %c0_16 = arith.constant 0 : index
    %c0_17 = arith.constant 0 : index
    %29 = vector.load %arg12[%c0_15, %c0_16, %c0_17] : memref<1x16x1xf32, #tpu.memory_space<vmem>>, vector<1x16x1xf32>
    tpu.vector_store %arg12[%c0_15, %c0_16, %c0_17], %28 {strides = array<i32>} : memref<1x16x1xf32, #tpu.memory_space<vmem>>, vector<1x16x1xf32>,
    %c0_18 = arith.constant 0 : index
    %c0_19 = arith.constant 0 : index
    %c0_20 = arith.constant 0 : index
    %30 = vector.load %arg13[%c0_18, %c0_19, %c0_20] : memref<1x16x256xf32, #tpu.memory_space<vmem>>, vector<1x16x256xf32>
    %31 = vector.broadcast %20 : vector<1x16x1xf32> to vector<1x16x256xf32>
    %32 = arith.mulf %31, %30 : vector<1x16x256xf32>
    %33 = vector.broadcast %23 : vector<4x16x1xf32> to vector<4x16x256xf32>
    %34 = arith.mulf %33, %4 : vector<4x16x256xf32>
    %cst_21 = arith.constant dense<0.000000e+00> : vector<16x256xf32>
    %35 = vector.multi_reduction <add>, %34, %cst_21 [0] : vector<4x16x256xf32> to vector<16x256xf32>
    %36 = vector.shape_cast %35 : vector<16x256xf32> to vector<1x16x256xf32>
    %37 = arith.addf %32, %36 : vector<1x16x256xf32>
    %c0_22 = arith.constant 0 : index
    %c0_23 = arith.constant 0 : index
    %c0_24 = arith.constant 0 : index
    %38 = vector.load %arg13[%c0_22, %c0_23, %c0_24] : memref<1x16x256xf32, #tpu.memory_space<vmem>>, vector<1x16x256xf32>
    tpu.vector_store %arg13[%c0_22, %c0_23, %c0_24], %37 {strides = array<i32>} : memref<1x16x256xf32, #tpu.memory_space<vmem>>, vector<1x16x256xf32>,
    %c0_25 = arith.constant 0 : index
    %c0_26 = arith.constant 0 : index
    %c0_27 = arith.constant 0 : index
    %39 = vector.load %arg11[%c0_25, %c0_26, %c0_27] : memref<1x16x1xf32, #tpu.memory_space<vmem>>, vector<1x16x1xf32>
    tpu.vector_store %arg11[%c0_25, %c0_26, %c0_27], %18 {strides = array<i32>} : memref<1x16x1xf32, #tpu.memory_space<vmem>>, vector<1x16x1xf32>,
    %c1_i32 = arith.constant 1 : i32
    %40 = arith.cmpi eq, %arg0, %c1_i32 : i32
    %41 = arith.extui %40 : i1 to i32
    %c0_i32_28 = arith.constant 0 : i32
    %42 = arith.cmpi ne, %41, %c0_i32_28 : i32
    scf.if %42 {
      %c0_29 = arith.constant 0 : index
      %c0_30 = arith.constant 0 : index
      %c0_31 = arith.constant 0 : index
      %43 = vector.load %arg13[%c0_29, %c0_30, %c0_31] : memref<1x16x256xf32, #tpu.memory_space<vmem>>, vector<1x16x256xf32>
      %44 = vector.shape_cast %43 : vector<1x16x256xf32> to vector<16x256xf32>
      %c0_32 = arith.constant 0 : index
      %c0_33 = arith.constant 0 : index
      %c0_34 = arith.constant 0 : index
      %45 = vector.load %arg12[%c0_32, %c0_33, %c0_34] : memref<1x16x1xf32, #tpu.memory_space<vmem>>, vector<1x16x1xf32>
      %46 = vector.shape_cast %45 : vector<1x16x1xf32> to vector<16x1xf32>
      %47 = tpu.reciprocal %46 {approx = true} : vector<16x1xf32> -> vector<16x1xf32>
      %48 = vector.broadcast %47 : vector<16x1xf32> to vector<16x256xf32>
      %49 = arith.mulf %44, %48 : vector<16x256xf32>
      %50 = tpu.iota {dimensions = array<i32: 1>} : vector<1x256xi32>
      %c32_i32 = arith.constant 32 : i32
      %51 = vector.broadcast %c32_i32 : i32 to vector<1x256xi32>
      %52 = arith.cmpi slt, %50, %51 : vector<1x256xi32>
      %c128_i32 = arith.constant 128 : i32
      %53 = vector.broadcast %c128_i32 : i32 to vector<1x256xi32>
      %54 = arith.cmpi sge, %50, %53 : vector<1x256xi32>
      %c160_i32 = arith.constant 160 : i32
      %55 = vector.broadcast %c160_i32 : i32 to vector<1x256xi32>
      %56 = arith.cmpi slt, %50, %55 : vector<1x256xi32>
      %57 = arith.andi %54, %56 : vector<1x256xi1>
      %58 = arith.ori %52, %57 : vector<1x256xi1>
      %cst_35 = arith.constant dense<0.000000e+00> : vector<16xf32>
      %59 = vector.multi_reduction <add>, %49, %cst_35 [1] : vector<16x256xf32> to vector<16xf32>
      %60 = vector.shape_cast %59 : vector<16xf32> to vector<16x1xf32>
      %cst_36 = arith.constant 1.562500e-02 : f32
      %61 = vector.broadcast %cst_36 : f32 to vector<16x1xf32>
      %62 = arith.mulf %60, %61 : vector<16x1xf32>
      %63 = vector.broadcast %62 : vector<16x1xf32> to vector<16x256xf32>
      %64 = arith.subf %49, %63 : vector<16x256xf32>
      %cst_37 = arith.constant 0.000000e+00 : f32
      %65 = vector.shape_cast %58 : vector<1x256xi1> to vector<1x256xi1>
      %66 = vector.broadcast %65 : vector<1x256xi1> to vector<16x256xi1>
      %67 = vector.broadcast %cst_37 : f32 to vector<16x256xf32>
      %68 = arith.select %66, %64, %67 : vector<16x256xi1>, vector<16x256xf32>
      %69 = arith.mulf %68, %68 : vector<16x256xf32>
      %cst_38 = arith.constant dense<0.000000e+00> : vector<16xf32>
      %70 = vector.multi_reduction <add>, %69, %cst_38 [1] : vector<16x256xf32> to vector<16xf32>
      %71 = vector.shape_cast %70 : vector<16xf32> to vector<16x1xf32>
      %cst_39 = arith.constant 1.562500e-02 : f32
      %72 = vector.broadcast %cst_39 : f32 to vector<16x1xf32>
      %73 = arith.mulf %71, %72 : vector<16x1xf32>
      %cst_40 = arith.constant 9.99999974E-6 : f32
      %74 = vector.broadcast %cst_40 : f32 to vector<16x1xf32>
      %75 = arith.addf %73, %74 : vector<16x1xf32>
      %76 = math.rsqrt %75 : vector<16x1xf32>
      %77 = vector.broadcast %76 : vector<16x1xf32> to vector<16x256xf32>
      %78 = arith.mulf %68, %77 : vector<16x256xf32>
      %c0_41 = arith.constant 0 : index
      %c0_42 = arith.constant 0 : index
      %79 = vector.load %arg4[%c0_41, %c0_42] : memref<1x256xf32, #tpu.memory_space<vmem>>, vector<1x256xf32>
      %80 = vector.broadcast %79 : vector<1x256xf32> to vector<16x256xf32>
      %81 = arith.mulf %78, %80 : vector<16x256xf32>
      %c0_43 = arith.constant 0 : index
      %c0_44 = arith.constant 0 : index
      %82 = vector.load %arg5[%c0_43, %c0_44] : memref<1x256xf32, #tpu.memory_space<vmem>>, vector<1x256xf32>
      %83 = vector.broadcast %82 : vector<1x256xf32> to vector<16x256xf32>
      %84 = arith.addf %81, %83 : vector<16x256xf32>
      %85 = arith.truncf %84 : vector<16x256xf32> to vector<16x256xbf16>
      %c0_45 = arith.constant 0 : index
      %c0_46 = arith.constant 0 : index
      %86 = vector.load %arg6[%c0_45, %c0_46] : memref<256x128xbf16, #tpu.memory_space<vmem>>, vector<256x128xbf16>
      %cst_47 = arith.constant dense<0.000000e+00> : vector<16x128xf32>
      %87 = tpu.matmul %85, %86, %cst_47 {dimension_numbers = #tpu.dot_dimension_numbers<[1], [0], [0], [1], [0, 0, 1, 1], [], []>} : vector<16x256xbf16>, vector<256x128xbf16>, vector<16x128xf32> -> vector<16x128xf32>
      %c0_48 = arith.constant 0 : index
      %c0_49 = arith.constant 0 : index
      %88 = vector.load %arg7[%c0_48, %c0_49] : memref<1x128xf32, #tpu.memory_space<vmem>>, vector<1x128xf32>
      %89 = vector.broadcast %88 : vector<1x128xf32> to vector<16x128xf32>
      %90 = arith.addf %87, %89 : vector<16x128xf32>
      %cst_50 = arith.constant 5.000000e-01 : f32
      %91 = vector.broadcast %cst_50 : f32 to vector<16x128xf32>
      %92 = arith.mulf %91, %90 : vector<16x128xf32>
      %cst_51 = arith.constant 0.707106769 : f32
      %93 = vector.broadcast %cst_51 : f32 to vector<16x128xf32>
      %94 = arith.mulf %90, %93 : vector<16x128xf32>
      %95 = math.erf %94 : vector<16x128xf32>
      %cst_52 = arith.constant 1.000000e+00 : f32
      %96 = vector.broadcast %cst_52 : f32 to vector<16x128xf32>
      %97 = arith.addf %96, %95 : vector<16x128xf32>
      %98 = arith.mulf %92, %97 : vector<16x128xf32>
      %99 = arith.truncf %98 : vector<16x128xf32> to vector<16x128xbf16>
      %c0_53 = arith.constant 0 : index
      %c0_54 = arith.constant 0 : index
      %100 = vector.load %arg8[%c0_53, %c0_54] : memref<128x128xbf16, #tpu.memory_space<vmem>>, vector<128x128xbf16>
      %cst_55 = arith.constant dense<0.000000e+00> : vector<16x128xf32>
      %101 = tpu.matmul %99, %100, %cst_55 {dimension_numbers = #tpu.dot_dimension_numbers<[1], [0], [0], [1], [0, 0, 1, 1], [], []>} : vector<16x128xbf16>, vector<128x128xbf16>, vector<16x128xf32> -> vector<16x128xf32>
      %c0_56 = arith.constant 0 : index
      %c0_57 = arith.constant 0 : index
      %102 = vector.load %arg9[%c0_56, %c0_57] : memref<1x128xf32, #tpu.memory_space<vmem>>, vector<1x128xf32>
      %103 = vector.broadcast %102 : vector<1x128xf32> to vector<16x128xf32>
      %104 = arith.addf %101, %103 : vector<16x128xf32>
      %c0_58 = arith.constant 0 : index
      %c0_59 = arith.constant 0 : index
      %105 = vector.load %arg10[%c0_58, %c0_59] : memref<16x128xf32, #tpu.memory_space<vmem>>, vector<16x128xf32>
      tpu.vector_store %arg10[%c0_58, %c0_59], %104 {strides = array<i32>} : memref<16x128xf32, #tpu.memory_space<vmem>>, vector<16x128xf32>,
    } else {
    }
    return
  }
  func.func @transform_0(%arg0: i32) -> (i32, i32, i32) {
    %c0_i32 = arith.constant 0 : i32
    %c0_i32_0 = arith.constant 0 : i32
    %c0_i32_1 = arith.constant 0 : i32
    return %arg0, %c0_i32, %c0_i32_0 : i32, i32, i32
  }
  func.func @transform_1(%arg0: i32) -> (i32, i32) {
    %c0_i32 = arith.constant 0 : i32
    %c0_i32_0 = arith.constant 0 : i32
    %c0_i32_1 = arith.constant 0 : i32
    return %c0_i32, %c0_i32_0 : i32, i32
  }
  func.func @transform_2(%arg0: i32) -> (i32, i32) {
    %c0_i32 = arith.constant 0 : i32
    %c0_i32_0 = arith.constant 0 : i32
    %c0_i32_1 = arith.constant 0 : i32
    return %c0_i32, %c0_i32_0 : i32, i32
  }
  func.func @transform_3(%arg0: i32) -> (i32, i32) {
    %c0_i32 = arith.constant 0 : i32
    %c0_i32_0 = arith.constant 0 : i32
    %c0_i32_1 = arith.constant 0 : i32
    return %c0_i32, %c0_i32_0 : i32, i32
  }
  func.func @transform_4(%arg0: i32) -> (i32, i32) {
    %c0_i32 = arith.constant 0 : i32
    %c0_i32_0 = arith.constant 0 : i32
    %c0_i32_1 = arith.constant 0 : i32
    return %c0_i32, %c0_i32_0 : i32, i32
  }
  func.func @transform_5(%arg0: i32) -> (i32, i32) {
    %c0_i32 = arith.constant 0 : i32
    %c0_i32_0 = arith.constant 0 : i32
    %c0_i32_1 = arith.constant 0 : i32
    return %c0_i32, %c0_i32_0 : i32, i32
  }
  func.func @transform_6(%arg0: i32) -> (i32, i32) {
    %c0_i32 = arith.constant 0 : i32
    %c0_i32_0 = arith.constant 0 : i32
    %c0_i32_1 = arith.constant 0 : i32
    return %c0_i32, %c0_i32_0 : i32, i32
  }
  func.func @transform_7(%arg0: i32) -> (i32, i32) {
    %c0_i32 = arith.constant 0 : i32
    %c0_i32_0 = arith.constant 0 : i32
    %c0_i32_1 = arith.constant 0 : i32
    return %c0_i32, %c0_i32_0 : i32, i32
  }
  func.func @transform_8(%arg0: i32) -> (i32, i32) {
    %c0_i32 = arith.constant 0 : i32
    %c0_i32_0 = arith.constant 0 : i32
    %c0_i32_1 = arith.constant 0 : i32
    return %c0_i32, %c0_i32_0 : i32, i32
  }
  func.func @transform_9(%arg0: i32) -> (i32, i32) {
    %c0_i32 = arith.constant 0 : i32
    %c0_i32_0 = arith.constant 0 : i32
    %c0_i32_1 = arith.constant 0 : i32
    return %c0_i32, %c0_i32_0 : i32, i32
  }
}

</mosaic_0001>

<bundles_post_ra>
// kernel: bigru_attn_forward.7
= control target key start
LH: loop header
LB: loop body
LE: loop exit
PB: predicated region body
PF: predicated region fallthrough
CT: control target
= control target key end

     0   :  { %s1309_s11 = smov 0   ;;  %s1577_s0 = inlined_call_operand.vmem [shape: bf16[8,16,256], index: 0, kind: input, shape index: {}]   ;;  %s1578_s1 = inlined_call_operand.vmem [shape: f32[1,256], index: 1, kind: input, shape index: {}]   ;;  %s1579_s2 = inlined_call_operand.<no memory space> [shape: f32[1,1], index: 2, kind: input, shape index: {}]   ;;  %s1580_s3 = inlined_call_operand.vmem [shape: f32[1,256], index: 3, kind: input, shape index: {}]   ;;  %s1581_s4 = inlined_call_operand.vmem [shape: f32[1,256], index: 4, kind: input, shape index: {}]   ;;  %s1582_s5 = inlined_call_operand.vmem [shape: bf16[256,128], index: 5, kind: input, shape index: {}]   ;;  %s1583_s6 = inlined_call_operand.vmem [shape: f32[1,128], index: 6, kind: input, shape index: {}]   ;;  %s1584_s7 = inlined_call_operand.vmem [shape: bf16[128,128], index: 7, kind: input, shape index: {}]   ;;  %s1585_s8 = inlined_call_operand.vmem [shape: f32[1,128], index: 8, kind: input, shape index: {}]   ;;  %s1586_s9 = inlined_call_operand.vmem [shape: f32[16,128], index: 9, kind: output, shape index: {}]  }
   0x1   :  { %v14_v0 = vstv %s1579_s2 }
   0x2   :  { %15 = vst [vmem:[#allocation5] sm:$0x1] %v14_v0 }
   0x3 LB: > { %s1315_s12 = sadd.s32 4294967295, %s1250_s11   ;;  %p1061_p0 = scmp.ge.s32.totalorder %s1250_s11, 1  ;;  %s1250_s11 = sphi %s1309_s11, %s21_s11  }
   0x4   : > { %p286_p1 = scmp.lt.s32.totalorder %s1250_s11, 3 }
   0x6   : > { %p287_p2 = pnand %p1061_p0, %p286_p1 }
   0x7   : > { %s1062_s13 = sshll.u32 (!%p287_p2), %s1315_s12, 2  ;;  %p1065_p4 = scmp.ne.s32.totalorder (!%p287_p2), %s1315_s12, 0 }
   0x8   : > { %290 = sbr.rel (%p287_p2) target bundleno = 1073 (0x431), region = 56  ;;  %p319_p3 = scmp.lt.s32.totalorder (!%p287_p2), %s1062_s13, 7 }
   0xd   : > { %s1588_s13 = smov (!%p319_p3, %s1062_s13), 7  ;;  %328 = sbr.rel (%p1065_p4) target bundleno = 27 (0x1b), region = 60 }
   0xe   : > { %s1167_s2 = sshll.u32 %s1588_s13, 4 }
   0xf   : > { %s1323_s16 = scalar_lea.vmem %s1577_s0, %s1167_s2 }
  0x12   : > { %vm329_vm0 = vcmask 7168   ;;  %v1252_v1 = vmov -inf   ;;  %v1253_v2 = vmov 0.0  }
  0x13   : > { %330 = vst.msk [vmem:[#allocation2] sm:$0xff] %vm329_vm0, %v1252_v1 }
  0x14   : > { %331 = vst.msk [vmem:[#allocation2 + $0x8] sm:$0xff] %vm329_vm0, %v1252_v1 }
  0x15   : > { %332 = vst.msk [vmem:[#allocation3] sm:$0xff] %vm329_vm0, %v1253_v2 }
  0x16   : > { %333 = vst.msk [vmem:[#allocation3 + $0x8] sm:$0xff] %vm329_vm0, %v1253_v2 }
  0x17   : > { %334 = vst [vmem:[#allocation4 + $0x10] sm:$0xff] %v1253_v2 }
  0x18   : > { %335 = vst [vmem:[#allocation4] sm:$0xff] %v1253_v2 }
  0x19   : > { %336 = vst [vmem:[#allocation4 + $0x18] sm:$0xff] %v1253_v2 }
  0x1a   : > { %337 = vst [vmem:[#allocation4 + $0x8] sm:$0xff] %v1253_v2 }
  0x1b PF: > { %v1327_v3 = vld [vmem:[%s1323_s16 + $0x20] sm:$0xff]  ;;  %v1333_v5 = vld [vmem:[%s1323_s16 + $0x10] sm:$0xff]  ;;  %v1341_v11 = vld [vmem:[%s1323_s16 + $0x28] sm:$0xff]  ;;  %v1254_v62 = vmov 0   ;;  %vm463_vm1 = vcmask 7168   ;;  %p1066_p5 = scmp.ne.s32.totalorder %s1315_s12, 1 }
  0x1c   : > { %v362_v4 = vld [vmem:[%s1578_s1] sm:$0x3]  ;;  %v354_v6 = vunpack.c.l.bf16 %v1327_v3  ;;  %v355_v7 = vunpack.c.h.bf16 %v1327_v3  ;;  %v350_v12 = vunpack.c.l.bf16 %v1333_v5  ;;  %v351_v13 = vunpack.c.h.bf16 %v1333_v5  ;;  %v1348_v16 = vld [vmem:[%s1323_s16 + $0x18] sm:$0xff]  ;;  %v1357_v21 = vld [vmem:[%s1323_s16 + $0x8] sm:$0xff]  ;;  %1208 = vset.pattern.permute.xlu1 %v1254_v62  ;;  %1207 = vset.pattern.permute.xlu0 %v1254_v62 }
  0x1d   : > { %v364_v8 = vperm.slane %v362_v4, 0  ;;  %v365_v9 = vperm.slane %v362_v4, 1  ;;  %v1338_v10 = vld [vmem:[%s1323_s16] sm:$0xff]  ;;  %v356_v19 = vunpack.c.l.bf16 %v1341_v11  ;;  %v357_v20 = vunpack.c.h.bf16 %v1341_v11  ;;  %v1382_v39 = vld [vmem:[%s1323_s16 + $0x38] sm:$0xff]  ;;  %v1387_v41 = vld [vmem:[%s1323_s16 + $0x30] sm:$0xff]  ;;  %1206 = vset.pattern.permute.xlu2 %v1254_v62 }
  0x1e   : > { %v346_v14 = vunpack.c.l.bf16 %v1338_v10  ;;  %v347_v15 = vunpack.c.h.bf16 %v1338_v10  ;;  %v408_v22 = vld [vmem:[#allocation5] sm:$0x1]  ;;  %v352_v28 = vunpack.c.l.bf16 %v1348_v16  ;;  %v353_v31 = vunpack.c.h.bf16 %v1348_v16 }
  0x1f   : > { %v376_v17 = vmul.f32 %v364_v8, %v354_v6  ;;  %v377_v18 = vmul.f32 %v365_v9, %v355_v7  ;;  %v372_v23 = vmul.f32 %v364_v8, %v350_v12  ;;  %v373_v24 = vmul.f32 %v365_v9, %v351_v13  ;;  %1192 = vpush %v408_v22 }
  0x20   : > { %v368_v25 = vmul.f32 %v364_v8, %v346_v14  ;;  %v369_v26 = vmul.f32 %v365_v9, %v347_v15  ;;  %v348_v32 = vunpack.c.l.bf16 %v1357_v21  ;;  %v378_v33 = vmul.f32 %v364_v8, %v356_v19 }
  0x21   : > { %v396_v27 = vadd.f32 %v377_v18, %v376_v17  ;;  %v390_v29 = vadd.f32 %v373_v24, %v372_v23  ;;  %v379_v34 = vmul.f32 %v365_v9, %v357_v20  ;;  %v349_v35 = vunpack.c.h.bf16 %v1357_v21 }
  0x22   : > { %v384_v30 = vadd.f32 %v369_v26, %v368_v25  ;;  %v374_v36 = vmul.f32 %v364_v8, %v352_v28  ;;  %v375_v37 = vmul.f32 %v365_v9, %v353_v31  ;;  %v370_v38 = vmul.f32 %v364_v8, %v348_v32 }
  0x23   : > { %397 = vadd.xlane.f32.xlu2 %v396_v27  ;;  %391 = vadd.xlane.f32.xlu1 %v390_v29  ;;  %v371_v40 = vmul.f32 %v365_v9, %v349_v35  ;;  %v399_v42 = vadd.f32 %v379_v34, %v378_v33  ;;  %v360_v43 = vunpack.c.l.bf16 %v1382_v39  ;;  %v361_v44 = vunpack.c.h.bf16 %v1382_v39  ;;  %v420_v27 = vld [vmem:[#allocation2 + $0x8] sm:$0xff]  ;;  %v419_v29 = vld [vmem:[#allocation2] sm:$0xff] }
  0x24   : > { %385 = vadd.xlane.f32.xlu0 %v384_v30  ;;  %v393_v45 = vadd.f32 %v375_v37, %v374_v36  ;;  %v358_v47 = vunpack.c.l.bf16 %v1387_v41  ;;  %v359_v48 = vunpack.c.h.bf16 %v1387_v41 }
  0x25   : > { %v387_v46 = vadd.f32 %v371_v40, %v370_v38  ;;  %v382_v49 = vmul.f32 %v364_v8, %v360_v43  ;;  %v383_v50 = vmul.f32 %v365_v9, %v361_v44 }
  0x26   : > { %v380_v51 = vmul.f32 %v364_v8, %v358_v47  ;;  %v381_v52 = vmul.f32 %v365_v9, %v359_v48 }
  0x27   : > { %v405_v53 = vadd.f32 %v383_v50, %v382_v49 }
  0x28   : > { %v402_v54 = vadd.f32 %v381_v52, %v380_v51 }
  0x2b   : > { %400 = vadd.xlane.f32.xlu2 %v399_v42  ;;  %394 = vadd.xlane.f32.xlu1 %v393_v45 }
  0x2c   : > { %388 = vadd.xlane.f32.xlu0 %v387_v46 }
  0x33   : > { %406 = vadd.xlane.f32.xlu1 %v405_v53 }
  0x34   : > { %403 = vadd.xlane.f32.xlu0 %v402_v54 }
  0x50   : > { %s1193_s19 = spop %1192 }
  0x51   : > { %v410_v60 = vstv %s1193_s19 }
  0x96   : > { %v392_v55 = vpop.xlane.xlu1 %391  ;;  %v398_v57 = vpop.xlane.xlu2 %397 }
  0x97   : > { %v386_v56 = vpop.xlane.xlu0 %385  ;;  %v415_v63 = vadd.f32 %v410_v60, %v398_v57  ;;  %v413_v17 = vadd.f32 %v410_v60, %v392_v55 }
  0x98   : > { %v411_v0 = vadd.f32 %v410_v60, %v386_v56 }
  0x9a   : > { %v421_v23 = vmax.f32 %v411_v0, %v415_v63 }
  0x9e   : > { %v395_v58 = vpop.xlane.xlu1 %394  ;;  %v401_v61 = vpop.xlane.xlu2 %400 }
  0x9f   : > { %v389_v59 = vpop.xlane.xlu0 %388  ;;  %v416_v1 = vadd.f32 %v410_v60, %v401_v61  ;;  %v414_v2 = vadd.f32 %v410_v60, %v395_v58 }
  0xa0   : > { %v412_v4 = vadd.f32 %v410_v60, %v389_v59 }
  0xa2   : > { %v424_v24 = vmax.f32 %v412_v4, %v416_v1 }
  0xa6   : > { %v407_v8 = vpop.xlane.xlu1 %406 }
  0xa7   : > { %v404_v9 = vpop.xlane.xlu0 %403  ;;  %v418_v18 = vadd.f32 %v410_v60, %v407_v8 }
  0xa8   : > { %v417_v22 = vadd.f32 %v410_v60, %v404_v9 }
  0xa9   : > { %v425_v25 = vmax.f32 %v414_v2, %v418_v18 }
  0xaa   : > { %v422_v26 = vmax.f32 %v413_v17, %v417_v22 }
  0xab   : > { %v426_v30 = vmax.f32 %v424_v24, %v425_v25 }
  0xac   : > { %v423_v33 = vmax.f32 %v421_v23, %v422_v26 }
  0xad   : > { %v428_v34 = vmax.f32 %v420_v27, %v426_v30 }
  0xae   : > { %v427_v36 = vmax.f32 %v419_v29, %v423_v33 }
  0xaf   : > { %v430_v37 = vsub.f32 %v420_v27, %v428_v34  ;;  %v436_v38 = vsub.f32 %v412_v4, %v428_v34  ;;  %v438_v40 = vsub.f32 %v414_v2, %v428_v34  ;;  %v440_v42 = vsub.f32 %v416_v1, %v428_v34  ;;  %577 = vst.msk [vmem:[#allocation2 + $0x8] sm:$0xff] %vm463_vm1, %v428_v34 }
  0xb0   : > { %v442_v45 = vsub.f32 %v418_v18, %v428_v34  ;;  %v429_v46 = vsub.f32 %v419_v29, %v427_v36  ;;  %576 = vst.msk [vmem:[#allocation2] sm:$0xff] %vm463_vm1, %v427_v36  ;;  %v435_v52 = vsub.f32 %v411_v0, %v427_v36  ;;  %v437_v54 = vsub.f32 %v413_v17, %v427_v36 }
  0xb1   : > { %v433_v49 = vmul.f32 1.442695, %v430_v37  ;;  %v445_v50 = vmul.f32 1.442695, %v436_v38  ;;  %v449_v51 = vmul.f32 1.442695, %v438_v40  ;;  %v439_v56 = vsub.f32 %v415_v63, %v427_v36 }
  0xb2   : > { %v453_v53 = vmul.f32 1.442695, %v440_v42  ;;  %v457_v55 = vmul.f32 1.442695, %v442_v45  ;;  %v431_v57 = vmul.f32 1.442695, %v429_v46  ;;  %v441_v58 = vsub.f32 %v417_v22, %v427_v36 }
  0xb3   : > { %1209 = vpow2.f32 %v433_v49  ;;  %v443_v59 = vmul.f32 1.442695, %v435_v52  ;;  %v447_v60 = vmul.f32 1.442695, %v437_v54  ;;  %v451_v61 = vmul.f32 1.442695, %v439_v56 }
  0xb4   : > { %1211 = vpow2.f32 %v445_v50  ;;  %v455_v62 = vmul.f32 1.442695, %v441_v58  ;;  %v460_v22 = vld [vmem:[#allocation3 + $0x8] sm:$0xff]  ;;  %v459_v42 = vld [vmem:[#allocation3] sm:$0xff] }
  0xb5   : > { %1213 = vpow2.f32 %v449_v51 }
  0xb6   : > { %1215 = vpow2.f32 %v453_v53 }
  0xb7   : > { %1217 = vpow2.f32 %v457_v55 }
  0xb8   : > { %1219 = vpow2.f32 %v431_v57 }
  0xb9   : > { %v1210_v1 = vpop.eup %1209  ;;  %1221 = vpow2.f32 %v443_v59 }
  0xba   : > { %v1212_v2 = vpop.eup %1211  ;;  %1223 = vpow2.f32 %v447_v60  ;;  %493 = vperm.xlu0 %1207, %v1210_v1   ;;  %v462_v33 = vmul.f32 %v1210_v1, %v460_v22 }
  0xbb   : > { %v1214_v0 = vpop.eup %1213  ;;  %v471_v4 = vsel %vm463_vm1, %v1212_v2, 0.0  ;;  %1225 = vpow2.f32 %v451_v61 }
  0xbc   : > { %v1216_v63 = vpop.eup %1215  ;;  %v472_v8 = vsel %vm463_vm1, %v1214_v0, 0.0  ;;  %1227 = vpow2.f32 %v455_v62 }
  0xbd   : > { %v1218_v9 = vpop.eup %1217  ;;  %v473_v17 = vadd.f32 %v472_v8, %v471_v4  ;;  %v474_v23 = vsel %vm463_vm1, %v1216_v63, 0.0  ;;  %v482_v8 = vld [vmem:[#allocation4 + $0x10] sm:$0xff] }
  0xbe   : > { %v1220_v18 = vpop.eup %1219  ;;  %v476_v27 = vsel %vm463_vm1, %v1218_v9, 0.0 }
  0xbf   : > { %v1222_v24 = vpop.eup %1221  ;;  %v475_v25 = vadd.f32 %v474_v23, %v473_v17  ;;  %488 = vperm.xlu2 %1206, %v1220_v18   ;;  %v461_v50 = vmul.f32 %v1220_v18, %v459_v42 }
  0xc0   : > { %v1224_v26 = vpop.eup %1223  ;;  %v464_v29 = vsel %vm463_vm1, %v1222_v24, 0.0  ;;  %502 = vperm.xlu1 %1208, %v1222_v24  }
  0xc1   : > { %v1226_v30 = vpop.eup %1225  ;;  %v477_v34 = vadd.f32 %v476_v27, %v475_v25  ;;  %v465_v36 = vsel %vm463_vm1, %v1224_v26, 0.0 }
  0xc2   : > { %v1228_v37 = vpop.eup %1227  ;;  %v466_v38 = vadd.f32 %v465_v36, %v464_v29  ;;  %v467_v45 = vsel %vm463_vm1, %v1226_v30, 0.0 }
  0xc3   : > { %v479_v40 = vadd.f32 %v477_v34, %v462_v33  ;;  %532 = vperm.xlu0 %1207, %v1228_v37   ;;  %v469_v49 = vsel %vm463_vm1, %v1228_v37, 0.0 }
  0xc4   : > { %v468_v46 = vadd.f32 %v467_v45, %v466_v38 }
  0xc5   : > { %481 = vst.msk [vmem:[#allocation3 + $0x8] sm:$0xff] %vm463_vm1, %v479_v40 }
  0xc6   : > { %v470_v51 = vadd.f32 %v469_v49, %v468_v46 }
  0xc7   : > { %507 = vperm.xlu2 %1206, %v1212_v2  }
  0xc8   : > { %v478_v52 = vadd.f32 %v470_v51, %v461_v50  ;;  %517 = vperm.xlu1 %1208, %v1214_v0  }
  0xca   : > { %480 = vst.msk [vmem:[#allocation3] sm:$0xff] %vm463_vm1, %v478_v52 }
  0xcf   : > { %512 = vperm.xlu2 %1206, %v1224_v26  }
  0xd0   : > { %527 = vperm.xlu1 %1208, %v1216_v63  }
  0xd7   : > { %522 = vperm.xlu2 %1206, %v1226_v30   ;;  %v485_v30 = vld [vmem:[#allocation4 + $0x8] sm:$0xff] }
  0xdf   : > { %537 = vperm.xlu2 %1206, %v1218_v9  }
 0x119   : > { %v489_v53 = vpop.permute.xlu2 %488 }
 0x121   : > { %v508_v54 = vpop.permute.xlu2 %507 }
 0x122   : > { %v542_v41 = vmul.f32 %v508_v54, %v348_v32 }
 0x129   : > { %v513_v55 = vpop.permute.xlu2 %512 }
 0x12a   : > { %v544_v59 = vmul.f32 %v513_v55, %v350_v12  ;;  %v545_v60 = vmul.f32 %v513_v55, %v351_v13  ;;  %v483_v12 = vld [vmem:[#allocation4] sm:$0xff] }
 0x12b   : > { %v497_v9 = vmul.f32 %v489_v53, %v483_v12 }
 0x12c   : > { %v494_v56 = vpop.permute.xlu0 %493 }
 0x12d   : > { %v499_v33 = vmul.f32 %v494_v56, %v485_v30 }
 0x131   : > { %v523_v58 = vpop.permute.xlu2 %522 }
 0x132   : > { %v503_v57 = vpop.permute.xlu1 %502  ;;  %v548_v0 = vmul.f32 %v523_v58, %v354_v6  ;;  %v549_v4 = vmul.f32 %v523_v58, %v355_v7 }
 0x133   : > { %v540_v61 = vmul.f32 %v503_v57, %v346_v14  ;;  %v541_v62 = vmul.f32 %v503_v57, %v347_v15  ;;  %v496_v15 = vmul.f32 %v489_v53, %v482_v8 }
 0x135   : > { %v556_v1 = vadd.f32 %v544_v59, %v540_v61  ;;  %v559_v2 = vadd.f32 %v545_v60, %v541_v62  ;;  %v533_v63 = vpop.permute.xlu0 %532 }
 0x136   : > { %v552_v5 = vmul.f32 %v533_v63, %v358_v47  ;;  %v553_v13 = vmul.f32 %v533_v63, %v359_v48  ;;  %v543_v47 = vmul.f32 %v508_v54, %v349_v35 }
 0x137   : > { %v557_v14 = vadd.f32 %v556_v1, %v548_v0  ;;  %v560_v10 = vadd.f32 %v559_v2, %v549_v4 }
 0x139   : > { %v558_v17 = vadd.f32 %v557_v14, %v552_v5  ;;  %v561_v18 = vadd.f32 %v560_v10, %v553_v13  ;;  %v538_v48 = vpop.permute.xlu2 %537 }
 0x13a   : > { %v518_v22 = vpop.permute.xlu1 %517  ;;  %v554_v16 = vmul.f32 %v538_v48, %v360_v43 }
 0x13b   : > { %v568_v6 = vadd.f32 %v558_v17, %v496_v15  ;;  %v569_v23 = vadd.f32 %v561_v18, %v497_v9  ;;  %v546_v3 = vmul.f32 %v518_v22, %v352_v28  ;;  %v547_v7 = vmul.f32 %v518_v22, %v353_v31  ;;  %v484_v28 = vld [vmem:[#allocation4 + $0x18] sm:$0xff] }
 0x13c   : > { %v555_v31 = vmul.f32 %v538_v48, %v361_v44  ;;  %v498_v35 = vmul.f32 %v494_v56, %v484_v28 }
 0x13d   : > { %572 = vst [vmem:[#allocation4 + $0x10] sm:$0xff] %v568_v6  ;;  %v562_v25 = vadd.f32 %v546_v3, %v542_v41  ;;  %v565_v26 = vadd.f32 %v547_v7, %v543_v47 }
 0x13e   : > { %573 = vst [vmem:[#allocation4] sm:$0xff] %v569_v23 }
 0x142   : > { %v528_v24 = vpop.permute.xlu1 %527 }
 0x143   : > { %v550_v27 = vmul.f32 %v528_v24, %v356_v19  ;;  %v551_v29 = vmul.f32 %v528_v24, %v357_v20 }
 0x145   : > { %v563_v21 = vadd.f32 %v562_v25, %v550_v27  ;;  %v566_v32 = vadd.f32 %v565_v26, %v551_v29 }
 0x147   : > { %v564_v34 = vadd.f32 %v563_v21, %v554_v16  ;;  %v567_v36 = vadd.f32 %v566_v32, %v555_v31 }
 0x148   : > { %581 = sbr.rel (%p1066_p5) target bundleno = 1073 (0x431), region = 64 }
 0x149   : > { %v570_v37 = vadd.f32 %v564_v34, %v498_v35  ;;  %v571_v38 = vadd.f32 %v567_v36, %v499_v33 }
 0x14b   : > { %574 = vst [vmem:[#allocation4 + $0x18] sm:$0xff] %v570_v37 }
 0x14c   : > { %575 = vst [vmem:[#allocation4 + $0x8] sm:$0xff] %v571_v38 }
 0x14d   : > { %v586_v11 = vld [vmem:[#allocation3] sm:$0xff]  ;;  %v1255_v19 = vmov 0   ;;  %v587_v20 = vld [vmem:[#allocation3 + $0x8] sm:$0xff]  ;;  %v583_v40 = vld [vmem:[#allocation4] sm:$0xff]  ;;  %v604_v56 = vlaneseq }
 0x14e   : > { %1229 = vset.pattern.permute.xlu0 %v1255_v19  ;;  %1232 = vrcp.f32 %v586_v11  ;;  %v582_v44 = vld [vmem:[#allocation4 + $0x10] sm:$0xff]  ;;  %v1175_v18 = vld [vmem:[%s1582_s5 + $0x38] sm:$0xff]  ;;  %v1173_v3 = vld [vmem:[%s1582_s5 + $0x28] sm:$0xff] }
 0x14f   : > { %1234 = vrcp.f32 %v587_v20  ;;  %v605_v57 = vand.u32 127, %v604_v56  ;;  %v1183_v22 = vld [vmem:[%s1582_s5 + $0x78] sm:$0xff]  ;;  %829 = vmatpush.bf16.msra.mxu0 %v1175_v18  ;;  %v1174_v6 = vld [vmem:[%s1582_s5 + $0x30] sm:$0xff]  ;;  %v1181_v7 = vld [vmem:[%s1582_s5 + $0x68] sm:$0xff] }
 0x150   : > { %843 = vmatpush.bf16.msra.mxu1 %v1183_v22  ;;  %v1182_v23 = vld [vmem:[%s1582_s5 + $0x70] sm:$0xff]  ;;  %v1172_v41 = vld [vmem:[%s1582_s5 + $0x20] sm:$0xff]  ;;  %v1171_v48 = vld [vmem:[%s1582_s5 + $0x18] sm:$0xff] }
 0x151   : > { %v606_v58 = vadd.s32 128, %v605_v57  ;;  %vm607_vm2 = vcmp.lt.s32.totalorder %v605_v57, 32  ;;  %v1180_v47 = vld [vmem:[%s1582_s5 + $0x60] sm:$0xff]  ;;  %v1179_v24 = vld [vmem:[%s1582_s5 + $0x58] sm:$0xff]  ;;  %v1170_v25 = vld [vmem:[%s1582_s5 + $0x10] sm:$0xff] }
 0x152   : > { %v584_v50 = vld [vmem:[#allocation4 + $0x18] sm:$0xff]  ;;  %v1178_v26 = vld [vmem:[%s1582_s5 + $0x50] sm:$0xff]  ;;  %v1169_v27 = vld [vmem:[%s1582_s5 + $0x8] sm:$0xff] }
 0x153   : > { %v585_v51 = vld [vmem:[#allocation4 + $0x8] sm:$0xff]  ;;  %vm612_vm3 = vcmp.lt.s32.totalorder %v606_v58, 160  ;;  %830 = vmatpush.bf16.msra.mxu0 %v1174_v6  ;;  %v1168_v30 = vld [vmem:[%s1582_s5] sm:$0xff] }
 0x154   : > { %v1233_v39 = vpop.eup %1232  ;;  %844 = vmatpush.bf16.msra.mxu1 %v1182_v23  ;;  %v1177_v29 = vld [vmem:[%s1582_s5 + $0x48] sm:$0xff]  ;;  %v1176_v16 = vld [vmem:[%s1582_s5 + $0x40] sm:$0xff] }
 0x155   : > { %592 = vperm.xlu0 %1229, %v1233_v39   ;;  %v1235_v43 = vpop.eup %1234  ;;  %v1189_v22 = vld [vmem:[%s1584_s7 + $0x28] sm:$0xff] }
 0x157   : > { %831 = vmatpush.bf16.msra.mxu0 %v1173_v3 }
 0x158   : > { %845 = vmatpush.bf16.msra.mxu1 %v1181_v7 }
 0x15b   : > { %832 = vmatpush.bf16.msra.mxu0 %v1172_v41 }
 0x15c   : > { %846 = vmatpush.bf16.msra.mxu1 %v1180_v47 }
 0x15d   : > { %597 = vperm.xlu0 %1229, %v1235_v43  }
 0x15f   : > { %833 = vmatpush.bf16.msra.mxu0 %v1171_v48  ;;  %v1188_v48 = vld [vmem:[%s1584_s7 + $0x20] sm:$0xff] }
 0x160   : > { %847 = vmatpush.bf16.msra.mxu1 %v1179_v24 }
 0x163   : > { %834 = vmatpush.bf16.msra.mxu0 %v1170_v25 }
 0x164   : > { %848 = vmatpush.bf16.msra.mxu1 %v1178_v26 }
 0x167   : > { %835 = vmatpush.bf16.msra.mxu0 %v1169_v27 }
 0x168   : > { %849 = vmatpush.bf16.msra.mxu1 %v1177_v29 }
 0x16b   : > { %836 = vmatpush.bf16.msra.mxu0 %v1168_v30 }
 0x16c   : > { %850 = vmatpush.bf16.msra.mxu1 %v1176_v16 }
 0x1c7   : > { %v593_v42 = vpop.permute.xlu0 %592 }
 0x1c8   : > { %v600_v45 = vmul.f32 %v593_v42, %v582_v44  ;;  %v601_v46 = vmul.f32 %v593_v42, %v583_v40  ;;  %v675_v42 = vld [vmem:[%s1580_s3] sm:$0x3] }
 0x1ca   : > { %v617_v49 = vadd.f32 %v601_v46, %v600_v45 }
 0x1cc   : > { %618 = vadd.xlane.f32.xlu1 %v617_v49  ;;  %v677_v49 = vperm.slane %v675_v42, 0 }
 0x1cf   : > { %v598_v52 = vpop.permute.xlu0 %597 }
 0x1d0   : > { %v602_v53 = vmul.f32 %v598_v52, %v584_v50  ;;  %v603_v54 = vmul.f32 %v598_v52, %v585_v51  ;;  %v685_v50 = vld [vmem:[%s1581_s4] sm:$0x3]  ;;  %v678_v52 = vperm.slane %v675_v42, 1 }
 0x1d1   : > { %v688_v56 = vperm.slane %v685_v50, 1 }
 0x1d2   : > { %v620_v55 = vadd.f32 %v603_v54, %v602_v53 }
 0x1d4   : > { %621 = vadd.xlane.f32.xlu1 %v620_v55  ;;  %v687_v55 = vperm.slane %v685_v50, 0 }
 0x23f   : > { %v619_v59 = vpop.xlane.xlu1 %618 }
 0x240   : > { %v623_v60 = vmul.f32 0.015625, %v619_v59 }
 0x242   : > { %v625_v61 = vsub.f32 %v600_v45, %v623_v60  ;;  %v626_v62 = vsub.f32 %v601_v46, %v623_v60 }
 0x244   : > { %v1446_v1 = vsel %vm607_vm2, %v625_v61, 0.0  ;;  %v1448_v2 = vsel %vm612_vm3, %v626_v62, 0.0 }
 0x245   : > { %v637_v0 = vmul.f32 %v1446_v1, %v1446_v1  ;;  %v638_v4 = vmul.f32 %v1448_v2, %v1448_v2 }
 0x247   : > { %v622_v63 = vpop.xlane.xlu1 %621  ;;  %v641_v8 = vadd.f32 %v638_v4, %v637_v0 }
 0x248   : > { %v624_v12 = vmul.f32 0.015625, %v622_v63 }
 0x249   : > { %642 = vadd.xlane.f32.xlu2 %v641_v8 }
 0x24a   : > { %v627_v5 = vsub.f32 %v602_v53, %v624_v12  ;;  %v628_v13 = vsub.f32 %v603_v54, %v624_v12  ;;  %v1230_v12 = vld [vmem:[%s1583_s6] ss:$0 sm:$0xff] }
 0x24c   : > { %v1454_v14 = vsel %vm607_vm2, %v627_v5, 0.0  ;;  %v1456_v10 = vsel %vm612_vm3, %v628_v13, 0.0 }
 0x24d   : > { %v639_v15 = vmul.f32 %v1454_v14, %v1454_v14  ;;  %v640_v9 = vmul.f32 %v1456_v10, %v1456_v10 }
 0x24f   : > { %v644_v17 = vadd.f32 %v640_v9, %v639_v15 }
 0x251   : > { %645 = vadd.xlane.f32.xlu2 %v644_v17  ;;  %v1190_v17 = vld [vmem:[%s1584_s7 + $0x30] sm:$0xff] }
 0x2bc   : > { %v643_v28 = vpop.xlane.xlu2 %642 }
 0x2bd   : > { %v647_v31 = vmul.f32 0.015625, %v643_v28  ;;  %v1187_v28 = vld [vmem:[%s1584_s7 + $0x18] sm:$0xff] }
 0x2bf   : > { %v649_v21 = vadd.f32 1e-05, %v647_v31 }
 0x2c1   : > { %1236 = vrsqrt.f32 %v649_v21  ;;  %vm657_vm5 = vweird.f32 %v649_v21 }
 0x2c4   : > { %v646_v32 = vpop.xlane.xlu2 %645 }
 0x2c5   : > { %v648_v35 = vmul.f32 0.015625, %v646_v32 }
 0x2c7   : > { %v1237_v33 = vpop.eup %1236  ;;  %v650_v34 = vadd.f32 1e-05, %v648_v35  ;;  %v1186_v35 = vld [vmem:[%s1584_s7 + $0x10] sm:$0xff] }
 0x2c8   : > { %v652_v36 = vmul.f32 %v1237_v33, %v649_v21  ;;  %vm658_vm4 = vweird.f32 %v1237_v33 }
 0x2c9   : > { %1238 = vrsqrt.f32 %v650_v34  ;;  %vm659_vm6 = vmor %vm657_vm5, %vm658_vm4  ;;  %vm667_vm8 = vweird.f32 %v650_v34 }
 0x2ca   : > { %v653_v37 = vmul.f32 %v1237_v33, %v652_v36 }
 0x2cc   : > { %v654_v38 = vmul.f32 0.5, %v653_v37 }
 0x2ce   : > { %v655_v11 = vsub.f32 1.5, %v654_v38 }
 0x2cf   : > { %v1239_v19 = vpop.eup %1238 }
 0x2d0   : > { %v656_v20 = vmul.f32 %v1237_v33, %v655_v11  ;;  %v662_v39 = vmul.f32 %v1239_v19, %v650_v34  ;;  %vm668_vm7 = vweird.f32 %v1239_v19 }
 0x2d1   : > { %vm669_vm9 = vmor %vm667_vm8, %vm668_vm7 }
 0x2d2   : > { %v663_v43 = vmul.f32 %v1239_v19, %v662_v39  ;;  %v660_v40 = vsel %vm659_vm6, %v1237_v33, %v656_v20  ;;  %v1185_v20 = vld [vmem:[%s1584_s7 + $0x8] sm:$0xff] }
 0x2d3   : > { %v671_v46 = vmul.f32 %v660_v40, %v1446_v1  ;;  %v672_v51 = vmul.f32 %v660_v40, %v1448_v2 }
 0x2d4   : > { %v664_v44 = vmul.f32 0.5, %v663_v43 }
 0x2d5   : > { %v681_v58 = vmul.f32 %v677_v49, %v671_v46  ;;  %v682_v60 = vmul.f32 %v678_v52, %v672_v51  ;;  %v1184_v46 = vld [vmem:[%s1584_s7] sm:$0xff] }
 0x2d6   : > { %v665_v45 = vsub.f32 1.5, %v664_v44 }
 0x2d7   : > { %v691_v1 = vadd.f32 %v687_v55, %v681_v58  ;;  %v692_v4 = vadd.f32 %v688_v56, %v682_v60 }
 0x2d8   : > { %v666_v53 = vmul.f32 %v1239_v19, %v665_v45 }
 0x2da   : > { %v670_v54 = vsel %vm669_vm9, %v1239_v19, %v666_v53 }
 0x2db   : > { %v673_v57 = vmul.f32 %v670_v54, %v1454_v14  ;;  %v674_v59 = vmul.f32 %v670_v54, %v1456_v10  ;;  %v1191_v10 = vld [vmem:[%s1584_s7 + $0x38] sm:$0xff] }
 0x2dc   : > { %1014 = vmatpush.bf16.msra.mxu2 %v1191_v10 }
 0x2dd   : > { %v683_v61 = vmul.f32 %v677_v49, %v673_v57  ;;  %v684_v62 = vmul.f32 %v678_v52, %v674_v59 }
 0x2df   : > { %v693_v0 = vadd.f32 %v687_v55, %v683_v61  ;;  %v694_v63 = vadd.f32 %v688_v56, %v684_v62 }
 0x2e0   : > { %1015 = vmatpush.bf16.msra.mxu2 %v1190_v17 }
 0x2e1   : > { %v695_v2 = vpack.c.bf16 %v693_v0, %v691_v1  ;;  %v696_v8 = vpack.c.bf16 %v694_v63, %v692_v4 }
 0x2e3   : > { %837 = vmatmul.bf16.vlgmr.msra.gmra.mxu0 %v695_v2  ;;  %851 = vmatmul.bf16.vlgmr.msra.gmra.mxu1 %v696_v8 }
 0x2e4   : > { %1016 = vmatpush.bf16.msra.mxu2 %v1189_v22 }
 0x2e8   : > { %1017 = vmatpush.bf16.msra.mxu2 %v1188_v48 }
 0x2ec   : > { %1018 = vmatpush.bf16.msra.mxu2 %v1187_v28 }
 0x2f0   : > { %1019 = vmatpush.bf16.msra.mxu2 %v1186_v35 }
 0x2f4   : > { %1020 = vmatpush.bf16.msra.mxu2 %v1185_v20 }
 0x2f8   : > { %1021 = vmatpush.bf16.msra.mxu2 %v1184_v46 }
 0x360   : > { %v838_v5 = vpop.f32.mrf.mxu0  ;;  %v852_v13 = vpop.f32.mrf.mxu1 }
 0x361   : > { %v839_v14 = vadd.f32 %v1230_v12, %v838_v5 }
 0x363   : > { %v1526_v15 = vadd.f32 %v852_v13, %v839_v14 }
 0x365   : > { %v1529_v9 = vmul.f32 0.70710677, %v1526_v15 }
 0x367   : > { %v861_v18 = vmul.f32 %v1529_v9, %v1529_v9 }
 0x368   : > { %v840_v6 = vpop.f32.mrf.mxu0  ;;  %v854_v7 = vpop.f32.mrf.mxu1 }
 0x369   : > { %v862_v23 = vmin.f32 %v861_v18, 16.0  ;;  %v841_v3 = vadd.f32 %v1230_v12, %v840_v6 }
 0x36b   : > { %v863_v41 = vmul.f32 2.1237322e-06, %v862_v23  ;;  %v1539_v47 = vadd.f32 %v854_v7, %v841_v3  ;;  %v874_v24 = vmul.f32 3.8918573e-05, %v862_v23 }
 0x36d   : > { %v864_v25 = vadd.f32 0.00028619796, %v863_v41  ;;  %v1545_v26 = vmul.f32 0.70710677, %v1539_v47  ;;  %v875_v27 = vadd.f32 0.001143296, %v874_v24 }
 0x36f   : > { %v901_v29 = vmul.f32 %v1545_v26, %v1545_v26  ;;  %v865_v30 = vmul.f32 %v864_v25, %v862_v23  ;;  %v876_v16 = vmul.f32 %v875_v27, %v862_v23 }
 0x371   : > { %v902_v31 = vmin.f32 %v901_v29, 16.0  ;;  %v877_v21 = vadd.f32 0.014752088, %v876_v16  ;;  %v866_v34 = vadd.f32 0.0036580483, %v865_v30 }
 0x373   : > { %v903_v32 = vmul.f32 2.1237322e-06, %v902_v31  ;;  %v914_v33 = vmul.f32 3.8918573e-05, %v902_v31  ;;  %v878_v36 = vmul.f32 %v877_v21, %v862_v23  ;;  %v867_v43 = vmul.f32 %v866_v34, %v862_v23 }
 0x374   : > { %v858_v34 = vmul.f32 0.5, %v1539_v47 }
 0x375   : > { %v904_v37 = vadd.f32 0.00028619796, %v903_v32  ;;  %v915_v38 = vadd.f32 0.001143296, %v914_v33  ;;  %v879_v11 = vadd.f32 0.112945676, %v878_v36 }
 0x376   : > { %v868_v50 = vadd.f32 0.05243302, %v867_v43  ;;  %v857_v33 = vmul.f32 0.5, %v1526_v15 }
 0x377   : > { %v905_v19 = vmul.f32 %v904_v37, %v902_v31  ;;  %v916_v39 = vmul.f32 %v915_v38, %v902_v31  ;;  %v880_v44 = vmul.f32 %v879_v11, %v862_v23 }
 0x378   : > { %v869_v56 = vmul.f32 %v868_v50, %v862_v23 }
 0x379   : > { %v906_v40 = vadd.f32 0.0036580483, %v905_v19  ;;  %v917_v42 = vadd.f32 0.014752088, %v916_v39  ;;  %v881_v45 = vadd.f32 0.4994258, %v880_v44 }
 0x37a   : > { %v870_v60 = vadd.f32 0.18741608, %v869_v56 }
 0x37b   : > { %v918_v49 = vmul.f32 %v917_v42, %v902_v31  ;;  %v882_v51 = vmul.f32 %v881_v45, %v862_v23  ;;  %v907_v52 = vmul.f32 %v906_v40, %v902_v31 }
 0x37c   : > { %v871_v4 = vmul.f32 %v870_v60, %v862_v23 }
 0x37d   : > { %v919_v53 = vadd.f32 0.112945676, %v918_v49  ;;  %v883_v54 = vadd.f32 1.0, %v882_v51  ;;  %v908_v57 = vadd.f32 0.05243302, %v907_v52 }
 0x37e   : > { %v872_v13 = vadd.f32 1.1283791, %v871_v4 }
 0x37f   : > { %v920_v55 = vmul.f32 %v919_v53, %v902_v31  ;;  %1240 = vrcp.f32 %v883_v54  ;;  %v909_v61 = vmul.f32 %v908_v57, %v902_v31  ;;  %v895_v8 = vand.u32 2147483648, %v883_v54 }
 0x380   : > { %v893_v5 = vand.u32 2147483647, %v883_v54  ;;  %vm889_vm11 = vweird.f32 %v883_v54  ;;  %v873_v3 = vmul.f32 %v872_v13, %v1529_v9 }
 0x381   : > { %v921_v58 = vadd.f32 0.4994258, %v920_v55  ;;  %v910_v63 = vadd.f32 0.18741608, %v909_v61  ;;  %v896_v18 = vor.u32 1.1754944e-38, %v895_v8 }
 0x382   : > { %vm894_vm13 = vcmp.eq.f32.partialorder %v893_v5, 8.507059e+37 }
 0x383   : > { %v922_v59 = vmul.f32 %v921_v58, %v902_v31  ;;  %v911_v10 = vmul.f32 %v910_v63, %v902_v31 }
 0x385   : > { %v923_v62 = vadd.f32 1.0, %v922_v59  ;;  %v1241_v1 = vpop.eup %1240  ;;  %v912_v41 = vadd.f32 1.1283791, %v911_v10 }
 0x386   : > { %v885_v0 = vmul.f32 %v1241_v1, %v883_v54  ;;  %vm890_vm10 = vweird.f32 %v1241_v1 }
 0x387   : > { %1242 = vrcp.f32 %v923_v62  ;;  %vm891_vm12 = vmor %vm889_vm11, %vm890_vm10  ;;  %v935_v48 = vand.u32 2147483648, %v923_v62  ;;  %v933_v27 = vand.u32 2147483647, %v923_v62  ;;  %vm929_vm15 = vweird.f32 %v923_v62 }
 0x388   : > { %v886_v2 = vsub.f32 1.0, %v885_v0  ;;  %v913_v30 = vmul.f32 %v912_v41, %v1545_v26  ;;  %v1231_v26 = vld [vmem:[%s1585_s8] ss:$0 sm:$0xff] }
 0x389   : > { %v936_v28 = vor.u32 1.1754944e-38, %v935_v48  ;;  %vm934_vm1 = vcmp.eq.f32.partialorder %v933_v27, 8.507059e+37 }
 0x38a   : > { %v887_v12 = vmul.f32 %v1241_v1, %v886_v2 }
 0x38c   : > { %v888_v17 = vadd.f32 %v1241_v1, %v887_v12 }
 0x38d   : > { %v1243_v14 = vpop.eup %1242 }
 0x38e   : > { %v925_v22 = vmul.f32 %v1243_v14, %v923_v62  ;;  %v892_v6 = vsel %vm891_vm12, %v1241_v1, %v888_v17  ;;  %vm930_vm14 = vweird.f32 %v1243_v14 }
 0x38f   : > { %v897_v7 = vsel %vm894_vm13, %v896_v18, %v892_v6  ;;  %vm931_vm0 = vmor %vm929_vm15, %vm930_vm14 }
 0x390   : > { %v926_v23 = vsub.f32 1.0, %v925_v22  ;;  %v898_v24 = vmul.f32 %v897_v7, %v873_v3 }
 0x392   : > { %v927_v25 = vmul.f32 %v1243_v14, %v926_v23  ;;  %v1131_v16 = vclamps-f32 %v898_v24, 1.0 }
 0x394   : > { %v928_v29 = vadd.f32 %v1243_v14, %v927_v25  ;;  %v941_v35 = vadd.f32 1.0, %v1131_v16 }
 0x396   : > { %v932_v31 = vsel %vm931_vm0, %v1243_v14, %v928_v29  ;;  %v943_v37 = vmul.f32 %v941_v35, %v857_v33 }
 0x397   : > { %v937_v21 = vsel %vm934_vm1, %v936_v28, %v932_v31 }
 0x398   : > { %v938_v32 = vmul.f32 %v937_v21, %v913_v30 }
 0x39a   : > { %v1132_v9 = vclamps-f32 %v938_v32, 1.0 }
 0x39c   : > { %v942_v36 = vadd.f32 1.0, %v1132_v9 }
 0x39e   : > { %v944_v38 = vmul.f32 %v942_v36, %v858_v34 }
 0x3a0   : > { %v945_v11 = vpack.c.bf16 %v944_v38, %v943_v37 }
 0x3a2   : > { %1022 = vmatmul.bf16.vlgmr.msra.gmra.mxu2 %v945_v11 }
 0x425   : > { %v1023_v19 = vpop.f32.mrf.mxu2 }
 0x426   : > { %v1024_v20 = vadd.f32 %v1231_v26, %v1023_v19 }
 0x428   : > { %1028 = vst [vmem:[%s1586_s9] sm:$0xff] %v1024_v20 }
 0x42d   : > { %v1025_v39 = vpop.f32.mrf.mxu2 }
 0x42e   : > { %v1026_v43 = vadd.f32 %v1231_v26, %v1025_v39 }
 0x430   : > { %1029 = vst [vmem:[%s1586_s9 + $0x8] sm:$0xff] %v1026_v43 }
 0x431 PF: > { %s21_s11 = sadd.s32 1, %s1250_s11  }
 0x432   : > { %p18_p6 = scmp.ge.s32.totalorder %s21_s11, 4  }
 0x434   :  { %20 = sbr.rel (!%p18_p6) target bundleno = 3 (0x3), region = 90 }

// kernel: bigru_attn_forward.4
= control target key start
LH: loop header
LB: loop body
LE: loop exit
PB: predicated region body
PF: predicated region fallthrough
CT: control target
= control target key end

     0   :  { %s3235_s0 = inlined_call_operand.vmem [shape: bf16[8,16,128], index: 0, kind: input, shape index: {}]   ;;  %s3236_s1 = inlined_call_operand.hbm [shape: bf16[2,128,384], index: 1, kind: input, shape index: {}]   ;;  %s3237_s2 = inlined_call_operand.hbm [shape: bf16[2,128,384], index: 2, kind: input, shape index: {}]   ;;  %s3238_s3 = inlined_call_operand.vmem [shape: f32[2,1,384], index: 3, kind: input, shape index: {}]   ;;  %s3239_s4 = inlined_call_operand.vmem [shape: f32[2,1,384], index: 4, kind: input, shape index: {}]   ;;  %s3240_s5 = inlined_call_operand.vmem [shape: bf16[8,16,256], index: 5, kind: output, shape index: {}]  }
   0x1   :  { %3245 = sst [smem:[#allocation16_spill]] %s3236_s1 }
   0x2   :  { %3246 = sst [smem:[#allocation17_spill]] %s3239_s4 }
   0x3   :  { %3247 = sst [smem:[#allocation18_spill]] %s3240_s5 }
   0x4   :  { %10 = vsyncpa [#allocation5], 0 }
   0x5   :  { %12 = vsyncpa [#allocation5 + $0x1], 0 }
   0x6   :  { %13 = vsyncpa [#allocation7], 0 }
   0x7   :  { %15 = vsyncpa [#allocation7 + $0x1], 0  ;;  %s2528_s18 = smov 0   ;;  %s2530_s19 = smov 0  }
   0x8   :  { %s2532_s20 = smov 0   ;;  %s2534_s21 = smov 0  }
   0x9   :  { %s2536_s22 = smov 0   ;;  %s2538_s23 = smov 0  }
   0xa   :  { %s2540_s24 = smov 0   ;;  %s2542_s25 = smov 0  }
   0xb   :  { %s2544_s26 = smov 0   ;;  %s2546_s27 = smov 0  }
   0xc LB: > { %3248 = sst [smem:[#allocation11_spill]] %s2485_s25  ;;  %s1821_s28 = sadd.s32 4294967295, %s2493_s27   ;;  %s2493_s27 = sphi %s2546_s27, %s21_s27   ;;  %s2489_s26 = sphi %s2544_s26, %s3272_s26   ;;  %s2485_s25 = sphi %s2542_s25, %s3271_s25   ;;  %s2481_s24 = sphi %s2540_s24, %s3278_s24   ;;  %s2477_s23 = sphi %s2538_s23, %s3269_s23   ;;  %s2473_s22 = sphi %s2536_s22, %s3277_s22   ;;  %s2469_s21 = sphi %s2534_s21, %s3276_s21   ;;  %s2465_s20 = sphi %s2532_s20, %s3275_s20   ;;  %s2461_s19 = sphi %s2530_s19, %s3274_s19   ;;  %s2457_s18 = sphi %s2528_s18, %s3273_s18  }
   0xd   : > { %3249 = sst [smem:[#allocation12_spill]] %s2489_s26  ;;  %s30_s29 = sadd.s32 1, %s2485_s25 }
   0xe   : > { %p31_p0 = scmp.ge.s32.totalorder %s30_s29, 2  ;;  %s33_s30 = sadd.s32 1, %s2489_s26 }
   0xf   : > { %s74_s6 = sadd.s32 1, %s2473_s22  ;;  %p81_p1 = scmp.ne.s32.totalorder %s2473_s22, %s2469_s21 }
  0x10   : > { %s3280_s29 = smov (%p31_p0, %s30_s29), 0  ;;  %s3282_s30 = smov (!%p31_p0, %s33_s30), %s2489_s26 }
  0x11   : > { %3250 = sst [smem:[#allocation13_spill]] %s3280_s29  ;;  %p82_p2 = scmp.eq.s32.totalorder %s2493_s27, 0 }
  0x12   : > { %p87_p3 = scmp.ne.s32.totalorder %s2469_s21, %s2465_s20  ;;  %p35_p4 = scmp.ge.s32.totalorder %s3282_s30, 2 }
  0x13   : > { %p88_p5 = scmp.eq.s32.totalorder %s1821_s28, 0  ;;  %p2587_p6 = por %p82_p2, %p81_p1 }
  0x14   : > { %s1825_s8 = sshll.u32 %s2489_s26, 1  ;;  %s3284_s30 = smov (%p35_p4, %s3282_s30), 0 }
  0x15   : > { %3252 = sst [smem:[#allocation14_spill]] %s3284_s30  ;;  %p2594_p7 = por %p88_p5, %p87_p3 }
  0x16   : > { %s176_s10 = ssub.s32 1, %s1825_s8  ;;  %s71_s11 = ssub.s32 %s2489_s26, %s3284_s30 }
  0x17   : > { %s177_s12 = smul.u32 %s2485_s25, %s176_s10  ;;  %p72_p8 = scmp.eq.s32.totalorder %s71_s11, 0 }
  0x18   : > { %s1826_s13 = sshll.u32 %s3284_s30, 1  ;;  %s188_s20 = sadd.s32 1, %s2461_s19 }
  0x19   : > { %s178_s14 = sadd.s32 %s2489_s26, %s177_s12  ;;  %s180_s15 = ssub.s32 1, %s1826_s13 }
  0x1a   : > { %s2604_s16 = scalar_select %p72_p8, %s2473_s22, %s74_s6  }
  0x1b   : > { %s181_s17 = smul.u32 %s180_s15, %s3280_s29  ;;  %p198_p9 = scmp.ne.s32.totalorder %s2461_s19, %s2457_s18 }
  0x1c   : > { %3254 = sst [smem:[#allocation15_spill]] %s2604_s16  ;;  %p199_p10 = scmp.eq.s32.totalorder %s1821_s28, 3 }
  0x1d   : > { %s182_s5 = sadd.s32 %s181_s17, %s3284_s30  ;;  %p2183_p12 = scmp.lt.s32.totalorder %s2493_s27, 4 }
  0x1e   : > { %s183_s4 = ssub.s32 %s178_s14, %s182_s5  ;;  %p2611_p11 = por %p199_p10, %p198_p9 }
  0x1f   : > { %s185_s10 = sor.u32 %s183_s4, %s71_s11  ;;  %s2617_s12 = sand.u32 1, %s2473_s22  }
  0x20   : > { %p186_p13 = scmp.eq.s32.totalorder %s185_s10, 0  ;;  %s2166_s6 = smul.u32 192, %s2617_s12 }
  0x21   : > { %s2167_s15 = smul.u32 192, %s2489_s26  ;;  %p2626_p0 = pnand %p2183_p12, %p2587_p6 }
  0x22   : > { %s2621_s13 = scalar_select %p186_p13, %s2461_s19, %s188_s20  }
  0x23   : > { %s247_s28 = scalar_lea.vmem [#allocation4], %s2166_s6  ;;  %s3257_s1 = sld [smem:[#allocation16_spill]] }
  0x24   : > { %s255_s17 = sshll.u32 %s247_s28, 4  ;;  %p1831_p1 = scmp.ge.s32.totalorder %s2493_s27, 1  ;;  %s256_s17 = int_to_ptr.vmem [resolvable:$true] %s255_s17 }
  0x25   : > { %s244_s20 = scalar_lea.sflag [#allocation5], %s2617_s12  ;;  %s2495_s30 = smov 192  }
  0x26   : > { %s2496_s29 = smov 12   ;;  %p299_p2 = scmp.lt.s32.totalorder %s2493_s27, 5 }
  0x27   : > { %s274_s26 = scalar_lea.hbm %s3237_s2, %s2167_s15  ;;  %s269_s4 = scalar_lea.vmem [#allocation6], %s2166_s6 }
  0x28   : > { %p300_p3 = pnand %p1831_p1, %p299_p2  ;;  %s275_s14 = sshll.u32 %s274_s26, 4  ;;  %s276_s14 = int_to_ptr.hbm [resolvable:$true] %s275_s14 }
  0x29   : > { %s252_s11 = scalar_lea.hbm %s3257_s1, %s2167_s15  ;;  %s277_s1 = sshll.u32 %s269_s4, 4  ;;  %s278_s1 = int_to_ptr.vmem [resolvable:$true] %s277_s1 }
  0x2a   : > { %s253_s10 = sshll.u32 %s252_s11, 4  ;;  %s266_s11 = scalar_lea.sflag [#allocation7], %s2617_s12  ;;  %s254_s10 = int_to_ptr.hbm [resolvable:$true] %s253_s10 }
  0x2b   : > { %2179 = dma.hbm_to_vmem [thread:$0]  (!%p2626_p0), %s254_s10, 3072, %s256_s17, %s244_s20, %s2495_s30, %s2495_s30, %s2496_s29  }
  0x2c   : > { %2182 = dma.hbm_to_vmem [thread:$0]  (!%p2626_p0), %s276_s14, 3072, %s278_s1, %s266_s11, %s2495_s30, %s2495_s30, %s2496_s29  }
  0x2d   : > { %303 = sbr.rel (%p300_p3) target bundleno = 938 (0x3aa), region = 40  ;;  %s305_s25 = sand.u32 (!%p300_p3), 1, %s2469_s21  }
  0x2e   : > { %s2170_s16 = smul.u32 (!%p300_p3), 192, %s305_s25  ;;  %s306_s17 = scalar_lea.sflag (!%p300_p3), [#allocation5], %s305_s25 }
  0x30   : > { %s2645_s10 = scalar_lea.vmem (!%p300_p3), [#allocation4], %s2170_s16 }
  0x32   : > { %2448 = dma.done.wait (%p2594_p7), %s306_s17, 3072  }
  0x33   : > { %2450 = vsyncadd (%p2594_p7), %s306_s17, 4294964224  ;;  %s316_s26 = scalar_lea.sflag [#allocation7], %s305_s25  ;;  %s2651_s6 = scalar_lea.vmem [#allocation6], %s2170_s16 }
  0x34   : > { %2452 = dma.done.wait (%p2594_p7), %s316_s26, 3072  }
  0x35   : > { %2454 = vsyncadd (%p2594_p7), %s316_s26, 4294964224  ;;  %s366_s1 = sand.u32 1, %s2457_s18   ;;  %s1833_s29 = sshll.u32 %s2481_s24, 1 }
  0x36   : > { %s1832_s30 = sshll.u32 %s366_s1, 5  ;;  %s2659_s12 = ssub.s32 1, %s1833_s29 }
  0x37   : > { %s371_s25 = smul.u32 %s2477_s23, %s2659_s12  ;;  %p384_p4 = scmp.lt.s32.totalorder %s2481_s24, 1 }
  0x38   : > { %s3258_s1 = sld [smem:[#allocation17_spill]]  ;;  %p1837_p6 = scmp.ne.s32.totalorder %s2477_s23, 0 }
  0x39   : > { %s2665_s16 = sadd.s32 %s2481_s24, %s371_s25  ;;  %s2684_s25 = scalar_lea.vmem [#allocation8], %s1832_s30 }
  0x3a   : > { %s1834_s15 = sshll.u32 %s2665_s16, 2 }
  0x3b   : > { %p374_p5 = scmp.lt.s32.totalorder %s1834_s15, 7 }
  0x3c   : > { %s385_s9 = scalar_select %p384_p4, %s2481_s24, 1 }
  0x3d   : > { %s3286_s15 = smov (!%p374_p5, %s1834_s15), 7  ;;  %400 = sbr.rel (%p1837_p6) target bundleno = 69 (0x45), region = 52 }
  0x3e   : > { %s2171_s5 = smul.u32 3, %s385_s9  ;;  %s2084_s20 = sshll.u32 %s3286_s15, 3 }
  0x3f   : > { %s2672_s18 = scalar_lea.vmem %s3235_s0, %s2084_s20 }
  0x40   : > { %s2677_s11 = scalar_lea.vmem %s3238_s3, %s2171_s5  ;;  %s2682_s29 = scalar_lea.vmem %s3258_s1, %s2171_s5 }
  0x42   : > { %v2497_v0 = vmov 0.0  }
  0x43   : > { %401 = vst [vmem:[#allocation3] sm:$0xff] %v2497_v0 }
  0x44   : > { %402 = vst [vmem:[#allocation3 + $0x8] sm:$0xff] %v2497_v0 }
  0x45 PF: > { %v1940_v1 = vld [vmem:[%s2645_s10 + $0xa8] sm:$0xf]  ;;  %v2111_v2 = vld [vmem:[%s2645_s10 + $0xb0] sm:$0xf0]  ;;  %v2110_v3 = vld [vmem:[%s2645_s10 + $0xac] sm:$0xf] }
  0x46   : > { %v1941_v4 = vor.u32 %v2111_v2, %v1940_v1  ;;  %v1942_v5 = vld [vmem:[%s2645_s10 + $0xb4] sm:$0xf0]  ;;  %v1948_v6 = vld [vmem:[%s2645_s10 + $0xb0] sm:$0xf]  ;;  %v2112_v7 = vld [vmem:[%s2645_s10 + $0xb8] sm:$0xf0] }
  0x47   : > { %v1945_v8 = vor.u32 %v2110_v3, %v1942_v5  ;;  %v1949_v9 = vor.u32 %v2112_v7, %v1948_v6  ;;  %v1928_v10 = vld [vmem:[%s2645_s10 + $0x90] sm:$0xf]  ;;  %v2108_v11 = vld [vmem:[%s2645_s10 + $0x98] sm:$0xf0]  ;;  %v2107_v12 = vld [vmem:[%s2645_s10 + $0x94] sm:$0xf] }
  0x48   : > { %595 = vmatpush.bf16.msra.mxu0 %v1941_v4  ;;  %v1929_v13 = vor.u32 %v2108_v11, %v1928_v10  ;;  %v1930_v14 = vld [vmem:[%s2645_s10 + $0x9c] sm:$0xf0]  ;;  %v1936_v15 = vld [vmem:[%s2645_s10 + $0x98] sm:$0xf]  ;;  %v2109_v16 = vld [vmem:[%s2645_s10 + $0xa0] sm:$0xf0] }
  0x49   : > { %624 = vmatpush.bf16.msra.mxu1 %v1945_v8  ;;  %653 = vmatpush.bf16.msra.mxu2 %v1949_v9  ;;  %v1933_v17 = vor.u32 %v2107_v12, %v1930_v14  ;;  %v1937_v18 = vor.u32 %v2109_v16, %v1936_v15  ;;  %v1916_v19 = vld [vmem:[%s2645_s10 + $0x78] sm:$0xf]  ;;  %v2105_v20 = vld [vmem:[%s2645_s10 + $0x80] sm:$0xf0]  ;;  %v2104_v21 = vld [vmem:[%s2645_s10 + $0x7c] sm:$0xf] }
  0x4a   : > { %v1918_v22 = vld [vmem:[%s2645_s10 + $0x84] sm:$0xf0]  ;;  %v1924_v23 = vld [vmem:[%s2645_s10 + $0x80] sm:$0xf]  ;;  %v2106_v24 = vld [vmem:[%s2645_s10 + $0x88] sm:$0xf0]  ;;  %v1917_v25 = vor.u32 %v2105_v20, %v1916_v19 }
  0x4b   : > { %v1921_v26 = vor.u32 %v2104_v21, %v1918_v22  ;;  %v1925_v27 = vor.u32 %v2106_v24, %v1924_v23  ;;  %v1904_v28 = vld [vmem:[%s2645_s10 + $0x60] sm:$0xf]  ;;  %v2102_v29 = vld [vmem:[%s2645_s10 + $0x68] sm:$0xf0]  ;;  %v2101_v30 = vld [vmem:[%s2645_s10 + $0x64] sm:$0xf] }
  0x4c   : > { %596 = vmatpush.bf16.msra.mxu0 %v1929_v13  ;;  %v1906_v31 = vld [vmem:[%s2645_s10 + $0x6c] sm:$0xf0]  ;;  %v1912_v32 = vld [vmem:[%s2645_s10 + $0x68] sm:$0xf]  ;;  %v2103_v33 = vld [vmem:[%s2645_s10 + $0x70] sm:$0xf0]  ;;  %v1905_v34 = vor.u32 %v2102_v29, %v1904_v28 }
  0x4d   : > { %625 = vmatpush.bf16.msra.mxu1 %v1933_v17  ;;  %654 = vmatpush.bf16.msra.mxu2 %v1937_v18  ;;  %v1909_v35 = vor.u32 %v2101_v30, %v1906_v31  ;;  %v1913_v36 = vor.u32 %v2103_v33, %v1912_v32  ;;  %v1892_v37 = vld [vmem:[%s2645_s10 + $0x48] sm:$0xf]  ;;  %v2099_v38 = vld [vmem:[%s2645_s10 + $0x50] sm:$0xf0]  ;;  %v2098_v39 = vld [vmem:[%s2645_s10 + $0x4c] sm:$0xf] }
  0x4e   : > { %v1894_v40 = vld [vmem:[%s2645_s10 + $0x54] sm:$0xf0]  ;;  %v1900_v41 = vld [vmem:[%s2645_s10 + $0x50] sm:$0xf]  ;;  %v2100_v42 = vld [vmem:[%s2645_s10 + $0x58] sm:$0xf0]  ;;  %v1893_v44 = vor.u32 %v2099_v38, %v1892_v37 }
  0x4f   : > { %v1880_v43 = vld [vmem:[%s2645_s10 + $0x30] sm:$0xf]  ;;  %v2096_v45 = vld [vmem:[%s2645_s10 + $0x38] sm:$0xf0]  ;;  %v2095_v46 = vld [vmem:[%s2645_s10 + $0x34] sm:$0xf]  ;;  %v1897_v48 = vor.u32 %v2098_v39, %v1894_v40  ;;  %v1901_v49 = vor.u32 %v2100_v42, %v1900_v41 }
  0x50   : > { %597 = vmatpush.bf16.msra.mxu0 %v1917_v25  ;;  %v1882_v47 = vld [vmem:[%s2645_s10 + $0x3c] sm:$0xf0]  ;;  %v1888_v50 = vld [vmem:[%s2645_s10 + $0x38] sm:$0xf]  ;;  %v2038_v51 = vld [vmem:[%s2651_s6 + $0xa8] sm:$0xf]  ;;  %v1881_v57 = vor.u32 %v2096_v45, %v1880_v43 }
  0x51   : > { %626 = vmatpush.bf16.msra.mxu1 %v1921_v26  ;;  %655 = vmatpush.bf16.msra.mxu2 %v1925_v27  ;;  %v2135_v52 = vld [vmem:[%s2651_s6 + $0xb0] sm:$0xf0]  ;;  %v2097_v53 = vld [vmem:[%s2645_s10 + $0x40] sm:$0xf0]  ;;  %v2026_v55 = vld [vmem:[%s2651_s6 + $0x90] sm:$0xf]  ;;  %v1885_v61 = vor.u32 %v2095_v46, %v1882_v47 }
  0x52   : > { %v2725_v54 = vor.u32 %v2135_v52, %v2038_v51  ;;  %v2132_v56 = vld [vmem:[%s2651_s6 + $0x98] sm:$0xf0]  ;;  %v1868_v58 = vld [vmem:[%s2645_s10 + $0x18] sm:$0xf]  ;;  %v2093_v59 = vld [vmem:[%s2645_s10 + $0x20] sm:$0xf0]  ;;  %v1889_v62 = vor.u32 %v2097_v53, %v1888_v50 }
  0x53   : > { %v2732_v60 = vor.u32 %v2132_v56, %v2026_v55  ;;  %v2092_v63 = vld [vmem:[%s2645_s10 + $0x1c] sm:$0xf]  ;;  %v2014_v0 = vld [vmem:[%s2651_s6 + $0x78] sm:$0xf]  ;;  %v2129_v1 = vld [vmem:[%s2651_s6 + $0x80] sm:$0xf0]  ;;  %v1869_v5 = vor.u32 %v2093_v59, %v1868_v58 }
  0x54   : > { %598 = vmatpush.bf16.msra.mxu0 %v1905_v34  ;;  %931 = vmatpush.bf16.msra.mxu3 %v2725_v54  ;;  %v1870_v2 = vld [vmem:[%s2645_s10 + $0x24] sm:$0xf0]  ;;  %v1876_v3 = vld [vmem:[%s2645_s10 + $0x20] sm:$0xf]  ;;  %v2094_v4 = vld [vmem:[%s2645_s10 + $0x28] sm:$0xf0]  ;;  %v2743_v8 = vor.u32 %v2129_v1, %v2014_v0 }
  0x55   : > { %627 = vmatpush.bf16.msra.mxu1 %v1909_v35  ;;  %656 = vmatpush.bf16.msra.mxu2 %v1913_v36  ;;  %v1856_v6 = vld [vmem:[%s2645_s10] sm:$0xf]  ;;  %v2090_v7 = vld [vmem:[%s2645_s10 + $0x8] sm:$0xf0]  ;;  %v1873_v9 = vor.u32 %v2092_v63, %v1870_v2  ;;  %v1877_v10 = vor.u32 %v2094_v4, %v1876_v3  ;;  %v2089_v11 = vld [vmem:[%s2645_s10 + $0x4] sm:$0xf] }
  0x56   : > { %v2002_v12 = vld [vmem:[%s2651_s6 + $0x60] sm:$0xf]  ;;  %v2126_v13 = vld [vmem:[%s2651_s6 + $0x68] sm:$0xf0]  ;;  %v1858_v14 = vld [vmem:[%s2645_s10 + $0xc] sm:$0xf0]  ;;  %v1857_v17 = vor.u32 %v2090_v7, %v1856_v6 }
  0x57   : > { %v1864_v15 = vld [vmem:[%s2645_s10 + $0x8] sm:$0xf]  ;;  %v2091_v16 = vld [vmem:[%s2645_s10 + $0x10] sm:$0xf0]  ;;  %v2752_v18 = vor.u32 %v2126_v13, %v2002_v12  ;;  %v1861_v19 = vor.u32 %v2089_v11, %v1858_v14  ;;  %v2134_v21 = vld [vmem:[%s2651_s6 + $0xac] sm:$0xf] }
  0x58   : > { %599 = vmatpush.bf16.msra.mxu0 %v1893_v44  ;;  %932 = vmatpush.bf16.msra.mxu3 %v2732_v60  ;;  %v1865_v20 = vor.u32 %v2091_v16, %v1864_v15  ;;  %v2040_v22 = vld [vmem:[%s2651_s6 + $0xb4] sm:$0xf0]  ;;  %v1990_v23 = vld [vmem:[%s2651_s6 + $0x48] sm:$0xf]  ;;  %v2123_v24 = vld [vmem:[%s2651_s6 + $0x50] sm:$0xf0] }
  0x59   : > { %628 = vmatpush.bf16.msra.mxu1 %v1897_v48  ;;  %657 = vmatpush.bf16.msra.mxu2 %v1901_v49  ;;  %v2085_v25 = vld [vmem:[%s2672_s18] sm:$0xff]  ;;  %v2760_v26 = vor.u32 %v2134_v21, %v2040_v22  ;;  %v2762_v27 = vor.u32 %v2123_v24, %v1990_v23  ;;  %v2120_v29 = vld [vmem:[%s2651_s6 + $0x38] sm:$0xf0]  ;;  %v2028_v31 = vld [vmem:[%s2651_s6 + $0x9c] sm:$0xf0]  ;;  %s2137_s23 = smul.u32 72, %s2481_s24 }
  0x5a   : > { %v1978_v28 = vld [vmem:[%s2651_s6 + $0x30] sm:$0xf]  ;;  %v2131_v30 = vld [vmem:[%s2651_s6 + $0x94] sm:$0xf]  ;;  %v2136_v33 = vld [vmem:[%s2651_s6 + $0xb8] sm:$0xf0] }
  0x5b   : > { %v2046_v32 = vld [vmem:[%s2651_s6 + $0xb0] sm:$0xf]  ;;  %v2772_v34 = vor.u32 %v2131_v30, %v2028_v31  ;;  %v2128_v35 = vld [vmem:[%s2651_s6 + $0x7c] sm:$0xf]  ;;  %v2776_v36 = vor.u32 %v2120_v29, %v1978_v28  ;;  %v2016_v38 = vld [vmem:[%s2651_s6 + $0x84] sm:$0xf0] }
  0x5c   : > { %600 = vmatpush.bf16.msra.mxu0 %v1881_v57  ;;  %933 = vmatpush.bf16.msra.mxu3 %v2743_v8  ;;  %v2778_v37 = vor.u32 %v2136_v33, %v2046_v32  ;;  %v2034_v39 = vld [vmem:[%s2651_s6 + $0x98] sm:$0xf]  ;;  %v2133_v40 = vld [vmem:[%s2651_s6 + $0xa0] sm:$0xf0]  ;;  %v2790_v44 = vor.u32 %v2128_v35, %v2016_v38  ;;  %v2004_v47 = vld [vmem:[%s2651_s6 + $0x6c] sm:$0xf0] }
  0x5d   : > { %629 = vmatpush.bf16.msra.mxu1 %v1885_v61  ;;  %658 = vmatpush.bf16.msra.mxu2 %v1889_v62  ;;  %v1966_v41 = vld [vmem:[%s2651_s6 + $0x18] sm:$0xf]  ;;  %v2117_v42 = vld [vmem:[%s2651_s6 + $0x20] sm:$0xf0]  ;;  %v2788_v43 = vor.u32 %v2133_v40, %v2034_v39  ;;  %v1954_v48 = vld [vmem:[%s2651_s6] sm:$0xf] }
  0x5e   : > { %v2793_v45 = vor.u32 %v2117_v42, %v1966_v41  ;;  %v2125_v46 = vld [vmem:[%s2651_s6 + $0x64] sm:$0xf]  ;;  %v2114_v49 = vld [vmem:[%s2651_s6 + $0x8] sm:$0xf0]  ;;  %v2807_v52 = vld [vmem:[#allocation3] sm:$0xff]  ;;  %s2975_s10 = scalar_lea.vmem [#allocation2], %s2137_s23 }
  0x5f   : > { %v2802_v50 = vor.u32 %v2125_v46, %v2004_v47  ;;  %v2805_v51 = vor.u32 %v2114_v49, %v1954_v48  ;;  %v2809_v53 = vld [vmem:[#allocation3 + $0x8] sm:$0xff]  ;;  %v2122_v55 = vld [vmem:[%s2651_s6 + $0x4c] sm:$0xf]  ;;  %v2119_v61 = vld [vmem:[%s2651_s6 + $0x34] sm:$0xf]  ;;  %s3045_s15 = smul.u32 3, %s2481_s24 }
  0x60   : > { %601 = vmatpush.bf16.msra.mxu0 %v1869_v5  ;;  %934 = vmatpush.bf16.msra.mxu3 %v2752_v18  ;;  %v1992_v56 = vld [vmem:[%s2651_s6 + $0x54] sm:$0xf0]  ;;  %v2819_v58 = vpack.c.bf16 %v2809_v53, %v2807_v52  ;;  %v1980_v62 = vld [vmem:[%s2651_s6 + $0x3c] sm:$0xf0]  ;;  %v2130_v0 = vld [vmem:[%s2651_s6 + $0x88] sm:$0xf0] }
  0x61   : > { %630 = vmatpush.bf16.msra.mxu1 %v1873_v9  ;;  %659 = vmatpush.bf16.msra.mxu2 %v1877_v10  ;;  %v2086_v57 = vld [vmem:[%s2672_s18 + $0x8] sm:$0xff]  ;;  %v2821_v59 = vor.u32 %v2122_v55, %v1992_v56  ;;  %v2022_v63 = vld [vmem:[%s2651_s6 + $0x80] sm:$0xf]  ;;  %v2833_v2 = vor.u32 %v2119_v61, %v1980_v62  ;;  %v2010_v3 = vld [vmem:[%s2651_s6 + $0x68] sm:$0xf]  ;;  %s3049_s9 = sadd.s32 %s3045_s15, %s2659_s12  ;;  %s1403_s1 = smul.u32 3, %s2659_s12 }
  0x62   : > { %v2831_v1 = vor.u32 %v2130_v0, %v2022_v63  ;;  %v2127_v4 = vld [vmem:[%s2651_s6 + $0x70] sm:$0xf0]  ;;  %v2116_v5 = vld [vmem:[%s2651_s6 + $0x1c] sm:$0xf]  ;;  %v1968_v6 = vld [vmem:[%s2651_s6 + $0x24] sm:$0xf0] }
  0x63   : > { %v2842_v7 = vor.u32 %v2127_v4, %v2010_v3  ;;  %v1998_v9 = vld [vmem:[%s2651_s6 + $0x50] sm:$0xf]  ;;  %v2124_v10 = vld [vmem:[%s2651_s6 + $0x58] sm:$0xf0]  ;;  %v2847_v11 = vor.u32 %v2116_v5, %v1968_v6  ;;  %v2113_v12 = vld [vmem:[%s2651_s6 + $0x4] sm:$0xf] }
  0x64   : > { %602 = vmatpush.bf16.msra.mxu0 %v1857_v17  ;;  %935 = vmatpush.bf16.msra.mxu3 %v2762_v27  ;;  %v1956_v13 = vld [vmem:[%s2651_s6 + $0xc] sm:$0xf0]  ;;  %v2854_v14 = vor.u32 %v2124_v10, %v1998_v9  ;;  %v1986_v16 = vld [vmem:[%s2651_s6 + $0x38] sm:$0xf]  ;;  %v2121_v17 = vld [vmem:[%s2651_s6 + $0x40] sm:$0xf0] }
  0x65   : > { %631 = vmatpush.bf16.msra.mxu1 %v1861_v19  ;;  %660 = vmatpush.bf16.msra.mxu2 %v1865_v20  ;;  %v2857_v15 = vor.u32 %v2113_v12, %v1956_v13  ;;  %v2087_v19 = vld [vmem:[%s2672_s18 + $0x10] sm:$0xff]  ;;  %v2868_v20 = vor.u32 %v2121_v17, %v1986_v16  ;;  %v2118_v22 = vld [vmem:[%s2651_s6 + $0x28] sm:$0xf0]  ;;  %v1962_v24 = vld [vmem:[%s2651_s6 + $0x8] sm:$0xf]  ;;  %s2139_s5 = smul.u32 24, %s3049_s9 }
  0x66   : > { %v1974_v21 = vld [vmem:[%s2651_s6 + $0x20] sm:$0xf]  ;;  %v2088_v29 = vld [vmem:[%s2672_s18 + $0x18] sm:$0xff]  ;;  %s2140_s7 = sshll.u32 %s3049_s9, 3  ;;  %s2062_s18 = sshll.u32 %s2659_s12, 1 }
  0x67   : > { %603 = vmatmul.bf16.vlgmr.msra.gmra.mxu0 %v2085_v25  ;;  %v2874_v23 = vor.u32 %v2118_v22, %v1974_v21  ;;  %s3052_s20 = scalar_lea.vmem [#allocation2], %s2139_s5  ;;  %s1236_s28 = scalar_lea.vmem %s2684_s25, %s2140_s7 [#allocation8] }
  0x68   : > { %632 = vmatmul.bf16.vlgmr.msra.gmra.mxu1 %v2085_v25  ;;  %661 = vmatmul.bf16.vlgmr.msra.gmra.mxu2 %v2085_v25  ;;  %v2115_v25 = vld [vmem:[%s2651_s6 + $0x10] sm:$0xf0]  ;;  %s2138_s6 = smul.u32 24, %s2481_s24  ;;  %s3093_s14 = sadd.s32 %s2062_s18, %s3045_s15 }
  0x69   : > { %1096 = vmatpush.bf16.msrb.mxu1 %v2725_v54  ;;  %1110 = vmatpush.bf16.msrb.mxu2 %v2760_v26  ;;  %v2882_v28 = vor.u32 %v2115_v25, %v1962_v24  ;;  %s2141_s4 = smul.u32 24, %s3093_s14  ;;  %s2142_s17 = sshll.u32 %s3093_s14, 3 }
  0x6a   : > { %959 = vmatpush.bf16.msrb.mxu0 %v2778_v37  ;;  %936 = vmatpush.bf16.msra.mxu3 %v2776_v36  ;;  %s1071_s30 = scalar_lea.vmem %s2684_s25, %s2138_s6 [#allocation8]  ;;  %s1400_s26 = scalar_lea.vmem %s2684_s25, %s2142_s17 [#allocation8] }
  0x6b   : > { %s3267_s7 = sld [smem:[#allocation18_spill]] (%p2611_p11) }
  0x6d   : > { %1097 = vmatpush.bf16.msrb.mxu1 %v2732_v60  ;;  %1111 = vmatpush.bf16.msrb.mxu2 %v2772_v34 }
  0x6e   : > { %960 = vmatpush.bf16.msrb.mxu0 %v2788_v43  ;;  %937 = vmatpush.bf16.msra.mxu3 %v2793_v45 }
  0x71   : > { %1098 = vmatpush.bf16.msrb.mxu1 %v2743_v8  ;;  %1112 = vmatpush.bf16.msrb.mxu2 %v2790_v44 }
  0x72   : > { %938 = vmatpush.bf16.msra.mxu3 %v2805_v51  ;;  %961 = vmatpush.bf16.msrb.mxu0 %v2831_v1 }
  0x75   : > { %1099 = vmatpush.bf16.msrb.mxu1 %v2752_v18  ;;  %1113 = vmatpush.bf16.msrb.mxu2 %v2802_v50 }
  0x76   : > { %945 = vmatpush.bf16.msrb.mxu3 %v2760_v26  ;;  %962 = vmatpush.bf16.msrb.mxu0 %v2842_v7 }
  0x77   : > { %608 = vmatmul.bf16.gmra.mxu0 %v2086_v57  ;;  %939 = vmatmul.bf16.vlgmr.msra.gmra.mxu3 %v2819_v58 }
  0x78   : > { %637 = vmatmul.bf16.gmra.mxu1 %v2086_v57  ;;  %666 = vmatmul.bf16.gmra.mxu2 %v2086_v57 }
  0x79   : > { %1100 = vmatpush.bf16.msrb.mxu1 %v2762_v27  ;;  %1114 = vmatpush.bf16.msrb.mxu2 %v2821_v59 }
  0x7a   : > { %946 = vmatpush.bf16.msrb.mxu3 %v2772_v34  ;;  %963 = vmatpush.bf16.msrb.mxu0 %v2854_v14 }
  0x7d   : > { %1101 = vmatpush.bf16.msrb.mxu1 %v2776_v36  ;;  %1115 = vmatpush.bf16.msrb.mxu2 %v2833_v2 }
  0x7e   : > { %947 = vmatpush.bf16.msrb.mxu3 %v2790_v44  ;;  %964 = vmatpush.bf16.msrb.mxu0 %v2868_v20 }
  0x81   : > { %1102 = vmatpush.bf16.msrb.mxu1 %v2793_v45  ;;  %1116 = vmatpush.bf16.msrb.mxu2 %v2847_v11 }
  0x82   : > { %948 = vmatpush.bf16.msrb.mxu3 %v2802_v50  ;;  %965 = vmatpush.bf16.msrb.mxu0 %v2874_v23 }
  0x85   : > { %1103 = vmatpush.bf16.msrb.mxu1 %v2805_v51  ;;  %1117 = vmatpush.bf16.msrb.mxu2 %v2857_v15 }
  0x86   : > { %949 = vmatpush.bf16.msrb.mxu3 %v2821_v59  ;;  %966 = vmatpush.bf16.msrb.mxu0 %v2882_v28 }
  0x87   : > { %613 = vmatmul.bf16.gmra.mxu0 %v2087_v19 }
  0x88   : > { %642 = vmatmul.bf16.gmra.mxu1 %v2087_v19  ;;  %671 = vmatmul.bf16.gmra.mxu2 %v2087_v19 }
  0x89   : > { %1274 = vmatpush.bf16.msra.mxu1 %v2760_v26  ;;  %1288 = vmatpush.bf16.msra.mxu2 %v2778_v37 }
  0x8a   : > { %950 = vmatpush.bf16.msrb.mxu3 %v2833_v2  ;;  %1260 = vmatpush.bf16.msra.mxu0 %v2725_v54 }
  0x8d   : > { %1275 = vmatpush.bf16.msra.mxu1 %v2772_v34  ;;  %1289 = vmatpush.bf16.msra.mxu2 %v2788_v43 }
  0x8e   : > { %951 = vmatpush.bf16.msrb.mxu3 %v2847_v11  ;;  %1261 = vmatpush.bf16.msra.mxu0 %v2732_v60 }
  0x91   : > { %1276 = vmatpush.bf16.msra.mxu1 %v2790_v44  ;;  %1290 = vmatpush.bf16.msra.mxu2 %v2831_v1 }
  0x92   : > { %952 = vmatpush.bf16.msrb.mxu3 %v2857_v15  ;;  %1262 = vmatpush.bf16.msra.mxu0 %v2743_v8 }
  0x95   : > { %1277 = vmatpush.bf16.msra.mxu1 %v2802_v50  ;;  %1291 = vmatpush.bf16.msra.mxu2 %v2842_v7 }
  0x96   : > { %1124 = vmatpush.bf16.msra.mxu3 %v2778_v37  ;;  %1263 = vmatpush.bf16.msra.mxu0 %v2752_v18 }
  0x97   : > { %953 = vmatmul.bf16.vlgmr.msrb.gmra.mxu3 %v2819_v58  ;;  %618 = vmatmul.bf16.gmra.mxu0 %v2088_v29 }
  0x98   : > { %647 = vmatmul.bf16.gmra.mxu1 %v2088_v29  ;;  %676 = vmatmul.bf16.gmra.mxu2 %v2088_v29 }
  0x99   : > { %1278 = vmatpush.bf16.msra.mxu1 %v2821_v59  ;;  %1292 = vmatpush.bf16.msra.mxu2 %v2854_v14 }
  0x9a   : > { %1125 = vmatpush.bf16.msra.mxu3 %v2788_v43  ;;  %1264 = vmatpush.bf16.msra.mxu0 %v2762_v27 }
  0x9d   : > { %1279 = vmatpush.bf16.msra.mxu1 %v2833_v2  ;;  %1293 = vmatpush.bf16.msra.mxu2 %v2868_v20 }
  0x9e   : > { %1126 = vmatpush.bf16.msra.mxu3 %v2831_v1  ;;  %1265 = vmatpush.bf16.msra.mxu0 %v2776_v36 }
  0xa1   : > { %1280 = vmatpush.bf16.msra.mxu1 %v2847_v11  ;;  %1294 = vmatpush.bf16.msra.mxu2 %v2874_v23 }
  0xa2   : > { %1127 = vmatpush.bf16.msra.mxu3 %v2842_v7  ;;  %1266 = vmatpush.bf16.msra.mxu0 %v2793_v45 }
  0xa5   : > { %1281 = vmatpush.bf16.msra.mxu1 %v2857_v15  ;;  %1295 = vmatpush.bf16.msra.mxu2 %v2882_v28 }
  0xa6   : > { %1128 = vmatpush.bf16.msra.mxu3 %v2854_v14  ;;  %1267 = vmatpush.bf16.msra.mxu0 %v2805_v51 }
  0xa7   : > { %967 = vmatmul.bf16.vlgmr.msrb.gmra.mxu0 %v2819_v58 }
  0xaa   : > { %1129 = vmatpush.bf16.msra.mxu3 %v2868_v20  ;;  %1438 = vmatpush.bf16.msrb.mxu0 %v2760_v26 }
  0xae   : > { %1130 = vmatpush.bf16.msra.mxu3 %v2874_v23  ;;  %1439 = vmatpush.bf16.msrb.mxu0 %v2772_v34 }
  0xb2   : > { %1131 = vmatpush.bf16.msra.mxu3 %v2882_v28  ;;  %1440 = vmatpush.bf16.msrb.mxu0 %v2790_v44 }
  0xb6   : > { %1424 = vmatpush.bf16.msrb.mxu3 %v2725_v54  ;;  %1441 = vmatpush.bf16.msrb.mxu0 %v2802_v50  ;;  %v682_v54 = vld [vmem:[%s2677_s11] sm:$0x7]  ;;  %s3096_s11 = scalar_lea.vmem [#allocation2], %s2141_s4 }
  0xb7   : > { %v2941_v32 = vperm.slane %v682_v54, 2 }
  0xba   : > { %1425 = vmatpush.bf16.msrb.mxu3 %v2732_v60  ;;  %1442 = vmatpush.bf16.msrb.mxu0 %v2821_v59  ;;  %v2935_v60 = vperm.slane %v682_v54, 0 }
  0xbe   : > { %1426 = vmatpush.bf16.msrb.mxu3 %v2743_v8  ;;  %1443 = vmatpush.bf16.msrb.mxu0 %v2833_v2  ;;  %v2937_v8 = vperm.slane %v682_v54, 1 }
  0xc2   : > { %1427 = vmatpush.bf16.msrb.mxu3 %v2752_v18  ;;  %1444 = vmatpush.bf16.msrb.mxu0 %v2847_v11 }
  0xc6   : > { %1428 = vmatpush.bf16.msrb.mxu3 %v2762_v27  ;;  %1445 = vmatpush.bf16.msrb.mxu0 %v2857_v15 }
  0xca   : > { %1429 = vmatpush.bf16.msrb.mxu3 %v2776_v36 }
  0xce   : > { %1430 = vmatpush.bf16.msrb.mxu3 %v2793_v45 }
  0xd2   : > { %1431 = vmatpush.bf16.msrb.mxu3 %v2805_v51 }
  0xe4   : > { %v604_v18 = vpop.f32.mrf.mxu0 }
  0xe5   : > { %v690_v26 = vadd.f32 %v2935_v60, %v604_v18  ;;  %v633_v27 = vpop.f32.mrf.mxu1 }
  0xe6   : > { %v691_v30 = vadd.f32 %v2937_v8, %v633_v27 }
  0xe8   : > { %v714_v31 = vpack.c.bf16 %v691_v30, %v690_v26 }
  0xea   : > { %730 = vst [vmem:[#allocation2] sm:$0xff] %v714_v31 }
  0xeb   : > { %v662_v33 = vpop.f32.mrf.mxu2 }
  0xec   : > { %v692_v34 = vadd.f32 %v2941_v32, %v662_v33  ;;  %v606_v35 = vpop.f32.mrf.mxu0 }
  0xed   : > { %v693_v36 = vadd.f32 %v2935_v60, %v606_v35  ;;  %v635_v38 = vpop.f32.mrf.mxu1 }
  0xee   : > { %v715_v39 = vpack.c.bf16 %v692_v34, %v692_v34  ;;  %v694_v40 = vadd.f32 %v2937_v8, %v635_v38 }
  0xf0   : > { %731 = vst [vmem:[#allocation2 + $0x8] sm:$0xf] %v715_v39  ;;  %v716_v41 = vpack.c.bf16 %v694_v40, %v693_v36 }
  0xf2   : > { %732 = vst [vmem:[#allocation2 + $0xc] sm:$0xff] %v716_v41 }
  0xf3   : > { %v664_v42 = vpop.f32.mrf.mxu2 }
  0xf4   : > { %v695_v44 = vadd.f32 %v2941_v32, %v664_v42  ;;  %v609_v45 = vpop.f32.mrf.mxu0 }
  0xf5   : > { %v696_v46 = vadd.f32 %v2935_v60, %v609_v45  ;;  %v638_v47 = vpop.f32.mrf.mxu1 }
  0xf6   : > { %v717_v48 = vpack.c.bf16 %v695_v44, %v695_v44  ;;  %v697_v49 = vadd.f32 %v2937_v8, %v638_v47 }
  0xf8   : > { %733 = vst [vmem:[#allocation2 + $0x14] sm:$0xf] %v717_v48  ;;  %v718_v50 = vpack.c.bf16 %v697_v49, %v696_v46  ;;  %v778_v46 = vld [vmem:[%s2682_s29] sm:$0x7]  ;;  %s3144_s29 = sadd.s32 %s1403_s1, %s3045_s15 }
  0xf9   : > { %v2967_v47 = vperm.slane %v778_v46, 1  ;;  %v2969_v48 = vperm.slane %v778_v46, 0  ;;  %s2143_s23 = smul.u32 24, %s3144_s29  ;;  %s2144_s12 = sshll.u32 %s3144_s29, 3 }
  0xfa   : > { %734 = vst [vmem:[#allocation2 + $0x18] sm:$0xff] %v718_v50  ;;  %v940_v16 = vpop.f32.mrf.mxu3  ;;  %s1564_s6 = scalar_lea.vmem %s2684_s25, %s2144_s12 [#allocation8] }
  0xfb   : > { %v667_v51 = vpop.f32.mrf.mxu2  ;;  %v941_v50 = vadd.f32 %v940_v16, %v2969_v48 }
  0xfc   : > { %v698_v55 = vadd.f32 %v2941_v32, %v667_v51  ;;  %v611_v56 = vpop.f32.mrf.mxu0 }
  0xfd   : > { %v699_v57 = vadd.f32 %v2935_v60, %v611_v56  ;;  %v640_v58 = vpop.f32.mrf.mxu1 }
  0xfe   : > { %v719_v59 = vpack.c.bf16 %v698_v55, %v698_v55  ;;  %v700_v61 = vadd.f32 %v2937_v8, %v640_v58 }
 0x100   : > { %735 = vst [vmem:[#allocation2 + $0x20] sm:$0xf] %v719_v59  ;;  %v720_v62 = vpack.c.bf16 %v700_v61, %v699_v57 }
 0x102   : > { %736 = vst [vmem:[#allocation2 + $0x24] sm:$0xff] %v720_v62  ;;  %v942_v27 = vpop.f32.mrf.mxu3 }
 0x103   : > { %v669_v63 = vpop.f32.mrf.mxu2  ;;  %v943_v51 = vadd.f32 %v942_v27, %v2969_v48 }
 0x104   : > { %v701_v0 = vadd.f32 %v2941_v32, %v669_v63  ;;  %v614_v2 = vpop.f32.mrf.mxu0 }
 0x105   : > { %v702_v3 = vadd.f32 %v2935_v60, %v614_v2  ;;  %v643_v4 = vpop.f32.mrf.mxu1 }
 0x106   : > { %v721_v5 = vpack.c.bf16 %v701_v0, %v701_v0  ;;  %v703_v6 = vadd.f32 %v2937_v8, %v643_v4 }
 0x108   : > { %737 = vst [vmem:[#allocation2 + $0x2c] sm:$0xf] %v721_v5  ;;  %v722_v9 = vpack.c.bf16 %v703_v6, %v702_v3 }
 0x10a   : > { %738 = vst [vmem:[#allocation2 + $0x30] sm:$0xff] %v722_v9 }
 0x10b   : > { %v672_v10 = vpop.f32.mrf.mxu2 }
 0x10c   : > { %v704_v11 = vadd.f32 %v2941_v32, %v672_v10  ;;  %v616_v12 = vpop.f32.mrf.mxu0 }
 0x10d   : > { %v705_v13 = vadd.f32 %v2935_v60, %v616_v12  ;;  %v645_v15 = vpop.f32.mrf.mxu1 }
 0x10e   : > { %v723_v17 = vpack.c.bf16 %v704_v11, %v704_v11  ;;  %v706_v19 = vadd.f32 %v2937_v8, %v645_v15 }
 0x110   : > { %739 = vst [vmem:[#allocation2 + $0x38] sm:$0xf] %v723_v17  ;;  %v724_v21 = vpack.c.bf16 %v706_v19, %v705_v13  ;;  %v2985_v19 = vperm.slane %v778_v46, 2 }
 0x112   : > { %740 = vst [vmem:[#allocation2 + $0x3c] sm:$0xff] %v724_v21 }
 0x113   : > { %v674_v22 = vpop.f32.mrf.mxu2 }
 0x114   : > { %v707_v24 = vadd.f32 %v2941_v32, %v674_v22  ;;  %v619_v25 = vpop.f32.mrf.mxu0 }
 0x115   : > { %v708_v29 = vadd.f32 %v2935_v60, %v619_v25  ;;  %v648_v54 = vpop.f32.mrf.mxu1 }
 0x116   : > { %v725_v18 = vpack.c.bf16 %v707_v24, %v707_v24  ;;  %v709_v26 = vadd.f32 %v2937_v8, %v648_v54 }
 0x118   : > { %741 = vst [vmem:[#allocation2 + $0x44] sm:$0xf] %v725_v18  ;;  %v726_v30 = vpack.c.bf16 %v709_v26, %v708_v29 }
 0x11a   : > { %742 = vst [vmem:[#allocation2 + $0x48] sm:$0xff] %v726_v30  ;;  %v954_v41 = vpop.f32.mrf.mxu3 }
 0x11b   : > { %v677_v31 = vpop.f32.mrf.mxu2  ;;  %v955_v49 = vadd.f32 %v954_v41, %v2967_v47 }
 0x11c   : > { %v710_v33 = vadd.f32 %v2941_v32, %v677_v31  ;;  %v621_v34 = vpop.f32.mrf.mxu0 }
 0x11d   : > { %v711_v35 = vadd.f32 %v2935_v60, %v621_v34  ;;  %v650_v36 = vpop.f32.mrf.mxu1 }
 0x11e   : > { %v727_v38 = vpack.c.bf16 %v710_v33, %v710_v33  ;;  %v712_v39 = vadd.f32 %v2937_v8, %v650_v36 }
 0x120   : > { %743 = vst [vmem:[#allocation2 + $0x50] sm:$0xf] %v727_v38  ;;  %v728_v40 = vpack.c.bf16 %v712_v39, %v711_v35 }
 0x122   : > { %744 = vst [vmem:[#allocation2 + $0x54] sm:$0xff] %v728_v40  ;;  %v956_v60 = vpop.f32.mrf.mxu3 }
 0x123   : > { %v679_v42 = vpop.f32.mrf.mxu2  ;;  %v957_v8 = vadd.f32 %v956_v60, %v2967_v47 }
 0x124   : > { %v713_v44 = vadd.f32 %v2941_v32, %v679_v42  ;;  %v968_v9 = vpop.f32.mrf.mxu0 }
 0x125   : > { %v969_v26 = vadd.f32 %v968_v9, %v2985_v19 }
 0x126   : > { %v729_v45 = vpack.c.bf16 %v713_v44, %v713_v44 }
 0x128   : > { %745 = vst [vmem:[#allocation2 + $0x5c] sm:$0xf] %v729_v45 }
 0x12c   : > { %v970_v25 = vpop.f32.mrf.mxu0 }
 0x12d   : > { %v971_v35 = vadd.f32 %v970_v25, %v2985_v19 }
 0x12f   : > { %v785_v32 = vld [vmem:[%s2975_s10] sm:$0xff]  ;;  %v787_v55 = vld [vmem:[%s2975_s10 + $0xc] sm:$0xff]  ;;  %v786_v36 = vld [vmem:[%s2975_s10 + $0x8] sm:$0xf] }
 0x130   : > { %v789_v56 = vunpack.c.l.bf16 %v785_v32  ;;  %v790_v57 = vunpack.c.h.bf16 %v785_v32  ;;  %v792_v58 = vunpack.c.l.bf16 %v787_v55  ;;  %v793_v59 = vunpack.c.h.bf16 %v787_v55 }
 0x132   : > { %v973_v61 = vadd.f32 %v941_v50, %v789_v56  ;;  %v1013_v62 = vadd.f32 %v955_v49, %v790_v57  ;;  %v974_v63 = vadd.f32 %v943_v51, %v792_v58  ;;  %v1014_v0 = vadd.f32 %v957_v8, %v793_v59  ;;  %v788_v57 = vld [vmem:[%s2975_s10 + $0x14] sm:$0xf]  ;;  %s3147_s10 = scalar_lea.vmem [#allocation2], %s2143_s23 }
 0x133   : > { %v791_v8 = vunpack.c.l.bf16 %v786_v36 }
 0x134   : > { %v2048_v2 = vmul.f32 -1.442695, %v973_v61  ;;  %v2050_v3 = vmul.f32 -1.442695, %v1013_v62  ;;  %v2049_v4 = vmul.f32 -1.442695, %v974_v63 }
 0x135   : > { %v2051_v5 = vmul.f32 -1.442695, %v1014_v0 }
 0x136   : > { %2267 = vpow2.f32 %v2048_v2 }
 0x137   : > { %2269 = vpow2.f32 %v2050_v3 }
 0x138   : > { %2271 = vpow2.f32 %v2049_v4 }
 0x139   : > { %2273 = vpow2.f32 %v2051_v5 }
 0x13c   : > { %v2268_v6 = vpop.eup %2267 }
 0x13d   : > { %v2270_v10 = vpop.eup %2269  ;;  %v981_v11 = vadd.f32 1.0, %v2268_v6  ;;  %v794_v6 = vunpack.c.l.bf16 %v788_v57 }
 0x13e   : > { %v2272_v12 = vpop.eup %2271  ;;  %v2979_v13 = vadd.f32 1.0, %v2270_v10 }
 0x13f   : > { %v2274_v15 = vpop.eup %2273  ;;  %2275 = vrcp.f32 %v981_v11  ;;  %v982_v16 = vadd.f32 1.0, %v2272_v12  ;;  %v994_v34 = vand.u32 2147483648, %v981_v11  ;;  %v992_v39 = vand.u32 2147483647, %v981_v11 }
 0x140   : > { %2277 = vrcp.f32 %v2979_v13  ;;  %v2982_v17 = vadd.f32 1.0, %v2274_v15  ;;  %vm988_vm1 = vweird.f32 %v981_v11  ;;  %vm1028_vm3 = vweird.f32 %v2979_v13 }
 0x141   : > { %2279 = vrcp.f32 %v982_v16  ;;  %v1009_v44 = vand.u32 2147483648, %v982_v16  ;;  %v1007_v60 = vand.u32 2147483647, %v982_v16  ;;  %v995_v50 = vor.u32 1.1754944e-38, %v994_v34 }
 0x142   : > { %2281 = vrcp.f32 %v2982_v17  ;;  %vm993_vm5 = vcmp.eq.f32.partialorder %v992_v39, 8.507059e+37  ;;  %vm1003_vm6 = vweird.f32 %v982_v16  ;;  %v1034_v59 = vand.u32 2147483648, %v2979_v13 }
 0x143   : > { %v1010_v58 = vor.u32 1.1754944e-38, %v1009_v44  ;;  %vm1008_vm9 = vcmp.eq.f32.partialorder %v1007_v60, 8.507059e+37  ;;  %v1032_v63 = vand.u32 2147483647, %v2979_v13  ;;  %v1049_v4 = vand.u32 2147483648, %v2982_v17 }
 0x144   : > { %vm1043_vm12 = vweird.f32 %v2982_v17  ;;  %v1035_v12 = vor.u32 1.1754944e-38, %v1034_v59 }
 0x145   : > { %v2276_v21 = vpop.eup %2275  ;;  %vm1033_vm14 = vcmp.eq.f32.partialorder %v1032_v63, 8.507059e+37 }
 0x146   : > { %v2987_v22 = vpop.eup %2277  ;;  %v984_v24 = vmul.f32 %v2276_v21, %v981_v11  ;;  %vm989_vm0 = vweird.f32 %v2276_v21  ;;  %v1047_v11 = vand.u32 2147483647, %v2982_v17 }
 0x147   : > { %v2280_v29 = vpop.eup %2279  ;;  %v1024_v54 = vmul.f32 %v2987_v22, %v2979_v13  ;;  %vm990_vm4 = vmor %vm988_vm1, %vm989_vm0  ;;  %vm1029_vm7 = vweird.f32 %v2987_v22 }
 0x148   : > { %v2991_v18 = vpop.eup %2281  ;;  %v985_v27 = vsub.f32 1.0, %v984_v24  ;;  %v999_v30 = vmul.f32 %v2280_v29, %v982_v16  ;;  %vm1004_vm2 = vweird.f32 %v2280_v29  ;;  %vm3011_vm11 = vmor %vm1028_vm3, %vm1029_vm7  ;;  %v1050_v16 = vor.u32 1.1754944e-38, %v1049_v4 }
 0x149   : > { %v1025_v31 = vsub.f32 1.0, %v1024_v54  ;;  %v1039_v33 = vmul.f32 %v2991_v18, %v2982_v17  ;;  %vm1005_vm8 = vmor %vm1003_vm6, %vm1004_vm2  ;;  %vm1044_vm10 = vweird.f32 %v2991_v18  ;;  %vm1048_vm15 = vcmp.eq.f32.partialorder %v1047_v11, 8.507059e+37 }
 0x14a   : > { %v986_v38 = vmul.f32 %v2276_v21, %v985_v27  ;;  %v1000_v40 = vsub.f32 1.0, %v999_v30  ;;  %vm1045_vm13 = vmor %vm1043_vm12, %vm1044_vm10 }
 0x14b   : > { %v1026_v41 = vmul.f32 %v2987_v22, %v1025_v31  ;;  %v1040_v42 = vsub.f32 1.0, %v1039_v33 }
 0x14c   : > { %v987_v45 = vadd.f32 %v2276_v21, %v986_v38  ;;  %v1001_v46 = vmul.f32 %v2280_v29, %v1000_v40 }
 0x14d   : > { %v1041_v49 = vmul.f32 %v2991_v18, %v1040_v42  ;;  %v1027_v56 = vadd.f32 %v2987_v22, %v1026_v41 }
 0x14e   : > { %v991_v51 = vsel %vm990_vm4, %v2276_v21, %v987_v45  ;;  %v1002_v32 = vadd.f32 %v2280_v29, %v1001_v46 }
 0x14f   : > { %v996_v55 = vsel %vm993_vm5, %v995_v50, %v991_v51  ;;  %v1042_v2 = vadd.f32 %v2991_v18, %v1041_v49  ;;  %v1031_v10 = vsel %vm3011_vm11, %v2987_v22, %v1027_v56 }
 0x150   : > { %v1053_v61 = vmul.f32 %v996_v55, %v969_v26  ;;  %v1006_v62 = vsel %vm1005_vm8, %v2280_v29, %v1002_v32  ;;  %v1036_v21 = vsel %vm1033_vm14, %v1035_v12, %v1031_v10 }
 0x151   : > { %v1011_v0 = vsel %vm1008_vm9, %v1010_v58, %v1006_v62  ;;  %v1046_v15 = vsel %vm1045_vm13, %v2991_v18, %v1042_v2  ;;  %v1059_v25 = vsub.f32 1.0, %v1036_v21  ;;  %v1063_v17 = vmul.f32 %v1036_v21, %v2807_v52 }
 0x152   : > { %v1055_v5 = vadd.f32 %v1053_v61, %v791_v8  ;;  %v1054_v9 = vmul.f32 %v1011_v0, %v971_v35  ;;  %v1051_v24 = vsel %vm1048_vm15, %v1050_v16, %v1046_v15 }
 0x153   : > { %v1060_v22 = vsub.f32 1.0, %v1051_v24  ;;  %v1064_v30 = vmul.f32 %v1051_v24, %v2809_v53 }
 0x154   : > { %2283 = vtanh.f32 %v1055_v5  ;;  %v1056_v13 = vadd.f32 %v1054_v9, %v794_v6 }
 0x156   : > { %2285 = vtanh.f32 %v1056_v13  ;;  %v1081_v13 = vld [vmem:[%s3052_s20 + $0x8] sm:$0xf] }
 0x15a   : > { %v2284_v29 = vpop.eup %2283 }
 0x15b   : > { %v1061_v54 = vmul.f32 %v2284_v29, %v1059_v25 }
 0x15c   : > { %v2286_v26 = vpop.eup %2285 }
 0x15d   : > { %v1062_v27 = vmul.f32 %v2286_v26, %v1060_v22  ;;  %v3025_v31 = vadd.f32 %v1063_v17, %v1061_v54  ;;  %v1086_v17 = vunpack.c.l.bf16 %v1081_v13 }
 0x15f   : > { %v3027_v18 = vadd.f32 %v1064_v30, %v1062_v27  ;;  %v1067_v33 = vpack.c.bf16 %v3025_v31, %v3025_v31 }
 0x161   : > { %v1068_v34 = vpack.c.bf16 %v3027_v18, %v3027_v18  ;;  %v2149_v35 = vpack.c.bf16 %v3027_v18, %v3025_v31  ;;  %v1092_v52 = vunpack.c.l.b16 %v1067_v33 }
 0x163   : > { %2150 = vst [vmem:[%s1071_s30] sm:$0xff] %v2149_v35   ;;  %v1093_v36 = vunpack.c.l.b16 %v1068_v34  ;;  %s2145_s30 = sshll.u32 (%p2611_p11), %s2665_s16, 4 }
 0x164   : > { %s1582_s15 = sadd.s32 (%p2611_p11), %s2481_s24, %s2145_s30 }
 0x165   : > { %v1094_v53 = vpack.c.b16 %v1093_v36, %v1092_v52  ;;  %s2081_s9 = sshll.u32 (%p2611_p11), %s1582_s15, 2 }
 0x166   : > { %s1584_s8 = scalar_lea.vmem (%p2611_p11), %s3267_s7, %s2081_s9 }
 0x167   : > { %1104 = vmatmul.bf16.vlgmr.msrb.gmra.mxu1 %v1094_v53  ;;  %1118 = vmatmul.bf16.vlgmr.msrb.gmra.mxu2 %v1094_v53 }
 0x168   : > { %1132 = vmatmul.bf16.vlgmr.msra.gmra.mxu3 %v1094_v53  ;;  %1452 = vmatpush.bf16.msrb.mxu1 %v2778_v37  ;;  %v1080_v37 = vld [vmem:[%s3052_s20] sm:$0xff] }
 0x169   : > { %v1085_v38 = vunpack.c.h.bf16 %v1080_v37 }
 0x16c   : > { %1453 = vmatpush.bf16.msrb.mxu1 %v2788_v43 }
 0x170   : > { %1454 = vmatpush.bf16.msrb.mxu1 %v2831_v1  ;;  %v1084_v1 = vunpack.c.l.bf16 %v1080_v37 }
 0x174   : > { %1455 = vmatpush.bf16.msrb.mxu1 %v2842_v7 }
 0x178   : > { %1456 = vmatpush.bf16.msrb.mxu1 %v2854_v14 }
 0x17c   : > { %1457 = vmatpush.bf16.msrb.mxu1 %v2868_v20 }
 0x180   : > { %1458 = vmatpush.bf16.msrb.mxu1 %v2874_v23 }
 0x184   : > { %1459 = vmatpush.bf16.msrb.mxu1 %v2882_v28  ;;  %v1082_v28 = vld [vmem:[%s3052_s20 + $0xc] sm:$0xff] }
 0x185   : > { %v1087_v42 = vunpack.c.l.bf16 %v1082_v28  ;;  %v1088_v51 = vunpack.c.h.bf16 %v1082_v28  ;;  %v1083_v28 = vld [vmem:[%s3052_s20 + $0x14] sm:$0xf] }
 0x1e4   : > { %v1105_v43 = vpop.f32.mrf.mxu1 }
 0x1e5   : > { %v1106_v7 = vadd.f32 %v1105_v43, %v2969_v48 }
 0x1e7   : > { %v1138_v14 = vadd.f32 %v1106_v7, %v1084_v1 }
 0x1e9   : > { %v2056_v20 = vmul.f32 -1.442695, %v1138_v14 }
 0x1ea   : > { %v1119_v23 = vpop.f32.mrf.mxu2 }
 0x1eb   : > { %2287 = vpow2.f32 %v2056_v20  ;;  %v1120_v39 = vadd.f32 %v1119_v23, %v2967_v47  ;;  %v1133_v4 = vpop.f32.mrf.mxu3 }
 0x1ec   : > { %v1107_v40 = vpop.f32.mrf.mxu1  ;;  %v1134_v24 = vadd.f32 %v1133_v4, %v2985_v19 }
 0x1ed   : > { %v1178_v41 = vadd.f32 %v1120_v39, %v1085_v38  ;;  %v1108_v44 = vadd.f32 %v1107_v40, %v2969_v48 }
 0x1ef   : > { %v2058_v45 = vmul.f32 -1.442695, %v1178_v41  ;;  %v1139_v46 = vadd.f32 %v1108_v44, %v1087_v42 }
 0x1f1   : > { %v2288_v60 = vpop.eup %2287  ;;  %2289 = vpow2.f32 %v2058_v45  ;;  %v2057_v49 = vmul.f32 -1.442695, %v1139_v46 }
 0x1f2   : > { %v1146_v8 = vadd.f32 1.0, %v2288_v60  ;;  %v1121_v50 = vpop.f32.mrf.mxu2  ;;  %v1089_v60 = vunpack.c.l.bf16 %v1083_v28 }
 0x1f3   : > { %2291 = vpow2.f32 %v2057_v49  ;;  %v1122_v32 = vadd.f32 %v1121_v50, %v2967_v47  ;;  %v1135_v1 = vpop.f32.mrf.mxu3 }
 0x1f4   : > { %2293 = vrcp.f32 %v1146_v8  ;;  %v1159_v2 = vand.u32 2147483648, %v1146_v8  ;;  %v1157_v6 = vand.u32 2147483647, %v1146_v8  ;;  %vm1153_vm1 = vweird.f32 %v1146_v8 }
 0x1f5   : > { %v1179_v55 = vadd.f32 %v1122_v32, %v1088_v51  ;;  %v1136_v40 = vadd.f32 %v1135_v1, %v2985_v19 }
 0x1f6   : > { %v1160_v15 = vor.u32 1.1754944e-38, %v1159_v2  ;;  %vm1158_vm3 = vcmp.eq.f32.partialorder %v1157_v6, 8.507059e+37 }
 0x1f7   : > { %v2290_v56 = vpop.eup %2289  ;;  %v2059_v57 = vmul.f32 -1.442695, %v1179_v55 }
 0x1f8   : > { %v1186_v58 = vadd.f32 1.0, %v2290_v56 }
 0x1f9   : > { %v2292_v59 = vpop.eup %2291  ;;  %2295 = vpow2.f32 %v2059_v57 }
 0x1fa   : > { %v2294_v61 = vpop.eup %2293  ;;  %2297 = vrcp.f32 %v1186_v58  ;;  %v1147_v63 = vadd.f32 1.0, %v2292_v59  ;;  %v1199_v52 = vand.u32 2147483648, %v1186_v58  ;;  %vm1193_vm6 = vweird.f32 %v1186_v58 }
 0x1fb   : > { %v1149_v62 = vmul.f32 %v2294_v61, %v1146_v8  ;;  %vm1154_vm0 = vweird.f32 %v2294_v61  ;;  %v1197_v37 = vand.u32 2147483647, %v1186_v58 }
 0x1fc   : > { %2299 = vrcp.f32 %v1147_v63  ;;  %vm1155_vm2 = vmor %vm1153_vm1, %vm1154_vm0  ;;  %v1174_v34 = vand.u32 2147483648, %v1147_v63  ;;  %v1172_v53 = vand.u32 2147483647, %v1147_v63  ;;  %vm1168_vm8 = vweird.f32 %v1147_v63 }
 0x1fd   : > { %v1150_v0 = vsub.f32 1.0, %v1149_v62  ;;  %v1200_v39 = vor.u32 1.1754944e-38, %v1199_v52  ;;  %vm1198_vm11 = vcmp.eq.f32.partialorder %v1197_v37, 8.507059e+37 }
 0x1fe   : > { %v1175_v38 = vor.u32 1.1754944e-38, %v1174_v34  ;;  %vm1173_vm10 = vcmp.eq.f32.partialorder %v1172_v53, 8.507059e+37 }
 0x1ff   : > { %v2296_v3 = vpop.eup %2295  ;;  %v1151_v5 = vmul.f32 %v2294_v61, %v1150_v0 }
 0x200   : > { %v2298_v9 = vpop.eup %2297  ;;  %v3060_v10 = vadd.f32 1.0, %v2296_v3 }
 0x201   : > { %v1189_v11 = vmul.f32 %v2298_v9, %v1186_v58  ;;  %v1152_v12 = vadd.f32 %v2294_v61, %v1151_v5  ;;  %vm1194_vm4 = vweird.f32 %v2298_v9 }
 0x202   : > { %2301 = vrcp.f32 %v3060_v10  ;;  %v2300_v16 = vpop.eup %2299  ;;  %vm3066_vm7 = vmor %vm1193_vm6, %vm1194_vm4  ;;  %v1214_v46 = vand.u32 2147483648, %v3060_v10  ;;  %vm1208_vm13 = vweird.f32 %v3060_v10  ;;  %v1212_v50 = vand.u32 2147483647, %v3060_v10 }
 0x203   : > { %v1190_v21 = vsub.f32 1.0, %v1189_v11  ;;  %v1156_v25 = vsel %vm1155_vm2, %v2294_v61, %v1152_v12  ;;  %v1164_v54 = vmul.f32 %v2300_v16, %v1147_v63  ;;  %vm1169_vm5 = vweird.f32 %v2300_v16 }
 0x204   : > { %v1161_v29 = vsel %vm1158_vm3, %v1160_v15, %v1156_v25  ;;  %vm1170_vm9 = vmor %vm1168_vm8, %vm1169_vm5  ;;  %v1215_v57 = vor.u32 1.1754944e-38, %v1214_v46  ;;  %vm1213_vm15 = vcmp.eq.f32.partialorder %v1212_v50, 8.507059e+37 }
 0x205   : > { %v1191_v22 = vmul.f32 %v2298_v9, %v1190_v21  ;;  %v1218_v26 = vmul.f32 %v1161_v29, %v1134_v24  ;;  %v1165_v27 = vsub.f32 1.0, %v1164_v54 }
 0x207   : > { %v1192_v30 = vadd.f32 %v2298_v9, %v1191_v22  ;;  %v1220_v33 = vadd.f32 %v1218_v26, %v1086_v17  ;;  %v1166_v36 = vmul.f32 %v2300_v16, %v1165_v27  ;;  %v1246_v17 = vld [vmem:[%s3096_s11 + $0xc] sm:$0xff] }
 0x208   : > { %v2302_v35 = vpop.eup %2301  ;;  %v1252_v34 = vunpack.c.h.bf16 %v1246_v17 }
 0x209   : > { %v1204_v43 = vmul.f32 %v2302_v35, %v3060_v10  ;;  %2303 = vtanh.f32 %v1220_v33  ;;  %v1167_v14 = vadd.f32 %v2300_v16, %v1166_v36  ;;  %v1196_v20 = vsel %vm3066_vm7, %v2298_v9, %v1192_v30 }
 0x20a   : > { %vm1209_vm12 = vweird.f32 %v2302_v35  ;;  %v1201_v45 = vsel %vm1198_vm11, %v1200_v39, %v1196_v20  ;;  %v1251_v30 = vunpack.c.l.bf16 %v1246_v17 }
 0x20b   : > { %v1205_v23 = vsub.f32 1.0, %v1204_v43  ;;  %v1171_v41 = vsel %vm1170_vm9, %v2300_v16, %v1167_v14  ;;  %vm1210_vm14 = vmor %vm1208_vm13, %vm1209_vm12  ;;  %v1224_v55 = vsub.f32 1.0, %v1201_v45  ;;  %v1228_v61 = vmul.f32 %v1201_v45, %v3025_v31 }
 0x20c   : > { %v1176_v44 = vsel %vm1173_vm10, %v1175_v38, %v1171_v41 }
 0x20d   : > { %v1206_v42 = vmul.f32 %v2302_v35, %v1205_v23  ;;  %v1219_v49 = vmul.f32 %v1176_v44, %v1136_v40 }
 0x20f   : > { %v1207_v8 = vadd.f32 %v2302_v35, %v1206_v42  ;;  %v2304_v51 = vpop.eup %2303  ;;  %v1221_v32 = vadd.f32 %v1219_v49, %v1089_v60 }
 0x210   : > { %v1226_v58 = vmul.f32 %v2304_v51, %v1224_v55  ;;  %v1245_v55 = vld [vmem:[%s3096_s11 + $0x8] sm:$0xf] }
 0x211   : > { %v1211_v56 = vsel %vm1210_vm14, %v2302_v35, %v1207_v8  ;;  %2305 = vtanh.f32 %v1221_v32 }
 0x212   : > { %v1216_v59 = vsel %vm1213_vm15, %v1215_v57, %v1211_v56  ;;  %v3078_v62 = vadd.f32 %v1228_v61, %v1226_v58 }
 0x213   : > { %v1225_v63 = vsub.f32 1.0, %v1216_v59  ;;  %v1229_v3 = vmul.f32 %v1216_v59, %v3027_v18  ;;  %v1244_v18 = vld [vmem:[%s3096_s11] sm:$0xff] }
 0x214   : > { %v1232_v5 = vpack.c.bf16 %v3078_v62, %v3078_v62  ;;  %v1248_v15 = vunpack.c.l.bf16 %v1244_v18  ;;  %v1249_v21 = vunpack.c.h.bf16 %v1244_v18 }
 0x216   : > { %v1256_v9 = vunpack.c.l.b16 %v1232_v5 }
 0x217   : > { %v2306_v0 = vpop.eup %2305 }
 0x218   : > { %v1227_v2 = vmul.f32 %v2306_v0, %v1225_v63 }
 0x21a   : > { %v3082_v4 = vadd.f32 %v1229_v3, %v1227_v2  ;;  %v1250_v2 = vunpack.c.l.bf16 %v1245_v55 }
 0x21c   : > { %v2154_v6 = vpack.c.bf16 %v3082_v4, %v3078_v62  ;;  %v1233_v31 = vpack.c.bf16 %v3082_v4, %v3082_v4 }
 0x21e   : > { %2155 = vst [vmem:[%s1236_s28] sm:$0xff] %v2154_v6   ;;  %v1257_v10 = vunpack.c.l.b16 %v1233_v31 }
 0x220   : > { %v1258_v11 = vpack.c.b16 %v1257_v10, %v1256_v9 }
 0x222   : > { %1268 = vmatmul.bf16.vlgmr.msra.gmra.mxu0 %v1258_v11  ;;  %1282 = vmatmul.bf16.vlgmr.msra.gmra.mxu1 %v1258_v11 }
 0x223   : > { %1296 = vmatmul.bf16.vlgmr.msra.gmra.mxu2 %v1258_v11 }
 0x29f   : > { %v1269_v12 = vpop.f32.mrf.mxu0  ;;  %v1283_v13 = vpop.f32.mrf.mxu1 }
 0x2a0   : > { %v1270_v16 = vadd.f32 %v1269_v12, %v2969_v48  ;;  %v1284_v24 = vadd.f32 %v1283_v13, %v2967_v47 }
 0x2a2   : > { %v1302_v25 = vadd.f32 %v1270_v16, %v1248_v15  ;;  %v1342_v29 = vadd.f32 %v1284_v24, %v1249_v21 }
 0x2a4   : > { %v2064_v54 = vmul.f32 -1.442695, %v1302_v25  ;;  %v2066_v22 = vmul.f32 -1.442695, %v1342_v29  ;;  %v1247_v29 = vld [vmem:[%s3096_s11 + $0x14] sm:$0xf] }
 0x2a6   : > { %2307 = vpow2.f32 %v2064_v54  ;;  %v1297_v46 = vpop.f32.mrf.mxu2 }
 0x2a7   : > { %2309 = vpow2.f32 %v2066_v22  ;;  %v1271_v26 = vpop.f32.mrf.mxu0  ;;  %v1285_v27 = vpop.f32.mrf.mxu1  ;;  %v1298_v57 = vadd.f32 %v1297_v46, %v2985_v19 }
 0x2a8   : > { %v1272_v33 = vadd.f32 %v1271_v26, %v2969_v48  ;;  %v1286_v35 = vadd.f32 %v1285_v27, %v2967_v47 }
 0x2aa   : > { %v1303_v52 = vadd.f32 %v1272_v33, %v1251_v30  ;;  %v1343_v36 = vadd.f32 %v1286_v35, %v1252_v34  ;;  %v1253_v35 = vunpack.c.l.bf16 %v1247_v29 }
 0x2ac   : > { %v2308_v53 = vpop.eup %2307  ;;  %v2065_v37 = vmul.f32 -1.442695, %v1303_v52  ;;  %v2067_v7 = vmul.f32 -1.442695, %v1343_v36 }
 0x2ad   : > { %v2310_v43 = vpop.eup %2309  ;;  %v1310_v1 = vadd.f32 1.0, %v2308_v53 }
 0x2ae   : > { %v3104_v14 = vadd.f32 1.0, %v2310_v43  ;;  %2311 = vpow2.f32 %v2065_v37  ;;  %v1299_v15 = vpop.f32.mrf.mxu2 }
 0x2af   : > { %2313 = vrcp.f32 %v1310_v1  ;;  %v1323_v60 = vand.u32 2147483648, %v1310_v1  ;;  %v1321_v8 = vand.u32 2147483647, %v1310_v1  ;;  %vm1317_vm1 = vweird.f32 %v1310_v1 }
 0x2b0   : > { %2315 = vrcp.f32 %v3104_v14  ;;  %v1363_v0 = vand.u32 2147483648, %v3104_v14  ;;  %vm1357_vm6 = vweird.f32 %v3104_v14  ;;  %v1361_v12 = vand.u32 2147483647, %v3104_v14 }
 0x2b1   : > { %2317 = vpow2.f32 %v2067_v7  ;;  %v1324_v56 = vor.u32 1.1754944e-38, %v1323_v60  ;;  %vm1322_vm3 = vcmp.eq.f32.partialorder %v1321_v8, 8.507059e+37  ;;  %v1300_v17 = vadd.f32 %v1299_v15, %v2985_v19 }
 0x2b2   : > { %v1364_v22 = vor.u32 1.1754944e-38, %v1363_v0  ;;  %vm1362_vm11 = vcmp.eq.f32.partialorder %v1361_v12, 8.507059e+37 }
 0x2b4   : > { %v2312_v20 = vpop.eup %2311 }
 0x2b5   : > { %v2314_v23 = vpop.eup %2313  ;;  %v1311_v28 = vadd.f32 1.0, %v2312_v20 }
 0x2b6   : > { %v2316_v38 = vpop.eup %2315  ;;  %v1313_v39 = vmul.f32 %v2314_v23, %v1310_v1  ;;  %vm1318_vm0 = vweird.f32 %v2314_v23 }
 0x2b7   : > { %v2318_v40 = vpop.eup %2317  ;;  %v1353_v41 = vmul.f32 %v2316_v38, %v3104_v14  ;;  %2319 = vrcp.f32 %v1311_v28  ;;  %vm1319_vm2 = vmor %vm1317_vm1, %vm1318_vm0  ;;  %vm1358_vm4 = vweird.f32 %v2316_v38  ;;  %v1338_v9 = vand.u32 2147483648, %v1311_v28 }
 0x2b8   : > { %v1314_v42 = vsub.f32 1.0, %v1313_v39  ;;  %v3108_v44 = vadd.f32 1.0, %v2318_v40  ;;  %v1336_v18 = vand.u32 2147483647, %v1311_v28  ;;  %vm3117_vm7 = vmor %vm1357_vm6, %vm1358_vm4  ;;  %vm1332_vm8 = vweird.f32 %v1311_v28 }
 0x2b9   : > { %v1354_v45 = vsub.f32 1.0, %v1353_v41  ;;  %v1339_v54 = vor.u32 1.1754944e-38, %v1338_v9 }
 0x2ba   : > { %v1315_v49 = vmul.f32 %v2314_v23, %v1314_v42  ;;  %2321 = vrcp.f32 %v3108_v44  ;;  %vm1337_vm10 = vcmp.eq.f32.partialorder %v1336_v18, 8.507059e+37  ;;  %v1378_v34 = vand.u32 2147483648, %v3108_v44 }
 0x2bb   : > { %v1355_v32 = vmul.f32 %v2316_v38, %v1354_v45  ;;  %vm1372_vm13 = vweird.f32 %v3108_v44  ;;  %v1376_v36 = vand.u32 2147483647, %v3108_v44 }
 0x2bc   : > { %v1316_v50 = vadd.f32 %v2314_v23, %v1315_v49  ;;  %v1379_v7 = vor.u32 1.1754944e-38, %v1378_v34 }
 0x2bd   : > { %v2320_v51 = vpop.eup %2319  ;;  %v1356_v6 = vadd.f32 %v2316_v38, %v1355_v32  ;;  %vm1377_vm15 = vcmp.eq.f32.partialorder %v1376_v36, 8.507059e+37 }
 0x2be   : > { %v1320_v58 = vsel %vm1319_vm2, %v2314_v23, %v1316_v50  ;;  %v1328_v59 = vmul.f32 %v2320_v51, %v1311_v28  ;;  %vm1333_vm5 = vweird.f32 %v2320_v51 }
 0x2bf   : > { %v1325_v61 = vsel %vm1322_vm3, %v1324_v56, %v1320_v58  ;;  %v1360_v24 = vsel %vm3117_vm7, %v2316_v38, %v1356_v6  ;;  %vm1334_vm9 = vmor %vm1332_vm8, %vm1333_vm5 }
 0x2c0   : > { %v2322_v63 = vpop.eup %2321  ;;  %v1382_v3 = vmul.f32 %v1325_v61, %v1298_v57  ;;  %v1329_v5 = vsub.f32 1.0, %v1328_v59  ;;  %v1365_v33 = vsel %vm1362_vm11, %v1364_v22, %v1360_v24  ;;  %v1410_v57 = vld [vmem:[%s3147_s10 + $0xc] sm:$0xff] }
 0x2c1   : > { %v1368_v31 = vmul.f32 %v2322_v63, %v3108_v44  ;;  %vm1373_vm12 = vweird.f32 %v2322_v63  ;;  %v1388_v43 = vsub.f32 1.0, %v1365_v33  ;;  %v1392_v23 = vmul.f32 %v1365_v33, %v3078_v62 }
 0x2c2   : > { %v1384_v10 = vadd.f32 %v1382_v3, %v1250_v2  ;;  %v1330_v11 = vmul.f32 %v2320_v51, %v1329_v5  ;;  %vm1374_vm14 = vmor %vm1372_vm13, %vm1373_vm12  ;;  %v1416_v0 = vunpack.c.h.bf16 %v1410_v57 }
 0x2c3   : > { %v1369_v13 = vsub.f32 1.0, %v1368_v31 }
 0x2c4   : > { %2323 = vtanh.f32 %v1384_v10  ;;  %v1331_v21 = vadd.f32 %v2320_v51, %v1330_v11  ;;  %v1415_v11 = vunpack.c.l.bf16 %v1410_v57  ;;  %v1411_v57 = vld [vmem:[%s3147_s10 + $0x14] sm:$0xf] }
 0x2c5   : > { %v1370_v25 = vmul.f32 %v2322_v63, %v1369_v13 }
 0x2c6   : > { %v1335_v26 = vsel %vm1334_vm9, %v2320_v51, %v1331_v21 }
 0x2c7   : > { %v1340_v27 = vsel %vm1337_vm10, %v1339_v54, %v1335_v26  ;;  %v1371_v30 = vadd.f32 %v2322_v63, %v1370_v25 }
 0x2c8   : > { %v1383_v52 = vmul.f32 %v1340_v27, %v1300_v17 }
 0x2c9   : > { %v1375_v1 = vsel %vm1374_vm14, %v2322_v63, %v1371_v30 }
 0x2ca   : > { %v2324_v53 = vpop.eup %2323  ;;  %v1385_v37 = vadd.f32 %v1383_v52, %v1253_v35  ;;  %v1380_v20 = vsel %vm1377_vm15, %v1379_v7, %v1375_v1 }
 0x2cb   : > { %v1390_v14 = vmul.f32 %v2324_v53, %v1388_v43  ;;  %v1389_v38 = vsub.f32 1.0, %v1380_v20  ;;  %v1393_v41 = vmul.f32 %v1380_v20, %v3082_v4  ;;  %v1408_v4 = vld [vmem:[%s3147_s10] sm:$0xff]  ;;  %v1409_v43 = vld [vmem:[%s3147_s10 + $0x8] sm:$0xf] }
 0x2cc   : > { %2325 = vtanh.f32 %v1385_v37  ;;  %v1413_v50 = vunpack.c.h.bf16 %v1408_v4  ;;  %v1412_v58 = vunpack.c.l.bf16 %v1408_v4 }
 0x2cd   : > { %v3129_v28 = vadd.f32 %v1392_v23, %v1390_v14 }
 0x2cf   : > { %v1396_v44 = vpack.c.bf16 %v3129_v28, %v3129_v28 }
 0x2d1   : > { %v1420_v46 = vunpack.c.l.b16 %v1396_v44 }
 0x2d2   : > { %v2326_v39 = vpop.eup %2325 }
 0x2d3   : > { %v1391_v40 = vmul.f32 %v2326_v39, %v1389_v38 }
 0x2d5   : > { %v3133_v42 = vadd.f32 %v1393_v41, %v1391_v40  ;;  %v1414_v41 = vunpack.c.l.bf16 %v1409_v43 }
 0x2d7   : > { %v2159_v45 = vpack.c.bf16 %v3133_v42, %v3129_v28  ;;  %v1397_v62 = vpack.c.bf16 %v3133_v42, %v3133_v42 }
 0x2d9   : > { %2160 = vst [vmem:[%s1400_s26] sm:$0xff] %v2159_v45   ;;  %v1421_v60 = vunpack.c.l.b16 %v1397_v62 }
 0x2db   : > { %v1422_v49 = vpack.c.b16 %v1421_v60, %v1420_v46 }
 0x2dd   : > { %1432 = vmatmul.bf16.vlgmr.msrb.gmra.mxu3 %v1422_v49  ;;  %1446 = vmatmul.bf16.vlgmr.msrb.gmra.mxu0 %v1422_v49 }
 0x2de   : > { %1460 = vmatmul.bf16.vlgmr.msrb.gmra.mxu1 %v1422_v49 }
 0x35a   : > { %v1447_v8 = vpop.f32.mrf.mxu0 }
 0x35b   : > { %v1448_v51 = vadd.f32 %v1447_v8, %v2967_v47  ;;  %v1461_v30 = vpop.f32.mrf.mxu1 }
 0x35c   : > { %v1462_v7 = vadd.f32 %v1461_v30, %v2985_v19 }
 0x35d   : > { %v1506_v32 = vadd.f32 %v1448_v51, %v1413_v50 }
 0x35f   : > { %v2073_v55 = vmul.f32 -1.442695, %v1506_v32 }
 0x360   : > { %v1433_v56 = vpop.f32.mrf.mxu3 }
 0x361   : > { %2327 = vpow2.f32 %v2073_v55  ;;  %v1434_v59 = vadd.f32 %v1433_v56, %v2969_v48 }
 0x362   : > { %v1449_v61 = vpop.f32.mrf.mxu0 }
 0x363   : > { %v1466_v63 = vadd.f32 %v1434_v59, %v1412_v58  ;;  %v1450_v2 = vadd.f32 %v1449_v61, %v2967_v47  ;;  %v1463_v32 = vpop.f32.mrf.mxu1 }
 0x364   : > { %v1464_v61 = vadd.f32 %v1463_v32, %v2985_v19 }
 0x365   : > { %v2071_v3 = vmul.f32 -1.442695, %v1466_v63  ;;  %v1507_v5 = vadd.f32 %v1450_v2, %v1416_v0 }
 0x367   : > { %v2328_v6 = vpop.eup %2327  ;;  %2329 = vpow2.f32 %v2071_v3  ;;  %v2074_v31 = vmul.f32 -1.442695, %v1507_v5  ;;  %v1417_v5 = vunpack.c.l.bf16 %v1411_v57 }
 0x368   : > { %v3154_v9 = vadd.f32 1.0, %v2328_v6  ;;  %v1435_v10 = vpop.f32.mrf.mxu3 }
 0x369   : > { %2331 = vpow2.f32 %v2074_v31  ;;  %v1436_v18 = vadd.f32 %v1435_v10, %v2969_v48 }
 0x36a   : > { %2333 = vrcp.f32 %v3154_v9  ;;  %v1527_v40 = vand.u32 2147483648, %v3154_v9  ;;  %vm1521_vm5 = vweird.f32 %v3154_v9  ;;  %v1525_v62 = vand.u32 2147483647, %v3154_v9 }
 0x36b   : > { %v1467_v12 = vadd.f32 %v1436_v18, %v1415_v11 }
 0x36c   : > { %v1528_v55 = vor.u32 1.1754944e-38, %v1527_v40  ;;  %vm1526_vm9 = vcmp.eq.f32.partialorder %v1525_v62, 8.507059e+37 }
 0x36d   : > { %v2330_v13 = vpop.eup %2329  ;;  %v2072_v15 = vmul.f32 -1.442695, %v1467_v12 }
 0x36e   : > { %v1474_v16 = vadd.f32 1.0, %v2330_v13 }
 0x36f   : > { %v2332_v21 = vpop.eup %2331  ;;  %2335 = vpow2.f32 %v2072_v15 }
 0x370   : > { %2337 = vrcp.f32 %v1474_v16  ;;  %v2334_v47 = vpop.eup %2333  ;;  %v3158_v24 = vadd.f32 1.0, %v2332_v21  ;;  %v1487_v33 = vand.u32 2147483648, %v1474_v16  ;;  %v1485_v35 = vand.u32 2147483647, %v1474_v16 }
 0x371   : > { %v1517_v25 = vmul.f32 %v2334_v47, %v3154_v9  ;;  %vm1481_vm1 = vweird.f32 %v1474_v16  ;;  %vm1522_vm4 = vweird.f32 %v2334_v47 }
 0x372   : > { %2339 = vrcp.f32 %v3158_v24  ;;  %v1488_v1 = vor.u32 1.1754944e-38, %v1487_v33  ;;  %vm1486_vm3 = vcmp.eq.f32.partialorder %v1485_v35, 8.507059e+37  ;;  %vm3171_vm6 = vmor %vm1521_vm5, %vm1522_vm4  ;;  %v1542_v3 = vand.u32 2147483648, %v3158_v24 }
 0x373   : > { %v1518_v17 = vsub.f32 1.0, %v1517_v25  ;;  %vm1536_vm13 = vweird.f32 %v3158_v24  ;;  %v1540_v9 = vand.u32 2147483647, %v3158_v24 }
 0x374   : > { %v1543_v13 = vor.u32 1.1754944e-38, %v1542_v3 }
 0x375   : > { %v2336_v29 = vpop.eup %2335  ;;  %v1519_v52 = vmul.f32 %v2334_v47, %v1518_v17  ;;  %vm1541_vm15 = vcmp.eq.f32.partialorder %v1540_v9, 8.507059e+37 }
 0x376   : > { %v2338_v54 = vpop.eup %2337  ;;  %v1475_v22 = vadd.f32 1.0, %v2336_v29 }
 0x377   : > { %v1477_v48 = vmul.f32 %v2338_v54, %v1474_v16  ;;  %vm1482_vm0 = vweird.f32 %v2338_v54  ;;  %v1520_v23 = vadd.f32 %v2334_v47, %v1519_v52 }
 0x378   : > { %2341 = vrcp.f32 %v1475_v22  ;;  %v3162_v26 = vpop.eup %2339  ;;  %vm1483_vm2 = vmor %vm1481_vm1, %vm1482_vm0  ;;  %v1502_v46 = vand.u32 2147483648, %v1475_v22  ;;  %v1500_v8 = vand.u32 2147483647, %v1475_v22  ;;  %vm1496_vm8 = vweird.f32 %v1475_v22 }
 0x379   : > { %v1478_v27 = vsub.f32 1.0, %v1477_v48  ;;  %v1532_v36 = vmul.f32 %v3162_v26, %v3158_v24  ;;  %v1524_v50 = vsel %vm3171_vm6, %v2334_v47, %v1520_v23  ;;  %vm1537_vm12 = vweird.f32 %v3162_v26 }
 0x37a   : > { %v1503_v58 = vor.u32 1.1754944e-38, %v1502_v46  ;;  %v1529_v59 = vsel %vm1526_vm9, %v1528_v55, %v1524_v50  ;;  %vm1501_vm11 = vcmp.eq.f32.partialorder %v1500_v8, 8.507059e+37  ;;  %vm1538_vm14 = vmor %vm1536_vm13, %vm1537_vm12 }
 0x37b   : > { %v1479_v34 = vmul.f32 %v2338_v54, %v1478_v27  ;;  %v1533_v39 = vsub.f32 1.0, %v1532_v36  ;;  %v1552_v31 = vsub.f32 1.0, %v1529_v59  ;;  %v1556_v11 = vmul.f32 %v1529_v59, %v3129_v28 }
 0x37d   : > { %v1480_v53 = vadd.f32 %v2338_v54, %v1479_v34  ;;  %v1534_v51 = vmul.f32 %v3162_v26, %v1533_v39 }
 0x37e   : > { %v2342_v37 = vpop.eup %2341 }
 0x37f   : > { %v1484_v14 = vsel %vm1483_vm2, %v2338_v54, %v1480_v53  ;;  %v1492_v20 = vmul.f32 %v2342_v37, %v1475_v22  ;;  %vm1497_vm7 = vweird.f32 %v2342_v37  ;;  %v1535_v0 = vadd.f32 %v3162_v26, %v1534_v51 }
 0x380   : > { %v1489_v38 = vsel %vm1486_vm3, %v1488_v1, %v1484_v14  ;;  %vm1498_vm10 = vmor %vm1496_vm8, %vm1497_vm7 }
 0x381   : > { %v1546_v44 = vmul.f32 %v1489_v38, %v1462_v7  ;;  %v1493_v45 = vsub.f32 1.0, %v1492_v20  ;;  %v1539_v12 = vsel %vm1538_vm14, %v3162_v26, %v1535_v0 }
 0x382   : > { %v1544_v16 = vsel %vm1541_vm15, %v1543_v13, %v1539_v12 }
 0x383   : > { %v1548_v49 = vadd.f32 %v1546_v44, %v1414_v41  ;;  %v1494_v4 = vmul.f32 %v2342_v37, %v1493_v45  ;;  %v1553_v21 = vsub.f32 1.0, %v1544_v16  ;;  %v1557_v24 = vmul.f32 %v1544_v16, %v3133_v42 }
 0x385   : > { %2343 = vtanh.f32 %v1548_v49  ;;  %v1495_v56 = vadd.f32 %v2342_v37, %v1494_v4 }
 0x387   : > { %v1499_v63 = vsel %vm1498_vm10, %v2342_v37, %v1495_v56 }
 0x388   : > { %v1504_v2 = vsel %vm1501_vm11, %v1503_v58, %v1499_v63 }
 0x389   : > { %v1547_v6 = vmul.f32 %v1504_v2, %v1464_v61 }
 0x38b   : > { %v2344_v10 = vpop.eup %2343  ;;  %v1549_v19 = vadd.f32 %v1547_v6, %v1417_v5 }
 0x38c   : > { %v1554_v18 = vmul.f32 %v2344_v10, %v1552_v31 }
 0x38d   : > { %2345 = vtanh.f32 %v1549_v19 }
 0x38e   : > { %v1558_v15 = vadd.f32 %v1556_v11, %v1554_v18 }
 0x390   : > { %1567 = vst [vmem:[#allocation3] sm:$0xff] %v1558_v15 }
 0x393   : > { %v2346_v47 = vpop.eup %2345 }
 0x394   : > { %v1555_v25 = vmul.f32 %v2346_v47, %v1553_v21 }
 0x396   : > { %v1559_v29 = vadd.f32 %v1557_v24, %v1555_v25  ;;  %1575 = sbr.rel (!%p2611_p11) target bundleno = 938 (0x3aa), region = 56 }
 0x398   : > { %v2164_v54 = vpack.c.bf16 %v1559_v29, %v1558_v15  ;;  %1568 = vst [vmem:[#allocation3 + $0x8] sm:$0xff] %v1559_v29 }
 0x39a   : > { %2165 = vst [vmem:[%s1564_s6] sm:$0xff] %v2164_v54  }
 0x3a1   : > { %v1601_v28 = vld [vmem:[%s2684_s25] sm:$0xf]  ;;  %v1603_v42 = vld [vmem:[%s2684_s25 + $0x4] sm:$0xf]  ;;  %v1605_v22 = vld [vmem:[%s2684_s25 + $0x8] sm:$0xf] }
 0x3a2   : > { %1602 = vst [vmem:[%s1584_s8] sm:$0xf] %v1601_v28  ;;  %v1607_v48 = vld [vmem:[%s2684_s25 + $0xc] sm:$0xf]  ;;  %v1609_v17 = vld [vmem:[%s2684_s25 + $0x10] sm:$0xf] }
 0x3a3   : > { %1604 = vst [vmem:[%s1584_s8 + $0x8] sm:$0xf] %v1603_v42  ;;  %v1611_v26 = vld [vmem:[%s2684_s25 + $0x14] sm:$0xf]  ;;  %v1613_v27 = vld [vmem:[%s2684_s25 + $0x18] sm:$0xf] }
 0x3a4   : > { %1606 = vst [vmem:[%s1584_s8 + $0x10] sm:$0xf] %v1605_v22  ;;  %v1615_v30 = vld [vmem:[%s2684_s25 + $0x1c] sm:$0xf] }
 0x3a5   : > { %1608 = vst [vmem:[%s1584_s8 + $0x18] sm:$0xf] %v1607_v48 }
 0x3a6   : > { %1610 = vst [vmem:[%s1584_s8 + $0x20] sm:$0xf] %v1609_v17 }
 0x3a7   : > { %1612 = vst [vmem:[%s1584_s8 + $0x28] sm:$0xf] %v1611_v26 }
 0x3a8   : > { %1614 = vst [vmem:[%s1584_s8 + $0x30] sm:$0xf] %v1613_v27 }
 0x3a9   : > { %1616 = vst [vmem:[%s1584_s8 + $0x38] sm:$0xf] %v1615_v30 }
 0x3aa PF: > { %s21_s27 = sadd.s32 1, %s2493_s27   ;;  %s3268_s24 = sld [smem:[#allocation15_spill]] }
 0x3ab   : > { %p18_p7 = scmp.ge.s32.totalorder %s21_s27, 6   ;;  %s3269_s23 = sld [smem:[#allocation11_spill]] }
 0x3ac   : > { %s3270_s16 = sld [smem:[#allocation12_spill]]  ;;  %s3273_s18 = smov %s2461_s19 }
 0x3ad   : > { %s3271_s25 = sld [smem:[#allocation13_spill]]  ;;  %s3274_s19 = smov %s2621_s13 }
 0x3ae   : > { %s3272_s26 = sld [smem:[#allocation14_spill]]  ;;  %s3275_s20 = smov %s2469_s21 }
 0x3af   : > { %s3276_s21 = smov %s2473_s22  ;;  %20 = sbr.rel (!%p18_p7) target bundleno = 12 (0xc), region = 155 }
 0x3b0   : > { %s3277_s22 = smov %s3268_s24 }
 0x3b2   : > { %s3278_s24 = smov %s3270_s16 }
 0x3b4   :  { %1666 = vsyncpa [#allocation5], 1 }
 0x3b5   :  { %1668 = vsyncpa [#allocation5 + $0x1], 1 }
 0x3b6   :  { %1669 = vsyncpa [#allocation7], 1 }
 0x3b7   :  { %1671 = vsyncpa [#allocation7 + $0x1], 1 }

// kernel: bigru_attn_forward.6
= control target key start
LH: loop header
LB: loop body
LE: loop exit
PB: predicated region body
PF: predicated region fallthrough
CT: control target
= control target key end

     0   :  { %s2730_s18 = smov 0   ;;  %s2732_s19 = smov 0   ;;  %s3459_s0 = inlined_call_operand.vmem [shape: bf16[8,16,256], index: 0, kind: input, shape index: {}]   ;;  %s3460_s1 = inlined_call_operand.vmem [shape: bf16[2,256,384], index: 1, kind: input, shape index: {}]   ;;  %s3461_s2 = inlined_call_operand.vmem [shape: bf16[2,128,384], index: 2, kind: input, shape index: {}]   ;;  %s3462_s3 = inlined_call_operand.vmem [shape: f32[2,1,384], index: 3, kind: input, shape index: {}]   ;;  %s3463_s4 = inlined_call_operand.vmem [shape: f32[2,1,384], index: 4, kind: input, shape index: {}]   ;;  %s3464_s5 = inlined_call_operand.vmem [shape: bf16[8,16,256], index: 5, kind: output, shape index: {}]  }
   0x1   :  { %s2734_s20 = smov 0   ;;  %s2736_s21 = smov 0  }
   0x2   :  { %s2738_s22 = smov 0   ;;  %s2740_s23 = smov 0  }
   0x3   :  { %s2742_s24 = smov 0  }
   0x4 LB: > { %3470 = sst [smem:[#allocation5_spill]] %s2677_s19  ;;  %s24_s25 = sadd.s32 1, %s2689_s22  ;;  %s2697_s24 = sphi %s2742_s24, %s15_s24   ;;  %s2693_s23 = sphi %s2740_s23, %s3486_s23   ;;  %s2689_s22 = sphi %s2738_s22, %s3485_s22   ;;  %s2685_s21 = sphi %s2736_s21, %s3484_s21   ;;  %s2681_s20 = sphi %s2734_s20, %s3483_s20   ;;  %s2677_s19 = sphi %s2732_s19, %s3482_s19   ;;  %s2673_s18 = sphi %s2730_s18, %s3481_s18  }
   0x5   : > { %3471 = sst [smem:[#allocation6_spill]] %s2689_s22  ;;  %p25_p0 = scmp.ge.s32.totalorder %s24_s25, 2 }
   0x6   : > { %3472 = sst [smem:[#allocation7_spill]] %s2693_s23  ;;  %s27_s26 = sadd.s32 1, %s2693_s23 }
   0x7   : > { %s2018_s27 = sadd.s32 4294967295, %s2697_s24   ;;  %s2022_s28 = sshll.u32 %s2693_s23, 1 }
   0x8   : > { %s3488_s25 = smov (%p25_p0, %s24_s25), 0  ;;  %s3490_s26 = smov (!%p25_p0, %s27_s26), %s2693_s23 }
   0x9   : > { %3473 = sst [smem:[#allocation8_spill]] %s3488_s25  ;;  %s170_s29 = ssub.s32 1, %s2022_s28 }
   0xa   : > { %p192_p1 = scmp.ne.s32.totalorder %s2677_s19, %s2673_s18  ;;  %p29_p2 = scmp.ge.s32.totalorder %s3490_s26, 2 }
   0xb   : > { %s171_s30 = smul.u32 %s2689_s22, %s170_s29  ;;  %p193_p3 = scmp.eq.s32.totalorder %s2018_s27, 3 }
   0xc   : > { %s3492_s26 = smov (%p29_p2, %s3490_s26), 0  ;;  %p2026_p5 = scmp.ge.s32.totalorder %s2697_s24, 1 }
   0xd   : > { %3474 = sst [smem:[#allocation9_spill]] %s3492_s26  ;;  %p2777_p4 = por %p193_p3, %p192_p1 }
   0xe   : > { %s2023_s7 = sshll.u32 %s3492_s26, 1  ;;  %p265_p6 = scmp.lt.s32.totalorder %s2697_s24, 5 }
   0xf   : > { %s174_s8 = ssub.s32 1, %s2023_s7  ;;  %s172_s9 = sadd.s32 %s2693_s23, %s171_s30 }
  0x10   : > { %s175_s10 = smul.u32 %s174_s8, %s3488_s25  ;;  %s178_s11 = ssub.s32 %s2693_s23, %s3492_s26 }
  0x11   : > { %p266_p7 = pnand %p2026_p5, %p265_p6  ;;  %s182_s15 = sadd.s32 1, %s2677_s19 }
  0x12   : > { %s176_s12 = sadd.s32 %s175_s10, %s3492_s26  ;;  %s312_s17 = sand.u32 (!%p266_p7), 1, %s2673_s18  }
  0x13   : > { %s177_s13 = ssub.s32 %s172_s9, %s176_s12  ;;  %s2028_s27 = sshll.u32 (!%p266_p7), %s2685_s21, 1 }
  0x14   : > { %s179_s14 = sor.u32 %s178_s11, %s177_s13  ;;  %s2027_s28 = sshll.u32 (!%p266_p7), %s312_s17, 5 }
  0x15   : > { %p180_p8 = scmp.eq.s32.totalorder %s179_s14, 0  ;;  %269 = sbr.rel (%p266_p7) target bundleno = 976 (0x3d0), region = 40 }
  0x16   : > { %s2795_s29 = ssub.s32 (!%p266_p7), 1, %s2028_s27  ;;  %p330_p9 = scmp.lt.s32.totalorder (!%p266_p7), %s2685_s21, 1 }
  0x17   : > { %s2791_s16 = scalar_select %p180_p8, %s2677_s19, %s182_s15  }
  0x18   : > { %s317_s30 = smul.u32 (!%p266_p7), %s2681_s20, %s2795_s29  ;;  %s2830_s14 = scalar_lea.vmem (!%p266_p7), [#allocation4], %s2027_s28 }
  0x19   : > { %3476 = sst [smem:[#allocation10_spill]] %s2791_s16  ;;  %p2034_p11 = scmp.ne.s32.totalorder (!%p266_p7), %s2681_s20, 0 }
  0x1a   : > { %s2801_s7 = sadd.s32 %s2685_s21, %s317_s30 }
  0x1b   : > { %s2029_s8 = sshll.u32 %s2801_s7, 2 }
  0x1c   : > { %p320_p10 = scmp.lt.s32.totalorder %s2029_s8, 7 }
  0x1d   : > { %s331_s9 = scalar_select %p330_p9, %s2685_s21, 1 }
  0x1e   : > { %s3494_s8 = smov (!%p320_p10, %s2029_s8), 7 }
  0x1f   : > { %s2503_s10 = smul.u32 384, %s331_s9  ;;  %s2393_s11 = sshll.u32 %s3494_s8, 4 }
  0x20   : > { %s2504_s12 = smul.u32 192, %s331_s9  ;;  %s2808_s18 = scalar_lea.vmem %s3459_s0, %s2393_s11 }
  0x21   : > { %s2813_s27 = scalar_lea.vmem %s3460_s1, %s2503_s10  ;;  %s2505_s23 = smul.u32 3, %s331_s9 }
  0x22   : > { %s2818_s25 = scalar_lea.vmem %s3461_s2, %s2504_s12  ;;  %356 = sbr.rel (%p2034_p11) target bundleno = 42 (0x2a), region = 44 }
  0x23   : > { %s2823_s8 = scalar_lea.vmem %s3462_s3, %s2505_s23  ;;  %s2828_s11 = scalar_lea.vmem %s3463_s4, %s2505_s23 }
  0x27   : > { %v2699_v0 = vmov 0.0  }
  0x28   : > { %357 = vst [vmem:[#allocation3] sm:$0xff] %v2699_v0 }
  0x29   : > { %358 = vst [vmem:[#allocation3 + $0x8] sm:$0xff] %v2699_v0 }
  0x2a PF: > { %v2153_v1 = vld [vmem:[%s2813_s27 + $0xa8] sm:$0xf]  ;;  %v2424_v2 = vld [vmem:[%s2813_s27 + $0xb0] sm:$0xf0]  ;;  %v2423_v6 = vld [vmem:[%s2813_s27 + $0xac] sm:$0xf] }
  0x2b   : > { %v2249_v3 = vld [vmem:[%s2813_s27 + $0x168] sm:$0xf]  ;;  %v2154_v4 = vor.u32 %v2424_v2, %v2153_v1  ;;  %v2448_v5 = vld [vmem:[%s2813_s27 + $0x170] sm:$0xf0]  ;;  %v2155_v7 = vld [vmem:[%s2813_s27 + $0xb4] sm:$0xf0] }
  0x2c   : > { %v2250_v8 = vor.u32 %v2448_v5, %v2249_v3  ;;  %v2158_v9 = vor.u32 %v2423_v6, %v2155_v7  ;;  %v2447_v10 = vld [vmem:[%s2813_s27 + $0x16c] sm:$0xf]  ;;  %v2251_v11 = vld [vmem:[%s2813_s27 + $0x174] sm:$0xf0]  ;;  %v2141_v12 = vld [vmem:[%s2813_s27 + $0x90] sm:$0xf] }
  0x2d   : > { %727 = vmatpush.bf16.msra.mxu0 %v2154_v4  ;;  %v2254_v13 = vor.u32 %v2447_v10, %v2251_v11  ;;  %v2421_v14 = vld [vmem:[%s2813_s27 + $0x98] sm:$0xf0]  ;;  %v2237_v15 = vld [vmem:[%s2813_s27 + $0x150] sm:$0xf]  ;;  %v2420_v19 = vld [vmem:[%s2813_s27 + $0x94] sm:$0xf] }
  0x2e   : > { %v2445_v16 = vld [vmem:[%s2813_s27 + $0x158] sm:$0xf0]  ;;  %756 = vmatpush.bf16.msra.mxu1 %v2250_v8  ;;  %785 = vmatpush.bf16.msra.mxu2 %v2158_v9  ;;  %v2142_v17 = vor.u32 %v2421_v14, %v2141_v12  ;;  %v2143_v20 = vld [vmem:[%s2813_s27 + $0x9c] sm:$0xf0]  ;;  %v2444_v21 = vld [vmem:[%s2813_s27 + $0x154] sm:$0xf] }
  0x2f   : > { %v2238_v18 = vor.u32 %v2445_v16, %v2237_v15  ;;  %814 = vmatpush.bf16.msra.mxu3 %v2254_v13  ;;  %v2146_v22 = vor.u32 %v2420_v19, %v2143_v20  ;;  %v2239_v23 = vld [vmem:[%s2813_s27 + $0x15c] sm:$0xf0]  ;;  %v2129_v24 = vld [vmem:[%s2813_s27 + $0x78] sm:$0xf]  ;;  %v2418_v25 = vld [vmem:[%s2813_s27 + $0x80] sm:$0xf0] }
  0x30   : > { %v2242_v26 = vor.u32 %v2444_v21, %v2239_v23  ;;  %v2225_v27 = vld [vmem:[%s2813_s27 + $0x138] sm:$0xf]  ;;  %v2442_v28 = vld [vmem:[%s2813_s27 + $0x140] sm:$0xf0]  ;;  %v2417_v29 = vld [vmem:[%s2813_s27 + $0x7c] sm:$0xf]  ;;  %v2130_v30 = vor.u32 %v2418_v25, %v2129_v24 }
  0x31   : > { %728 = vmatpush.bf16.msra.mxu0 %v2142_v17  ;;  %v2131_v31 = vld [vmem:[%s2813_s27 + $0x84] sm:$0xf0]  ;;  %v2441_v32 = vld [vmem:[%s2813_s27 + $0x13c] sm:$0xf]  ;;  %v2226_v34 = vor.u32 %v2442_v28, %v2225_v27  ;;  %v2117_v36 = vld [vmem:[%s2813_s27 + $0x60] sm:$0xf] }
  0x32   : > { %v2227_v33 = vld [vmem:[%s2813_s27 + $0x144] sm:$0xf0]  ;;  %757 = vmatpush.bf16.msra.mxu1 %v2238_v18  ;;  %786 = vmatpush.bf16.msra.mxu2 %v2146_v22  ;;  %v2134_v35 = vor.u32 %v2417_v29, %v2131_v31  ;;  %v2415_v37 = vld [vmem:[%s2813_s27 + $0x68] sm:$0xf0]  ;;  %v2213_v38 = vld [vmem:[%s2813_s27 + $0x120] sm:$0xf] }
  0x33   : > { %815 = vmatpush.bf16.msra.mxu3 %v2242_v26  ;;  %v2230_v39 = vor.u32 %v2441_v32, %v2227_v33  ;;  %v2439_v40 = vld [vmem:[%s2813_s27 + $0x128] sm:$0xf0]  ;;  %v2414_v41 = vld [vmem:[%s2813_s27 + $0x64] sm:$0xf]  ;;  %v2119_v42 = vld [vmem:[%s2813_s27 + $0x6c] sm:$0xf0]  ;;  %v2118_v45 = vor.u32 %v2415_v37, %v2117_v36 }
  0x34   : > { %v2438_v43 = vld [vmem:[%s2813_s27 + $0x124] sm:$0xf]  ;;  %v2215_v44 = vld [vmem:[%s2813_s27 + $0x12c] sm:$0xf0]  ;;  %v2214_v46 = vor.u32 %v2439_v40, %v2213_v38  ;;  %v2122_v47 = vor.u32 %v2414_v41, %v2119_v42  ;;  %v2105_v48 = vld [vmem:[%s2813_s27 + $0x48] sm:$0xf] }
  0x35   : > { %729 = vmatpush.bf16.msra.mxu0 %v2130_v30  ;;  %v2412_v49 = vld [vmem:[%s2813_s27 + $0x50] sm:$0xf0]  ;;  %v2201_v50 = vld [vmem:[%s2813_s27 + $0x108] sm:$0xf]  ;;  %v2218_v51 = vor.u32 %v2438_v43, %v2215_v44  ;;  %v2411_v53 = vld [vmem:[%s2813_s27 + $0x4c] sm:$0xf] }
  0x36   : > { %758 = vmatpush.bf16.msra.mxu1 %v2226_v34  ;;  %787 = vmatpush.bf16.msra.mxu2 %v2134_v35  ;;  %v2436_v52 = vld [vmem:[%s2813_s27 + $0x110] sm:$0xf0]  ;;  %v2107_v54 = vld [vmem:[%s2813_s27 + $0x54] sm:$0xf0]  ;;  %v2435_v55 = vld [vmem:[%s2813_s27 + $0x10c] sm:$0xf]  ;;  %v2106_v57 = vor.u32 %v2412_v49, %v2105_v48 }
  0x37   : > { %816 = vmatpush.bf16.msra.mxu3 %v2230_v39  ;;  %v2203_v56 = vld [vmem:[%s2813_s27 + $0x114] sm:$0xf0]  ;;  %v2202_v58 = vor.u32 %v2436_v52, %v2201_v50  ;;  %v2110_v59 = vor.u32 %v2411_v53, %v2107_v54  ;;  %v2093_v60 = vld [vmem:[%s2813_s27 + $0x30] sm:$0xf]  ;;  %v2409_v61 = vld [vmem:[%s2813_s27 + $0x38] sm:$0xf0] }
  0x38   : > { %v2189_v62 = vld [vmem:[%s2813_s27 + $0xf0] sm:$0xf]  ;;  %v2206_v63 = vor.u32 %v2435_v55, %v2203_v56  ;;  %v2433_v0 = vld [vmem:[%s2813_s27 + $0xf8] sm:$0xf0]  ;;  %v2408_v1 = vld [vmem:[%s2813_s27 + $0x34] sm:$0xf]  ;;  %v2094_v5 = vor.u32 %v2409_v61, %v2093_v60 }
  0x39   : > { %730 = vmatpush.bf16.msra.mxu0 %v2118_v45  ;;  %v2095_v2 = vld [vmem:[%s2813_s27 + $0x3c] sm:$0xf0]  ;;  %v2432_v3 = vld [vmem:[%s2813_s27 + $0xf4] sm:$0xf]  ;;  %v2190_v6 = vor.u32 %v2433_v0, %v2189_v62  ;;  %v2081_v8 = vld [vmem:[%s2813_s27 + $0x18] sm:$0xf] }
  0x3a   : > { %759 = vmatpush.bf16.msra.mxu1 %v2214_v46  ;;  %788 = vmatpush.bf16.msra.mxu2 %v2122_v47  ;;  %v2191_v4 = vld [vmem:[%s2813_s27 + $0xfc] sm:$0xf0]  ;;  %v2098_v7 = vor.u32 %v2408_v1, %v2095_v2  ;;  %v2406_v9 = vld [vmem:[%s2813_s27 + $0x20] sm:$0xf0]  ;;  %v2177_v10 = vld [vmem:[%s2813_s27 + $0xd8] sm:$0xf] }
  0x3b   : > { %817 = vmatpush.bf16.msra.mxu3 %v2218_v51  ;;  %v2194_v11 = vor.u32 %v2432_v3, %v2191_v4  ;;  %v2430_v12 = vld [vmem:[%s2813_s27 + $0xe0] sm:$0xf0]  ;;  %v2405_v13 = vld [vmem:[%s2813_s27 + $0x1c] sm:$0xf]  ;;  %v2083_v14 = vld [vmem:[%s2813_s27 + $0x24] sm:$0xf0]  ;;  %v2082_v17 = vor.u32 %v2406_v9, %v2081_v8 }
  0x3c   : > { %v2429_v15 = vld [vmem:[%s2813_s27 + $0xdc] sm:$0xf]  ;;  %v2179_v16 = vld [vmem:[%s2813_s27 + $0xe4] sm:$0xf0]  ;;  %v2069_v18 = vld [vmem:[%s2813_s27] sm:$0xf]  ;;  %v2178_v20 = vor.u32 %v2430_v12, %v2177_v10  ;;  %v2086_v21 = vor.u32 %v2405_v13, %v2083_v14 }
  0x3d   : > { %731 = vmatpush.bf16.msra.mxu0 %v2106_v57  ;;  %v2403_v19 = vld [vmem:[%s2813_s27 + $0x8] sm:$0xf0]  ;;  %v2165_v22 = vld [vmem:[%s2813_s27 + $0xc0] sm:$0xf]  ;;  %v2402_v24 = vld [vmem:[%s2813_s27 + $0x4] sm:$0xf]  ;;  %v2182_v25 = vor.u32 %v2429_v15, %v2179_v16 }
  0x3e   : > { %760 = vmatpush.bf16.msra.mxu1 %v2202_v58  ;;  %789 = vmatpush.bf16.msra.mxu2 %v2110_v59  ;;  %v2427_v23 = vld [vmem:[%s2813_s27 + $0xc8] sm:$0xf0]  ;;  %v2071_v26 = vld [vmem:[%s2813_s27 + $0xc] sm:$0xf0]  ;;  %v2426_v27 = vld [vmem:[%s2813_s27 + $0xc4] sm:$0xf]  ;;  %v2070_v32 = vor.u32 %v2403_v19, %v2069_v18 }
  0x3f   : > { %818 = vmatpush.bf16.msra.mxu3 %v2206_v63  ;;  %v2167_v28 = vld [vmem:[%s2813_s27 + $0xcc] sm:$0xf0]  ;;  %v2037_v29 = vld [vmem:[%s2808_s18] sm:$0xf]  ;;  %v2425_v31 = vld [vmem:[%s2813_s27 + $0xb8] sm:$0xf0]  ;;  %v2166_v36 = vor.u32 %v2427_v23, %v2165_v22  ;;  %v2074_v37 = vor.u32 %v2402_v24, %v2071_v26 }
  0x40   : > { %v2161_v30 = vld [vmem:[%s2813_s27 + $0xb0] sm:$0xf]  ;;  %v2395_v33 = vld [vmem:[%s2808_s18 + $0x4] sm:$0xf0]  ;;  %v2449_v35 = vld [vmem:[%s2813_s27 + $0x178] sm:$0xf0]  ;;  %v2170_v40 = vor.u32 %v2426_v27, %v2167_v28 }
  0x41   : > { %732 = vmatpush.bf16.msra.mxu0 %v2094_v5  ;;  %v2257_v34 = vld [vmem:[%s2813_s27 + $0x170] sm:$0xf]  ;;  %v2394_v38 = vld [vmem:[%s2808_s18 + $0x4] sm:$0xf]  ;;  %v2039_v39 = vld [vmem:[%s2808_s18 + $0x8] sm:$0xf0]  ;;  %v2162_v41 = vor.u32 %v2425_v31, %v2161_v30  ;;  %v2905_v42 = vor.u32 %v2395_v33, %v2037_v29 }
  0x42   : > { %761 = vmatpush.bf16.msra.mxu1 %v2190_v6  ;;  %790 = vmatpush.bf16.msra.mxu2 %v2098_v7  ;;  %v2258_v43 = vor.u32 %v2449_v35, %v2257_v34  ;;  %v2149_v44 = vld [vmem:[%s2813_s27 + $0x98] sm:$0xf]  ;;  %v2422_v45 = vld [vmem:[%s2813_s27 + $0xa0] sm:$0xf0]  ;;  %v2909_v46 = vor.u32 %v2394_v38, %v2039_v39  ;;  %v2137_v51 = vld [vmem:[%s2813_s27 + $0x80] sm:$0xf] }
  0x43   : > { %819 = vmatpush.bf16.msra.mxu3 %v2194_v11  ;;  %v2245_v47 = vld [vmem:[%s2813_s27 + $0x158] sm:$0xf]  ;;  %v2446_v48 = vld [vmem:[%s2813_s27 + $0x160] sm:$0xf0]  ;;  %v2150_v49 = vor.u32 %v2422_v45, %v2149_v44  ;;  %v2419_v52 = vld [vmem:[%s2813_s27 + $0x88] sm:$0xf0] }
  0x44   : > { %v2246_v50 = vor.u32 %v2446_v48, %v2245_v47  ;;  %v2233_v53 = vld [vmem:[%s2813_s27 + $0x140] sm:$0xf]  ;;  %v2443_v54 = vld [vmem:[%s2813_s27 + $0x148] sm:$0xf0]  ;;  %v2138_v55 = vor.u32 %v2419_v52, %v2137_v51  ;;  %v2125_v57 = vld [vmem:[%s2813_s27 + $0x68] sm:$0xf] }
  0x45   : > { %733 = vmatpush.bf16.msra.mxu0 %v2082_v17  ;;  %v2234_v56 = vor.u32 %v2443_v54, %v2233_v53  ;;  %v2416_v58 = vld [vmem:[%s2813_s27 + $0x70] sm:$0xf0]  ;;  %v2221_v59 = vld [vmem:[%s2813_s27 + $0x128] sm:$0xf]  ;;  %v2045_v62 = vld [vmem:[%s2808_s18 + $0x10] sm:$0xf] }
  0x46   : > { %762 = vmatpush.bf16.msra.mxu1 %v2178_v20  ;;  %791 = vmatpush.bf16.msra.mxu2 %v2086_v21  ;;  %v2440_v60 = vld [vmem:[%s2813_s27 + $0x130] sm:$0xf0]  ;;  %v2126_v61 = vor.u32 %v2416_v58, %v2125_v57  ;;  %v2113_v0 = vld [vmem:[%s2813_s27 + $0x50] sm:$0xf]  ;;  %v2413_v1 = vld [vmem:[%s2813_s27 + $0x58] sm:$0xf0] }
  0x47   : > { %820 = vmatpush.bf16.msra.mxu3 %v2182_v25  ;;  %v2222_v63 = vor.u32 %v2440_v60, %v2221_v59  ;;  %v2397_v2 = vld [vmem:[%s2808_s18 + $0x14] sm:$0xf0]  ;;  %v2209_v3 = vld [vmem:[%s2813_s27 + $0x110] sm:$0xf]  ;;  %v2437_v4 = vld [vmem:[%s2813_s27 + $0x118] sm:$0xf0]  ;;  %v2114_v7 = vor.u32 %v2413_v1, %v2113_v0 }
  0x48   : > { %v2396_v5 = vld [vmem:[%s2808_s18 + $0x14] sm:$0xf]  ;;  %v2047_v6 = vld [vmem:[%s2808_s18 + $0x18] sm:$0xf0]  ;;  %v2933_v8 = vor.u32 %v2397_v2, %v2045_v62  ;;  %v2210_v9 = vor.u32 %v2437_v4, %v2209_v3  ;;  %v2101_v10 = vld [vmem:[%s2813_s27 + $0x38] sm:$0xf] }
  0x49   : > { %734 = vmatpush.bf16.msra.mxu0 %v2070_v32  ;;  %v2410_v11 = vld [vmem:[%s2813_s27 + $0x40] sm:$0xf0]  ;;  %v2937_v12 = vor.u32 %v2396_v5, %v2047_v6  ;;  %v2197_v13 = vld [vmem:[%s2813_s27 + $0xf8] sm:$0xf]  ;;  %v2089_v17 = vld [vmem:[%s2813_s27 + $0x20] sm:$0xf] }
  0x4a   : > { %763 = vmatpush.bf16.msra.mxu1 %v2166_v36  ;;  %792 = vmatpush.bf16.msra.mxu2 %v2074_v37  ;;  %v2434_v14 = vld [vmem:[%s2813_s27 + $0x100] sm:$0xf0]  ;;  %v2102_v15 = vor.u32 %v2410_v11, %v2101_v10  ;;  %v2407_v18 = vld [vmem:[%s2813_s27 + $0x28] sm:$0xf0]  ;;  %v2185_v19 = vld [vmem:[%s2813_s27 + $0xe0] sm:$0xf] }
  0x4b   : > { %821 = vmatpush.bf16.msra.mxu3 %v2170_v40  ;;  %v2198_v16 = vor.u32 %v2434_v14, %v2197_v13  ;;  %v2090_v20 = vor.u32 %v2407_v18, %v2089_v17  ;;  %v2431_v21 = vld [vmem:[%s2813_s27 + $0xe8] sm:$0xf0]  ;;  %v2077_v23 = vld [vmem:[%s2813_s27 + $0x8] sm:$0xf]  ;;  %v2404_v24 = vld [vmem:[%s2813_s27 + $0x10] sm:$0xf0] }
  0x4c   : > { %735 = vmatmul.bf16.vlgmr.msra.gmra.mxu0 %v2905_v42  ;;  %v2186_v22 = vor.u32 %v2431_v21, %v2185_v19  ;;  %v2347_v25 = vld [vmem:[%s2818_s25 + $0xa8] sm:$0xf]  ;;  %v2428_v27 = vld [vmem:[%s2813_s27 + $0xd0] sm:$0xf0]  ;;  %v2078_v30 = vor.u32 %v2404_v24, %v2077_v23  ;;  %v2053_v32 = vld [vmem:[%s2808_s18 + $0x20] sm:$0xf] }
  0x4d   : > { %843 = vmatpush.bf16.msrb.mxu0 %v2162_v41  ;;  %764 = vmatmul.bf16.vlgmr.msra.gmra.mxu1 %v2909_v46  ;;  %v2173_v26 = vld [vmem:[%s2813_s27 + $0xc8] sm:$0xf]  ;;  %v2472_v28 = vld [vmem:[%s2818_s25 + $0xb0] sm:$0xf0]  ;;  %v2398_v34 = vld [vmem:[%s2808_s18 + $0x24] sm:$0xf] }
  0x4e   : > { %872 = vmatpush.bf16.msrb.mxu1 %v2258_v43  ;;  %793 = vmatmul.bf16.vlgmr.msra.gmra.mxu2 %v2905_v42  ;;  %v2955_v29 = vor.u32 %v2472_v28, %v2347_v25  ;;  %v2174_v31 = vor.u32 %v2428_v27, %v2173_v26  ;;  %v2399_v33 = vld [vmem:[%s2808_s18 + $0x24] sm:$0xf0]  ;;  %v2055_v35 = vld [vmem:[%s2808_s18 + $0x28] sm:$0xf0]  ;;  %v2335_v38 = vld [vmem:[%s2818_s25 + $0x90] sm:$0xf] }
  0x4f   : > { %822 = vmatmul.bf16.vlgmr.msra.gmra.mxu3 %v2909_v46  ;;  %v2962_v36 = vor.u32 %v2399_v33, %v2053_v32  ;;  %v2964_v37 = vor.u32 %v2398_v34, %v2055_v35  ;;  %v2469_v39 = vld [vmem:[%s2818_s25 + $0x98] sm:$0xf0]  ;;  %v2471_v40 = vld [vmem:[%s2818_s25 + $0xac] sm:$0xf]  ;;  %v2349_v43 = vld [vmem:[%s2818_s25 + $0xb4] sm:$0xf0] }
  0x50   : > { %1150 = vmatpush.bf16.msrb.mxu2 %v2955_v29  ;;  %v2973_v41 = vor.u32 %v2469_v39, %v2335_v38  ;;  %v2323_v44 = vld [vmem:[%s2818_s25 + $0x78] sm:$0xf]  ;;  %v2466_v45 = vld [vmem:[%s2818_s25 + $0x80] sm:$0xf0]  ;;  %v2978_v47 = vor.u32 %v2471_v40, %v2349_v43  ;;  %v2468_v48 = vld [vmem:[%s2818_s25 + $0x94] sm:$0xf] }
  0x51   : > { %844 = vmatpush.bf16.msrb.mxu0 %v2150_v49  ;;  %v2337_v49 = vld [vmem:[%s2818_s25 + $0x9c] sm:$0xf0]  ;;  %v2061_v52 = vld [vmem:[%s2808_s18 + $0x30] sm:$0xf]  ;;  %v2401_v53 = vld [vmem:[%s2808_s18 + $0x34] sm:$0xf0] }
  0x52   : > { %873 = vmatpush.bf16.msrb.mxu1 %v2246_v50  ;;  %v2983_v50 = vor.u32 %v2466_v45, %v2323_v44  ;;  %1164 = vmatpush.bf16.msrb.mxu3 %v2978_v47  ;;  %v2986_v51 = vor.u32 %v2468_v48, %v2337_v49  ;;  %v2400_v54 = vld [vmem:[%s2808_s18 + $0x34] sm:$0xf]  ;;  %v2311_v58 = vld [vmem:[%s2818_s25 + $0x60] sm:$0xf]  ;;  %v2463_v59 = vld [vmem:[%s2818_s25 + $0x68] sm:$0xf0] }
  0x53   : > { %v2465_v60 = vld [vmem:[%s2818_s25 + $0x7c] sm:$0xf]  ;;  %v2325_v62 = vld [vmem:[%s2818_s25 + $0x84] sm:$0xf0]  ;;  %v2460_v0 = vld [vmem:[%s2818_s25 + $0x50] sm:$0xf0] }
  0x54   : > { %1151 = vmatpush.bf16.msrb.mxu2 %v2973_v41  ;;  %v3012_v1 = vor.u32 %v2465_v60, %v2325_v62  ;;  %v2462_v2 = vld [vmem:[%s2818_s25 + $0x64] sm:$0xf]  ;;  %v2313_v3 = vld [vmem:[%s2818_s25 + $0x6c] sm:$0xf0]  ;;  %v2301_v11 = vld [vmem:[%s2818_s25 + $0x54] sm:$0xf0] }
  0x55   : > { %845 = vmatpush.bf16.msrb.mxu0 %v2138_v55  ;;  %v2063_v55 = vld [vmem:[%s2808_s18 + $0x38] sm:$0xf0]  ;;  %v3020_v5 = vor.u32 %v2462_v2, %v2313_v3  ;;  %v2287_v6 = vld [vmem:[%s2818_s25 + $0x30] sm:$0xf]  ;;  %v2275_v13 = vld [vmem:[%s2818_s25 + $0x18] sm:$0xf] }
  0x56   : > { %874 = vmatpush.bf16.msrb.mxu1 %v2234_v56  ;;  %1165 = vmatpush.bf16.msrb.mxu3 %v2986_v51  ;;  %v2996_v56 = vor.u32 %v2401_v53, %v2061_v52  ;;  %v2998_v57 = vor.u32 %v2400_v54, %v2063_v55  ;;  %v2454_v14 = vld [vmem:[%s2818_s25 + $0x20] sm:$0xf0]  ;;  %v2289_v17 = vld [vmem:[%s2818_s25 + $0x3c] sm:$0xf0]  ;;  %v2451_v21 = vld [vmem:[%s2818_s25 + $0x8] sm:$0xf0] }
  0x57   : > { %v3041_v18 = vor.u32 %v2454_v14, %v2275_v13  ;;  %v3061_v24 = vld [vmem:[#allocation3] sm:$0xff]  ;;  %v3063_v25 = vld [vmem:[#allocation3 + $0x8] sm:$0xff]  ;;  %v2453_v27 = vld [vmem:[%s2818_s25 + $0x1c] sm:$0xf]  ;;  %s2474_s19 = smul.u32 72, %s2685_s21  ;;  %s2371_s12 = sshll.u32 %s2795_s29, 1 }
  0x58   : > { %1152 = vmatpush.bf16.msrb.mxu2 %v2983_v50  ;;  %v3068_v26 = vpack.c.bf16 %v3063_v25, %v3061_v24  ;;  %v2277_v28 = vld [vmem:[%s2818_s25 + $0x24] sm:$0xf0]  ;;  %v2470_v32 = vld [vmem:[%s2818_s25 + $0xa0] sm:$0xf0]  ;;  %v2331_v35 = vld [vmem:[%s2818_s25 + $0x80] sm:$0xf] }
  0x59   : > { %846 = vmatpush.bf16.msrb.mxu0 %v2126_v61  ;;  %v3007_v61 = vor.u32 %v2463_v59, %v2311_v58  ;;  %v2450_v33 = vld [vmem:[%s2818_s25 + $0x4] sm:$0xf]  ;;  %v2467_v38 = vld [vmem:[%s2818_s25 + $0x88] sm:$0xf0]  ;;  %v2319_v40 = vld [vmem:[%s2818_s25 + $0x68] sm:$0xf] }
  0x5a   : > { %875 = vmatpush.bf16.msrb.mxu1 %v2222_v63  ;;  %v2299_v63 = vld [vmem:[%s2818_s25 + $0x48] sm:$0xf]  ;;  %1166 = vmatpush.bf16.msrb.mxu3 %v3012_v1  ;;  %v2464_v43 = vld [vmem:[%s2818_s25 + $0x70] sm:$0xf0]  ;;  %v2307_v45 = vld [vmem:[%s2818_s25 + $0x50] sm:$0xf] }
  0x5b   : > { %v3017_v4 = vor.u32 %v2460_v0, %v2299_v63  ;;  %v3097_v44 = vor.u32 %v2464_v43, %v2319_v40  ;;  %v2461_v48 = vld [vmem:[%s2818_s25 + $0x58] sm:$0xf0]  ;;  %v2295_v52 = vld [vmem:[%s2818_s25 + $0x38] sm:$0xf]  ;;  %v2458_v53 = vld [vmem:[%s2818_s25 + $0x40] sm:$0xf0] }
  0x5c   : > { %740 = vmatmul.bf16.gmra.mxu0 %v2933_v8  ;;  %1153 = vmatpush.bf16.msrb.mxu2 %v3007_v61  ;;  %v3109_v49 = vor.u32 %v2461_v48, %v2307_v45  ;;  %v3119_v54 = vor.u32 %v2458_v53, %v2295_v52  ;;  %v2455_v55 = vld [vmem:[%s2818_s25 + $0x28] sm:$0xf0]  ;;  %v2271_v58 = vld [vmem:[%s2818_s25 + $0x8] sm:$0xf]  ;;  %v2452_v59 = vld [vmem:[%s2818_s25 + $0x10] sm:$0xf0] }
  0x5d   : > { %847 = vmatpush.bf16.msrb.mxu0 %v2114_v7  ;;  %769 = vmatmul.bf16.gmra.mxu1 %v2937_v12  ;;  %v2457_v7 = vld [vmem:[%s2818_s25 + $0x38] sm:$0xf0]  ;;  %v3135_v60 = vor.u32 %v2452_v59, %v2271_v58  ;;  %s3215_s20 = scalar_lea.vmem [#allocation2], %s2474_s19  ;;  %s2475_s22 = smul.u32 24, %s2685_s21 }
  0x5e   : > { %876 = vmatpush.bf16.msrb.mxu1 %v2210_v9  ;;  %798 = vmatmul.bf16.gmra.mxu2 %v2933_v8  ;;  %v2459_v9 = vld [vmem:[%s2818_s25 + $0x4c] sm:$0xf]  ;;  %v3031_v10 = vor.u32 %v2457_v7, %v2287_v6 }
  0x5f   : > { %827 = vmatmul.bf16.gmra.mxu3 %v2937_v12  ;;  %s1290_s23 = scalar_lea.vmem %s2830_s14, %s2475_s22 [#allocation4]  ;;  %s2482_s22 = sshll.u32 (%p2777_p4), %s2801_s7, 4 }
  0x60   : > { %1154 = vmatpush.bf16.msrb.mxu2 %v3017_v4  ;;  %1167 = vmatpush.bf16.msrb.mxu3 %v3020_v5 }
  0x61   : > { %848 = vmatpush.bf16.msrb.mxu0 %v2102_v15  ;;  %v3036_v15 = vor.u32 %v2459_v9, %v2301_v11 }
  0x62   : > { %877 = vmatpush.bf16.msrb.mxu1 %v2198_v16  ;;  %v2456_v16 = vld [vmem:[%s2818_s25 + $0x34] sm:$0xf] }
  0x63   : > { %v3046_v19 = vor.u32 %v2456_v16, %v2289_v17 }
  0x64   : > { %1155 = vmatpush.bf16.msrb.mxu2 %v3031_v10  ;;  %1168 = vmatpush.bf16.msrb.mxu3 %v3036_v15 }
  0x65   : > { %849 = vmatpush.bf16.msrb.mxu0 %v2090_v20  ;;  %v2263_v20 = vld [vmem:[%s2818_s25] sm:$0xf] }
  0x66   : > { %878 = vmatpush.bf16.msrb.mxu1 %v2186_v22  ;;  %v3055_v23 = vor.u32 %v2451_v21, %v2263_v20 }
  0x68   : > { %1156 = vmatpush.bf16.msrb.mxu2 %v3041_v18  ;;  %1169 = vmatpush.bf16.msrb.mxu3 %v3046_v19 }
  0x69   : > { %850 = vmatpush.bf16.msrb.mxu0 %v2078_v30  ;;  %v3073_v30 = vor.u32 %v2453_v27, %v2277_v28 }
  0x6a   : > { %879 = vmatpush.bf16.msrb.mxu1 %v2174_v31  ;;  %v2343_v31 = vld [vmem:[%s2818_s25 + $0x98] sm:$0xf] }
  0x6b   : > { %v3079_v34 = vor.u32 %v2470_v32, %v2343_v31 }
  0x6c   : > { %745 = vmatmul.bf16.gmra.mxu0 %v2962_v36  ;;  %1157 = vmatpush.bf16.msrb.mxu2 %v3055_v23 }
  0x6d   : > { %774 = vmatmul.bf16.gmra.mxu1 %v2964_v37  ;;  %1329 = vmatpush.bf16.msra.mxu0 %v2978_v47 }
  0x6e   : > { %803 = vmatmul.bf16.gmra.mxu2 %v2962_v36  ;;  %1170 = vmatpush.bf16.msrb.mxu3 %v3073_v30 }
  0x6f   : > { %832 = vmatmul.bf16.gmra.mxu3 %v2964_v37 }
  0x71   : > { %1330 = vmatpush.bf16.msra.mxu0 %v2986_v51 }
  0x75   : > { %1331 = vmatpush.bf16.msra.mxu0 %v3012_v1 }
  0x79   : > { %1332 = vmatpush.bf16.msra.mxu0 %v3020_v5 }
  0x7c   : > { %750 = vmatmul.bf16.gmra.mxu0 %v2996_v56 }
  0x7d   : > { %779 = vmatmul.bf16.gmra.mxu1 %v2998_v57  ;;  %1333 = vmatpush.bf16.msra.mxu0 %v3036_v15 }
  0x7e   : > { %808 = vmatmul.bf16.gmra.mxu2 %v2996_v56 }
  0x7f   : > { %837 = vmatmul.bf16.gmra.mxu3 %v2998_v57 }
  0x81   : > { %1334 = vmatpush.bf16.msra.mxu0 %v3046_v19 }
  0x85   : > { %1335 = vmatpush.bf16.msra.mxu0 %v3073_v30 }
  0x8c   : > { %851 = vmatmul.bf16.vlgmr.msrb.gmra.mxu0 %v2905_v42  ;;  %v2355_v42 = vld [vmem:[%s2818_s25 + $0xb0] sm:$0xf] }
  0x8d   : > { %880 = vmatmul.bf16.vlgmr.msrb.gmra.mxu1 %v2909_v46  ;;  %v2473_v46 = vld [vmem:[%s2818_s25 + $0xb8] sm:$0xf0] }
  0x8e   : > { %v3050_v22 = vor.u32 %v2473_v46, %v2355_v42  ;;  %1158 = vmatmul.bf16.vlgmr.msrb.gmra.mxu2 %v3068_v26 }
  0x90   : > { %1343 = vmatpush.bf16.msra.mxu1 %v3050_v22  ;;  %1178 = vmatpush.bf16.msra.mxu2 %v3050_v22 }
  0x94   : > { %1179 = vmatpush.bf16.msra.mxu2 %v3079_v34  ;;  %1344 = vmatpush.bf16.msra.mxu1 %v3079_v34 }
  0x9c   : > { %856 = vmatmul.bf16.gmra.mxu0 %v2933_v8  ;;  %v2265_v8 = vld [vmem:[%s2818_s25 + $0xc] sm:$0xf0] }
  0x9d   : > { %885 = vmatmul.bf16.gmra.mxu1 %v2937_v12  ;;  %v3085_v39 = vor.u32 %v2450_v33, %v2265_v8  ;;  %v3089_v12 = vor.u32 %v2467_v38, %v2331_v35 }
  0x9f   : > { %1171 = vmatpush.bf16.msrb.mxu3 %v3085_v39  ;;  %1336 = vmatpush.bf16.msra.mxu0 %v3085_v39 }
  0xa0   : > { %1180 = vmatpush.bf16.msra.mxu2 %v3089_v12  ;;  %1345 = vmatpush.bf16.msra.mxu1 %v3089_v12 }
  0xa2   : > { %1172 = vmatmul.bf16.vlgmr.msrb.gmra.mxu3 %v3068_v26 }
  0xa3   : > { %1315 = vmatpush.bf16.msra.mxu3 %v2955_v29  ;;  %1507 = vmatpush.bf16.msrb.mxu0 %v3050_v22 }
  0xa4   : > { %1181 = vmatpush.bf16.msra.mxu2 %v3097_v44  ;;  %1346 = vmatpush.bf16.msra.mxu1 %v3097_v44 }
  0xa7   : > { %1316 = vmatpush.bf16.msra.mxu3 %v2973_v41  ;;  %1508 = vmatpush.bf16.msrb.mxu0 %v3079_v34 }
  0xa8   : > { %1182 = vmatpush.bf16.msra.mxu2 %v3109_v49  ;;  %1347 = vmatpush.bf16.msra.mxu1 %v3109_v49 }
  0xab   : > { %1317 = vmatpush.bf16.msra.mxu3 %v2983_v50  ;;  %1509 = vmatpush.bf16.msrb.mxu0 %v3089_v12 }
  0xac   : > { %861 = vmatmul.bf16.gmra.mxu0 %v2962_v36  ;;  %1183 = vmatpush.bf16.msra.mxu2 %v3119_v54  ;;  %v2283_v36 = vld [vmem:[%s2818_s25 + $0x20] sm:$0xf]  ;;  %s3270_s25 = smul.u32 3, %s2685_s21 }
  0xad   : > { %890 = vmatmul.bf16.gmra.mxu1 %v2964_v37  ;;  %v3127_v37 = vor.u32 %v2455_v55, %v2283_v36 }
  0xae   : > { %1348 = vmatpush.bf16.msra.mxu1 %v3119_v54  ;;  %s3274_s26 = sadd.s32 %s3270_s25, %s2795_s29  ;;  %s3339_s18 = sadd.s32 %s2371_s12, %s3270_s25 }
  0xaf   : > { %1318 = vmatpush.bf16.msra.mxu3 %v3007_v61  ;;  %1510 = vmatpush.bf16.msrb.mxu0 %v3097_v44  ;;  %s2476_s16 = smul.u32 24, %s3274_s26  ;;  %s2477_s9 = sshll.u32 %s3274_s26, 3 }
  0xb0   : > { %1184 = vmatpush.bf16.msra.mxu2 %v3127_v37  ;;  %s1455_s10 = scalar_lea.vmem %s2830_s14, %s2477_s9 [#allocation4]  ;;  %s2478_s15 = smul.u32 24, %s3339_s18 }
  0xb1   : > { %s3277_s28 = scalar_lea.vmem [#allocation2], %s2476_s16  ;;  %s2479_s27 = sshll.u32 %s3339_s18, 3 }
  0xb2   : > { %1349 = vmatpush.bf16.msra.mxu1 %v3127_v37  ;;  %s3342_s17 = scalar_lea.vmem [#allocation2], %s2478_s15  ;;  %s1619_s30 = scalar_lea.vmem %s2830_s14, %s2479_s27 [#allocation4] }
  0xb3   : > { %1319 = vmatpush.bf16.msra.mxu3 %v3017_v4  ;;  %1511 = vmatpush.bf16.msrb.mxu0 %v3109_v49 }
  0xb4   : > { %1185 = vmatpush.bf16.msra.mxu2 %v3135_v60 }
  0xb6   : > { %1350 = vmatpush.bf16.msra.mxu1 %v3135_v60 }
  0xb7   : > { %1320 = vmatpush.bf16.msra.mxu3 %v3031_v10  ;;  %1512 = vmatpush.bf16.msrb.mxu0 %v3119_v54 }
  0xb8   : > { %1479 = vmatpush.bf16.msrb.mxu2 %v2955_v29 }
  0xb9   : > { %1186 = vmatmul.bf16.vlgmr.msra.gmra.mxu2 %v3068_v26 }
  0xba   : > { %1643 = vmatpush.bf16.msrb.mxu1 %v2955_v29 }
  0xbb   : > { %1321 = vmatpush.bf16.msra.mxu3 %v3041_v18  ;;  %1513 = vmatpush.bf16.msrb.mxu0 %v3127_v37 }
  0xbc   : > { %866 = vmatmul.bf16.gmra.mxu0 %v2996_v56  ;;  %1480 = vmatpush.bf16.msrb.mxu2 %v2973_v41 }
  0xbd   : > { %895 = vmatmul.bf16.gmra.mxu1 %v2998_v57 }
  0xbe   : > { %1644 = vmatpush.bf16.msrb.mxu1 %v2973_v41  ;;  %v3162_v41 = vld [vmem:[%s2823_s8] sm:$0x7]  ;;  %s1622_s8 = smul.u32 3, %s2795_s29 }
  0xbf   : > { %1322 = vmatpush.bf16.msra.mxu3 %v3055_v23  ;;  %1514 = vmatpush.bf16.msrb.mxu0 %v3135_v60  ;;  %v3168_v57 = vperm.slane %v3162_v41, 0  ;;  %v3171_v62 = vperm.slane %v3162_v41, 1 }
  0xc0   : > { %1481 = vmatpush.bf16.msrb.mxu2 %v2983_v50  ;;  %s3397_s13 = sadd.s32 %s1622_s8, %s3270_s25 }
  0xc1   : > { %s2481_s29 = sshll.u32 %s3397_s13, 3 }
  0xc2   : > { %1645 = vmatpush.bf16.msrb.mxu1 %v2983_v50 }
  0xc3   : > { %1493 = vmatpush.bf16.msrb.mxu3 %v2978_v47 }
  0xc4   : > { %1482 = vmatpush.bf16.msrb.mxu2 %v3007_v61 }
  0xc6   : > { %1646 = vmatpush.bf16.msrb.mxu1 %v3007_v61 }
  0xc7   : > { %1494 = vmatpush.bf16.msrb.mxu3 %v2986_v51 }
  0xc8   : > { %1483 = vmatpush.bf16.msrb.mxu2 %v3017_v4 }
  0xc9   : > { %v736_v29 = vpop.f32.mrf.mxu0 }
  0xca   : > { %v765_v56 = vpop.f32.mrf.mxu1  ;;  %1647 = vmatpush.bf16.msrb.mxu1 %v3017_v4 }
  0xcb   : > { %1495 = vmatpush.bf16.msrb.mxu3 %v3012_v1  ;;  %v766_v50 = vadd.f32 %v765_v56, %v736_v29 }
  0xcc   : > { %1484 = vmatpush.bf16.msrb.mxu2 %v3031_v10 }
  0xcd   : > { %v909_v4 = vadd.f32 %v3168_v57, %v766_v50 }
  0xce   : > { %1648 = vmatpush.bf16.msrb.mxu1 %v3031_v10 }
  0xcf   : > { %1496 = vmatpush.bf16.msrb.mxu3 %v3020_v5 }
  0xd0   : > { %1485 = vmatpush.bf16.msrb.mxu2 %v3041_v18 }
  0xd1   : > { %v794_v61 = vpop.f32.mrf.mxu2  ;;  %v738_v0 = vpop.f32.mrf.mxu0 }
  0xd2   : > { %v823_v63 = vpop.f32.mrf.mxu3  ;;  %v767_v3 = vpop.f32.mrf.mxu1  ;;  %1649 = vmatpush.bf16.msrb.mxu1 %v3041_v18 }
  0xd3   : > { %v824_v2 = vadd.f32 %v823_v63, %v794_v61  ;;  %1497 = vmatpush.bf16.msrb.mxu3 %v3036_v15  ;;  %v768_v9 = vadd.f32 %v767_v3, %v738_v0 }
  0xd4   : > { %1486 = vmatpush.bf16.msrb.mxu2 %v3055_v23 }
  0xd5   : > { %v910_v6 = vadd.f32 %v3171_v62, %v824_v2  ;;  %v912_v17 = vadd.f32 %v3168_v57, %v768_v9 }
  0xd6   : > { %1650 = vmatpush.bf16.msrb.mxu1 %v3055_v23 }
  0xd7   : > { %v933_v7 = vpack.c.bf16 %v910_v6, %v909_v4  ;;  %1498 = vmatpush.bf16.msrb.mxu3 %v3046_v19 }
  0xd8   : > { %1657 = vmatpush.bf16.msra.mxu2 %v2978_v47 }
  0xd9   : > { %949 = vst [vmem:[#allocation2] sm:$0xff] %v933_v7  ;;  %v796_v10 = vpop.f32.mrf.mxu2  ;;  %v741_v13 = vpop.f32.mrf.mxu0 }
  0xda   : > { %v825_v11 = vpop.f32.mrf.mxu3  ;;  %v770_v16 = vpop.f32.mrf.mxu1 }
  0xdb   : > { %v826_v14 = vadd.f32 %v825_v11, %v796_v10  ;;  %1499 = vmatpush.bf16.msrb.mxu3 %v3073_v30  ;;  %v771_v47 = vadd.f32 %v770_v16, %v741_v13 }
  0xdc   : > { %1658 = vmatpush.bf16.msra.mxu2 %v2986_v51 }
  0xdd   : > { %v913_v18 = vadd.f32 %v3171_v62, %v826_v14  ;;  %v915_v51 = vadd.f32 %v3168_v57, %v771_v47 }
  0xdf   : > { %v935_v42 = vpack.c.bf16 %v913_v18, %v912_v17  ;;  %1500 = vmatpush.bf16.msrb.mxu3 %v3085_v39  ;;  %v905_v18 = vperm.slane %v3162_v41, 2 }
  0xe0   : > { %1659 = vmatpush.bf16.msra.mxu2 %v3012_v1 }
  0xe1   : > { %951 = vst [vmem:[#allocation2 + $0xc] sm:$0xff] %v935_v42  ;;  %v799_v46 = vpop.f32.mrf.mxu2  ;;  %v743_v21 = vpop.f32.mrf.mxu0 }
  0xe2   : > { %v828_v20 = vpop.f32.mrf.mxu3  ;;  %v772_v26 = vpop.f32.mrf.mxu1 }
  0xe3   : > { %v829_v23 = vadd.f32 %v828_v20, %v799_v46  ;;  %v773_v31 = vadd.f32 %v772_v26, %v743_v21 }
  0xe4   : > { %1660 = vmatpush.bf16.msra.mxu2 %v3020_v5 }
  0xe5   : > { %v916_v27 = vadd.f32 %v3171_v62, %v829_v23  ;;  %v918_v38 = vadd.f32 %v3168_v57, %v773_v31 }
  0xe7   : > { %v937_v28 = vpack.c.bf16 %v916_v27, %v915_v51 }
  0xe8   : > { %1661 = vmatpush.bf16.msra.mxu2 %v3036_v15 }
  0xe9   : > { %953 = vst [vmem:[#allocation2 + $0x18] sm:$0xff] %v937_v28  ;;  %v801_v32 = vpop.f32.mrf.mxu2  ;;  %v746_v33 = vpop.f32.mrf.mxu0 }
  0xea   : > { %v830_v1 = vpop.f32.mrf.mxu3  ;;  %v775_v35 = vpop.f32.mrf.mxu1 }
  0xeb   : > { %v831_v8 = vadd.f32 %v830_v1, %v801_v32  ;;  %v776_v43 = vadd.f32 %v775_v35, %v746_v33 }
  0xec   : > { %1662 = vmatpush.bf16.msra.mxu2 %v3046_v19 }
  0xed   : > { %v919_v5 = vadd.f32 %v3171_v62, %v831_v8  ;;  %v921_v36 = vadd.f32 %v3168_v57, %v776_v43 }
  0xef   : > { %v939_v40 = vpack.c.bf16 %v919_v5, %v918_v38 }
  0xf0   : > { %1663 = vmatpush.bf16.msra.mxu2 %v3073_v30 }
  0xf1   : > { %955 = vst [vmem:[#allocation2 + $0x24] sm:$0xff] %v939_v40  ;;  %v804_v45 = vpop.f32.mrf.mxu2  ;;  %v748_v48 = vpop.f32.mrf.mxu0 }
  0xf2   : > { %v833_v15 = vpop.f32.mrf.mxu3  ;;  %v777_v53 = vpop.f32.mrf.mxu1 }
  0xf3   : > { %v834_v52 = vadd.f32 %v833_v15, %v804_v45  ;;  %v778_v58 = vadd.f32 %v777_v53, %v748_v48 }
  0xf4   : > { %1664 = vmatpush.bf16.msra.mxu2 %v3085_v39 }
  0xf5   : > { %v922_v19 = vadd.f32 %v3171_v62, %v834_v52  ;;  %v924_v61 = vadd.f32 %v3168_v57, %v778_v58 }
  0xf7   : > { %v941_v55 = vpack.c.bf16 %v922_v19, %v921_v36 }
  0xf9   : > { %957 = vst [vmem:[#allocation2 + $0x30] sm:$0xff] %v941_v55  ;;  %v806_v59 = vpop.f32.mrf.mxu2  ;;  %v751_v56 = vpop.f32.mrf.mxu0 }
  0xfa   : > { %v835_v29 = vpop.f32.mrf.mxu3  ;;  %v780_v50 = vpop.f32.mrf.mxu1 }
  0xfb   : > { %v836_v30 = vadd.f32 %v835_v29, %v806_v59  ;;  %v781_v2 = vadd.f32 %v780_v50, %v751_v56 }
  0xfd   : > { %v925_v63 = vadd.f32 %v3171_v62, %v836_v30  ;;  %v927_v9 = vadd.f32 %v3168_v57, %v781_v2 }
  0xff   : > { %v943_v0 = vpack.c.bf16 %v925_v63, %v924_v61 }
 0x101   : > { %959 = vst [vmem:[#allocation2 + $0x3c] sm:$0xff] %v943_v0  ;;  %v809_v39 = vpop.f32.mrf.mxu2  ;;  %v753_v4 = vpop.f32.mrf.mxu0 }
 0x102   : > { %v838_v3 = vpop.f32.mrf.mxu3  ;;  %v782_v7 = vpop.f32.mrf.mxu1 }
 0x103   : > { %v839_v6 = vadd.f32 %v838_v3, %v809_v39  ;;  %v783_v13 = vadd.f32 %v782_v7, %v753_v4  ;;  %v997_v7 = vld [vmem:[%s2828_s11] sm:$0x7]  ;;  %s2480_s11 = smul.u32 24, %s3397_s13 }
 0x105   : > { %v928_v10 = vadd.f32 %v3171_v62, %v839_v6  ;;  %v930_v20 = vadd.f32 %v3168_v57, %v783_v13  ;;  %s3400_s19 = scalar_lea.vmem [#allocation2], %s2480_s11 }
 0x107   : > { %v945_v11 = vpack.c.bf16 %v928_v10, %v927_v9  ;;  %v3208_v9 = vperm.slane %v997_v7, 1  ;;  %v3210_v10 = vperm.slane %v997_v7, 0 }
 0x109   : > { %961 = vst [vmem:[#allocation2 + $0x48] sm:$0xff] %v945_v11  ;;  %v811_v14 = vpop.f32.mrf.mxu2  ;;  %v852_v17 = vpop.f32.mrf.mxu0 }
 0x10a   : > { %v840_v16 = vpop.f32.mrf.mxu3  ;;  %v881_v47 = vpop.f32.mrf.mxu1 }
 0x10b   : > { %v841_v42 = vadd.f32 %v840_v16, %v811_v14  ;;  %v882_v46 = vadd.f32 %v881_v47, %v852_v17 }
 0x10d   : > { %v931_v21 = vadd.f32 %v3171_v62, %v841_v42  ;;  %v911_v23 = vadd.f32 %v905_v18, %v882_v46 }
 0x10f   : > { %v947_v26 = vpack.c.bf16 %v931_v21, %v930_v20  ;;  %v934_v51 = vpack.c.bf16 %v911_v23, %v911_v23 }
 0x111   : > { %963 = vst [vmem:[#allocation2 + $0x54] sm:$0xff] %v947_v26  ;;  %v854_v27 = vpop.f32.mrf.mxu0  ;;  %v1159_v39 = vpop.f32.mrf.mxu2 }
 0x112   : > { %950 = vst [vmem:[#allocation2 + $0x8] sm:$0xf] %v934_v51  ;;  %v883_v28 = vpop.f32.mrf.mxu1  ;;  %v1160_v17 = vadd.f32 %v1159_v39, %v3210_v10 }
 0x113   : > { %v884_v31 = vadd.f32 %v883_v28, %v854_v27 }
 0x115   : > { %v914_v32 = vadd.f32 %v905_v18, %v884_v31 }
 0x117   : > { %v936_v1 = vpack.c.bf16 %v914_v32, %v914_v32 }
 0x119   : > { %952 = vst [vmem:[#allocation2 + $0x14] sm:$0xf] %v936_v1  ;;  %v857_v33 = vpop.f32.mrf.mxu0  ;;  %v1161_v13 = vpop.f32.mrf.mxu2 }
 0x11a   : > { %v886_v41 = vpop.f32.mrf.mxu1  ;;  %v1162_v42 = vadd.f32 %v1161_v13, %v3210_v10 }
 0x11b   : > { %v887_v8 = vadd.f32 %v886_v41, %v857_v33 }
 0x11d   : > { %v917_v35 = vadd.f32 %v905_v18, %v887_v8 }
 0x11f   : > { %v938_v38 = vpack.c.bf16 %v917_v35, %v917_v35 }
 0x121   : > { %954 = vst [vmem:[#allocation2 + $0x20] sm:$0xf] %v938_v38  ;;  %v859_v57 = vpop.f32.mrf.mxu0 }
 0x122   : > { %v888_v5 = vpop.f32.mrf.mxu1 }
 0x123   : > { %v889_v62 = vadd.f32 %v888_v5, %v859_v57 }
 0x125   : > { %v920_v40 = vadd.f32 %v905_v18, %v889_v62  ;;  %v1173_v2 = vpop.f32.mrf.mxu3 }
 0x126   : > { %v1174_v14 = vadd.f32 %v1173_v2, %v3208_v9 }
 0x127   : > { %v940_v43 = vpack.c.bf16 %v920_v40, %v920_v40 }
 0x129   : > { %956 = vst [vmem:[#allocation2 + $0x2c] sm:$0xf] %v940_v43  ;;  %v862_v45 = vpop.f32.mrf.mxu0 }
 0x12a   : > { %v891_v15 = vpop.f32.mrf.mxu1 }
 0x12b   : > { %v892_v48 = vadd.f32 %v891_v15, %v862_v45  ;;  %v3226_v45 = vperm.slane %v997_v7, 2 }
 0x12d   : > { %v923_v52 = vadd.f32 %v905_v18, %v892_v48  ;;  %v1175_v11 = vpop.f32.mrf.mxu3 }
 0x12e   : > { %v1176_v16 = vadd.f32 %v1175_v11, %v3208_v9 }
 0x12f   : > { %v942_v53 = vpack.c.bf16 %v923_v52, %v923_v52 }
 0x131   : > { %958 = vst [vmem:[#allocation2 + $0x38] sm:$0xf] %v942_v53  ;;  %v864_v36 = vpop.f32.mrf.mxu0 }
 0x132   : > { %v893_v19 = vpop.f32.mrf.mxu1 }
 0x133   : > { %v894_v55 = vadd.f32 %v893_v19, %v864_v36 }
 0x135   : > { %v926_v58 = vadd.f32 %v905_v18, %v894_v55 }
 0x137   : > { %v944_v59 = vpack.c.bf16 %v926_v58, %v926_v58 }
 0x139   : > { %960 = vst [vmem:[#allocation2 + $0x44] sm:$0xf] %v944_v59  ;;  %v867_v29 = vpop.f32.mrf.mxu0 }
 0x13a   : > { %v896_v56 = vpop.f32.mrf.mxu1 }
 0x13b   : > { %v897_v30 = vadd.f32 %v896_v56, %v867_v29 }
 0x13c   : > { %v1187_v41 = vpop.f32.mrf.mxu2 }
 0x13d   : > { %v929_v50 = vadd.f32 %v905_v18, %v897_v30  ;;  %v1188_v55 = vadd.f32 %v1187_v41, %v3226_v45 }
 0x13f   : > { %v946_v61 = vpack.c.bf16 %v929_v50, %v929_v50 }
 0x141   : > { %962 = vst [vmem:[#allocation2 + $0x50] sm:$0xf] %v946_v61  ;;  %v869_v63 = vpop.f32.mrf.mxu0 }
 0x142   : > { %v898_v0 = vpop.f32.mrf.mxu1 }
 0x143   : > { %v899_v3 = vadd.f32 %v898_v0, %v869_v63 }
 0x144   : > { %v1189_v15 = vpop.f32.mrf.mxu2 }
 0x145   : > { %v932_v4 = vadd.f32 %v905_v18, %v899_v3  ;;  %v1190_v59 = vadd.f32 %v1189_v15, %v3226_v45 }
 0x147   : > { %v948_v6 = vpack.c.bf16 %v932_v4, %v932_v4 }
 0x149   : > { %964 = vst [vmem:[#allocation2 + $0x5c] sm:$0xf] %v948_v6 }
 0x150   : > { %v1006_v18 = vld [vmem:[%s3215_s20 + $0xc] sm:$0xff]  ;;  %v1004_v47 = vld [vmem:[%s3215_s20] sm:$0xff]  ;;  %v1005_v52 = vld [vmem:[%s3215_s20 + $0x8] sm:$0xf] }
 0x151   : > { %v1011_v46 = vunpack.c.l.bf16 %v1006_v18  ;;  %v1008_v20 = vunpack.c.l.bf16 %v1004_v47  ;;  %v1009_v21 = vunpack.c.h.bf16 %v1004_v47  ;;  %v1012_v23 = vunpack.c.h.bf16 %v1006_v18  ;;  %v1007_v50 = vld [vmem:[%s3215_s20 + $0x14] sm:$0xf]  ;;  %s1783_s20 = scalar_lea.vmem %s2830_s14, %s2481_s29 [#allocation4] }
 0x152   : > { %v1010_v30 = vunpack.c.l.bf16 %v1005_v52 }
 0x153   : > { %v1193_v26 = vadd.f32 %v1162_v42, %v1011_v46  ;;  %v1192_v51 = vadd.f32 %v1160_v17, %v1008_v20  ;;  %v1232_v27 = vadd.f32 %v1174_v14, %v1009_v21  ;;  %v1233_v28 = vadd.f32 %v1176_v16, %v1012_v23 }
 0x154   : > { %v1013_v14 = vunpack.c.l.bf16 %v1007_v50 }
 0x155   : > { %v2358_v31 = vmul.f32 -1.442695, %v1193_v26  ;;  %v2357_v32 = vmul.f32 -1.442695, %v1192_v51  ;;  %v2359_v1 = vmul.f32 -1.442695, %v1232_v27 }
 0x156   : > { %v2360_v33 = vmul.f32 -1.442695, %v1233_v28 }
 0x157   : > { %2563 = vpow2.f32 %v2358_v31 }
 0x158   : > { %2565 = vpow2.f32 %v2357_v32 }
 0x159   : > { %2567 = vpow2.f32 %v2359_v1 }
 0x15a   : > { %2569 = vpow2.f32 %v2360_v33 }
 0x15d   : > { %v2564_v8 = vpop.eup %2563 }
 0x15e   : > { %v2566_v35 = vpop.eup %2565  ;;  %v1201_v38 = vadd.f32 1.0, %v2564_v8 }
 0x15f   : > { %v2568_v57 = vpop.eup %2567  ;;  %v1200_v5 = vadd.f32 1.0, %v2566_v35 }
 0x160   : > { %v2570_v62 = vpop.eup %2569  ;;  %2571 = vrcp.f32 %v1201_v38  ;;  %v3220_v40 = vadd.f32 1.0, %v2568_v57  ;;  %v1226_v63 = vand.u32 2147483647, %v1201_v38  ;;  %v1228_v3 = vand.u32 2147483648, %v1201_v38 }
 0x161   : > { %2573 = vrcp.f32 %v1200_v5  ;;  %v3222_v43 = vadd.f32 1.0, %v2570_v62  ;;  %v1211_v39 = vand.u32 2147483647, %v1200_v5  ;;  %v1213_v6 = vand.u32 2147483648, %v1200_v5 }
 0x162   : > { %2575 = vrcp.f32 %v3220_v40  ;;  %vm1207_vm2 = vweird.f32 %v1200_v5  ;;  %vm1222_vm3 = vweird.f32 %v1201_v38  ;;  %v1229_v46 = vor.u32 1.1754944e-38, %v1228_v3 }
 0x163   : > { %2577 = vrcp.f32 %v3222_v43  ;;  %v1268_v42 = vand.u32 2147483648, %v3222_v43  ;;  %vm1212_vm6 = vcmp.eq.f32.partialorder %v1211_v39, 8.507059e+37  ;;  %v1214_v20 = vor.u32 1.1754944e-38, %v1213_v6 }
 0x164   : > { %vm1227_vm7 = vcmp.eq.f32.partialorder %v1226_v63, 8.507059e+37  ;;  %v1253_v32 = vand.u32 2147483648, %v3220_v40  ;;  %vm1262_vm10 = vweird.f32 %v3222_v43  ;;  %v1266_v33 = vand.u32 2147483647, %v3222_v43 }
 0x165   : > { %vm1247_vm11 = vweird.f32 %v3220_v40  ;;  %v1251_v41 = vand.u32 2147483647, %v3220_v40  ;;  %v1269_v57 = vor.u32 1.1754944e-38, %v1268_v42 }
 0x166   : > { %v2572_v48 = vpop.eup %2571  ;;  %v1254_v62 = vor.u32 1.1754944e-38, %v1253_v32  ;;  %vm1267_vm14 = vcmp.eq.f32.partialorder %v1266_v33, 8.507059e+37 }
 0x167   : > { %v2574_v53 = vpop.eup %2573  ;;  %v1218_v36 = vmul.f32 %v2572_v48, %v1201_v38  ;;  %vm1223_vm0 = vweird.f32 %v2572_v48  ;;  %vm1252_vm15 = vcmp.eq.f32.partialorder %v1251_v41, 8.507059e+37 }
 0x168   : > { %v3229_v19 = vpop.eup %2575  ;;  %v1203_v58 = vmul.f32 %v2574_v53, %v1200_v5  ;;  %vm1208_vm1 = vweird.f32 %v2574_v53  ;;  %vm1224_vm4 = vmor %vm1222_vm3, %vm1223_vm0 }
 0x169   : > { %v2578_v29 = vpop.eup %2577  ;;  %v1243_v56 = vmul.f32 %v3229_v19, %v3220_v40  ;;  %v1219_v61 = vsub.f32 1.0, %v1218_v36  ;;  %vm1209_vm5 = vmor %vm1207_vm2, %vm1208_vm1  ;;  %vm1248_vm9 = vweird.f32 %v3229_v19 }
 0x16a   : > { %v1258_v0 = vmul.f32 %v2578_v29, %v3222_v43  ;;  %v1204_v2 = vsub.f32 1.0, %v1203_v58  ;;  %vm1263_vm8 = vweird.f32 %v2578_v29  ;;  %vm1249_vm13 = vmor %vm1247_vm11, %vm1248_vm9 }
 0x16b   : > { %v1244_v4 = vsub.f32 1.0, %v1243_v56  ;;  %v1220_v7 = vmul.f32 %v2572_v48, %v1219_v61  ;;  %vm1264_vm12 = vmor %vm1262_vm10, %vm1263_vm8 }
 0x16c   : > { %v1259_v11 = vsub.f32 1.0, %v1258_v0  ;;  %v1205_v13 = vmul.f32 %v2574_v53, %v1204_v2 }
 0x16d   : > { %v1245_v16 = vmul.f32 %v3229_v19, %v1244_v4  ;;  %v1221_v17 = vadd.f32 %v2572_v48, %v1220_v7 }
 0x16e   : > { %v1260_v18 = vmul.f32 %v2578_v29, %v1259_v11  ;;  %v1206_v47 = vadd.f32 %v2574_v53, %v1205_v13 }
 0x16f   : > { %v1225_v21 = vsel %vm1224_vm4, %v2572_v48, %v1221_v17  ;;  %v1246_v28 = vadd.f32 %v3229_v19, %v1245_v16 }
 0x170   : > { %v1210_v23 = vsel %vm1209_vm5, %v2574_v53, %v1206_v47  ;;  %v1230_v26 = vsel %vm1227_vm7, %v1229_v46, %v1225_v21  ;;  %v1261_v51 = vadd.f32 %v2578_v29, %v1260_v18 }
 0x171   : > { %v1215_v27 = vsel %vm1212_vm6, %v1214_v20, %v1210_v23  ;;  %v1273_v31 = vmul.f32 %v1230_v26, %v1190_v59  ;;  %v1250_v5 = vsel %vm1249_vm13, %v3229_v19, %v1246_v28 }
 0x172   : > { %v1272_v1 = vmul.f32 %v1215_v27, %v1188_v55  ;;  %v1265_v38 = vsel %vm1264_vm12, %v2578_v29, %v1261_v51  ;;  %v1255_v15 = vsel %vm1252_vm15, %v1254_v62, %v1250_v5 }
 0x173   : > { %v1275_v8 = vadd.f32 %v1273_v31, %v1013_v14  ;;  %v1270_v43 = vsel %vm1267_vm14, %v1269_v57, %v1265_v38  ;;  %v1278_v53 = vsub.f32 1.0, %v1255_v15  ;;  %v1282_v59 = vmul.f32 %v1255_v15, %v3061_v24 }
 0x174   : > { %v1274_v35 = vadd.f32 %v1272_v1, %v1010_v30  ;;  %v1279_v48 = vsub.f32 1.0, %v1270_v43  ;;  %v1283_v55 = vmul.f32 %v1270_v43, %v3063_v25 }
 0x175   : > { %2579 = vtanh.f32 %v1275_v8 }
 0x176   : > { %2581 = vtanh.f32 %v1274_v35 }
 0x17b   : > { %v2580_v52 = vpop.eup %2579 }
 0x17c   : > { %v2582_v40 = vpop.eup %2581  ;;  %v1281_v36 = vmul.f32 %v2580_v52, %v1279_v48  ;;  %v1300_v48 = vld [vmem:[%s3277_s28 + $0x8] sm:$0xf] }
 0x17d   : > { %v1280_v58 = vmul.f32 %v2582_v40, %v1278_v53 }
 0x17e   : > { %v3250_v19 = vadd.f32 %v1283_v55, %v1281_v36 }
 0x17f   : > { %v3252_v29 = vadd.f32 %v1282_v59, %v1280_v58  ;;  %v1305_v59 = vunpack.c.l.bf16 %v1300_v48 }
 0x180   : > { %v1287_v56 = vpack.c.bf16 %v3250_v19, %v3250_v19 }
 0x181   : > { %v2486_v30 = vpack.c.bf16 %v3250_v19, %v3252_v29  ;;  %v1286_v50 = vpack.c.bf16 %v3252_v29, %v3252_v29 }
 0x182   : > { %v1312_v25 = vunpack.c.l.b16 %v1287_v56 }
 0x183   : > { %2487 = vst [vmem:[%s1290_s23] sm:$0xff] %v2486_v30   ;;  %v1311_v61 = vunpack.c.l.b16 %v1286_v50  ;;  %s1801_s23 = sadd.s32 (%p2777_p4), %s2685_s21, %s2482_s22 }
 0x184   : > { %s2390_s25 = sshll.u32 (%p2777_p4), %s1801_s23, 2 }
 0x185   : > { %v1313_v24 = vpack.c.b16 %v1312_v25, %v1311_v61  ;;  %s1803_s6 = scalar_lea.vmem (%p2777_p4), %s3464_s5, %s2390_s25 }
 0x187   : > { %1323 = vmatmul.bf16.vlgmr.msra.gmra.mxu3 %v1313_v24  ;;  %1337 = vmatmul.bf16.vlgmr.msra.gmra.mxu0 %v1313_v24 }
 0x188   : > { %1351 = vmatmul.bf16.vlgmr.msra.gmra.mxu1 %v1313_v24  ;;  %1671 = vmatpush.bf16.msra.mxu3 %v3050_v22  ;;  %v1299_v22 = vld [vmem:[%s3277_s28] sm:$0xff] }
 0x189   : > { %v1303_v63 = vunpack.c.l.bf16 %v1299_v22 }
 0x18c   : > { %1672 = vmatpush.bf16.msra.mxu3 %v3079_v34 }
 0x190   : > { %1673 = vmatpush.bf16.msra.mxu3 %v3089_v12  ;;  %v1304_v12 = vunpack.c.h.bf16 %v1299_v22 }
 0x194   : > { %1674 = vmatpush.bf16.msra.mxu3 %v3097_v44 }
 0x198   : > { %1675 = vmatpush.bf16.msra.mxu3 %v3109_v49 }
 0x19c   : > { %1676 = vmatpush.bf16.msra.mxu3 %v3119_v54 }
 0x1a0   : > { %1677 = vmatpush.bf16.msra.mxu3 %v3127_v37 }
 0x1a4   : > { %1678 = vmatpush.bf16.msra.mxu3 %v3135_v60  ;;  %v1301_v60 = vld [vmem:[%s3277_s28 + $0xc] sm:$0xff] }
 0x1a5   : > { %v1307_v3 = vunpack.c.h.bf16 %v1301_v60  ;;  %v1306_v17 = vunpack.c.l.bf16 %v1301_v60  ;;  %v1302_v60 = vld [vmem:[%s3277_s28 + $0x14] sm:$0xf] }
 0x204   : > { %v1338_v34 = vpop.f32.mrf.mxu0 }
 0x205   : > { %v1339_v44 = vadd.f32 %v1338_v34, %v3208_v9  ;;  %v1352_v8 = vpop.f32.mrf.mxu1 }
 0x206   : > { %v1353_v53 = vadd.f32 %v1352_v8, %v3226_v45 }
 0x207   : > { %v1397_v49 = vadd.f32 %v1339_v44, %v1304_v12 }
 0x209   : > { %v2367_v54 = vmul.f32 -1.442695, %v1397_v49 }
 0x20a   : > { %v1324_v37 = vpop.f32.mrf.mxu3 }
 0x20b   : > { %2583 = vpow2.f32 %v2367_v54  ;;  %v1325_v0 = vadd.f32 %v1324_v37, %v3210_v10 }
 0x20c   : > { %v1340_v2 = vpop.f32.mrf.mxu0 }
 0x20d   : > { %v1357_v39 = vadd.f32 %v1325_v0, %v1303_v63  ;;  %v1341_v4 = vadd.f32 %v1340_v2, %v3208_v9  ;;  %v1354_v49 = vpop.f32.mrf.mxu1 }
 0x20f   : > { %v2365_v6 = vmul.f32 -1.442695, %v1357_v39  ;;  %v1398_v7 = vadd.f32 %v1341_v4, %v1307_v3  ;;  %v1355_v39 = vadd.f32 %v1354_v49, %v3226_v45 }
 0x211   : > { %v2584_v11 = vpop.eup %2583  ;;  %2585 = vpow2.f32 %v2365_v6  ;;  %v2368_v13 = vmul.f32 -1.442695, %v1398_v7 }
 0x212   : > { %v1326_v14 = vpop.f32.mrf.mxu3  ;;  %v3284_v16 = vadd.f32 1.0, %v2584_v11  ;;  %v1308_v11 = vunpack.c.l.bf16 %v1302_v60 }
 0x213   : > { %2587 = vpow2.f32 %v2368_v13  ;;  %v1327_v18 = vadd.f32 %v1326_v14, %v3210_v10 }
 0x214   : > { %2589 = vrcp.f32 %v3284_v16  ;;  %v1418_v25 = vand.u32 2147483648, %v3284_v16  ;;  %vm1412_vm6 = vweird.f32 %v3284_v16  ;;  %v1416_v12 = vand.u32 2147483647, %v3284_v16 }
 0x215   : > { %v1358_v42 = vadd.f32 %v1327_v18, %v1306_v17 }
 0x216   : > { %v1419_v2 = vor.u32 1.1754944e-38, %v1418_v25  ;;  %vm1417_vm11 = vcmp.eq.f32.partialorder %v1416_v12, 8.507059e+37 }
 0x217   : > { %v2586_v47 = vpop.eup %2585  ;;  %v2366_v46 = vmul.f32 -1.442695, %v1358_v42 }
 0x218   : > { %v1365_v20 = vadd.f32 1.0, %v2586_v47 }
 0x219   : > { %v2588_v21 = vpop.eup %2587  ;;  %2591 = vpow2.f32 %v2366_v46 }
 0x21a   : > { %2593 = vrcp.f32 %v1365_v20  ;;  %v3288_v23 = vadd.f32 1.0, %v2588_v21  ;;  %v3290_v26 = vpop.eup %2589  ;;  %v1378_v35 = vand.u32 2147483648, %v1365_v20  ;;  %v1376_v57 = vand.u32 2147483647, %v1365_v20 }
 0x21b   : > { %v1408_v28 = vmul.f32 %v3290_v26, %v3284_v16  ;;  %vm1372_vm1 = vweird.f32 %v1365_v20  ;;  %vm1413_vm4 = vweird.f32 %v3290_v26 }
 0x21c   : > { %2595 = vrcp.f32 %v3288_v23  ;;  %v1379_v52 = vor.u32 1.1754944e-38, %v1378_v35  ;;  %vm1377_vm3 = vcmp.eq.f32.partialorder %v1376_v57, 8.507059e+37  ;;  %vm3308_vm7 = vmor %vm1412_vm6, %vm1413_vm4  ;;  %v1433_v7 = vand.u32 2147483648, %v3288_v23 }
 0x21d   : > { %v1409_v41 = vsub.f32 1.0, %v1408_v28  ;;  %vm1427_vm13 = vweird.f32 %v3288_v23  ;;  %v1431_v16 = vand.u32 2147483647, %v3288_v23 }
 0x21e   : > { %v1434_v46 = vor.u32 1.1754944e-38, %v1433_v7 }
 0x21f   : > { %v2592_v51 = vpop.eup %2591  ;;  %v1410_v15 = vmul.f32 %v3290_v26, %v1409_v41  ;;  %vm1432_vm15 = vcmp.eq.f32.partialorder %v1431_v16, 8.507059e+37 }
 0x220   : > { %v2594_v27 = vpop.eup %2593  ;;  %v1366_v31 = vadd.f32 1.0, %v2592_v51 }
 0x221   : > { %v1368_v32 = vmul.f32 %v2594_v27, %v1365_v20  ;;  %vm1373_vm0 = vweird.f32 %v2594_v27  ;;  %v1411_v50 = vadd.f32 %v3290_v26, %v1410_v15 }
 0x222   : > { %2597 = vrcp.f32 %v1366_v31  ;;  %v3295_v1 = vpop.eup %2595  ;;  %vm1374_vm2 = vmor %vm1372_vm1, %vm1373_vm0  ;;  %v1393_v61 = vand.u32 2147483648, %v1366_v31  ;;  %v1391_v34 = vand.u32 2147483647, %v1366_v31  ;;  %vm1387_vm8 = vweird.f32 %v1366_v31 }
 0x223   : > { %v1369_v33 = vsub.f32 1.0, %v1368_v32  ;;  %v1423_v5 = vmul.f32 %v3295_v1, %v3288_v23  ;;  %v1415_v0 = vsel %vm3308_vm7, %v3290_v26, %v1411_v50  ;;  %vm1428_vm12 = vweird.f32 %v3295_v1 }
 0x224   : > { %v1394_v63 = vor.u32 1.1754944e-38, %v1393_v61  ;;  %vm1392_vm10 = vcmp.eq.f32.partialorder %v1391_v34, 8.507059e+37  ;;  %v1420_v14 = vsel %vm1417_vm11, %v1419_v2, %v1415_v0  ;;  %vm1429_vm14 = vmor %vm1427_vm13, %vm1428_vm12 }
 0x225   : > { %v1370_v38 = vmul.f32 %v2594_v27, %v1369_v33  ;;  %v1424_v58 = vsub.f32 1.0, %v1423_v5  ;;  %v1443_v47 = vsub.f32 1.0, %v1420_v14  ;;  %v1447_v26 = vmul.f32 %v1420_v14, %v3252_v29 }
 0x227   : > { %v1371_v62 = vadd.f32 %v2594_v27, %v1370_v38  ;;  %v1425_v44 = vmul.f32 %v3295_v1, %v1424_v58 }
 0x228   : > { %v2598_v43 = vpop.eup %2597 }
 0x229   : > { %v1375_v40 = vsel %vm1374_vm2, %v2594_v27, %v1371_v62  ;;  %v1383_v36 = vmul.f32 %v2598_v43, %v1366_v31  ;;  %vm1388_vm5 = vweird.f32 %v2598_v43  ;;  %v1426_v4 = vadd.f32 %v3295_v1, %v1425_v44 }
 0x22a   : > { %v1380_v55 = vsel %vm1377_vm3, %v1379_v52, %v1375_v40  ;;  %vm1389_vm9 = vmor %vm1387_vm8, %vm1388_vm5 }
 0x22b   : > { %v1437_v56 = vmul.f32 %v1380_v55, %v1353_v53  ;;  %v1384_v30 = vsub.f32 1.0, %v1383_v36  ;;  %v1430_v42 = vsel %vm1429_vm14, %v3295_v1, %v1426_v4  ;;  %v1465_v36 = vld [vmem:[%s3342_s17 + $0xc] sm:$0xff] }
 0x22c   : > { %v1435_v21 = vsel %vm1432_vm15, %v1434_v46, %v1430_v42 }
 0x22d   : > { %v1439_v24 = vadd.f32 %v1437_v56, %v1305_v59  ;;  %v1385_v22 = vmul.f32 %v2598_v43, %v1384_v30  ;;  %v1444_v51 = vsub.f32 1.0, %v1435_v21  ;;  %v1448_v31 = vmul.f32 %v1435_v21, %v3250_v19  ;;  %v1463_v19 = vld [vmem:[%s3342_s17] sm:$0xff] }
 0x22e   : > { %v1467_v5 = vunpack.c.l.bf16 %v1463_v19  ;;  %v1470_v59 = vunpack.c.l.bf16 %v1465_v36  ;;  %v1471_v30 = vunpack.c.h.bf16 %v1465_v36 }
 0x22f   : > { %v1386_v37 = vadd.f32 %v2598_v43, %v1385_v22  ;;  %2599 = vtanh.f32 %v1439_v24 }
 0x231   : > { %v1390_v3 = vsel %vm1389_vm9, %v2598_v43, %v1386_v37  ;;  %v1468_v43 = vunpack.c.h.bf16 %v1463_v19 }
 0x232   : > { %v1395_v6 = vsel %vm1392_vm10, %v1394_v63, %v1390_v3 }
 0x233   : > { %v1438_v13 = vmul.f32 %v1395_v6, %v1355_v39 }
 0x235   : > { %v2600_v17 = vpop.eup %2599  ;;  %v1440_v18 = vadd.f32 %v1438_v13, %v1308_v11 }
 0x236   : > { %v1445_v20 = vmul.f32 %v2600_v17, %v1443_v47 }
 0x237   : > { %2601 = vtanh.f32 %v1440_v18  ;;  %v1464_v18 = vld [vmem:[%s3342_s17 + $0x8] sm:$0xf] }
 0x238   : > { %v3324_v27 = vadd.f32 %v1447_v26, %v1445_v20 }
 0x23a   : > { %v1451_v1 = vpack.c.bf16 %v3324_v27, %v3324_v27 }
 0x23c   : > { %v1475_v41 = vunpack.c.l.b16 %v1451_v1 }
 0x23d   : > { %v2602_v28 = vpop.eup %2601 }
 0x23e   : > { %v1446_v23 = vmul.f32 %v2602_v28, %v1444_v51  ;;  %v1469_v28 = vunpack.c.l.bf16 %v1464_v18 }
 0x240   : > { %v3328_v32 = vadd.f32 %v1448_v31, %v1446_v23 }
 0x242   : > { %v1452_v33 = vpack.c.bf16 %v3328_v32, %v3328_v32  ;;  %v2491_v29 = vpack.c.bf16 %v3328_v32, %v3324_v27 }
 0x244   : > { %2492 = vst [vmem:[%s1455_s10] sm:$0xff] %v2491_v29   ;;  %v1476_v8 = vunpack.c.l.b16 %v1452_v33 }
 0x246   : > { %v1477_v35 = vpack.c.b16 %v1476_v8, %v1475_v41 }
 0x248   : > { %1487 = vmatmul.bf16.vlgmr.msrb.gmra.mxu2 %v1477_v35  ;;  %1501 = vmatmul.bf16.vlgmr.msrb.gmra.mxu3 %v1477_v35 }
 0x249   : > { %1515 = vmatmul.bf16.vlgmr.msrb.gmra.mxu0 %v1477_v35 }
 0x2c6   : > { %v1516_v6 = vpop.f32.mrf.mxu0 }
 0x2c7   : > { %v1517_v46 = vadd.f32 %v1516_v6, %v3226_v45 }
 0x2cb   : > { %v1488_v38 = vpop.f32.mrf.mxu2  ;;  %v1502_v57 = vpop.f32.mrf.mxu3 }
 0x2cc   : > { %v1489_v62 = vadd.f32 %v1488_v38, %v3210_v10  ;;  %v1503_v15 = vadd.f32 %v1502_v57, %v3208_v9 }
 0x2ce   : > { %v1521_v48 = vadd.f32 %v1489_v62, %v1467_v5  ;;  %v1561_v52 = vadd.f32 %v1503_v15, %v1468_v43  ;;  %v1518_v57 = vpop.f32.mrf.mxu0  ;;  %v1466_v15 = vld [vmem:[%s3342_s17 + $0x14] sm:$0xf] }
 0x2cf   : > { %v1519_v36 = vadd.f32 %v1518_v57, %v3226_v45 }
 0x2d0   : > { %v2373_v53 = vmul.f32 -1.442695, %v1521_v48  ;;  %v2375_v40 = vmul.f32 -1.442695, %v1561_v52 }
 0x2d2   : > { %2603 = vpow2.f32 %v2373_v53 }
 0x2d3   : > { %2605 = vpow2.f32 %v2375_v40  ;;  %v1490_v55 = vpop.f32.mrf.mxu2  ;;  %v1504_v58 = vpop.f32.mrf.mxu3 }
 0x2d4   : > { %v1491_v56 = vadd.f32 %v1490_v55, %v3210_v10  ;;  %v1505_v50 = vadd.f32 %v1504_v58, %v3208_v9 }
 0x2d6   : > { %v1522_v25 = vadd.f32 %v1491_v56, %v1470_v59  ;;  %v1562_v61 = vadd.f32 %v1505_v50, %v1471_v30  ;;  %v1472_v56 = vunpack.c.l.bf16 %v1466_v15 }
 0x2d8   : > { %v2604_v24 = vpop.eup %2603  ;;  %v2374_v22 = vmul.f32 -1.442695, %v1522_v25  ;;  %v2376_v44 = vmul.f32 -1.442695, %v1562_v61 }
 0x2d9   : > { %v2606_v34 = vpop.eup %2605  ;;  %v1529_v12 = vadd.f32 1.0, %v2604_v24 }
 0x2da   : > { %v3350_v49 = vadd.f32 1.0, %v2606_v34  ;;  %2607 = vpow2.f32 %v2374_v22 }
 0x2db   : > { %2609 = vrcp.f32 %v1529_v12  ;;  %v1542_v7 = vand.u32 2147483648, %v1529_v12  ;;  %v1540_v14 = vand.u32 2147483647, %v1529_v12  ;;  %vm1536_vm1 = vweird.f32 %v1529_v12 }
 0x2dc   : > { %2611 = vrcp.f32 %v3350_v49  ;;  %v1582_v31 = vand.u32 2147483648, %v3350_v49  ;;  %vm1576_vm6 = vweird.f32 %v3350_v49  ;;  %v1580_v38 = vand.u32 2147483647, %v3350_v49 }
 0x2dd   : > { %2613 = vpow2.f32 %v2376_v44  ;;  %v1543_v42 = vor.u32 1.1754944e-38, %v1542_v7  ;;  %vm1541_vm3 = vcmp.eq.f32.partialorder %v1540_v14, 8.507059e+37 }
 0x2de   : > { %v1583_v40 = vor.u32 1.1754944e-38, %v1582_v31  ;;  %vm1581_vm11 = vcmp.eq.f32.partialorder %v1580_v38, 8.507059e+37 }
 0x2e0   : > { %v2608_v54 = vpop.eup %2607 }
 0x2e1   : > { %v2610_v37 = vpop.eup %2609  ;;  %v1530_v60 = vadd.f32 1.0, %v2608_v54 }
 0x2e2   : > { %v3353_v63 = vpop.eup %2611  ;;  %v1532_v0 = vmul.f32 %v2610_v37, %v1529_v12  ;;  %vm1537_vm0 = vweird.f32 %v2610_v37 }
 0x2e3   : > { %v2614_v2 = vpop.eup %2613  ;;  %v1572_v39 = vmul.f32 %v3353_v63, %v3350_v49  ;;  %2615 = vrcp.f32 %v1530_v60  ;;  %vm1538_vm2 = vmor %vm1536_vm1, %vm1537_vm0  ;;  %vm1577_vm4 = vweird.f32 %v3353_v63  ;;  %v1557_v29 = vand.u32 2147483648, %v1530_v60 }
 0x2e4   : > { %v1533_v3 = vsub.f32 1.0, %v1532_v0  ;;  %v3357_v4 = vadd.f32 1.0, %v2614_v2  ;;  %v1555_v19 = vand.u32 2147483647, %v1530_v60  ;;  %vm3369_vm7 = vmor %vm1576_vm6, %vm1577_vm4  ;;  %vm1551_vm8 = vweird.f32 %v1530_v60 }
 0x2e5   : > { %v1573_v11 = vsub.f32 1.0, %v1572_v39  ;;  %v1558_v48 = vor.u32 1.1754944e-38, %v1557_v29 }
 0x2e6   : > { %v1534_v13 = vmul.f32 %v2610_v37, %v1533_v3  ;;  %2617 = vrcp.f32 %v3357_v4  ;;  %vm1556_vm10 = vcmp.eq.f32.partialorder %v1555_v19, 8.507059e+37  ;;  %v1597_v50 = vand.u32 2147483648, %v3357_v4 }
 0x2e7   : > { %v1574_v47 = vmul.f32 %v3353_v63, %v1573_v11  ;;  %vm1591_vm13 = vweird.f32 %v3357_v4  ;;  %v1595_v61 = vand.u32 2147483647, %v3357_v4 }
 0x2e8   : > { %v1535_v16 = vadd.f32 %v2610_v37, %v1534_v13  ;;  %v1598_v44 = vor.u32 1.1754944e-38, %v1597_v50 }
 0x2e9   : > { %v2616_v17 = vpop.eup %2615  ;;  %v1575_v33 = vadd.f32 %v3353_v63, %v1574_v47  ;;  %vm1596_vm15 = vcmp.eq.f32.partialorder %v1595_v61, 8.507059e+37 }
 0x2ea   : > { %v1539_v20 = vsel %vm1538_vm2, %v2610_v37, %v1535_v16  ;;  %v1547_v21 = vmul.f32 %v2616_v17, %v1530_v60  ;;  %vm1552_vm5 = vweird.f32 %v2616_v17 }
 0x2eb   : > { %v1544_v26 = vsel %vm1541_vm3, %v1543_v42, %v1539_v20  ;;  %vm1553_vm9 = vmor %vm1551_vm8, %vm1552_vm5  ;;  %v1579_v53 = vsel %vm3369_vm7, %v3353_v63, %v1575_v33 }
 0x2ec   : > { %v2618_v51 = vpop.eup %2617  ;;  %v1601_v23 = vmul.f32 %v1544_v26, %v1517_v46  ;;  %v1548_v1 = vsub.f32 1.0, %v1547_v21  ;;  %v1584_v25 = vsel %vm1581_vm11, %v1583_v40, %v1579_v53  ;;  %v1629_v46 = vld [vmem:[%s3400_s19 + $0xc] sm:$0xff] }
 0x2ed   : > { %v1587_v41 = vmul.f32 %v2618_v51, %v3357_v4  ;;  %vm1592_vm12 = vweird.f32 %v2618_v51  ;;  %v1607_v12 = vsub.f32 1.0, %v1584_v25  ;;  %v1611_v37 = vmul.f32 %v1584_v25, %v3324_v27 }
 0x2ee   : > { %v1603_v8 = vadd.f32 %v1601_v23, %v1469_v28  ;;  %v1549_v35 = vmul.f32 %v2616_v17, %v1548_v1  ;;  %vm1593_vm14 = vmor %vm1591_vm13, %vm1592_vm12  ;;  %v1634_v28 = vunpack.c.l.bf16 %v1629_v46 }
 0x2ef   : > { %v1588_v5 = vsub.f32 1.0, %v1587_v41 }
 0x2f0   : > { %v1550_v43 = vadd.f32 %v2616_v17, %v1549_v35  ;;  %2619 = vtanh.f32 %v1603_v8  ;;  %v1635_v35 = vunpack.c.h.bf16 %v1629_v46 }
 0x2f1   : > { %v1589_v52 = vmul.f32 %v2618_v51, %v1588_v5 }
 0x2f2   : > { %v1554_v55 = vsel %vm1553_vm9, %v2616_v17, %v1550_v43 }
 0x2f3   : > { %v1559_v58 = vsel %vm1556_vm10, %v1558_v48, %v1554_v55  ;;  %v1590_v59 = vadd.f32 %v2618_v51, %v1589_v52 }
 0x2f4   : > { %v1602_v30 = vmul.f32 %v1559_v58, %v1519_v36 }
 0x2f5   : > { %v1594_v34 = vsel %vm1593_vm14, %v2618_v51, %v1590_v59 }
 0x2f6   : > { %v2620_v24 = vpop.eup %2619  ;;  %v1604_v22 = vadd.f32 %v1602_v30, %v1472_v56  ;;  %v1599_v54 = vsel %vm1596_vm15, %v1598_v44, %v1594_v34  ;;  %v1628_v30 = vld [vmem:[%s3400_s19 + $0x8] sm:$0xf] }
 0x2f7   : > { %v1609_v49 = vmul.f32 %v2620_v24, %v1607_v12  ;;  %v1608_v60 = vsub.f32 1.0, %v1599_v54  ;;  %v1612_v39 = vmul.f32 %v1599_v54, %v3328_v32  ;;  %v1627_v32 = vld [vmem:[%s3400_s19] sm:$0xff]  ;;  %v1633_v12 = vunpack.c.l.bf16 %v1628_v30 }
 0x2f8   : > { %2621 = vtanh.f32 %v1604_v22  ;;  %v1631_v16 = vunpack.c.l.bf16 %v1627_v32  ;;  %v1632_v20 = vunpack.c.h.bf16 %v1627_v32 }
 0x2f9   : > { %v3382_v63 = vadd.f32 %v1611_v37, %v1609_v49 }
 0x2fb   : > { %v1615_v4 = vpack.c.bf16 %v3382_v63, %v3382_v63 }
 0x2fd   : > { %v1639_v7 = vunpack.c.l.b16 %v1615_v4 }
 0x2fe   : > { %v2622_v0 = vpop.eup %2621 }
 0x2ff   : > { %v1610_v2 = vmul.f32 %v2622_v0, %v1608_v60 }
 0x301   : > { %v3386_v3 = vadd.f32 %v1612_v39, %v1610_v2 }
 0x303   : > { %v1616_v6 = vpack.c.bf16 %v3386_v3, %v3386_v3  ;;  %v2496_v27 = vpack.c.bf16 %v3386_v3, %v3382_v63 }
 0x305   : > { %2497 = vst [vmem:[%s1619_s30] sm:$0xff] %v2496_v27   ;;  %v1640_v11 = vunpack.c.l.b16 %v1616_v6 }
 0x307   : > { %v1641_v13 = vpack.c.b16 %v1640_v11, %v1639_v7 }
 0x309   : > { %1651 = vmatmul.bf16.vlgmr.msrb.gmra.mxu1 %v1641_v13  ;;  %1665 = vmatmul.bf16.vlgmr.msra.gmra.mxu2 %v1641_v13 }
 0x30a   : > { %1679 = vmatmul.bf16.vlgmr.msra.gmra.mxu3 %v1641_v13 }
 0x386   : > { %v1652_v14 = vpop.f32.mrf.mxu1 }
 0x387   : > { %v1653_v17 = vadd.f32 %v1652_v14, %v3210_v10 }
 0x389   : > { %v1685_v18 = vadd.f32 %v1653_v17, %v1631_v16 }
 0x38b   : > { %v2380_v42 = vmul.f32 -1.442695, %v1685_v18 }
 0x38c   : > { %v1666_v47 = vpop.f32.mrf.mxu2 }
 0x38d   : > { %2623 = vpow2.f32 %v2380_v42  ;;  %v1667_v21 = vadd.f32 %v1666_v47, %v3208_v9  ;;  %v1680_v36 = vpop.f32.mrf.mxu3  ;;  %v1630_v47 = vld [vmem:[%s3400_s19 + $0x14] sm:$0xf] }
 0x38e   : > { %v1654_v26 = vpop.f32.mrf.mxu1  ;;  %v1681_v22 = vadd.f32 %v1680_v36, %v3226_v45 }
 0x38f   : > { %v1725_v51 = vadd.f32 %v1667_v21, %v1632_v20  ;;  %v1655_v23 = vadd.f32 %v1654_v26, %v3210_v10 }
 0x391   : > { %v2382_v31 = vmul.f32 -1.442695, %v1725_v51  ;;  %v1686_v1 = vadd.f32 %v1655_v23, %v1634_v28 }
 0x393   : > { %v2624_v33 = vpop.eup %2623  ;;  %2625 = vpow2.f32 %v2382_v31  ;;  %v2381_v29 = vmul.f32 -1.442695, %v1686_v1  ;;  %v1636_v31 = vunpack.c.l.bf16 %v1630_v47 }
 0x394   : > { %v1693_v41 = vadd.f32 1.0, %v2624_v33  ;;  %v1668_v8 = vpop.f32.mrf.mxu2 }
 0x395   : > { %2627 = vpow2.f32 %v2381_v29  ;;  %v1669_v19 = vadd.f32 %v1668_v8, %v3208_v9  ;;  %v1682_v16 = vpop.f32.mrf.mxu3 }
 0x396   : > { %2629 = vrcp.f32 %v1693_v41  ;;  %v1706_v53 = vand.u32 2147483648, %v1693_v41  ;;  %v1704_v9 = vand.u32 2147483647, %v1693_v41  ;;  %vm1700_vm1 = vweird.f32 %v1693_v41 }
 0x397   : > { %v1726_v38 = vadd.f32 %v1669_v19, %v1635_v35  ;;  %v1683_v20 = vadd.f32 %v1682_v16, %v3226_v45 }
 0x398   : > { %v1707_v25 = vor.u32 1.1754944e-38, %v1706_v53  ;;  %vm1705_vm3 = vcmp.eq.f32.partialorder %v1704_v9, 8.507059e+37 }
 0x399   : > { %v2626_v57 = vpop.eup %2625  ;;  %v2383_v5 = vmul.f32 -1.442695, %v1726_v38 }
 0x39a   : > { %v1733_v62 = vadd.f32 1.0, %v2626_v57 }
 0x39b   : > { %v2628_v43 = vpop.eup %2627  ;;  %2631 = vpow2.f32 %v2383_v5 }
 0x39c   : > { %v2630_v10 = vpop.eup %2629  ;;  %2633 = vrcp.f32 %v1733_v62  ;;  %v1694_v48 = vadd.f32 1.0, %v2628_v43  ;;  %v1746_v37 = vand.u32 2147483648, %v1733_v62  ;;  %v1744_v0 = vand.u32 2147483647, %v1733_v62 }
 0x39d   : > { %v1696_v15 = vmul.f32 %v2630_v10, %v1693_v41  ;;  %vm1701_vm0 = vweird.f32 %v2630_v10  ;;  %vm1740_vm5 = vweird.f32 %v1733_v62 }
 0x39e   : > { %2635 = vrcp.f32 %v1694_v48  ;;  %vm1702_vm2 = vmor %vm1700_vm1, %vm1701_vm0  ;;  %v1721_v6 = vand.u32 2147483648, %v1694_v48  ;;  %v1719_v11 = vand.u32 2147483647, %v1694_v48  ;;  %v1747_v13 = vor.u32 1.1754944e-38, %v1746_v37 }
 0x39f   : > { %v1697_v52 = vsub.f32 1.0, %v1696_v15  ;;  %vm1745_vm8 = vcmp.eq.f32.partialorder %v1744_v0, 8.507059e+37  ;;  %vm1715_vm9 = vweird.f32 %v1694_v48 }
 0x3a0   : > { %v1722_v46 = vor.u32 1.1754944e-38, %v1721_v6  ;;  %vm1720_vm11 = vcmp.eq.f32.partialorder %v1719_v11, 8.507059e+37 }
 0x3a1   : > { %v2632_v40 = vpop.eup %2631  ;;  %v1698_v55 = vmul.f32 %v2630_v10, %v1697_v52 }
 0x3a2   : > { %v2634_v58 = vpop.eup %2633  ;;  %v3408_v59 = vadd.f32 1.0, %v2632_v40 }
 0x3a3   : > { %v1736_v56 = vmul.f32 %v2634_v58, %v1733_v62  ;;  %v1699_v50 = vadd.f32 %v2630_v10, %v1698_v55  ;;  %vm1741_vm4 = vweird.f32 %v2634_v58 }
 0x3a4   : > { %2637 = vrcp.f32 %v3408_v59  ;;  %v2636_v61 = vpop.eup %2635  ;;  %vm1742_vm6 = vmor %vm1740_vm5, %vm1741_vm4  ;;  %v1761_v23 = vand.u32 2147483648, %v3408_v59  ;;  %vm1755_vm13 = vweird.f32 %v3408_v59  ;;  %v1759_v41 = vand.u32 2147483647, %v3408_v59 }
 0x3a5   : > { %v1737_v24 = vsub.f32 1.0, %v1736_v56  ;;  %v1703_v34 = vsel %vm1702_vm2, %v2630_v10, %v1699_v50  ;;  %v1711_v49 = vmul.f32 %v2636_v61, %v1694_v48  ;;  %vm1716_vm7 = vweird.f32 %v2636_v61 }
 0x3a6   : > { %v1708_v44 = vsel %vm1705_vm3, %v1707_v25, %v1703_v34  ;;  %vm1717_vm10 = vmor %vm1715_vm9, %vm1716_vm7  ;;  %v1762_v57 = vor.u32 1.1754944e-38, %v1761_v23  ;;  %vm1760_vm15 = vcmp.eq.f32.partialorder %v1759_v41, 8.507059e+37 }
 0x3a7   : > { %v1738_v54 = vmul.f32 %v2634_v58, %v1737_v24  ;;  %v1765_v60 = vmul.f32 %v1708_v44, %v1681_v22  ;;  %v1712_v2 = vsub.f32 1.0, %v1711_v49 }
 0x3a9   : > { %v1739_v39 = vadd.f32 %v2634_v58, %v1738_v54  ;;  %v1767_v4 = vadd.f32 %v1765_v60, %v1633_v12  ;;  %v1713_v7 = vmul.f32 %v2636_v61, %v1712_v2 }
 0x3aa   : > { %v2638_v27 = vpop.eup %2637 }
 0x3ab   : > { %v1743_v32 = vsel %vm1742_vm6, %v2634_v58, %v1739_v39  ;;  %2639 = vtanh.f32 %v1767_v4  ;;  %v1751_v14 = vmul.f32 %v2638_v27, %v3408_v59  ;;  %v1714_v17 = vadd.f32 %v2636_v61, %v1713_v7 }
 0x3ac   : > { %v1748_v18 = vsel %vm1745_vm8, %v1747_v13, %v1743_v32  ;;  %vm1756_vm12 = vweird.f32 %v2638_v27 }
 0x3ad   : > { %v1752_v42 = vsub.f32 1.0, %v1751_v14  ;;  %v1718_v21 = vsel %vm1717_vm10, %v2636_v61, %v1714_v17  ;;  %v1771_v28 = vsub.f32 1.0, %v1748_v18  ;;  %v1775_v45 = vmul.f32 %v1748_v18, %v3382_v63  ;;  %vm1757_vm14 = vmor %vm1755_vm13, %vm1756_vm12 }
 0x3ae   : > { %v1723_v51 = vsel %vm1720_vm11, %v1722_v46, %v1718_v21 }
 0x3af   : > { %v1753_v26 = vmul.f32 %v2638_v27, %v1752_v42  ;;  %v1766_v1 = vmul.f32 %v1723_v51, %v1683_v20 }
 0x3b1   : > { %v2640_v33 = vpop.eup %2639  ;;  %v1754_v29 = vadd.f32 %v2638_v27, %v1753_v26  ;;  %v1768_v35 = vadd.f32 %v1766_v1, %v1636_v31 }
 0x3b2   : > { %v1773_v8 = vmul.f32 %v2640_v33, %v1771_v28 }
 0x3b3   : > { %v1758_v19 = vsel %vm1757_vm14, %v2638_v27, %v1754_v29  ;;  %2641 = vtanh.f32 %v1768_v35 }
 0x3b4   : > { %v1777_v38 = vadd.f32 %v1775_v45, %v1773_v8  ;;  %v1763_v5 = vsel %vm1760_vm15, %v1762_v57, %v1758_v19 }
 0x3b5   : > { %v1772_v62 = vsub.f32 1.0, %v1763_v5  ;;  %v1776_v15 = vmul.f32 %v1763_v5, %v3386_v3 }
 0x3b6   : > { %1786 = vst [vmem:[#allocation3] sm:$0xff] %v1777_v38 }
 0x3b9   : > { %v2642_v43 = vpop.eup %2641 }
 0x3ba   : > { %v1774_v10 = vmul.f32 %v2642_v43, %v1772_v62 }
 0x3bc   : > { %v1778_v48 = vadd.f32 %v1776_v15, %v1774_v10  ;;  %1794 = sbr.rel (!%p2777_p4) target bundleno = 976 (0x3d0), region = 48 }
 0x3be   : > { %v2501_v52 = vpack.c.bf16 %v1778_v48, %v1777_v38  ;;  %1787 = vst [vmem:[#allocation3 + $0x8] sm:$0xff] %v1778_v48 }
 0x3c0   : > { %2502 = vst [vmem:[%s1783_s20] sm:$0xff] %v2501_v52  }
 0x3c7   : > { %v1820_v63 = vld [vmem:[%s2830_s14] sm:$0xf]  ;;  %v1822_v3 = vld [vmem:[%s2830_s14 + $0x4] sm:$0xf]  ;;  %v1824_v53 = vld [vmem:[%s2830_s14 + $0x8] sm:$0xf] }
 0x3c8   : > { %1821 = vst [vmem:[%s1803_s6] sm:$0xf] %v1820_v63  ;;  %v1826_v40 = vld [vmem:[%s2830_s14 + $0xc] sm:$0xf]  ;;  %v1828_v36 = vld [vmem:[%s2830_s14 + $0x10] sm:$0xf] }
 0x3c9   : > { %1823 = vst [vmem:[%s1803_s6 + $0x8] sm:$0xf] %v1822_v3  ;;  %v1830_v55 = vld [vmem:[%s2830_s14 + $0x14] sm:$0xf]  ;;  %v1832_v9 = vld [vmem:[%s2830_s14 + $0x18] sm:$0xf] }
 0x3ca   : > { %1825 = vst [vmem:[%s1803_s6 + $0x10] sm:$0xf] %v1824_v53  ;;  %v1834_v58 = vld [vmem:[%s2830_s14 + $0x1c] sm:$0xf] }
 0x3cb   : > { %1827 = vst [vmem:[%s1803_s6 + $0x18] sm:$0xf] %v1826_v40 }
 0x3cc   : > { %1829 = vst [vmem:[%s1803_s6 + $0x20] sm:$0xf] %v1828_v36 }
 0x3cd   : > { %1831 = vst [vmem:[%s1803_s6 + $0x28] sm:$0xf] %v1830_v55 }
 0x3ce   : > { %1833 = vst [vmem:[%s1803_s6 + $0x30] sm:$0xf] %v1832_v9 }
 0x3cf   : > { %1835 = vst [vmem:[%s1803_s6 + $0x38] sm:$0xf] %v1834_v58 }
 0x3d0 PF: > { %s15_s24 = sadd.s32 1, %s2697_s24   ;;  %s3481_s18 = sld [smem:[#allocation5_spill]] }
 0x3d1   : > { %p12_p12 = scmp.ge.s32.totalorder %s15_s24, 6   ;;  %s3482_s19 = sld [smem:[#allocation10_spill]] }
 0x3d2   : > { %s3483_s20 = sld [smem:[#allocation6_spill]] }
 0x3d3   : > { %s3484_s21 = sld [smem:[#allocation7_spill]]  ;;  %14 = sbr.rel (!%p12_p12) target bundleno = 4 (0x4), region = 135 }
 0x3d4   : > { %s3485_s22 = sld [smem:[#allocation8_spill]] }
 0x3d5   : > { %s3486_s23 = sld [smem:[#allocation9_spill]] }

// kernel: bigru_attn_forward.5
= control target key start
LH: loop header
LB: loop body
LE: loop exit
PB: predicated region body
PF: predicated region fallthrough
CT: control target
= control target key end

     0   :  { %s3635_s0 = inlined_call_operand.vmem [shape: bf16[8,16,256], index: 0, kind: input, shape index: {}]   ;;  %s3636_s1 = inlined_call_operand.vmem [shape: bf16[2,256,384], index: 1, kind: input, shape index: {}]   ;;  %s3637_s2 = inlined_call_operand.hbm [shape: bf16[2,128,384], index: 2, kind: input, shape index: {}]   ;;  %s3638_s3 = inlined_call_operand.vmem [shape: f32[2,1,384], index: 3, kind: input, shape index: {}]   ;;  %s3639_s4 = inlined_call_operand.vmem [shape: f32[2,1,384], index: 4, kind: input, shape index: {}]   ;;  %s3640_s5 = inlined_call_operand.vmem [shape: bf16[8,16,256], index: 5, kind: output, shape index: {}]  }
   0x1   :  { %3646 = sst [smem:[#allocation14_spill]] %s3637_s2 }
   0x2   :  { %3647 = sst [smem:[#allocation15_spill]] %s3639_s4 }
   0x3   :  { %3648 = sst [smem:[#allocation16_spill]] %s3640_s5 }
   0x4   :  { %10 = vsyncpa [#allocation5], 0 }
   0x5   :  { %12 = vsyncpa [#allocation5 + $0x1], 0  ;;  %s2858_s18 = smov 0   ;;  %s2860_s19 = smov 0  }
   0x6   :  { %s2862_s20 = smov 0   ;;  %s2864_s21 = smov 0  }
   0x7   :  { %s2866_s22 = smov 0   ;;  %s2868_s23 = smov 0  }
   0x8   :  { %s2870_s24 = smov 0   ;;  %s2872_s25 = smov 0  }
   0x9   :  { %s2874_s26 = smov 0   ;;  %s2876_s27 = smov 0  }
   0xa LB: > { %3649 = sst [smem:[#allocation8_spill]] %s2803_s22  ;;  %s2051_s28 = sadd.s32 4294967295, %s2823_s27   ;;  %s2823_s27 = sphi %s2876_s27, %s18_s27   ;;  %s2819_s26 = sphi %s2874_s26, %s3670_s26   ;;  %s2815_s25 = sphi %s2872_s25, %s3669_s25   ;;  %s2811_s24 = sphi %s2870_s24, %s3675_s24   ;;  %s2807_s23 = sphi %s2868_s23, %s3667_s23   ;;  %s2803_s22 = sphi %s2866_s22, %s3666_s22   ;;  %s2799_s21 = sphi %s2864_s21, %s3674_s21   ;;  %s2795_s20 = sphi %s2862_s20, %s3673_s20   ;;  %s2791_s19 = sphi %s2860_s19, %s3672_s19   ;;  %s2787_s18 = sphi %s2858_s18, %s3671_s18  }
   0xb   : > { %3650 = sst [smem:[#allocation9_spill]] %s2815_s25  ;;  %s27_s29 = sadd.s32 1, %s2815_s25 }
   0xc   : > { %3651 = sst [smem:[#allocation10_spill]] %s2819_s26  ;;  %p28_p0 = scmp.ge.s32.totalorder %s27_s29, 2 }
   0xd   : > { %s30_s30 = sadd.s32 1, %s2819_s26  ;;  %s97_s6 = sadd.s32 1, %s2803_s22 }
   0xe   : > { %p104_p1 = scmp.ne.s32.totalorder %s2803_s22, %s2799_s21  ;;  %s3677_s29 = smov (%p28_p0, %s27_s29), 0 }
   0xf   : > { %3652 = sst [smem:[#allocation11_spill]] %s3677_s29  ;;  %s3679_s30 = smov (!%p28_p0, %s30_s30), %s2819_s26 }
  0x10   : > { %p105_p2 = scmp.eq.s32.totalorder %s2823_s27, 0  ;;  %p110_p3 = scmp.ne.s32.totalorder %s2799_s21, %s2795_s20 }
  0x11   : > { %p32_p4 = scmp.ge.s32.totalorder %s3679_s30, 2  ;;  %p111_p5 = scmp.eq.s32.totalorder %s2051_s28, 0 }
  0x12   : > { %p2917_p6 = por %p105_p2, %p104_p1  ;;  %s2055_s8 = sshll.u32 %s2819_s26, 1 }
  0x13   : > { %s3681_s30 = smov (%p32_p4, %s3679_s30), 0  ;;  %p2924_p7 = por %p111_p5, %p110_p3 }
  0x14   : > { %3654 = sst [smem:[#allocation12_spill]] %s3681_s30  ;;  %s173_s10 = ssub.s32 1, %s2055_s8 }
  0x15   : > { %s94_s11 = ssub.s32 %s2819_s26, %s3681_s30  ;;  %s174_s12 = smul.u32 %s2815_s25, %s173_s10 }
  0x16   : > { %p95_p8 = scmp.eq.s32.totalorder %s94_s11, 0  ;;  %s2056_s13 = sshll.u32 %s3681_s30, 1 }
  0x17   : > { %s175_s14 = sadd.s32 %s2819_s26, %s174_s12  ;;  %s177_s15 = ssub.s32 1, %s2056_s13 }
  0x18   : > { %s2934_s16 = scalar_select %p95_p8, %s2803_s22, %s97_s6  }
  0x19   : > { %s178_s17 = smul.u32 %s177_s15, %s3677_s29  ;;  %s185_s20 = sadd.s32 1, %s2791_s19 }
  0x1a   : > { %3656 = sst [smem:[#allocation13_spill]] %s2934_s16  ;;  %p195_p9 = scmp.ne.s32.totalorder %s2791_s19, %s2787_s18 }
  0x1b   : > { %p196_p10 = scmp.eq.s32.totalorder %s2051_s28, 3  ;;  %s179_s5 = sadd.s32 %s178_s17, %s3681_s30 }
  0x1c   : > { %s180_s4 = ssub.s32 %s175_s14, %s179_s5  ;;  %p2547_p12 = scmp.lt.s32.totalorder %s2823_s27, 4 }
  0x1d   : > { %p2941_p11 = por %p196_p10, %p195_p9  ;;  %s182_s10 = sor.u32 %s180_s4, %s94_s11 }
  0x1e   : > { %p183_p13 = scmp.eq.s32.totalorder %s182_s10, 0  ;;  %s248_s12 = sand.u32 1, %s2803_s22  }
  0x1f   : > { %s2536_s13 = smul.u32 192, %s248_s12  ;;  %p2544_p0 = pnand %p2547_p12, %p2917_p6 }
  0x20   : > { %s2948_s6 = scalar_select %p183_p13, %s2791_s19, %s185_s20  }
  0x21   : > { %s2537_s15 = smul.u32 192, %s2819_s26  ;;  %s252_s29 = scalar_lea.vmem [#allocation4], %s2536_s13 }
  0x22   : > { %s260_s25 = sshll.u32 %s252_s29, 4  ;;  %s3658_s2 = sld [smem:[#allocation14_spill]]  ;;  %s261_s25 = int_to_ptr.vmem [resolvable:$true] %s260_s25 }
  0x23   : > { %p2060_p1 = scmp.ge.s32.totalorder %s2823_s27, 1  ;;  %s249_s4 = scalar_lea.sflag [#allocation5], %s248_s12 }
  0x24   : > { %s2825_s11 = smov 192   ;;  %s2826_s10 = smov 12  }
  0x25   : > { %p282_p2 = scmp.lt.s32.totalorder %s2823_s27, 5 }
  0x27   : > { %p283_p3 = pnand %p2060_p1, %p282_p2 }
  0x28   : > { %s257_s14 = scalar_lea.hbm %s3658_s2, %s2537_s15  ;;  %s288_s29 = sand.u32 (!%p283_p3), 1, %s2799_s21  }
  0x29   : > { %s258_s17 = sshll.u32 %s257_s14, 4  ;;  %286 = sbr.rel (%p283_p3) target bundleno = 997 (0x3e5), region = 40  ;;  %s259_s17 = int_to_ptr.hbm [resolvable:$true] %s258_s17 }
  0x2a   : > { %2546 = dma.hbm_to_vmem [thread:$0]  (!%p2544_p0), %s259_s17, 3072, %s261_s25, %s249_s4, %s2825_s11, %s2825_s11, %s2826_s10  }
  0x2b   : > { %s2538_s7 = smul.u32 (!%p283_p3), 192, %s288_s29  ;;  %s289_s20 = scalar_lea.sflag (!%p283_p3), [#allocation5], %s288_s29 }
  0x2d   : > { %s2959_s13 = scalar_lea.vmem (!%p283_p3), [#allocation4], %s2538_s7 }
  0x2e   : > { %2782 = dma.done.wait (%p2924_p7), %s289_s20, 3072  }
  0x2f   : > { %2784 = vsyncadd (%p2924_p7), %s289_s20, 4294964224  ;;  %s339_s25 = sand.u32 1, %s2787_s18   ;;  %s2062_s12 = sshll.u32 %s2811_s24, 1 }
  0x30   : > { %s2061_s15 = sshll.u32 %s339_s25, 5  ;;  %s2967_s28 = ssub.s32 1, %s2062_s12 }
  0x31   : > { %s344_s5 = smul.u32 %s2807_s23, %s2967_s28  ;;  %p357_p4 = scmp.lt.s32.totalorder %s2811_s24, 1 }
  0x32   : > { %s3659_s22 = sld [smem:[#allocation15_spill]]  ;;  %p2067_p6 = scmp.ne.s32.totalorder %s2807_s23, 0 }
  0x33   : > { %s2973_s14 = sadd.s32 %s2811_s24, %s344_s5 }
  0x34   : > { %s2063_s17 = sshll.u32 %s2973_s14, 2 }
  0x35   : > { %p347_p5 = scmp.lt.s32.totalorder %s2063_s17, 7 }
  0x36   : > { %s358_s9 = scalar_select %p357_p4, %s2811_s24, 1 }
  0x37   : > { %s3683_s17 = smov (!%p347_p5, %s2063_s17), 7  ;;  %378 = sbr.rel (%p2067_p6) target bundleno = 63 (0x3f), region = 48 }
  0x38   : > { %s2539_s4 = smul.u32 384, %s358_s9  ;;  %s2426_s11 = sshll.u32 %s3683_s17, 4 }
  0x39   : > { %s2540_s10 = smul.u32 3, %s358_s9  ;;  %s2980_s18 = scalar_lea.vmem %s3635_s0, %s2426_s11 }
  0x3a   : > { %s2985_s12 = scalar_lea.vmem %s3636_s1, %s2539_s4  ;;  %s2997_s9 = scalar_lea.vmem [#allocation6], %s2061_s15 }
  0x3b   : > { %s2990_s30 = scalar_lea.vmem %s3638_s3, %s2540_s10  ;;  %s2995_s17 = scalar_lea.vmem %s3659_s22, %s2540_s10 }
  0x3c   : > { %v2827_v0 = vmov 0.0  }
  0x3d   : > { %379 = vst [vmem:[#allocation3] sm:$0xff] %v2827_v0 }
  0x3e   : > { %380 = vst [vmem:[#allocation3 + $0x8] sm:$0xff] %v2827_v0 }
  0x3f PF: > { %v2186_v1 = vld [vmem:[%s2985_s12 + $0xa8] sm:$0xf]  ;;  %v2457_v2 = vld [vmem:[%s2985_s12 + $0xb0] sm:$0xf0]  ;;  %v2456_v6 = vld [vmem:[%s2985_s12 + $0xac] sm:$0xf] }
  0x40   : > { %v2282_v3 = vld [vmem:[%s2985_s12 + $0x168] sm:$0xf]  ;;  %v2187_v4 = vor.u32 %v2457_v2, %v2186_v1  ;;  %v2481_v5 = vld [vmem:[%s2985_s12 + $0x170] sm:$0xf0]  ;;  %v2188_v7 = vld [vmem:[%s2985_s12 + $0xb4] sm:$0xf0] }
  0x41   : > { %v2283_v8 = vor.u32 %v2481_v5, %v2282_v3  ;;  %v2191_v9 = vor.u32 %v2456_v6, %v2188_v7  ;;  %v2480_v10 = vld [vmem:[%s2985_s12 + $0x16c] sm:$0xf]  ;;  %v2284_v11 = vld [vmem:[%s2985_s12 + $0x174] sm:$0xf0]  ;;  %v2174_v12 = vld [vmem:[%s2985_s12 + $0x90] sm:$0xf] }
  0x42   : > { %749 = vmatpush.bf16.msra.mxu0 %v2187_v4  ;;  %v2287_v13 = vor.u32 %v2480_v10, %v2284_v11  ;;  %v2454_v14 = vld [vmem:[%s2985_s12 + $0x98] sm:$0xf0]  ;;  %v2270_v15 = vld [vmem:[%s2985_s12 + $0x150] sm:$0xf]  ;;  %v2453_v19 = vld [vmem:[%s2985_s12 + $0x94] sm:$0xf] }
  0x43   : > { %v2478_v16 = vld [vmem:[%s2985_s12 + $0x158] sm:$0xf0]  ;;  %778 = vmatpush.bf16.msra.mxu1 %v2283_v8  ;;  %807 = vmatpush.bf16.msra.mxu2 %v2191_v9  ;;  %v2175_v17 = vor.u32 %v2454_v14, %v2174_v12  ;;  %v2176_v20 = vld [vmem:[%s2985_s12 + $0x9c] sm:$0xf0]  ;;  %v2477_v21 = vld [vmem:[%s2985_s12 + $0x154] sm:$0xf] }
  0x44   : > { %v2271_v18 = vor.u32 %v2478_v16, %v2270_v15  ;;  %836 = vmatpush.bf16.msra.mxu3 %v2287_v13  ;;  %v2179_v22 = vor.u32 %v2453_v19, %v2176_v20  ;;  %v2272_v23 = vld [vmem:[%s2985_s12 + $0x15c] sm:$0xf0]  ;;  %v2162_v24 = vld [vmem:[%s2985_s12 + $0x78] sm:$0xf]  ;;  %v2451_v25 = vld [vmem:[%s2985_s12 + $0x80] sm:$0xf0] }
  0x45   : > { %v2275_v26 = vor.u32 %v2477_v21, %v2272_v23  ;;  %v2258_v27 = vld [vmem:[%s2985_s12 + $0x138] sm:$0xf]  ;;  %v2475_v28 = vld [vmem:[%s2985_s12 + $0x140] sm:$0xf0]  ;;  %v2450_v29 = vld [vmem:[%s2985_s12 + $0x7c] sm:$0xf]  ;;  %v2163_v30 = vor.u32 %v2451_v25, %v2162_v24 }
  0x46   : > { %750 = vmatpush.bf16.msra.mxu0 %v2175_v17  ;;  %v2164_v31 = vld [vmem:[%s2985_s12 + $0x84] sm:$0xf0]  ;;  %v2474_v32 = vld [vmem:[%s2985_s12 + $0x13c] sm:$0xf]  ;;  %v2259_v34 = vor.u32 %v2475_v28, %v2258_v27  ;;  %v2150_v36 = vld [vmem:[%s2985_s12 + $0x60] sm:$0xf] }
  0x47   : > { %v2260_v33 = vld [vmem:[%s2985_s12 + $0x144] sm:$0xf0]  ;;  %779 = vmatpush.bf16.msra.mxu1 %v2271_v18  ;;  %808 = vmatpush.bf16.msra.mxu2 %v2179_v22  ;;  %v2167_v35 = vor.u32 %v2450_v29, %v2164_v31  ;;  %v2448_v37 = vld [vmem:[%s2985_s12 + $0x68] sm:$0xf0]  ;;  %v2246_v38 = vld [vmem:[%s2985_s12 + $0x120] sm:$0xf] }
  0x48   : > { %837 = vmatpush.bf16.msra.mxu3 %v2275_v26  ;;  %v2263_v39 = vor.u32 %v2474_v32, %v2260_v33  ;;  %v2472_v40 = vld [vmem:[%s2985_s12 + $0x128] sm:$0xf0]  ;;  %v2447_v41 = vld [vmem:[%s2985_s12 + $0x64] sm:$0xf]  ;;  %v2152_v42 = vld [vmem:[%s2985_s12 + $0x6c] sm:$0xf0]  ;;  %v2151_v45 = vor.u32 %v2448_v37, %v2150_v36 }
  0x49   : > { %v2471_v43 = vld [vmem:[%s2985_s12 + $0x124] sm:$0xf]  ;;  %v2248_v44 = vld [vmem:[%s2985_s12 + $0x12c] sm:$0xf0]  ;;  %v2247_v46 = vor.u32 %v2472_v40, %v2246_v38  ;;  %v2155_v47 = vor.u32 %v2447_v41, %v2152_v42  ;;  %v2138_v48 = vld [vmem:[%s2985_s12 + $0x48] sm:$0xf] }
  0x4a   : > { %751 = vmatpush.bf16.msra.mxu0 %v2163_v30  ;;  %v2445_v49 = vld [vmem:[%s2985_s12 + $0x50] sm:$0xf0]  ;;  %v2234_v50 = vld [vmem:[%s2985_s12 + $0x108] sm:$0xf]  ;;  %v2251_v51 = vor.u32 %v2471_v43, %v2248_v44  ;;  %v2444_v53 = vld [vmem:[%s2985_s12 + $0x4c] sm:$0xf] }
  0x4b   : > { %780 = vmatpush.bf16.msra.mxu1 %v2259_v34  ;;  %809 = vmatpush.bf16.msra.mxu2 %v2167_v35  ;;  %v2469_v52 = vld [vmem:[%s2985_s12 + $0x110] sm:$0xf0]  ;;  %v2140_v54 = vld [vmem:[%s2985_s12 + $0x54] sm:$0xf0]  ;;  %v2468_v55 = vld [vmem:[%s2985_s12 + $0x10c] sm:$0xf]  ;;  %v2139_v57 = vor.u32 %v2445_v49, %v2138_v48 }
  0x4c   : > { %838 = vmatpush.bf16.msra.mxu3 %v2263_v39  ;;  %v2236_v56 = vld [vmem:[%s2985_s12 + $0x114] sm:$0xf0]  ;;  %v2235_v58 = vor.u32 %v2469_v52, %v2234_v50  ;;  %v2143_v59 = vor.u32 %v2444_v53, %v2140_v54  ;;  %v2126_v60 = vld [vmem:[%s2985_s12 + $0x30] sm:$0xf]  ;;  %v2442_v61 = vld [vmem:[%s2985_s12 + $0x38] sm:$0xf0] }
  0x4d   : > { %v2222_v62 = vld [vmem:[%s2985_s12 + $0xf0] sm:$0xf]  ;;  %v2239_v63 = vor.u32 %v2468_v55, %v2236_v56  ;;  %v2466_v0 = vld [vmem:[%s2985_s12 + $0xf8] sm:$0xf0]  ;;  %v2441_v1 = vld [vmem:[%s2985_s12 + $0x34] sm:$0xf]  ;;  %v2127_v5 = vor.u32 %v2442_v61, %v2126_v60 }
  0x4e   : > { %752 = vmatpush.bf16.msra.mxu0 %v2151_v45  ;;  %v2128_v2 = vld [vmem:[%s2985_s12 + $0x3c] sm:$0xf0]  ;;  %v2465_v3 = vld [vmem:[%s2985_s12 + $0xf4] sm:$0xf]  ;;  %v2223_v6 = vor.u32 %v2466_v0, %v2222_v62  ;;  %v2114_v8 = vld [vmem:[%s2985_s12 + $0x18] sm:$0xf] }
  0x4f   : > { %781 = vmatpush.bf16.msra.mxu1 %v2247_v46  ;;  %810 = vmatpush.bf16.msra.mxu2 %v2155_v47  ;;  %v2224_v4 = vld [vmem:[%s2985_s12 + $0xfc] sm:$0xf0]  ;;  %v2131_v7 = vor.u32 %v2441_v1, %v2128_v2  ;;  %v2439_v9 = vld [vmem:[%s2985_s12 + $0x20] sm:$0xf0]  ;;  %v2210_v10 = vld [vmem:[%s2985_s12 + $0xd8] sm:$0xf] }
  0x50   : > { %839 = vmatpush.bf16.msra.mxu3 %v2251_v51  ;;  %v2227_v11 = vor.u32 %v2465_v3, %v2224_v4  ;;  %v2463_v12 = vld [vmem:[%s2985_s12 + $0xe0] sm:$0xf0]  ;;  %v2438_v13 = vld [vmem:[%s2985_s12 + $0x1c] sm:$0xf]  ;;  %v2116_v14 = vld [vmem:[%s2985_s12 + $0x24] sm:$0xf0]  ;;  %v2115_v17 = vor.u32 %v2439_v9, %v2114_v8 }
  0x51   : > { %v2462_v15 = vld [vmem:[%s2985_s12 + $0xdc] sm:$0xf]  ;;  %v2212_v16 = vld [vmem:[%s2985_s12 + $0xe4] sm:$0xf0]  ;;  %v2102_v18 = vld [vmem:[%s2985_s12] sm:$0xf]  ;;  %v2211_v20 = vor.u32 %v2463_v12, %v2210_v10  ;;  %v2119_v21 = vor.u32 %v2438_v13, %v2116_v14 }
  0x52   : > { %753 = vmatpush.bf16.msra.mxu0 %v2139_v57  ;;  %v2436_v19 = vld [vmem:[%s2985_s12 + $0x8] sm:$0xf0]  ;;  %v2198_v22 = vld [vmem:[%s2985_s12 + $0xc0] sm:$0xf]  ;;  %v2435_v24 = vld [vmem:[%s2985_s12 + $0x4] sm:$0xf]  ;;  %v2215_v25 = vor.u32 %v2462_v15, %v2212_v16 }
  0x53   : > { %782 = vmatpush.bf16.msra.mxu1 %v2235_v58  ;;  %811 = vmatpush.bf16.msra.mxu2 %v2143_v59  ;;  %v2460_v23 = vld [vmem:[%s2985_s12 + $0xc8] sm:$0xf0]  ;;  %v2104_v26 = vld [vmem:[%s2985_s12 + $0xc] sm:$0xf0]  ;;  %v2459_v27 = vld [vmem:[%s2985_s12 + $0xc4] sm:$0xf]  ;;  %v2103_v32 = vor.u32 %v2436_v19, %v2102_v18 }
  0x54   : > { %840 = vmatpush.bf16.msra.mxu3 %v2239_v63  ;;  %v2200_v28 = vld [vmem:[%s2985_s12 + $0xcc] sm:$0xf0]  ;;  %v2070_v29 = vld [vmem:[%s2980_s18] sm:$0xf]  ;;  %v2458_v31 = vld [vmem:[%s2985_s12 + $0xb8] sm:$0xf0]  ;;  %v2199_v36 = vor.u32 %v2460_v23, %v2198_v22  ;;  %v2107_v37 = vor.u32 %v2435_v24, %v2104_v26 }
  0x55   : > { %v2194_v30 = vld [vmem:[%s2985_s12 + $0xb0] sm:$0xf]  ;;  %v2428_v33 = vld [vmem:[%s2980_s18 + $0x4] sm:$0xf0]  ;;  %v2482_v35 = vld [vmem:[%s2985_s12 + $0x178] sm:$0xf0]  ;;  %v2203_v40 = vor.u32 %v2459_v27, %v2200_v28 }
  0x56   : > { %754 = vmatpush.bf16.msra.mxu0 %v2127_v5  ;;  %v2290_v34 = vld [vmem:[%s2985_s12 + $0x170] sm:$0xf]  ;;  %v2427_v38 = vld [vmem:[%s2980_s18 + $0x4] sm:$0xf]  ;;  %v2072_v39 = vld [vmem:[%s2980_s18 + $0x8] sm:$0xf0]  ;;  %v2195_v41 = vor.u32 %v2458_v31, %v2194_v30  ;;  %v3072_v42 = vor.u32 %v2428_v33, %v2070_v29 }
  0x57   : > { %783 = vmatpush.bf16.msra.mxu1 %v2223_v6  ;;  %812 = vmatpush.bf16.msra.mxu2 %v2131_v7  ;;  %v2291_v43 = vor.u32 %v2482_v35, %v2290_v34  ;;  %v2182_v44 = vld [vmem:[%s2985_s12 + $0x98] sm:$0xf]  ;;  %v2455_v45 = vld [vmem:[%s2985_s12 + $0xa0] sm:$0xf0]  ;;  %v3076_v46 = vor.u32 %v2427_v38, %v2072_v39  ;;  %v2170_v51 = vld [vmem:[%s2985_s12 + $0x80] sm:$0xf] }
  0x58   : > { %841 = vmatpush.bf16.msra.mxu3 %v2227_v11  ;;  %v2278_v47 = vld [vmem:[%s2985_s12 + $0x158] sm:$0xf]  ;;  %v2479_v48 = vld [vmem:[%s2985_s12 + $0x160] sm:$0xf0]  ;;  %v2183_v49 = vor.u32 %v2455_v45, %v2182_v44  ;;  %v2452_v52 = vld [vmem:[%s2985_s12 + $0x88] sm:$0xf0] }
  0x59   : > { %v2279_v50 = vor.u32 %v2479_v48, %v2278_v47  ;;  %v2266_v53 = vld [vmem:[%s2985_s12 + $0x140] sm:$0xf]  ;;  %v2476_v54 = vld [vmem:[%s2985_s12 + $0x148] sm:$0xf0]  ;;  %v2171_v55 = vor.u32 %v2452_v52, %v2170_v51  ;;  %v2158_v57 = vld [vmem:[%s2985_s12 + $0x68] sm:$0xf] }
  0x5a   : > { %755 = vmatpush.bf16.msra.mxu0 %v2115_v17  ;;  %v2267_v56 = vor.u32 %v2476_v54, %v2266_v53  ;;  %v2449_v58 = vld [vmem:[%s2985_s12 + $0x70] sm:$0xf0]  ;;  %v2254_v59 = vld [vmem:[%s2985_s12 + $0x128] sm:$0xf]  ;;  %v2078_v62 = vld [vmem:[%s2980_s18 + $0x10] sm:$0xf] }
  0x5b   : > { %784 = vmatpush.bf16.msra.mxu1 %v2211_v20  ;;  %813 = vmatpush.bf16.msra.mxu2 %v2119_v21  ;;  %v2473_v60 = vld [vmem:[%s2985_s12 + $0x130] sm:$0xf0]  ;;  %v2159_v61 = vor.u32 %v2449_v58, %v2158_v57  ;;  %v2146_v0 = vld [vmem:[%s2985_s12 + $0x50] sm:$0xf]  ;;  %v2446_v1 = vld [vmem:[%s2985_s12 + $0x58] sm:$0xf0] }
  0x5c   : > { %842 = vmatpush.bf16.msra.mxu3 %v2215_v25  ;;  %v2255_v63 = vor.u32 %v2473_v60, %v2254_v59  ;;  %v2430_v2 = vld [vmem:[%s2980_s18 + $0x14] sm:$0xf0]  ;;  %v2242_v3 = vld [vmem:[%s2985_s12 + $0x110] sm:$0xf]  ;;  %v2470_v4 = vld [vmem:[%s2985_s12 + $0x118] sm:$0xf0]  ;;  %v2147_v7 = vor.u32 %v2446_v1, %v2146_v0 }
  0x5d   : > { %v2429_v5 = vld [vmem:[%s2980_s18 + $0x14] sm:$0xf]  ;;  %v2080_v6 = vld [vmem:[%s2980_s18 + $0x18] sm:$0xf0]  ;;  %v3100_v8 = vor.u32 %v2430_v2, %v2078_v62  ;;  %v2243_v9 = vor.u32 %v2470_v4, %v2242_v3  ;;  %v2134_v10 = vld [vmem:[%s2985_s12 + $0x38] sm:$0xf] }
  0x5e   : > { %756 = vmatpush.bf16.msra.mxu0 %v2103_v32  ;;  %v2443_v11 = vld [vmem:[%s2985_s12 + $0x40] sm:$0xf0]  ;;  %v3104_v12 = vor.u32 %v2429_v5, %v2080_v6  ;;  %v2230_v13 = vld [vmem:[%s2985_s12 + $0xf8] sm:$0xf]  ;;  %v2122_v17 = vld [vmem:[%s2985_s12 + $0x20] sm:$0xf] }
  0x5f   : > { %785 = vmatpush.bf16.msra.mxu1 %v2199_v36  ;;  %814 = vmatpush.bf16.msra.mxu2 %v2107_v37  ;;  %v2467_v14 = vld [vmem:[%s2985_s12 + $0x100] sm:$0xf0]  ;;  %v2135_v15 = vor.u32 %v2443_v11, %v2134_v10  ;;  %v2440_v18 = vld [vmem:[%s2985_s12 + $0x28] sm:$0xf0]  ;;  %v2218_v19 = vld [vmem:[%s2985_s12 + $0xe0] sm:$0xf] }
  0x60   : > { %843 = vmatpush.bf16.msra.mxu3 %v2203_v40  ;;  %v2231_v16 = vor.u32 %v2467_v14, %v2230_v13  ;;  %v2123_v20 = vor.u32 %v2440_v18, %v2122_v17  ;;  %v2464_v21 = vld [vmem:[%s2985_s12 + $0xe8] sm:$0xf0]  ;;  %v2110_v23 = vld [vmem:[%s2985_s12 + $0x8] sm:$0xf]  ;;  %v2437_v24 = vld [vmem:[%s2985_s12 + $0x10] sm:$0xf0] }
  0x61   : > { %757 = vmatmul.bf16.vlgmr.msra.gmra.mxu0 %v3072_v42  ;;  %v2219_v22 = vor.u32 %v2464_v21, %v2218_v19  ;;  %v2380_v25 = vld [vmem:[%s2959_s13 + $0xa8] sm:$0xf]  ;;  %v2206_v26 = vld [vmem:[%s2985_s12 + $0xc8] sm:$0xf]  ;;  %v2461_v27 = vld [vmem:[%s2985_s12 + $0xd0] sm:$0xf0]  ;;  %v2111_v30 = vor.u32 %v2437_v24, %v2110_v23 }
  0x62   : > { %865 = vmatpush.bf16.msrb.mxu0 %v2195_v41  ;;  %786 = vmatmul.bf16.vlgmr.msra.gmra.mxu1 %v3076_v46  ;;  %v2505_v28 = vld [vmem:[%s2959_s13 + $0xb0] sm:$0xf0]  ;;  %v2207_v31 = vor.u32 %v2461_v27, %v2206_v26  ;;  %v2086_v32 = vld [vmem:[%s2980_s18 + $0x20] sm:$0xf]  ;;  %v2432_v33 = vld [vmem:[%s2980_s18 + $0x24] sm:$0xf0] }
  0x63   : > { %894 = vmatpush.bf16.msrb.mxu1 %v2291_v43  ;;  %815 = vmatmul.bf16.vlgmr.msra.gmra.mxu2 %v3072_v42  ;;  %v3122_v29 = vor.u32 %v2505_v28, %v2380_v25  ;;  %v2431_v34 = vld [vmem:[%s2980_s18 + $0x24] sm:$0xf]  ;;  %v2088_v35 = vld [vmem:[%s2980_s18 + $0x28] sm:$0xf0]  ;;  %v3129_v36 = vor.u32 %v2432_v33, %v2086_v32  ;;  %v2368_v38 = vld [vmem:[%s2959_s13 + $0x90] sm:$0xf] }
  0x64   : > { %844 = vmatmul.bf16.vlgmr.msra.gmra.mxu3 %v3076_v46  ;;  %v3131_v37 = vor.u32 %v2431_v34, %v2088_v35  ;;  %v2502_v39 = vld [vmem:[%s2959_s13 + $0x98] sm:$0xf0]  ;;  %v2504_v40 = vld [vmem:[%s2959_s13 + $0xac] sm:$0xf]  ;;  %v2382_v43 = vld [vmem:[%s2959_s13 + $0xb4] sm:$0xf0] }
  0x65   : > { %1172 = vmatpush.bf16.msrb.mxu2 %v3122_v29  ;;  %v3140_v41 = vor.u32 %v2502_v39, %v2368_v38  ;;  %v2356_v44 = vld [vmem:[%s2959_s13 + $0x78] sm:$0xf]  ;;  %v2499_v45 = vld [vmem:[%s2959_s13 + $0x80] sm:$0xf0]  ;;  %v3145_v47 = vor.u32 %v2504_v40, %v2382_v43  ;;  %v2501_v48 = vld [vmem:[%s2959_s13 + $0x94] sm:$0xf] }
  0x66   : > { %866 = vmatpush.bf16.msrb.mxu0 %v2183_v49  ;;  %v2370_v49 = vld [vmem:[%s2959_s13 + $0x9c] sm:$0xf0]  ;;  %v2434_v53 = vld [vmem:[%s2980_s18 + $0x34] sm:$0xf0]  ;;  %v2433_v54 = vld [vmem:[%s2980_s18 + $0x34] sm:$0xf] }
  0x67   : > { %895 = vmatpush.bf16.msrb.mxu1 %v2279_v50  ;;  %v3150_v50 = vor.u32 %v2499_v45, %v2356_v44  ;;  %1186 = vmatpush.bf16.msrb.mxu3 %v3145_v47  ;;  %v3153_v51 = vor.u32 %v2501_v48, %v2370_v49  ;;  %v2094_v52 = vld [vmem:[%s2980_s18 + $0x30] sm:$0xf]  ;;  %v2496_v59 = vld [vmem:[%s2959_s13 + $0x68] sm:$0xf0]  ;;  %v2498_v60 = vld [vmem:[%s2959_s13 + $0x7c] sm:$0xf] }
  0x68   : > { %v2344_v58 = vld [vmem:[%s2959_s13 + $0x60] sm:$0xf]  ;;  %v2358_v62 = vld [vmem:[%s2959_s13 + $0x84] sm:$0xf0]  ;;  %v2493_v0 = vld [vmem:[%s2959_s13 + $0x50] sm:$0xf0] }
  0x69   : > { %1173 = vmatpush.bf16.msrb.mxu2 %v3140_v41  ;;  %v3179_v1 = vor.u32 %v2498_v60, %v2358_v62  ;;  %v2495_v2 = vld [vmem:[%s2959_s13 + $0x64] sm:$0xf]  ;;  %v2346_v3 = vld [vmem:[%s2959_s13 + $0x6c] sm:$0xf0]  ;;  %v2334_v11 = vld [vmem:[%s2959_s13 + $0x54] sm:$0xf0] }
  0x6a   : > { %867 = vmatpush.bf16.msrb.mxu0 %v2171_v55  ;;  %v2096_v55 = vld [vmem:[%s2980_s18 + $0x38] sm:$0xf0]  ;;  %v3187_v5 = vor.u32 %v2495_v2, %v2346_v3  ;;  %v2320_v6 = vld [vmem:[%s2959_s13 + $0x30] sm:$0xf]  ;;  %v2308_v13 = vld [vmem:[%s2959_s13 + $0x18] sm:$0xf] }
  0x6b   : > { %896 = vmatpush.bf16.msrb.mxu1 %v2267_v56  ;;  %1187 = vmatpush.bf16.msrb.mxu3 %v3153_v51  ;;  %v3163_v56 = vor.u32 %v2434_v53, %v2094_v52  ;;  %v3165_v57 = vor.u32 %v2433_v54, %v2096_v55  ;;  %v2487_v14 = vld [vmem:[%s2959_s13 + $0x20] sm:$0xf0]  ;;  %v2322_v17 = vld [vmem:[%s2959_s13 + $0x3c] sm:$0xf0]  ;;  %v2484_v21 = vld [vmem:[%s2959_s13 + $0x8] sm:$0xf0] }
  0x6c   : > { %v3208_v18 = vor.u32 %v2487_v14, %v2308_v13  ;;  %v3228_v24 = vld [vmem:[#allocation3] sm:$0xff]  ;;  %v3230_v25 = vld [vmem:[#allocation3 + $0x8] sm:$0xff]  ;;  %v2310_v28 = vld [vmem:[%s2959_s13 + $0x24] sm:$0xf0]  ;;  %s2507_s2 = smul.u32 72, %s2811_s24  ;;  %s2404_s10 = sshll.u32 %s2967_s28, 1 }
  0x6d   : > { %1174 = vmatpush.bf16.msrb.mxu2 %v3150_v50  ;;  %v3235_v26 = vpack.c.bf16 %v3230_v25, %v3228_v24  ;;  %v2486_v27 = vld [vmem:[%s2959_s13 + $0x1c] sm:$0xf]  ;;  %v2503_v32 = vld [vmem:[%s2959_s13 + $0xa0] sm:$0xf0]  ;;  %v2364_v35 = vld [vmem:[%s2959_s13 + $0x80] sm:$0xf] }
  0x6e   : > { %868 = vmatpush.bf16.msrb.mxu0 %v2159_v61  ;;  %v3174_v61 = vor.u32 %v2496_v59, %v2344_v58  ;;  %v2483_v33 = vld [vmem:[%s2959_s13 + $0x4] sm:$0xf]  ;;  %v2500_v38 = vld [vmem:[%s2959_s13 + $0x88] sm:$0xf0]  ;;  %v2352_v40 = vld [vmem:[%s2959_s13 + $0x68] sm:$0xf] }
  0x6f   : > { %897 = vmatpush.bf16.msrb.mxu1 %v2255_v63  ;;  %v2332_v63 = vld [vmem:[%s2959_s13 + $0x48] sm:$0xf]  ;;  %1188 = vmatpush.bf16.msrb.mxu3 %v3179_v1  ;;  %v2497_v43 = vld [vmem:[%s2959_s13 + $0x70] sm:$0xf0]  ;;  %v2340_v45 = vld [vmem:[%s2959_s13 + $0x50] sm:$0xf] }
  0x70   : > { %v3184_v4 = vor.u32 %v2493_v0, %v2332_v63  ;;  %v3264_v44 = vor.u32 %v2497_v43, %v2352_v40  ;;  %v2494_v48 = vld [vmem:[%s2959_s13 + $0x58] sm:$0xf0]  ;;  %v2328_v52 = vld [vmem:[%s2959_s13 + $0x38] sm:$0xf]  ;;  %v2491_v53 = vld [vmem:[%s2959_s13 + $0x40] sm:$0xf0] }
  0x71   : > { %762 = vmatmul.bf16.gmra.mxu0 %v3100_v8  ;;  %1175 = vmatpush.bf16.msrb.mxu2 %v3174_v61  ;;  %v3276_v49 = vor.u32 %v2494_v48, %v2340_v45  ;;  %v3286_v54 = vor.u32 %v2491_v53, %v2328_v52  ;;  %v2488_v55 = vld [vmem:[%s2959_s13 + $0x28] sm:$0xf0]  ;;  %v2304_v58 = vld [vmem:[%s2959_s13 + $0x8] sm:$0xf]  ;;  %v2485_v59 = vld [vmem:[%s2959_s13 + $0x10] sm:$0xf0] }
  0x72   : > { %869 = vmatpush.bf16.msrb.mxu0 %v2147_v7  ;;  %791 = vmatmul.bf16.gmra.mxu1 %v3104_v12  ;;  %v2490_v7 = vld [vmem:[%s2959_s13 + $0x38] sm:$0xf0]  ;;  %v3302_v60 = vor.u32 %v2485_v59, %v2304_v58  ;;  %s3382_s22 = scalar_lea.vmem [#allocation2], %s2507_s2  ;;  %s2508_s23 = smul.u32 24, %s2811_s24 }
  0x73   : > { %898 = vmatpush.bf16.msrb.mxu1 %v2243_v9  ;;  %820 = vmatmul.bf16.gmra.mxu2 %v3100_v8  ;;  %v2492_v9 = vld [vmem:[%s2959_s13 + $0x4c] sm:$0xf]  ;;  %v3198_v10 = vor.u32 %v2490_v7, %v2320_v6  ;;  %s1644_s12 = smul.u32 3, %s2967_s28 }
  0x74   : > { %849 = vmatmul.bf16.gmra.mxu3 %v3104_v12  ;;  %s1312_s26 = scalar_lea.vmem %s2997_s9, %s2508_s23 [#allocation6]  ;;  %s2515_s23 = sshll.u32 (%p2941_p11), %s2973_s14, 4 }
  0x75   : > { %1176 = vmatpush.bf16.msrb.mxu2 %v3184_v4  ;;  %1189 = vmatpush.bf16.msrb.mxu3 %v3187_v5 }
  0x76   : > { %870 = vmatpush.bf16.msrb.mxu0 %v2135_v15  ;;  %v3203_v15 = vor.u32 %v2492_v9, %v2334_v11 }
  0x77   : > { %899 = vmatpush.bf16.msrb.mxu1 %v2231_v16  ;;  %v2489_v16 = vld [vmem:[%s2959_s13 + $0x34] sm:$0xf] }
  0x78   : > { %v3213_v19 = vor.u32 %v2489_v16, %v2322_v17 }
  0x79   : > { %1177 = vmatpush.bf16.msrb.mxu2 %v3198_v10  ;;  %1190 = vmatpush.bf16.msrb.mxu3 %v3203_v15 }
  0x7a   : > { %871 = vmatpush.bf16.msrb.mxu0 %v2123_v20  ;;  %v2296_v20 = vld [vmem:[%s2959_s13] sm:$0xf] }
  0x7b   : > { %900 = vmatpush.bf16.msrb.mxu1 %v2219_v22  ;;  %v3222_v23 = vor.u32 %v2484_v21, %v2296_v20 }
  0x7d   : > { %1178 = vmatpush.bf16.msrb.mxu2 %v3208_v18  ;;  %1191 = vmatpush.bf16.msrb.mxu3 %v3213_v19 }
  0x7e   : > { %872 = vmatpush.bf16.msrb.mxu0 %v2111_v30  ;;  %v3240_v30 = vor.u32 %v2486_v27, %v2310_v28 }
  0x7f   : > { %901 = vmatpush.bf16.msrb.mxu1 %v2207_v31  ;;  %v2376_v31 = vld [vmem:[%s2959_s13 + $0x98] sm:$0xf] }
  0x80   : > { %v3246_v34 = vor.u32 %v2503_v32, %v2376_v31 }
  0x81   : > { %767 = vmatmul.bf16.gmra.mxu0 %v3129_v36  ;;  %1179 = vmatpush.bf16.msrb.mxu2 %v3222_v23 }
  0x82   : > { %796 = vmatmul.bf16.gmra.mxu1 %v3131_v37  ;;  %1351 = vmatpush.bf16.msra.mxu0 %v3145_v47 }
  0x83   : > { %825 = vmatmul.bf16.gmra.mxu2 %v3129_v36  ;;  %1192 = vmatpush.bf16.msrb.mxu3 %v3240_v30 }
  0x84   : > { %854 = vmatmul.bf16.gmra.mxu3 %v3131_v37 }
  0x86   : > { %1352 = vmatpush.bf16.msra.mxu0 %v3153_v51 }
  0x8a   : > { %1353 = vmatpush.bf16.msra.mxu0 %v3179_v1 }
  0x8e   : > { %1354 = vmatpush.bf16.msra.mxu0 %v3187_v5 }
  0x91   : > { %772 = vmatmul.bf16.gmra.mxu0 %v3163_v56 }
  0x92   : > { %801 = vmatmul.bf16.gmra.mxu1 %v3165_v57  ;;  %1355 = vmatpush.bf16.msra.mxu0 %v3203_v15 }
  0x93   : > { %830 = vmatmul.bf16.gmra.mxu2 %v3163_v56 }
  0x94   : > { %859 = vmatmul.bf16.gmra.mxu3 %v3165_v57 }
  0x96   : > { %1356 = vmatpush.bf16.msra.mxu0 %v3213_v19 }
  0x9a   : > { %1357 = vmatpush.bf16.msra.mxu0 %v3240_v30 }
  0xa1   : > { %873 = vmatmul.bf16.vlgmr.msrb.gmra.mxu0 %v3072_v42  ;;  %v2388_v42 = vld [vmem:[%s2959_s13 + $0xb0] sm:$0xf] }
  0xa2   : > { %902 = vmatmul.bf16.vlgmr.msrb.gmra.mxu1 %v3076_v46  ;;  %v2506_v46 = vld [vmem:[%s2959_s13 + $0xb8] sm:$0xf0] }
  0xa3   : > { %v3217_v22 = vor.u32 %v2506_v46, %v2388_v42  ;;  %1180 = vmatmul.bf16.vlgmr.msrb.gmra.mxu2 %v3235_v26 }
  0xa5   : > { %1365 = vmatpush.bf16.msra.mxu1 %v3217_v22  ;;  %1200 = vmatpush.bf16.msra.mxu2 %v3217_v22 }
  0xa9   : > { %1201 = vmatpush.bf16.msra.mxu2 %v3246_v34  ;;  %1366 = vmatpush.bf16.msra.mxu1 %v3246_v34 }
  0xb1   : > { %878 = vmatmul.bf16.gmra.mxu0 %v3100_v8  ;;  %v2298_v8 = vld [vmem:[%s2959_s13 + $0xc] sm:$0xf0] }
  0xb2   : > { %907 = vmatmul.bf16.gmra.mxu1 %v3104_v12  ;;  %v3252_v39 = vor.u32 %v2483_v33, %v2298_v8  ;;  %v3256_v12 = vor.u32 %v2500_v38, %v2364_v35 }
  0xb4   : > { %1193 = vmatpush.bf16.msrb.mxu3 %v3252_v39  ;;  %1358 = vmatpush.bf16.msra.mxu0 %v3252_v39 }
  0xb5   : > { %1202 = vmatpush.bf16.msra.mxu2 %v3256_v12  ;;  %1367 = vmatpush.bf16.msra.mxu1 %v3256_v12 }
  0xb7   : > { %1194 = vmatmul.bf16.vlgmr.msrb.gmra.mxu3 %v3235_v26 }
  0xb8   : > { %1337 = vmatpush.bf16.msra.mxu3 %v3122_v29  ;;  %1529 = vmatpush.bf16.msrb.mxu0 %v3217_v22 }
  0xb9   : > { %1203 = vmatpush.bf16.msra.mxu2 %v3264_v44  ;;  %1368 = vmatpush.bf16.msra.mxu1 %v3264_v44 }
  0xbc   : > { %1338 = vmatpush.bf16.msra.mxu3 %v3140_v41  ;;  %1530 = vmatpush.bf16.msrb.mxu0 %v3246_v34 }
  0xbd   : > { %1204 = vmatpush.bf16.msra.mxu2 %v3276_v49  ;;  %1369 = vmatpush.bf16.msra.mxu1 %v3276_v49 }
  0xc0   : > { %1339 = vmatpush.bf16.msra.mxu3 %v3150_v50  ;;  %1531 = vmatpush.bf16.msrb.mxu0 %v3256_v12 }
  0xc1   : > { %883 = vmatmul.bf16.gmra.mxu0 %v3129_v36  ;;  %1205 = vmatpush.bf16.msra.mxu2 %v3286_v54  ;;  %v2316_v36 = vld [vmem:[%s2959_s13 + $0x20] sm:$0xf] }
  0xc2   : > { %912 = vmatmul.bf16.gmra.mxu1 %v3131_v37  ;;  %v3294_v37 = vor.u32 %v2488_v55, %v2316_v36 }
  0xc3   : > { %1370 = vmatpush.bf16.msra.mxu1 %v3286_v54 }
  0xc4   : > { %1340 = vmatpush.bf16.msra.mxu3 %v3174_v61  ;;  %1532 = vmatpush.bf16.msrb.mxu0 %v3264_v44 }
  0xc5   : > { %1206 = vmatpush.bf16.msra.mxu2 %v3294_v37 }
  0xc7   : > { %1371 = vmatpush.bf16.msra.mxu1 %v3294_v37 }
  0xc8   : > { %1341 = vmatpush.bf16.msra.mxu3 %v3184_v4  ;;  %1533 = vmatpush.bf16.msrb.mxu0 %v3276_v49 }
  0xc9   : > { %1207 = vmatpush.bf16.msra.mxu2 %v3302_v60 }
  0xcb   : > { %1372 = vmatpush.bf16.msra.mxu1 %v3302_v60 }
  0xcc   : > { %1342 = vmatpush.bf16.msra.mxu3 %v3198_v10  ;;  %1534 = vmatpush.bf16.msrb.mxu0 %v3286_v54 }
  0xcd   : > { %1501 = vmatpush.bf16.msrb.mxu2 %v3122_v29 }
  0xce   : > { %1208 = vmatmul.bf16.vlgmr.msra.gmra.mxu2 %v3235_v26 }
  0xcf   : > { %1665 = vmatpush.bf16.msrb.mxu1 %v3122_v29 }
  0xd0   : > { %1343 = vmatpush.bf16.msra.mxu3 %v3208_v18  ;;  %1535 = vmatpush.bf16.msrb.mxu0 %v3294_v37 }
  0xd1   : > { %888 = vmatmul.bf16.gmra.mxu0 %v3163_v56  ;;  %1502 = vmatpush.bf16.msrb.mxu2 %v3140_v41 }
  0xd2   : > { %917 = vmatmul.bf16.gmra.mxu1 %v3165_v57 }
  0xd3   : > { %1666 = vmatpush.bf16.msrb.mxu1 %v3140_v41  ;;  %v3329_v41 = vld [vmem:[%s2990_s30] sm:$0x7]  ;;  %s3437_s30 = smul.u32 3, %s2811_s24 }
  0xd4   : > { %1344 = vmatpush.bf16.msra.mxu3 %v3222_v23  ;;  %1536 = vmatpush.bf16.msrb.mxu0 %v3302_v60  ;;  %v3335_v57 = vperm.slane %v3329_v41, 0  ;;  %v3338_v62 = vperm.slane %v3329_v41, 1 }
  0xd5   : > { %1503 = vmatpush.bf16.msrb.mxu2 %v3150_v50  ;;  %s3441_s16 = sadd.s32 %s3437_s30, %s2967_s28  ;;  %s3506_s29 = sadd.s32 %s2404_s10, %s3437_s30 }
  0xd6   : > { %s2509_s13 = smul.u32 24, %s3441_s16  ;;  %s2510_s4 = sshll.u32 %s3441_s16, 3 }
  0xd7   : > { %1667 = vmatpush.bf16.msrb.mxu1 %v3150_v50  ;;  %s1477_s11 = scalar_lea.vmem %s2997_s9, %s2510_s4 [#allocation6]  ;;  %s2511_s7 = smul.u32 24, %s3506_s29 }
  0xd8   : > { %1515 = vmatpush.bf16.msrb.mxu3 %v3145_v47  ;;  %s3444_s15 = scalar_lea.vmem [#allocation2], %s2509_s13  ;;  %s2512_s20 = sshll.u32 %s3506_s29, 3 }
  0xd9   : > { %1504 = vmatpush.bf16.msrb.mxu2 %v3174_v61  ;;  %s3509_s18 = scalar_lea.vmem [#allocation2], %s2511_s7  ;;  %s1641_s25 = scalar_lea.vmem %s2997_s9, %s2512_s20 [#allocation6] }
  0xda   : > { %s3564_s5 = sadd.s32 %s1644_s12, %s3437_s30 }
  0xdb   : > { %1668 = vmatpush.bf16.msrb.mxu1 %v3174_v61  ;;  %s2514_s28 = sshll.u32 %s3564_s5, 3 }
  0xdc   : > { %1516 = vmatpush.bf16.msrb.mxu3 %v3153_v51 }
  0xdd   : > { %1505 = vmatpush.bf16.msrb.mxu2 %v3184_v4 }
  0xde   : > { %v758_v29 = vpop.f32.mrf.mxu0 }
  0xdf   : > { %v787_v56 = vpop.f32.mrf.mxu1  ;;  %1669 = vmatpush.bf16.msrb.mxu1 %v3184_v4 }
  0xe0   : > { %1517 = vmatpush.bf16.msrb.mxu3 %v3179_v1  ;;  %v788_v50 = vadd.f32 %v787_v56, %v758_v29 }
  0xe1   : > { %1506 = vmatpush.bf16.msrb.mxu2 %v3198_v10 }
  0xe2   : > { %v931_v4 = vadd.f32 %v3335_v57, %v788_v50 }
  0xe3   : > { %1670 = vmatpush.bf16.msrb.mxu1 %v3198_v10 }
  0xe4   : > { %1518 = vmatpush.bf16.msrb.mxu3 %v3187_v5 }
  0xe5   : > { %1507 = vmatpush.bf16.msrb.mxu2 %v3208_v18 }
  0xe6   : > { %v816_v61 = vpop.f32.mrf.mxu2  ;;  %v760_v0 = vpop.f32.mrf.mxu0 }
  0xe7   : > { %v845_v63 = vpop.f32.mrf.mxu3  ;;  %v789_v3 = vpop.f32.mrf.mxu1  ;;  %1671 = vmatpush.bf16.msrb.mxu1 %v3208_v18 }
  0xe8   : > { %v846_v2 = vadd.f32 %v845_v63, %v816_v61  ;;  %1519 = vmatpush.bf16.msrb.mxu3 %v3203_v15  ;;  %v790_v9 = vadd.f32 %v789_v3, %v760_v0 }
  0xe9   : > { %1508 = vmatpush.bf16.msrb.mxu2 %v3222_v23 }
  0xea   : > { %v932_v6 = vadd.f32 %v3338_v62, %v846_v2  ;;  %v934_v17 = vadd.f32 %v3335_v57, %v790_v9 }
  0xeb   : > { %1672 = vmatpush.bf16.msrb.mxu1 %v3222_v23 }
  0xec   : > { %v955_v7 = vpack.c.bf16 %v932_v6, %v931_v4  ;;  %1520 = vmatpush.bf16.msrb.mxu3 %v3213_v19 }
  0xed   : > { %1679 = vmatpush.bf16.msra.mxu2 %v3145_v47 }
  0xee   : > { %971 = vst [vmem:[#allocation2] sm:$0xff] %v955_v7  ;;  %v818_v10 = vpop.f32.mrf.mxu2  ;;  %v763_v13 = vpop.f32.mrf.mxu0 }
  0xef   : > { %v847_v11 = vpop.f32.mrf.mxu3  ;;  %v792_v16 = vpop.f32.mrf.mxu1 }
  0xf0   : > { %v848_v14 = vadd.f32 %v847_v11, %v818_v10  ;;  %1521 = vmatpush.bf16.msrb.mxu3 %v3240_v30  ;;  %v793_v47 = vadd.f32 %v792_v16, %v763_v13 }
  0xf1   : > { %1680 = vmatpush.bf16.msra.mxu2 %v3153_v51 }
  0xf2   : > { %v935_v18 = vadd.f32 %v3338_v62, %v848_v14  ;;  %v937_v51 = vadd.f32 %v3335_v57, %v793_v47 }
  0xf4   : > { %v957_v42 = vpack.c.bf16 %v935_v18, %v934_v17  ;;  %1522 = vmatpush.bf16.msrb.mxu3 %v3252_v39  ;;  %v927_v18 = vperm.slane %v3329_v41, 2 }
  0xf5   : > { %1681 = vmatpush.bf16.msra.mxu2 %v3179_v1 }
  0xf6   : > { %973 = vst [vmem:[#allocation2 + $0xc] sm:$0xff] %v957_v42  ;;  %v821_v46 = vpop.f32.mrf.mxu2  ;;  %v765_v21 = vpop.f32.mrf.mxu0 }
  0xf7   : > { %v850_v20 = vpop.f32.mrf.mxu3  ;;  %v794_v26 = vpop.f32.mrf.mxu1 }
  0xf8   : > { %v851_v23 = vadd.f32 %v850_v20, %v821_v46  ;;  %v795_v31 = vadd.f32 %v794_v26, %v765_v21 }
  0xf9   : > { %1682 = vmatpush.bf16.msra.mxu2 %v3187_v5 }
  0xfa   : > { %v938_v27 = vadd.f32 %v3338_v62, %v851_v23  ;;  %v940_v38 = vadd.f32 %v3335_v57, %v795_v31 }
  0xfc   : > { %v959_v28 = vpack.c.bf16 %v938_v27, %v937_v51 }
  0xfd   : > { %1683 = vmatpush.bf16.msra.mxu2 %v3203_v15 }
  0xfe   : > { %975 = vst [vmem:[#allocation2 + $0x18] sm:$0xff] %v959_v28  ;;  %v823_v32 = vpop.f32.mrf.mxu2  ;;  %v768_v33 = vpop.f32.mrf.mxu0 }
  0xff   : > { %v852_v1 = vpop.f32.mrf.mxu3  ;;  %v797_v35 = vpop.f32.mrf.mxu1 }
 0x100   : > { %v853_v8 = vadd.f32 %v852_v1, %v823_v32  ;;  %v798_v43 = vadd.f32 %v797_v35, %v768_v33 }
 0x101   : > { %1684 = vmatpush.bf16.msra.mxu2 %v3213_v19 }
 0x102   : > { %v941_v5 = vadd.f32 %v3338_v62, %v853_v8  ;;  %v943_v36 = vadd.f32 %v3335_v57, %v798_v43 }
 0x104   : > { %v961_v40 = vpack.c.bf16 %v941_v5, %v940_v38 }
 0x105   : > { %1685 = vmatpush.bf16.msra.mxu2 %v3240_v30 }
 0x106   : > { %977 = vst [vmem:[#allocation2 + $0x24] sm:$0xff] %v961_v40  ;;  %v826_v45 = vpop.f32.mrf.mxu2  ;;  %v770_v48 = vpop.f32.mrf.mxu0 }
 0x107   : > { %v855_v15 = vpop.f32.mrf.mxu3  ;;  %v799_v53 = vpop.f32.mrf.mxu1 }
 0x108   : > { %v856_v52 = vadd.f32 %v855_v15, %v826_v45  ;;  %v800_v58 = vadd.f32 %v799_v53, %v770_v48 }
 0x109   : > { %1686 = vmatpush.bf16.msra.mxu2 %v3252_v39 }
 0x10a   : > { %v944_v19 = vadd.f32 %v3338_v62, %v856_v52  ;;  %v946_v61 = vadd.f32 %v3335_v57, %v800_v58 }
 0x10c   : > { %v963_v55 = vpack.c.bf16 %v944_v19, %v943_v36 }
 0x10e   : > { %979 = vst [vmem:[#allocation2 + $0x30] sm:$0xff] %v963_v55  ;;  %v828_v59 = vpop.f32.mrf.mxu2  ;;  %v773_v56 = vpop.f32.mrf.mxu0 }
 0x10f   : > { %v857_v29 = vpop.f32.mrf.mxu3  ;;  %v802_v50 = vpop.f32.mrf.mxu1 }
 0x110   : > { %v858_v30 = vadd.f32 %v857_v29, %v828_v59  ;;  %v803_v2 = vadd.f32 %v802_v50, %v773_v56 }
 0x112   : > { %v947_v63 = vadd.f32 %v3338_v62, %v858_v30  ;;  %v949_v9 = vadd.f32 %v3335_v57, %v803_v2 }
 0x114   : > { %v965_v0 = vpack.c.bf16 %v947_v63, %v946_v61 }
 0x116   : > { %981 = vst [vmem:[#allocation2 + $0x3c] sm:$0xff] %v965_v0  ;;  %v831_v39 = vpop.f32.mrf.mxu2  ;;  %v775_v4 = vpop.f32.mrf.mxu0 }
 0x117   : > { %v860_v3 = vpop.f32.mrf.mxu3  ;;  %v804_v7 = vpop.f32.mrf.mxu1 }
 0x118   : > { %v861_v6 = vadd.f32 %v860_v3, %v831_v39  ;;  %v805_v13 = vadd.f32 %v804_v7, %v775_v4  ;;  %v1019_v7 = vld [vmem:[%s2995_s17] sm:$0x7]  ;;  %s2513_s17 = smul.u32 24, %s3564_s5 }
 0x11a   : > { %v950_v10 = vadd.f32 %v3338_v62, %v861_v6  ;;  %v952_v20 = vadd.f32 %v3335_v57, %v805_v13  ;;  %s3567_s2 = scalar_lea.vmem [#allocation2], %s2513_s17 }
 0x11c   : > { %v967_v11 = vpack.c.bf16 %v950_v10, %v949_v9  ;;  %v3375_v9 = vperm.slane %v1019_v7, 1  ;;  %v3377_v10 = vperm.slane %v1019_v7, 0 }
 0x11e   : > { %983 = vst [vmem:[#allocation2 + $0x48] sm:$0xff] %v967_v11  ;;  %v833_v14 = vpop.f32.mrf.mxu2  ;;  %v874_v17 = vpop.f32.mrf.mxu0 }
 0x11f   : > { %v862_v16 = vpop.f32.mrf.mxu3  ;;  %v903_v47 = vpop.f32.mrf.mxu1 }
 0x120   : > { %v863_v42 = vadd.f32 %v862_v16, %v833_v14  ;;  %v904_v46 = vadd.f32 %v903_v47, %v874_v17 }
 0x122   : > { %v953_v21 = vadd.f32 %v3338_v62, %v863_v42  ;;  %v933_v23 = vadd.f32 %v927_v18, %v904_v46 }
 0x124   : > { %v969_v26 = vpack.c.bf16 %v953_v21, %v952_v20  ;;  %v956_v51 = vpack.c.bf16 %v933_v23, %v933_v23 }
 0x126   : > { %985 = vst [vmem:[#allocation2 + $0x54] sm:$0xff] %v969_v26  ;;  %v876_v27 = vpop.f32.mrf.mxu0  ;;  %v1181_v39 = vpop.f32.mrf.mxu2 }
 0x127   : > { %972 = vst [vmem:[#allocation2 + $0x8] sm:$0xf] %v956_v51  ;;  %v905_v28 = vpop.f32.mrf.mxu1  ;;  %v1182_v17 = vadd.f32 %v1181_v39, %v3377_v10 }
 0x128   : > { %v906_v31 = vadd.f32 %v905_v28, %v876_v27 }
 0x12a   : > { %v936_v32 = vadd.f32 %v927_v18, %v906_v31 }
 0x12c   : > { %v958_v1 = vpack.c.bf16 %v936_v32, %v936_v32 }
 0x12e   : > { %974 = vst [vmem:[#allocation2 + $0x14] sm:$0xf] %v958_v1  ;;  %v879_v33 = vpop.f32.mrf.mxu0  ;;  %v1183_v13 = vpop.f32.mrf.mxu2 }
 0x12f   : > { %v908_v41 = vpop.f32.mrf.mxu1  ;;  %v1184_v42 = vadd.f32 %v1183_v13, %v3377_v10 }
 0x130   : > { %v909_v8 = vadd.f32 %v908_v41, %v879_v33 }
 0x132   : > { %v939_v35 = vadd.f32 %v927_v18, %v909_v8 }
 0x134   : > { %v960_v38 = vpack.c.bf16 %v939_v35, %v939_v35 }
 0x136   : > { %976 = vst [vmem:[#allocation2 + $0x20] sm:$0xf] %v960_v38  ;;  %v881_v57 = vpop.f32.mrf.mxu0 }
 0x137   : > { %v910_v5 = vpop.f32.mrf.mxu1 }
 0x138   : > { %v911_v62 = vadd.f32 %v910_v5, %v881_v57 }
 0x13a   : > { %v942_v40 = vadd.f32 %v927_v18, %v911_v62  ;;  %v1195_v2 = vpop.f32.mrf.mxu3 }
 0x13b   : > { %v1196_v14 = vadd.f32 %v1195_v2, %v3375_v9 }
 0x13c   : > { %v962_v43 = vpack.c.bf16 %v942_v40, %v942_v40 }
 0x13e   : > { %978 = vst [vmem:[#allocation2 + $0x2c] sm:$0xf] %v962_v43  ;;  %v884_v45 = vpop.f32.mrf.mxu0 }
 0x13f   : > { %v913_v15 = vpop.f32.mrf.mxu1 }
 0x140   : > { %v914_v48 = vadd.f32 %v913_v15, %v884_v45  ;;  %v3393_v45 = vperm.slane %v1019_v7, 2 }
 0x142   : > { %v945_v52 = vadd.f32 %v927_v18, %v914_v48  ;;  %v1197_v11 = vpop.f32.mrf.mxu3 }
 0x143   : > { %v1198_v16 = vadd.f32 %v1197_v11, %v3375_v9 }
 0x144   : > { %v964_v53 = vpack.c.bf16 %v945_v52, %v945_v52 }
 0x146   : > { %980 = vst [vmem:[#allocation2 + $0x38] sm:$0xf] %v964_v53  ;;  %v886_v36 = vpop.f32.mrf.mxu0 }
 0x147   : > { %v915_v19 = vpop.f32.mrf.mxu1 }
 0x148   : > { %v916_v55 = vadd.f32 %v915_v19, %v886_v36 }
 0x14a   : > { %v948_v58 = vadd.f32 %v927_v18, %v916_v55 }
 0x14c   : > { %v966_v59 = vpack.c.bf16 %v948_v58, %v948_v58 }
 0x14e   : > { %982 = vst [vmem:[#allocation2 + $0x44] sm:$0xf] %v966_v59  ;;  %v889_v29 = vpop.f32.mrf.mxu0 }
 0x14f   : > { %v918_v56 = vpop.f32.mrf.mxu1 }
 0x150   : > { %v919_v30 = vadd.f32 %v918_v56, %v889_v29 }
 0x151   : > { %v1209_v41 = vpop.f32.mrf.mxu2 }
 0x152   : > { %v951_v50 = vadd.f32 %v927_v18, %v919_v30  ;;  %v1210_v55 = vadd.f32 %v1209_v41, %v3393_v45 }
 0x154   : > { %v968_v61 = vpack.c.bf16 %v951_v50, %v951_v50 }
 0x156   : > { %984 = vst [vmem:[#allocation2 + $0x50] sm:$0xf] %v968_v61  ;;  %v891_v63 = vpop.f32.mrf.mxu0 }
 0x157   : > { %v920_v0 = vpop.f32.mrf.mxu1 }
 0x158   : > { %v921_v3 = vadd.f32 %v920_v0, %v891_v63 }
 0x159   : > { %v1211_v15 = vpop.f32.mrf.mxu2 }
 0x15a   : > { %v954_v4 = vadd.f32 %v927_v18, %v921_v3  ;;  %v1212_v59 = vadd.f32 %v1211_v15, %v3393_v45 }
 0x15c   : > { %v970_v6 = vpack.c.bf16 %v954_v4, %v954_v4 }
 0x15e   : > { %986 = vst [vmem:[#allocation2 + $0x5c] sm:$0xf] %v970_v6 }
 0x165   : > { %v1028_v18 = vld [vmem:[%s3382_s22 + $0xc] sm:$0xff]  ;;  %v1026_v47 = vld [vmem:[%s3382_s22] sm:$0xff]  ;;  %v1027_v52 = vld [vmem:[%s3382_s22 + $0x8] sm:$0xf] }
 0x166   : > { %v1033_v46 = vunpack.c.l.bf16 %v1028_v18  ;;  %v1030_v20 = vunpack.c.l.bf16 %v1026_v47  ;;  %v1031_v21 = vunpack.c.h.bf16 %v1026_v47  ;;  %v1034_v23 = vunpack.c.h.bf16 %v1028_v18  ;;  %v1029_v50 = vld [vmem:[%s3382_s22 + $0x14] sm:$0xf]  ;;  %s1805_s22 = scalar_lea.vmem %s2997_s9, %s2514_s28 [#allocation6] }
 0x167   : > { %v1032_v30 = vunpack.c.l.bf16 %v1027_v52 }
 0x168   : > { %v1215_v26 = vadd.f32 %v1184_v42, %v1033_v46  ;;  %v1214_v51 = vadd.f32 %v1182_v17, %v1030_v20  ;;  %v1254_v27 = vadd.f32 %v1196_v14, %v1031_v21  ;;  %v1255_v28 = vadd.f32 %v1198_v16, %v1034_v23 }
 0x169   : > { %v1035_v14 = vunpack.c.l.bf16 %v1029_v50 }
 0x16a   : > { %v2391_v31 = vmul.f32 -1.442695, %v1215_v26  ;;  %v2390_v32 = vmul.f32 -1.442695, %v1214_v51  ;;  %v2392_v1 = vmul.f32 -1.442695, %v1254_v27 }
 0x16b   : > { %v2393_v33 = vmul.f32 -1.442695, %v1255_v28 }
 0x16c   : > { %2631 = vpow2.f32 %v2391_v31 }
 0x16d   : > { %2633 = vpow2.f32 %v2390_v32 }
 0x16e   : > { %2635 = vpow2.f32 %v2392_v1 }
 0x16f   : > { %2637 = vpow2.f32 %v2393_v33 }
 0x172   : > { %v2632_v8 = vpop.eup %2631 }
 0x173   : > { %v2634_v35 = vpop.eup %2633  ;;  %v1223_v38 = vadd.f32 1.0, %v2632_v8 }
 0x174   : > { %v2636_v57 = vpop.eup %2635  ;;  %v1222_v5 = vadd.f32 1.0, %v2634_v35 }
 0x175   : > { %v2638_v62 = vpop.eup %2637  ;;  %2639 = vrcp.f32 %v1223_v38  ;;  %v3387_v40 = vadd.f32 1.0, %v2636_v57  ;;  %v1248_v63 = vand.u32 2147483647, %v1223_v38  ;;  %v1250_v3 = vand.u32 2147483648, %v1223_v38 }
 0x176   : > { %2641 = vrcp.f32 %v1222_v5  ;;  %v3389_v43 = vadd.f32 1.0, %v2638_v62  ;;  %v1233_v39 = vand.u32 2147483647, %v1222_v5  ;;  %v1235_v6 = vand.u32 2147483648, %v1222_v5 }
 0x177   : > { %2643 = vrcp.f32 %v3387_v40  ;;  %vm1229_vm2 = vweird.f32 %v1222_v5  ;;  %vm1244_vm3 = vweird.f32 %v1223_v38  ;;  %v1251_v46 = vor.u32 1.1754944e-38, %v1250_v3 }
 0x178   : > { %2645 = vrcp.f32 %v3389_v43  ;;  %v1290_v42 = vand.u32 2147483648, %v3389_v43  ;;  %vm1234_vm6 = vcmp.eq.f32.partialorder %v1233_v39, 8.507059e+37  ;;  %v1236_v20 = vor.u32 1.1754944e-38, %v1235_v6 }
 0x179   : > { %vm1249_vm7 = vcmp.eq.f32.partialorder %v1248_v63, 8.507059e+37  ;;  %v1275_v32 = vand.u32 2147483648, %v3387_v40  ;;  %vm1284_vm10 = vweird.f32 %v3389_v43  ;;  %v1288_v33 = vand.u32 2147483647, %v3389_v43 }
 0x17a   : > { %vm1269_vm11 = vweird.f32 %v3387_v40  ;;  %v1273_v41 = vand.u32 2147483647, %v3387_v40  ;;  %v1291_v57 = vor.u32 1.1754944e-38, %v1290_v42 }
 0x17b   : > { %v2640_v48 = vpop.eup %2639  ;;  %v1276_v62 = vor.u32 1.1754944e-38, %v1275_v32  ;;  %vm1289_vm14 = vcmp.eq.f32.partialorder %v1288_v33, 8.507059e+37 }
 0x17c   : > { %v2642_v53 = vpop.eup %2641  ;;  %v1240_v36 = vmul.f32 %v2640_v48, %v1223_v38  ;;  %vm1245_vm0 = vweird.f32 %v2640_v48  ;;  %vm1274_vm15 = vcmp.eq.f32.partialorder %v1273_v41, 8.507059e+37 }
 0x17d   : > { %v3396_v19 = vpop.eup %2643  ;;  %v1225_v58 = vmul.f32 %v2642_v53, %v1222_v5  ;;  %vm1230_vm1 = vweird.f32 %v2642_v53  ;;  %vm1246_vm4 = vmor %vm1244_vm3, %vm1245_vm0 }
 0x17e   : > { %v2646_v29 = vpop.eup %2645  ;;  %v1265_v56 = vmul.f32 %v3396_v19, %v3387_v40  ;;  %v1241_v61 = vsub.f32 1.0, %v1240_v36  ;;  %vm1231_vm5 = vmor %vm1229_vm2, %vm1230_vm1  ;;  %vm1270_vm9 = vweird.f32 %v3396_v19 }
 0x17f   : > { %v1280_v0 = vmul.f32 %v2646_v29, %v3389_v43  ;;  %v1226_v2 = vsub.f32 1.0, %v1225_v58  ;;  %vm1285_vm8 = vweird.f32 %v2646_v29  ;;  %vm1271_vm13 = vmor %vm1269_vm11, %vm1270_vm9 }
 0x180   : > { %v1266_v4 = vsub.f32 1.0, %v1265_v56  ;;  %v1242_v7 = vmul.f32 %v2640_v48, %v1241_v61  ;;  %vm1286_vm12 = vmor %vm1284_vm10, %vm1285_vm8 }
 0x181   : > { %v1281_v11 = vsub.f32 1.0, %v1280_v0  ;;  %v1227_v13 = vmul.f32 %v2642_v53, %v1226_v2 }
 0x182   : > { %v1267_v16 = vmul.f32 %v3396_v19, %v1266_v4  ;;  %v1243_v17 = vadd.f32 %v2640_v48, %v1242_v7 }
 0x183   : > { %v1282_v18 = vmul.f32 %v2646_v29, %v1281_v11  ;;  %v1228_v47 = vadd.f32 %v2642_v53, %v1227_v13 }
 0x184   : > { %v1247_v21 = vsel %vm1246_vm4, %v2640_v48, %v1243_v17  ;;  %v1268_v28 = vadd.f32 %v3396_v19, %v1267_v16 }
 0x185   : > { %v1232_v23 = vsel %vm1231_vm5, %v2642_v53, %v1228_v47  ;;  %v1252_v26 = vsel %vm1249_vm7, %v1251_v46, %v1247_v21  ;;  %v1283_v51 = vadd.f32 %v2646_v29, %v1282_v18 }
 0x186   : > { %v1237_v27 = vsel %vm1234_vm6, %v1236_v20, %v1232_v23  ;;  %v1295_v31 = vmul.f32 %v1252_v26, %v1212_v59  ;;  %v1272_v5 = vsel %vm1271_vm13, %v3396_v19, %v1268_v28 }
 0x187   : > { %v1294_v1 = vmul.f32 %v1237_v27, %v1210_v55  ;;  %v1287_v38 = vsel %vm1286_vm12, %v2646_v29, %v1283_v51  ;;  %v1277_v15 = vsel %vm1274_vm15, %v1276_v62, %v1272_v5 }
 0x188   : > { %v1297_v8 = vadd.f32 %v1295_v31, %v1035_v14  ;;  %v1292_v43 = vsel %vm1289_vm14, %v1291_v57, %v1287_v38  ;;  %v1300_v53 = vsub.f32 1.0, %v1277_v15  ;;  %v1304_v59 = vmul.f32 %v1277_v15, %v3228_v24 }
 0x189   : > { %v1296_v35 = vadd.f32 %v1294_v1, %v1032_v30  ;;  %v1301_v48 = vsub.f32 1.0, %v1292_v43  ;;  %v1305_v55 = vmul.f32 %v1292_v43, %v3230_v25 }
 0x18a   : > { %2647 = vtanh.f32 %v1297_v8 }
 0x18b   : > { %2649 = vtanh.f32 %v1296_v35 }
 0x190   : > { %v2648_v52 = vpop.eup %2647 }
 0x191   : > { %v2650_v40 = vpop.eup %2649  ;;  %v1303_v36 = vmul.f32 %v2648_v52, %v1301_v48  ;;  %v1322_v48 = vld [vmem:[%s3444_s15 + $0x8] sm:$0xf] }
 0x192   : > { %v1302_v58 = vmul.f32 %v2650_v40, %v1300_v53 }
 0x193   : > { %v3417_v19 = vadd.f32 %v1305_v55, %v1303_v36 }
 0x194   : > { %v3419_v29 = vadd.f32 %v1304_v59, %v1302_v58  ;;  %v1327_v59 = vunpack.c.l.bf16 %v1322_v48 }
 0x195   : > { %v1309_v56 = vpack.c.bf16 %v3417_v19, %v3417_v19 }
 0x196   : > { %v2519_v30 = vpack.c.bf16 %v3417_v19, %v3419_v29  ;;  %v1308_v50 = vpack.c.bf16 %v3419_v29, %v3419_v29 }
 0x197   : > { %v1334_v25 = vunpack.c.l.b16 %v1309_v56 }
 0x198   : > { %2520 = vst [vmem:[%s1312_s26] sm:$0xff] %v2519_v30   ;;  %v1333_v61 = vunpack.c.l.b16 %v1308_v50  ;;  %s1823_s26 = sadd.s32 (%p2941_p11), %s2811_s24, %s2515_s23 }
 0x199   : > { %s2423_s30 = sshll.u32 (%p2941_p11), %s1823_s26, 2 }
 0x19a   : > { %v1335_v24 = vpack.c.b16 %v1334_v25, %v1333_v61 }
 0x19c   : > { %1345 = vmatmul.bf16.vlgmr.msra.gmra.mxu3 %v1335_v24  ;;  %1359 = vmatmul.bf16.vlgmr.msra.gmra.mxu0 %v1335_v24 }
 0x19d   : > { %1373 = vmatmul.bf16.vlgmr.msra.gmra.mxu1 %v1335_v24  ;;  %1693 = vmatpush.bf16.msra.mxu3 %v3217_v22  ;;  %v1321_v22 = vld [vmem:[%s3444_s15] sm:$0xff] }
 0x19e   : > { %v1325_v63 = vunpack.c.l.bf16 %v1321_v22 }
 0x1a1   : > { %1694 = vmatpush.bf16.msra.mxu3 %v3246_v34 }
 0x1a5   : > { %1695 = vmatpush.bf16.msra.mxu3 %v3256_v12  ;;  %v1326_v12 = vunpack.c.h.bf16 %v1321_v22 }
 0x1a9   : > { %1696 = vmatpush.bf16.msra.mxu3 %v3264_v44 }
 0x1ad   : > { %1697 = vmatpush.bf16.msra.mxu3 %v3276_v49 }
 0x1b1   : > { %1698 = vmatpush.bf16.msra.mxu3 %v3286_v54 }
 0x1b5   : > { %1699 = vmatpush.bf16.msra.mxu3 %v3294_v37 }
 0x1b9   : > { %1700 = vmatpush.bf16.msra.mxu3 %v3302_v60  ;;  %v1323_v60 = vld [vmem:[%s3444_s15 + $0xc] sm:$0xff] }
 0x1ba   : > { %v1329_v3 = vunpack.c.h.bf16 %v1323_v60  ;;  %v1328_v17 = vunpack.c.l.bf16 %v1323_v60  ;;  %v1324_v60 = vld [vmem:[%s3444_s15 + $0x14] sm:$0xf]  ;;  %s3664_s15 = sld [smem:[#allocation16_spill]] (%p2941_p11) }
 0x1c0   : > { %s1825_s8 = scalar_lea.vmem (%p2941_p11), %s3664_s15, %s2423_s30 }
 0x219   : > { %v1360_v34 = vpop.f32.mrf.mxu0 }
 0x21a   : > { %v1361_v44 = vadd.f32 %v1360_v34, %v3375_v9  ;;  %v1374_v8 = vpop.f32.mrf.mxu1 }
 0x21b   : > { %v1375_v53 = vadd.f32 %v1374_v8, %v3393_v45 }
 0x21c   : > { %v1419_v49 = vadd.f32 %v1361_v44, %v1326_v12 }
 0x21e   : > { %v2400_v54 = vmul.f32 -1.442695, %v1419_v49 }
 0x21f   : > { %v1346_v37 = vpop.f32.mrf.mxu3 }
 0x220   : > { %2651 = vpow2.f32 %v2400_v54  ;;  %v1347_v0 = vadd.f32 %v1346_v37, %v3377_v10 }
 0x221   : > { %v1362_v2 = vpop.f32.mrf.mxu0 }
 0x222   : > { %v1379_v39 = vadd.f32 %v1347_v0, %v1325_v63  ;;  %v1363_v4 = vadd.f32 %v1362_v2, %v3375_v9  ;;  %v1376_v49 = vpop.f32.mrf.mxu1 }
 0x224   : > { %v2398_v6 = vmul.f32 -1.442695, %v1379_v39  ;;  %v1420_v7 = vadd.f32 %v1363_v4, %v1329_v3  ;;  %v1377_v39 = vadd.f32 %v1376_v49, %v3393_v45 }
 0x226   : > { %v2652_v11 = vpop.eup %2651  ;;  %2653 = vpow2.f32 %v2398_v6  ;;  %v2401_v13 = vmul.f32 -1.442695, %v1420_v7 }
 0x227   : > { %v1348_v14 = vpop.f32.mrf.mxu3  ;;  %v3451_v16 = vadd.f32 1.0, %v2652_v11  ;;  %v1330_v11 = vunpack.c.l.bf16 %v1324_v60 }
 0x228   : > { %2655 = vpow2.f32 %v2401_v13  ;;  %v1349_v18 = vadd.f32 %v1348_v14, %v3377_v10 }
 0x229   : > { %2657 = vrcp.f32 %v3451_v16  ;;  %v1440_v25 = vand.u32 2147483648, %v3451_v16  ;;  %vm1434_vm6 = vweird.f32 %v3451_v16  ;;  %v1438_v12 = vand.u32 2147483647, %v3451_v16 }
 0x22a   : > { %v1380_v42 = vadd.f32 %v1349_v18, %v1328_v17 }
 0x22b   : > { %v1441_v2 = vor.u32 1.1754944e-38, %v1440_v25  ;;  %vm1439_vm11 = vcmp.eq.f32.partialorder %v1438_v12, 8.507059e+37 }
 0x22c   : > { %v2654_v47 = vpop.eup %2653  ;;  %v2399_v46 = vmul.f32 -1.442695, %v1380_v42 }
 0x22d   : > { %v1387_v20 = vadd.f32 1.0, %v2654_v47 }
 0x22e   : > { %v2656_v21 = vpop.eup %2655  ;;  %2659 = vpow2.f32 %v2399_v46 }
 0x22f   : > { %2661 = vrcp.f32 %v1387_v20  ;;  %v3455_v23 = vadd.f32 1.0, %v2656_v21  ;;  %v3457_v26 = vpop.eup %2657  ;;  %v1400_v35 = vand.u32 2147483648, %v1387_v20  ;;  %v1398_v57 = vand.u32 2147483647, %v1387_v20 }
 0x230   : > { %v1430_v28 = vmul.f32 %v3457_v26, %v3451_v16  ;;  %vm1394_vm1 = vweird.f32 %v1387_v20  ;;  %vm1435_vm4 = vweird.f32 %v3457_v26 }
 0x231   : > { %2663 = vrcp.f32 %v3455_v23  ;;  %v1401_v52 = vor.u32 1.1754944e-38, %v1400_v35  ;;  %vm1399_vm3 = vcmp.eq.f32.partialorder %v1398_v57, 8.507059e+37  ;;  %vm3475_vm7 = vmor %vm1434_vm6, %vm1435_vm4  ;;  %v1455_v7 = vand.u32 2147483648, %v3455_v23 }
 0x232   : > { %v1431_v41 = vsub.f32 1.0, %v1430_v28  ;;  %vm1449_vm13 = vweird.f32 %v3455_v23  ;;  %v1453_v16 = vand.u32 2147483647, %v3455_v23 }
 0x233   : > { %v1456_v46 = vor.u32 1.1754944e-38, %v1455_v7 }
 0x234   : > { %v2660_v51 = vpop.eup %2659  ;;  %v1432_v15 = vmul.f32 %v3457_v26, %v1431_v41  ;;  %vm1454_vm15 = vcmp.eq.f32.partialorder %v1453_v16, 8.507059e+37 }
 0x235   : > { %v2662_v27 = vpop.eup %2661  ;;  %v1388_v31 = vadd.f32 1.0, %v2660_v51 }
 0x236   : > { %v1390_v32 = vmul.f32 %v2662_v27, %v1387_v20  ;;  %vm1395_vm0 = vweird.f32 %v2662_v27  ;;  %v1433_v50 = vadd.f32 %v3457_v26, %v1432_v15 }
 0x237   : > { %2665 = vrcp.f32 %v1388_v31  ;;  %v3462_v1 = vpop.eup %2663  ;;  %vm1396_vm2 = vmor %vm1394_vm1, %vm1395_vm0  ;;  %v1415_v61 = vand.u32 2147483648, %v1388_v31  ;;  %v1413_v34 = vand.u32 2147483647, %v1388_v31  ;;  %vm1409_vm8 = vweird.f32 %v1388_v31 }
 0x238   : > { %v1391_v33 = vsub.f32 1.0, %v1390_v32  ;;  %v1445_v5 = vmul.f32 %v3462_v1, %v3455_v23  ;;  %v1437_v0 = vsel %vm3475_vm7, %v3457_v26, %v1433_v50  ;;  %vm1450_vm12 = vweird.f32 %v3462_v1 }
 0x239   : > { %v1416_v63 = vor.u32 1.1754944e-38, %v1415_v61  ;;  %vm1414_vm10 = vcmp.eq.f32.partialorder %v1413_v34, 8.507059e+37  ;;  %v1442_v14 = vsel %vm1439_vm11, %v1441_v2, %v1437_v0  ;;  %vm1451_vm14 = vmor %vm1449_vm13, %vm1450_vm12 }
 0x23a   : > { %v1392_v38 = vmul.f32 %v2662_v27, %v1391_v33  ;;  %v1446_v58 = vsub.f32 1.0, %v1445_v5  ;;  %v1465_v47 = vsub.f32 1.0, %v1442_v14  ;;  %v1469_v26 = vmul.f32 %v1442_v14, %v3419_v29 }
 0x23c   : > { %v1393_v62 = vadd.f32 %v2662_v27, %v1392_v38  ;;  %v1447_v44 = vmul.f32 %v3462_v1, %v1446_v58 }
 0x23d   : > { %v2666_v43 = vpop.eup %2665 }
 0x23e   : > { %v1397_v40 = vsel %vm1396_vm2, %v2662_v27, %v1393_v62  ;;  %v1405_v36 = vmul.f32 %v2666_v43, %v1388_v31  ;;  %vm1410_vm5 = vweird.f32 %v2666_v43  ;;  %v1448_v4 = vadd.f32 %v3462_v1, %v1447_v44 }
 0x23f   : > { %v1402_v55 = vsel %vm1399_vm3, %v1401_v52, %v1397_v40  ;;  %vm1411_vm9 = vmor %vm1409_vm8, %vm1410_vm5 }
 0x240   : > { %v1459_v56 = vmul.f32 %v1402_v55, %v1375_v53  ;;  %v1406_v30 = vsub.f32 1.0, %v1405_v36  ;;  %v1452_v42 = vsel %vm1451_vm14, %v3462_v1, %v1448_v4  ;;  %v1487_v36 = vld [vmem:[%s3509_s18 + $0xc] sm:$0xff] }
 0x241   : > { %v1457_v21 = vsel %vm1454_vm15, %v1456_v46, %v1452_v42 }
 0x242   : > { %v1461_v24 = vadd.f32 %v1459_v56, %v1327_v59  ;;  %v1407_v22 = vmul.f32 %v2666_v43, %v1406_v30  ;;  %v1466_v51 = vsub.f32 1.0, %v1457_v21  ;;  %v1470_v31 = vmul.f32 %v1457_v21, %v3417_v19  ;;  %v1485_v19 = vld [vmem:[%s3509_s18] sm:$0xff] }
 0x243   : > { %v1489_v5 = vunpack.c.l.bf16 %v1485_v19  ;;  %v1492_v59 = vunpack.c.l.bf16 %v1487_v36  ;;  %v1493_v30 = vunpack.c.h.bf16 %v1487_v36 }
 0x244   : > { %v1408_v37 = vadd.f32 %v2666_v43, %v1407_v22  ;;  %2667 = vtanh.f32 %v1461_v24 }
 0x246   : > { %v1412_v3 = vsel %vm1411_vm9, %v2666_v43, %v1408_v37  ;;  %v1490_v43 = vunpack.c.h.bf16 %v1485_v19 }
 0x247   : > { %v1417_v6 = vsel %vm1414_vm10, %v1416_v63, %v1412_v3 }
 0x248   : > { %v1460_v13 = vmul.f32 %v1417_v6, %v1377_v39 }
 0x24a   : > { %v2668_v17 = vpop.eup %2667  ;;  %v1462_v18 = vadd.f32 %v1460_v13, %v1330_v11 }
 0x24b   : > { %v1467_v20 = vmul.f32 %v2668_v17, %v1465_v47 }
 0x24c   : > { %2669 = vtanh.f32 %v1462_v18  ;;  %v1486_v18 = vld [vmem:[%s3509_s18 + $0x8] sm:$0xf] }
 0x24d   : > { %v3491_v27 = vadd.f32 %v1469_v26, %v1467_v20 }
 0x24f   : > { %v1473_v1 = vpack.c.bf16 %v3491_v27, %v3491_v27 }
 0x251   : > { %v1497_v41 = vunpack.c.l.b16 %v1473_v1 }
 0x252   : > { %v2670_v28 = vpop.eup %2669 }
 0x253   : > { %v1468_v23 = vmul.f32 %v2670_v28, %v1466_v51  ;;  %v1491_v28 = vunpack.c.l.bf16 %v1486_v18 }
 0x255   : > { %v3495_v32 = vadd.f32 %v1470_v31, %v1468_v23 }
 0x257   : > { %v1474_v33 = vpack.c.bf16 %v3495_v32, %v3495_v32  ;;  %v2524_v29 = vpack.c.bf16 %v3495_v32, %v3491_v27 }
 0x259   : > { %2525 = vst [vmem:[%s1477_s11] sm:$0xff] %v2524_v29   ;;  %v1498_v8 = vunpack.c.l.b16 %v1474_v33 }
 0x25b   : > { %v1499_v35 = vpack.c.b16 %v1498_v8, %v1497_v41 }
 0x25d   : > { %1509 = vmatmul.bf16.vlgmr.msrb.gmra.mxu2 %v1499_v35  ;;  %1523 = vmatmul.bf16.vlgmr.msrb.gmra.mxu3 %v1499_v35 }
 0x25e   : > { %1537 = vmatmul.bf16.vlgmr.msrb.gmra.mxu0 %v1499_v35 }
 0x2db   : > { %v1538_v6 = vpop.f32.mrf.mxu0 }
 0x2dc   : > { %v1539_v46 = vadd.f32 %v1538_v6, %v3393_v45 }
 0x2e0   : > { %v1510_v38 = vpop.f32.mrf.mxu2  ;;  %v1524_v57 = vpop.f32.mrf.mxu3 }
 0x2e1   : > { %v1511_v62 = vadd.f32 %v1510_v38, %v3377_v10  ;;  %v1525_v15 = vadd.f32 %v1524_v57, %v3375_v9 }
 0x2e3   : > { %v1543_v48 = vadd.f32 %v1511_v62, %v1489_v5  ;;  %v1583_v52 = vadd.f32 %v1525_v15, %v1490_v43  ;;  %v1540_v57 = vpop.f32.mrf.mxu0  ;;  %v1488_v15 = vld [vmem:[%s3509_s18 + $0x14] sm:$0xf] }
 0x2e4   : > { %v1541_v36 = vadd.f32 %v1540_v57, %v3393_v45 }
 0x2e5   : > { %v2406_v53 = vmul.f32 -1.442695, %v1543_v48  ;;  %v2408_v40 = vmul.f32 -1.442695, %v1583_v52 }
 0x2e7   : > { %2671 = vpow2.f32 %v2406_v53 }
 0x2e8   : > { %2673 = vpow2.f32 %v2408_v40  ;;  %v1512_v55 = vpop.f32.mrf.mxu2  ;;  %v1526_v58 = vpop.f32.mrf.mxu3 }
 0x2e9   : > { %v1513_v56 = vadd.f32 %v1512_v55, %v3377_v10  ;;  %v1527_v50 = vadd.f32 %v1526_v58, %v3375_v9 }
 0x2eb   : > { %v1544_v25 = vadd.f32 %v1513_v56, %v1492_v59  ;;  %v1584_v61 = vadd.f32 %v1527_v50, %v1493_v30  ;;  %v1494_v56 = vunpack.c.l.bf16 %v1488_v15 }
 0x2ed   : > { %v2672_v24 = vpop.eup %2671  ;;  %v2407_v22 = vmul.f32 -1.442695, %v1544_v25  ;;  %v2409_v44 = vmul.f32 -1.442695, %v1584_v61 }
 0x2ee   : > { %v2674_v34 = vpop.eup %2673  ;;  %v1551_v12 = vadd.f32 1.0, %v2672_v24 }
 0x2ef   : > { %v3517_v49 = vadd.f32 1.0, %v2674_v34  ;;  %2675 = vpow2.f32 %v2407_v22 }
 0x2f0   : > { %2677 = vrcp.f32 %v1551_v12  ;;  %v1564_v7 = vand.u32 2147483648, %v1551_v12  ;;  %v1562_v14 = vand.u32 2147483647, %v1551_v12  ;;  %vm1558_vm1 = vweird.f32 %v1551_v12 }
 0x2f1   : > { %2679 = vrcp.f32 %v3517_v49  ;;  %v1604_v31 = vand.u32 2147483648, %v3517_v49  ;;  %vm1598_vm6 = vweird.f32 %v3517_v49  ;;  %v1602_v38 = vand.u32 2147483647, %v3517_v49 }
 0x2f2   : > { %2681 = vpow2.f32 %v2409_v44  ;;  %v1565_v42 = vor.u32 1.1754944e-38, %v1564_v7  ;;  %vm1563_vm3 = vcmp.eq.f32.partialorder %v1562_v14, 8.507059e+37 }
 0x2f3   : > { %v1605_v40 = vor.u32 1.1754944e-38, %v1604_v31  ;;  %vm1603_vm11 = vcmp.eq.f32.partialorder %v1602_v38, 8.507059e+37 }
 0x2f5   : > { %v2676_v54 = vpop.eup %2675 }
 0x2f6   : > { %v2678_v37 = vpop.eup %2677  ;;  %v1552_v60 = vadd.f32 1.0, %v2676_v54 }
 0x2f7   : > { %v3520_v63 = vpop.eup %2679  ;;  %v1554_v0 = vmul.f32 %v2678_v37, %v1551_v12  ;;  %vm1559_vm0 = vweird.f32 %v2678_v37 }
 0x2f8   : > { %v2682_v2 = vpop.eup %2681  ;;  %v1594_v39 = vmul.f32 %v3520_v63, %v3517_v49  ;;  %2683 = vrcp.f32 %v1552_v60  ;;  %vm1560_vm2 = vmor %vm1558_vm1, %vm1559_vm0  ;;  %vm1599_vm4 = vweird.f32 %v3520_v63  ;;  %v1579_v29 = vand.u32 2147483648, %v1552_v60 }
 0x2f9   : > { %v1555_v3 = vsub.f32 1.0, %v1554_v0  ;;  %v3524_v4 = vadd.f32 1.0, %v2682_v2  ;;  %v1577_v19 = vand.u32 2147483647, %v1552_v60  ;;  %vm3536_vm7 = vmor %vm1598_vm6, %vm1599_vm4  ;;  %vm1573_vm8 = vweird.f32 %v1552_v60 }
 0x2fa   : > { %v1595_v11 = vsub.f32 1.0, %v1594_v39  ;;  %v1580_v48 = vor.u32 1.1754944e-38, %v1579_v29 }
 0x2fb   : > { %v1556_v13 = vmul.f32 %v2678_v37, %v1555_v3  ;;  %2685 = vrcp.f32 %v3524_v4  ;;  %vm1578_vm10 = vcmp.eq.f32.partialorder %v1577_v19, 8.507059e+37  ;;  %v1619_v50 = vand.u32 2147483648, %v3524_v4 }
 0x2fc   : > { %v1596_v47 = vmul.f32 %v3520_v63, %v1595_v11  ;;  %vm1613_vm13 = vweird.f32 %v3524_v4  ;;  %v1617_v61 = vand.u32 2147483647, %v3524_v4 }
 0x2fd   : > { %v1557_v16 = vadd.f32 %v2678_v37, %v1556_v13  ;;  %v1620_v44 = vor.u32 1.1754944e-38, %v1619_v50 }
 0x2fe   : > { %v2684_v17 = vpop.eup %2683  ;;  %v1597_v33 = vadd.f32 %v3520_v63, %v1596_v47  ;;  %vm1618_vm15 = vcmp.eq.f32.partialorder %v1617_v61, 8.507059e+37 }
 0x2ff   : > { %v1561_v20 = vsel %vm1560_vm2, %v2678_v37, %v1557_v16  ;;  %v1569_v21 = vmul.f32 %v2684_v17, %v1552_v60  ;;  %vm1574_vm5 = vweird.f32 %v2684_v17 }
 0x300   : > { %v1566_v26 = vsel %vm1563_vm3, %v1565_v42, %v1561_v20  ;;  %vm1575_vm9 = vmor %vm1573_vm8, %vm1574_vm5  ;;  %v1601_v53 = vsel %vm3536_vm7, %v3520_v63, %v1597_v33 }
 0x301   : > { %v2686_v51 = vpop.eup %2685  ;;  %v1623_v23 = vmul.f32 %v1566_v26, %v1539_v46  ;;  %v1570_v1 = vsub.f32 1.0, %v1569_v21  ;;  %v1606_v25 = vsel %vm1603_vm11, %v1605_v40, %v1601_v53  ;;  %v1651_v46 = vld [vmem:[%s3567_s2 + $0xc] sm:$0xff] }
 0x302   : > { %v1609_v41 = vmul.f32 %v2686_v51, %v3524_v4  ;;  %vm1614_vm12 = vweird.f32 %v2686_v51  ;;  %v1629_v12 = vsub.f32 1.0, %v1606_v25  ;;  %v1633_v37 = vmul.f32 %v1606_v25, %v3491_v27 }
 0x303   : > { %v1625_v8 = vadd.f32 %v1623_v23, %v1491_v28  ;;  %v1571_v35 = vmul.f32 %v2684_v17, %v1570_v1  ;;  %vm1615_vm14 = vmor %vm1613_vm13, %vm1614_vm12  ;;  %v1656_v28 = vunpack.c.l.bf16 %v1651_v46 }
 0x304   : > { %v1610_v5 = vsub.f32 1.0, %v1609_v41 }
 0x305   : > { %v1572_v43 = vadd.f32 %v2684_v17, %v1571_v35  ;;  %2687 = vtanh.f32 %v1625_v8  ;;  %v1657_v35 = vunpack.c.h.bf16 %v1651_v46 }
 0x306   : > { %v1611_v52 = vmul.f32 %v2686_v51, %v1610_v5 }
 0x307   : > { %v1576_v55 = vsel %vm1575_vm9, %v2684_v17, %v1572_v43 }
 0x308   : > { %v1581_v58 = vsel %vm1578_vm10, %v1580_v48, %v1576_v55  ;;  %v1612_v59 = vadd.f32 %v2686_v51, %v1611_v52 }
 0x309   : > { %v1624_v30 = vmul.f32 %v1581_v58, %v1541_v36 }
 0x30a   : > { %v1616_v34 = vsel %vm1615_vm14, %v2686_v51, %v1612_v59 }
 0x30b   : > { %v2688_v24 = vpop.eup %2687  ;;  %v1626_v22 = vadd.f32 %v1624_v30, %v1494_v56  ;;  %v1621_v54 = vsel %vm1618_vm15, %v1620_v44, %v1616_v34  ;;  %v1650_v30 = vld [vmem:[%s3567_s2 + $0x8] sm:$0xf] }
 0x30c   : > { %v1631_v49 = vmul.f32 %v2688_v24, %v1629_v12  ;;  %v1630_v60 = vsub.f32 1.0, %v1621_v54  ;;  %v1634_v39 = vmul.f32 %v1621_v54, %v3495_v32  ;;  %v1649_v32 = vld [vmem:[%s3567_s2] sm:$0xff]  ;;  %v1655_v12 = vunpack.c.l.bf16 %v1650_v30 }
 0x30d   : > { %2689 = vtanh.f32 %v1626_v22  ;;  %v1653_v16 = vunpack.c.l.bf16 %v1649_v32  ;;  %v1654_v20 = vunpack.c.h.bf16 %v1649_v32 }
 0x30e   : > { %v3549_v63 = vadd.f32 %v1633_v37, %v1631_v49 }
 0x310   : > { %v1637_v4 = vpack.c.bf16 %v3549_v63, %v3549_v63 }
 0x312   : > { %v1661_v7 = vunpack.c.l.b16 %v1637_v4 }
 0x313   : > { %v2690_v0 = vpop.eup %2689 }
 0x314   : > { %v1632_v2 = vmul.f32 %v2690_v0, %v1630_v60 }
 0x316   : > { %v3553_v3 = vadd.f32 %v1634_v39, %v1632_v2 }
 0x318   : > { %v1638_v6 = vpack.c.bf16 %v3553_v3, %v3553_v3  ;;  %v2529_v27 = vpack.c.bf16 %v3553_v3, %v3549_v63 }
 0x31a   : > { %2530 = vst [vmem:[%s1641_s25] sm:$0xff] %v2529_v27   ;;  %v1662_v11 = vunpack.c.l.b16 %v1638_v6 }
 0x31c   : > { %v1663_v13 = vpack.c.b16 %v1662_v11, %v1661_v7 }
 0x31e   : > { %1673 = vmatmul.bf16.vlgmr.msrb.gmra.mxu1 %v1663_v13  ;;  %1687 = vmatmul.bf16.vlgmr.msra.gmra.mxu2 %v1663_v13 }
 0x31f   : > { %1701 = vmatmul.bf16.vlgmr.msra.gmra.mxu3 %v1663_v13 }
 0x39b   : > { %v1674_v14 = vpop.f32.mrf.mxu1 }
 0x39c   : > { %v1675_v17 = vadd.f32 %v1674_v14, %v3377_v10 }
 0x39e   : > { %v1707_v18 = vadd.f32 %v1675_v17, %v1653_v16 }
 0x3a0   : > { %v2413_v42 = vmul.f32 -1.442695, %v1707_v18 }
 0x3a1   : > { %v1688_v47 = vpop.f32.mrf.mxu2 }
 0x3a2   : > { %2691 = vpow2.f32 %v2413_v42  ;;  %v1689_v21 = vadd.f32 %v1688_v47, %v3375_v9  ;;  %v1702_v36 = vpop.f32.mrf.mxu3  ;;  %v1652_v47 = vld [vmem:[%s3567_s2 + $0x14] sm:$0xf] }
 0x3a3   : > { %v1676_v26 = vpop.f32.mrf.mxu1  ;;  %v1703_v22 = vadd.f32 %v1702_v36, %v3393_v45 }
 0x3a4   : > { %v1747_v51 = vadd.f32 %v1689_v21, %v1654_v20  ;;  %v1677_v23 = vadd.f32 %v1676_v26, %v3377_v10 }
 0x3a6   : > { %v2415_v31 = vmul.f32 -1.442695, %v1747_v51  ;;  %v1708_v1 = vadd.f32 %v1677_v23, %v1656_v28 }
 0x3a8   : > { %v2692_v33 = vpop.eup %2691  ;;  %2693 = vpow2.f32 %v2415_v31  ;;  %v2414_v29 = vmul.f32 -1.442695, %v1708_v1  ;;  %v1658_v31 = vunpack.c.l.bf16 %v1652_v47 }
 0x3a9   : > { %v1715_v41 = vadd.f32 1.0, %v2692_v33  ;;  %v1690_v8 = vpop.f32.mrf.mxu2 }
 0x3aa   : > { %2695 = vpow2.f32 %v2414_v29  ;;  %v1691_v19 = vadd.f32 %v1690_v8, %v3375_v9  ;;  %v1704_v16 = vpop.f32.mrf.mxu3 }
 0x3ab   : > { %2697 = vrcp.f32 %v1715_v41  ;;  %v1728_v53 = vand.u32 2147483648, %v1715_v41  ;;  %v1726_v9 = vand.u32 2147483647, %v1715_v41  ;;  %vm1722_vm1 = vweird.f32 %v1715_v41 }
 0x3ac   : > { %v1748_v38 = vadd.f32 %v1691_v19, %v1657_v35  ;;  %v1705_v20 = vadd.f32 %v1704_v16, %v3393_v45 }
 0x3ad   : > { %v1729_v25 = vor.u32 1.1754944e-38, %v1728_v53  ;;  %vm1727_vm3 = vcmp.eq.f32.partialorder %v1726_v9, 8.507059e+37 }
 0x3ae   : > { %v2694_v57 = vpop.eup %2693  ;;  %v2416_v5 = vmul.f32 -1.442695, %v1748_v38 }
 0x3af   : > { %v1755_v62 = vadd.f32 1.0, %v2694_v57 }
 0x3b0   : > { %v2696_v43 = vpop.eup %2695  ;;  %2699 = vpow2.f32 %v2416_v5 }
 0x3b1   : > { %v2698_v10 = vpop.eup %2697  ;;  %2701 = vrcp.f32 %v1755_v62  ;;  %v1716_v48 = vadd.f32 1.0, %v2696_v43  ;;  %v1768_v37 = vand.u32 2147483648, %v1755_v62  ;;  %v1766_v0 = vand.u32 2147483647, %v1755_v62 }
 0x3b2   : > { %v1718_v15 = vmul.f32 %v2698_v10, %v1715_v41  ;;  %vm1723_vm0 = vweird.f32 %v2698_v10  ;;  %vm1762_vm5 = vweird.f32 %v1755_v62 }
 0x3b3   : > { %2703 = vrcp.f32 %v1716_v48  ;;  %vm1724_vm2 = vmor %vm1722_vm1, %vm1723_vm0  ;;  %v1743_v6 = vand.u32 2147483648, %v1716_v48  ;;  %v1741_v11 = vand.u32 2147483647, %v1716_v48  ;;  %v1769_v13 = vor.u32 1.1754944e-38, %v1768_v37 }
 0x3b4   : > { %v1719_v52 = vsub.f32 1.0, %v1718_v15  ;;  %vm1767_vm8 = vcmp.eq.f32.partialorder %v1766_v0, 8.507059e+37  ;;  %vm1737_vm9 = vweird.f32 %v1716_v48 }
 0x3b5   : > { %v1744_v46 = vor.u32 1.1754944e-38, %v1743_v6  ;;  %vm1742_vm11 = vcmp.eq.f32.partialorder %v1741_v11, 8.507059e+37 }
 0x3b6   : > { %v2700_v40 = vpop.eup %2699  ;;  %v1720_v55 = vmul.f32 %v2698_v10, %v1719_v52 }
 0x3b7   : > { %v2702_v58 = vpop.eup %2701  ;;  %v3575_v59 = vadd.f32 1.0, %v2700_v40 }
 0x3b8   : > { %v1758_v56 = vmul.f32 %v2702_v58, %v1755_v62  ;;  %v1721_v50 = vadd.f32 %v2698_v10, %v1720_v55  ;;  %vm1763_vm4 = vweird.f32 %v2702_v58 }
 0x3b9   : > { %2705 = vrcp.f32 %v3575_v59  ;;  %v2704_v61 = vpop.eup %2703  ;;  %vm1764_vm6 = vmor %vm1762_vm5, %vm1763_vm4  ;;  %v1783_v23 = vand.u32 2147483648, %v3575_v59  ;;  %vm1777_vm13 = vweird.f32 %v3575_v59  ;;  %v1781_v41 = vand.u32 2147483647, %v3575_v59 }
 0x3ba   : > { %v1759_v24 = vsub.f32 1.0, %v1758_v56  ;;  %v1725_v34 = vsel %vm1724_vm2, %v2698_v10, %v1721_v50  ;;  %v1733_v49 = vmul.f32 %v2704_v61, %v1716_v48  ;;  %vm1738_vm7 = vweird.f32 %v2704_v61 }
 0x3bb   : > { %v1730_v44 = vsel %vm1727_vm3, %v1729_v25, %v1725_v34  ;;  %vm1739_vm10 = vmor %vm1737_vm9, %vm1738_vm7  ;;  %v1784_v57 = vor.u32 1.1754944e-38, %v1783_v23  ;;  %vm1782_vm15 = vcmp.eq.f32.partialorder %v1781_v41, 8.507059e+37 }
 0x3bc   : > { %v1760_v54 = vmul.f32 %v2702_v58, %v1759_v24  ;;  %v1787_v60 = vmul.f32 %v1730_v44, %v1703_v22  ;;  %v1734_v2 = vsub.f32 1.0, %v1733_v49 }
 0x3be   : > { %v1761_v39 = vadd.f32 %v2702_v58, %v1760_v54  ;;  %v1789_v4 = vadd.f32 %v1787_v60, %v1655_v12  ;;  %v1735_v7 = vmul.f32 %v2704_v61, %v1734_v2 }
 0x3bf   : > { %v2706_v27 = vpop.eup %2705 }
 0x3c0   : > { %v1765_v32 = vsel %vm1764_vm6, %v2702_v58, %v1761_v39  ;;  %2707 = vtanh.f32 %v1789_v4  ;;  %v1773_v14 = vmul.f32 %v2706_v27, %v3575_v59  ;;  %v1736_v17 = vadd.f32 %v2704_v61, %v1735_v7 }
 0x3c1   : > { %v1770_v18 = vsel %vm1767_vm8, %v1769_v13, %v1765_v32  ;;  %vm1778_vm12 = vweird.f32 %v2706_v27 }
 0x3c2   : > { %v1774_v42 = vsub.f32 1.0, %v1773_v14  ;;  %v1740_v21 = vsel %vm1739_vm10, %v2704_v61, %v1736_v17  ;;  %v1793_v28 = vsub.f32 1.0, %v1770_v18  ;;  %v1797_v45 = vmul.f32 %v1770_v18, %v3549_v63  ;;  %vm1779_vm14 = vmor %vm1777_vm13, %vm1778_vm12 }
 0x3c3   : > { %v1745_v51 = vsel %vm1742_vm11, %v1744_v46, %v1740_v21 }
 0x3c4   : > { %v1775_v26 = vmul.f32 %v2706_v27, %v1774_v42  ;;  %v1788_v1 = vmul.f32 %v1745_v51, %v1705_v20 }
 0x3c6   : > { %v2708_v33 = vpop.eup %2707  ;;  %v1776_v29 = vadd.f32 %v2706_v27, %v1775_v26  ;;  %v1790_v35 = vadd.f32 %v1788_v1, %v1658_v31 }
 0x3c7   : > { %v1795_v8 = vmul.f32 %v2708_v33, %v1793_v28 }
 0x3c8   : > { %v1780_v19 = vsel %vm1779_vm14, %v2706_v27, %v1776_v29  ;;  %2709 = vtanh.f32 %v1790_v35 }
 0x3c9   : > { %v1799_v38 = vadd.f32 %v1797_v45, %v1795_v8  ;;  %v1785_v5 = vsel %vm1782_vm15, %v1784_v57, %v1780_v19 }
 0x3ca   : > { %v1794_v62 = vsub.f32 1.0, %v1785_v5  ;;  %v1798_v15 = vmul.f32 %v1785_v5, %v3553_v3 }
 0x3cb   : > { %1808 = vst [vmem:[#allocation3] sm:$0xff] %v1799_v38 }
 0x3ce   : > { %v2710_v43 = vpop.eup %2709 }
 0x3cf   : > { %v1796_v10 = vmul.f32 %v2710_v43, %v1794_v62 }
 0x3d1   : > { %v1800_v48 = vadd.f32 %v1798_v15, %v1796_v10  ;;  %1816 = sbr.rel (!%p2941_p11) target bundleno = 997 (0x3e5), region = 52 }
 0x3d3   : > { %v2534_v52 = vpack.c.bf16 %v1800_v48, %v1799_v38  ;;  %1809 = vst [vmem:[#allocation3 + $0x8] sm:$0xff] %v1800_v48 }
 0x3d5   : > { %2535 = vst [vmem:[%s1805_s22] sm:$0xff] %v2534_v52  }
 0x3dc   : > { %v1842_v63 = vld [vmem:[%s2997_s9] sm:$0xf]  ;;  %v1844_v3 = vld [vmem:[%s2997_s9 + $0x4] sm:$0xf]  ;;  %v1846_v53 = vld [vmem:[%s2997_s9 + $0x8] sm:$0xf] }
 0x3dd   : > { %1843 = vst [vmem:[%s1825_s8] sm:$0xf] %v1842_v63  ;;  %v1848_v40 = vld [vmem:[%s2997_s9 + $0xc] sm:$0xf]  ;;  %v1850_v36 = vld [vmem:[%s2997_s9 + $0x10] sm:$0xf] }
 0x3de   : > { %1845 = vst [vmem:[%s1825_s8 + $0x8] sm:$0xf] %v1844_v3  ;;  %v1852_v55 = vld [vmem:[%s2997_s9 + $0x14] sm:$0xf]  ;;  %v1854_v9 = vld [vmem:[%s2997_s9 + $0x18] sm:$0xf] }
 0x3df   : > { %1847 = vst [vmem:[%s1825_s8 + $0x10] sm:$0xf] %v1846_v53  ;;  %v1856_v58 = vld [vmem:[%s2997_s9 + $0x1c] sm:$0xf] }
 0x3e0   : > { %1849 = vst [vmem:[%s1825_s8 + $0x18] sm:$0xf] %v1848_v40 }
 0x3e1   : > { %1851 = vst [vmem:[%s1825_s8 + $0x20] sm:$0xf] %v1850_v36 }
 0x3e2   : > { %1853 = vst [vmem:[%s1825_s8 + $0x28] sm:$0xf] %v1852_v55 }
 0x3e3   : > { %1855 = vst [vmem:[%s1825_s8 + $0x30] sm:$0xf] %v1854_v9 }
 0x3e4   : > { %1857 = vst [vmem:[%s1825_s8 + $0x38] sm:$0xf] %v1856_v58 }
 0x3e5 PF: > { %s18_s27 = sadd.s32 1, %s2823_s27   ;;  %s3665_s24 = sld [smem:[#allocation8_spill]] }
 0x3e6   : > { %p15_p7 = scmp.ge.s32.totalorder %s18_s27, 6   ;;  %s3666_s22 = sld [smem:[#allocation13_spill]] }
 0x3e7   : > { %s3667_s23 = sld [smem:[#allocation9_spill]]  ;;  %s3671_s18 = smov %s2791_s19 }
 0x3e8   : > { %s3668_s14 = sld [smem:[#allocation10_spill]]  ;;  %s3672_s19 = smov %s2948_s6 }
 0x3e9   : > { %s3669_s25 = sld [smem:[#allocation11_spill]]  ;;  %s3673_s20 = smov %s2799_s21 }
 0x3ea   : > { %s3670_s26 = sld [smem:[#allocation12_spill]]  ;;  %17 = sbr.rel (!%p15_p7) target bundleno = 10 (0xa), region = 145 }
 0x3eb   : > { %s3674_s21 = smov %s3665_s24 }
 0x3ee   : > { %s3675_s24 = smov %s3668_s14 }
 0x3ef   :  { %1907 = vsyncpa [#allocation5], 1 }
 0x3f0   :  { %1909 = vsyncpa [#allocation5 + $0x1], 1 }

</bundles_post_ra>
